<compile_context>
chip_gen: v7x
topology: tpu7x:2x2x1
jax: 0.10.0
libtpu: 0.0.40
codegen_flags: <defaults>
</compile_context>

<pallas_src>
import math
import functools

import jax
import jax.numpy as jnp
from jax import lax
from jax.experimental import pallas as pl
from jax.experimental.pallas import tpu as pltpu

# ---- small synthetic BERT config (mirrors the module's hyper-parameter roles)
VOCAB = 128          # vocab_size
HIDDEN = 64          # hidden_size
N_LAYERS = 2         # num_hidden_layers
N_HEADS = 2          # num_attention_heads
HEAD_DIM = HIDDEN // N_HEADS
INTERMEDIATE = 128   # intermediate_size
MAX_POS = 32         # max_position_embeddings (relative_key_query distances)
LN_EPS = 1e-12
INIT_RANGE = 0.02
BATCH = 2
SEQ = 16

_BF16 = jnp.bfloat16
_F32 = jnp.float32


# --------------------------------------------------------------------------
# In-kernel helpers (pure functions on values)
# --------------------------------------------------------------------------
def _ln(x, g, b, eps=LN_EPS):
    mu = jnp.mean(x, axis=-1, keepdims=True)
    xc = x - mu
    var = jnp.mean(xc * xc, axis=-1, keepdims=True)
    return xc * lax.rsqrt(var + eps) * g + b


def _gelu(x):  # exact (erf) gelu, matching HF hidden_act='gelu'
    return 0.5 * x * (1.0 + lax.erf(x * (1.0 / math.sqrt(2.0))))


def _mm(a, w_bf16):  # bf16 operands on the MXU, f32 accumulation
    return jnp.dot(a.astype(_BF16), w_bf16, preferred_element_type=_F32)


# --------------------------------------------------------------------------
# The single fused kernel: one invocation == whole forward (batch flattened).
# --------------------------------------------------------------------------
def _bert_kernel(x_ref, bias_ref,
                 mlng_ref, mlnb_ref, tte_ref, elng_ref, elnb_ref,
                 wqkv_ref, bqkv_ref, pos_ref,
                 wo_ref, bo_ref, ln1g_ref, ln1b_ref,
                 wi_ref, bi_ref, wo2_ref, bo2_ref, ln2g_ref, ln2b_ref,
                 et_ref, o_ref, *, batch, seq_len):
    L = seq_len
    scale = 1.0 / math.sqrt(HEAD_DIM)

    # embeddings = Model.layer_norm(input_embeddings) ; + token_type[0] ; emb LN
    x = x_ref[...]                                          # (B*L, HIDDEN) f32
    x = _ln(x, mlng_ref[...], mlnb_ref[...])
    x = x + tte_ref[...]
    x = _ln(x, elng_ref[...], elnb_ref[...])

    h = x
    for l in range(N_LAYERS):
        # ---- fused QKV projection: one (B*L,H)x(H,3H) MXU matmul ----------
        qkv = _mm(h, wqkv_ref[l]) + bqkv_ref[pl.ds(l, 1)]   # (B*L, 3H) f32
        qkv_b16 = qkv.astype(_BF16)                         # single cast pass
        pos = pos_ref[l]                                    # (L, L, D) bf16

        # attention: per-batch blocks (keys must not cross batch rows)
        ctx_rows = []
        for b in range(batch):
            r0 = b * L
            qkv_bb = qkv_b16[r0:r0 + L]                     # (L, 3H) sublane slice
            bias_b = bias_ref[pl.ds(b, 1)]                  # (1, L) additive mask

            head_ctx = []
            for hh in range(N_HEADS):
                c0 = hh * HEAD_DIM
                qb = qkv_bb[:, c0:c0 + HEAD_DIM]                            # (L, D)
                kb = qkv_bb[:, HIDDEN + c0:HIDDEN + c0 + HEAD_DIM]          # (L, D)
                vb = qkv_bb[:, 2 * HIDDEN + c0:2 * HIDDEN + c0 + HEAD_DIM]  # (L, D)

                # content scores Q @ K^T on the MXU
                scores = lax.dot_general(qb, kb, (((1,), (1,)), ((), ())),
                                         preferred_element_type=_F32)      # (L, L)
                # rel_q + rel_k fused on the VPU:
                #   sum_d (q[l,d] + k[r,d]) * pos[l,r,d]
                qk = qb[:, None, :] + kb[None, :, :]                         # (L,L,D) bf16
                rel = jnp.sum((qk * pos).astype(_F32), axis=-1)              # (L, L) f32

                s = (scores + rel) * scale + bias_b
                m = jnp.max(s, axis=-1, keepdims=True)
                p = jnp.exp(s - m)
                attn = p * pl.reciprocal(jnp.sum(p, axis=-1, keepdims=True),
                                         approx=True)
                ctx = jnp.dot(attn.astype(_BF16), vb,
                              preferred_element_type=_F32)                   # (L, D)
                head_ctx.append(ctx)
            ctx_rows.append(jnp.concatenate(head_ctx, axis=-1))              # (L, H)

        ctx_all = jnp.concatenate(ctx_rows, axis=0)                          # (B*L, H)

        # single merged output projection for all heads / all batch rows
        attn_out = _mm(ctx_all, wo_ref[l]) + bo_ref[pl.ds(l, 1)]
        # residual fused into layernorm
        h1 = _ln(attn_out + h, ln1g_ref[pl.ds(l, 1)], ln1b_ref[pl.ds(l, 1)])

        inter = _gelu(_mm(h1, wi_ref[l]) + bi_ref[pl.ds(l, 1)])              # (B*L, I)
        out = _mm(inter, wo2_ref[l]) + bo2_ref[pl.ds(l, 1)]                  # (B*L, H)
        h = _ln(out + h1, ln2g_ref[pl.ds(l, 1)], ln2b_ref[pl.ds(l, 1)])

    # tied logits: pre-transposed E (HIDDEN, VOCAB) => plain matmul, lane-dense out
    o_ref[...] = jnp.dot(h.astype(_BF16), et_ref[...],
                         preferred_element_type=_F32)                        # (B*L, VOCAB)


# --------------------------------------------------------------------------
# Wrapper: one pallas_call, single grid step, everything VMEM-resident.
# --------------------------------------------------------------------------
def _full_spec(shape):
    zeros = (0,) * len(shape)
    return pl.BlockSpec(shape, lambda i: zeros)


def bert_forward(params, input_ids, attention_mask):
    B, L = input_ids.shape

    # glue: embedding lookup + extended attention mask + distance gather
    x = params["E"][input_ids].reshape(B * L, HIDDEN)            # (B*L, H) f32
    mask_f = attention_mask.astype(_F32)
    bias = (1.0 - mask_f) * jnp.finfo(_F32).min                  # (B, L)
    dist_idx = (jnp.arange(L)[:, None] - jnp.arange(L)[None, :]) + MAX_POS - 1
    pos = params["dist_emb"][:, dist_idx].astype(_BF16)          # (NL, L, L, D)

    flat_in = [
        x, bias,
        params["mln_g"], params["mln_b"], params["tte0"],
        params["eln_g"], params["eln_b"],
        params["wqkv"], params["bqkv"], pos,
        params["wo"], params["bo"], params["ln1_g"], params["ln1_b"],
        params["wi"], params["bi"], params["wo2"], params["bo2"],
        params["ln2_g"], params["ln2_b"],
        params["Et_bf16"],
    ]
    in_specs = [_full_spec(a.shape) for a in flat_in]

    out = pl.pallas_call(
        functools.partial(_bert_kernel, batch=B, seq_len=L),
        out_shape=jax.ShapeDtypeStruct((B * L, VOCAB), _F32),
        grid=(1,),
        in_specs=in_specs,
        out_specs=_full_spec((B * L, VOCAB)),                    # lane-dense (128)
        compiler_params=pltpu.CompilerParams(
            dimension_semantics=("arbitrary",)),
    )(*flat_in)
    return out.reshape(B, L, VOCAB)


bert_forward = jax.jit(bert_forward)


# --------------------------------------------------------------------------
# Parameter init (deterministic; packed layout the kernel consumes)
# --------------------------------------------------------------------------
def init_params(key):
    keys = iter(jax.random.split(key, 16))

    def nrm(shape):
        return INIT_RANGE * jax.random.normal(next(keys), shape, _F32)

    E = nrm((VOCAB, HIDDEN)).at[0].set(0.0)          # input_embeddings, padding_idx=0

    wq = nrm((N_LAYERS, HIDDEN, HIDDEN))
    wk = nrm((N_LAYERS, HIDDEN, HIDDEN))
    wv = nrm((N_LAYERS, HIDDEN, HIDDEN))
    wqkv = jnp.concatenate([wq, wk, wv], axis=-1)    # (NL, H, 3H)

    return {
        "E": E,                                      # f32 for the lookup
        "Et_bf16": E.T.astype(_BF16),                # tied logits operand, pre-transposed
        "mln_g": jnp.ones((1, HIDDEN), _F32),        # Model.layer_norm
        "mln_b": jnp.zeros((1, HIDDEN), _F32),
        "tte0": nrm((1, HIDDEN)),                    # token_type_embeddings[0]
        "eln_g": jnp.ones((1, HIDDEN), _F32),        # BertEmbeddings.LayerNorm
        "eln_b": jnp.zeros((1, HIDDEN), _F32),
        "wqkv": wqkv.astype(_BF16),
        "bqkv": jnp.zeros((N_LAYERS, 3 * HIDDEN), _F32),
        "dist_emb": nrm((N_LAYERS, 2 * MAX_POS - 1, HEAD_DIM)),  # distance_embedding
        "wo": nrm((N_LAYERS, HIDDEN, HIDDEN)).astype(_BF16),
        "bo": jnp.zeros((N_LAYERS, HIDDEN), _F32),
        "ln1_g": jnp.ones((N_LAYERS, HIDDEN), _F32),
        "ln1_b": jnp.zeros((N_LAYERS, HIDDEN), _F32),
        "wi": nrm((N_LAYERS, HIDDEN, INTERMEDIATE)).astype(_BF16),
        "bi": jnp.zeros((N_LAYERS, INTERMEDIATE), _F32),
        "wo2": nrm((N_LAYERS, INTERMEDIATE, HIDDEN)).astype(_BF16),
        "bo2": jnp.zeros((N_LAYERS, HIDDEN), _F32),
        "ln2_g": jnp.ones((N_LAYERS, HIDDEN), _F32),
        "ln2_b": jnp.zeros((N_LAYERS, HIDDEN), _F32),
    }


if __name__ == "__main__":
    key = jax.random.PRNGKey(0)
    k_param, k_ids = jax.random.split(key)
    params = init_params(k_param)

    input_ids = jax.random.randint(k_ids, (BATCH, SEQ), 0, VOCAB, dtype=jnp.int32)
    attention_mask = jnp.ones((BATCH, SEQ), jnp.int32).at[1, SEQ - 3:].set(0)

    logits = bert_forward(params, input_ids, attention_mask)
    jax.block_until_ready(logits)
    assert logits.shape == (BATCH, SEQ, VOCAB)
    assert bool(jnp.all(jnp.isfinite(logits)))
    print("KERNEL_OK")
</pallas_src>

<mosaic_0001>
module attributes {stable_mosaic.version = 11 : i64} {
  func.func @_bert_kernel(%arg0: i32, %arg1: memref<32x64xf32, #tpu.memory_space<vmem>>, %arg2: memref<2x16xf32, #tpu.memory_space<vmem>>, %arg3: memref<1x64xf32, #tpu.memory_space<vmem>>, %arg4: memref<1x64xf32, #tpu.memory_space<vmem>>, %arg5: memref<1x64xf32, #tpu.memory_space<vmem>>, %arg6: memref<1x64xf32, #tpu.memory_space<vmem>>, %arg7: memref<1x64xf32, #tpu.memory_space<vmem>>, %arg8: memref<2x64x192xbf16, #tpu.memory_space<vmem>>, %arg9: memref<2x192xf32, #tpu.memory_space<vmem>>, %arg10: memref<2x16x16x32xbf16, #tpu.memory_space<vmem>>, %arg11: memref<2x64x64xbf16, #tpu.memory_space<vmem>>, %arg12: memref<2x64xf32, #tpu.memory_space<vmem>>, %arg13: memref<2x64xf32, #tpu.memory_space<vmem>>, %arg14: memref<2x64xf32, #tpu.memory_space<vmem>>, %arg15: memref<2x64x128xbf16, #tpu.memory_space<vmem>>, %arg16: memref<2x128xf32, #tpu.memory_space<vmem>>, %arg17: memref<2x128x64xbf16, #tpu.memory_space<vmem>>, %arg18: memref<2x64xf32, #tpu.memory_space<vmem>>, %arg19: memref<2x64xf32, #tpu.memory_space<vmem>>, %arg20: memref<2x64xf32, #tpu.memory_space<vmem>>, %arg21: memref<64x128xbf16, #tpu.memory_space<vmem>>, %arg22: memref<32x128xf32, #tpu.memory_space<vmem>>) attributes {dimension_semantics = [#tpu.dimension_semantics<arbitrary>], iteration_bounds = array<i64: 1>, scalar_prefetch = 0 : i64, scratch_operands = 0 : i64, tpu.core_type = #tpu.core_type<tc>, window_params = [{pipeline_mode = #tpu.pipeline_mode<synchronous>, transform_indices = @transform_0, window_bounds = array<i64: 32, 64>}, {pipeline_mode = #tpu.pipeline_mode<synchronous>, transform_indices = @transform_1, window_bounds = array<i64: 2, 16>}, {pipeline_mode = #tpu.pipeline_mode<synchronous>, transform_indices = @transform_2, window_bounds = array<i64: 1, 64>}, {pipeline_mode = #tpu.pipeline_mode<synchronous>, transform_indices = @transform_3, window_bounds = array<i64: 1, 64>}, {pipeline_mode = #tpu.pipeline_mode<synchronous>, transform_indices = @transform_4, window_bounds = array<i64: 1, 64>}, {pipeline_mode = #tpu.pipeline_mode<synchronous>, transform_indices = @transform_5, window_bounds = array<i64: 1, 64>}, {pipeline_mode = #tpu.pipeline_mode<synchronous>, transform_indices = @transform_6, window_bounds = array<i64: 1, 64>}, {pipeline_mode = #tpu.pipeline_mode<synchronous>, transform_indices = @transform_7, window_bounds = array<i64: 2, 64, 192>}, {pipeline_mode = #tpu.pipeline_mode<synchronous>, transform_indices = @transform_8, window_bounds = array<i64: 2, 192>}, {pipeline_mode = #tpu.pipeline_mode<synchronous>, transform_indices = @transform_9, window_bounds = array<i64: 2, 16, 16, 32>}, {pipeline_mode = #tpu.pipeline_mode<synchronous>, transform_indices = @transform_10, window_bounds = array<i64: 2, 64, 64>}, {pipeline_mode = #tpu.pipeline_mode<synchronous>, transform_indices = @transform_11, window_bounds = array<i64: 2, 64>}, {pipeline_mode = #tpu.pipeline_mode<synchronous>, transform_indices = @transform_12, window_bounds = array<i64: 2, 64>}, {pipeline_mode = #tpu.pipeline_mode<synchronous>, transform_indices = @transform_13, window_bounds = array<i64: 2, 64>}, {pipeline_mode = #tpu.pipeline_mode<synchronous>, transform_indices = @transform_14, window_bounds = array<i64: 2, 64, 128>}, {pipeline_mode = #tpu.pipeline_mode<synchronous>, transform_indices = @transform_15, window_bounds = array<i64: 2, 128>}, {pipeline_mode = #tpu.pipeline_mode<synchronous>, transform_indices = @transform_16, window_bounds = array<i64: 2, 128, 64>}, {pipeline_mode = #tpu.pipeline_mode<synchronous>, transform_indices = @transform_17, window_bounds = array<i64: 2, 64>}, {pipeline_mode = #tpu.pipeline_mode<synchronous>, transform_indices = @transform_18, window_bounds = array<i64: 2, 64>}, {pipeline_mode = #tpu.pipeline_mode<synchronous>, transform_indices = @transform_19, window_bounds = array<i64: 2, 64>}, {pipeline_mode = #tpu.pipeline_mode<synchronous>, transform_indices = @transform_20, window_bounds = array<i64: 64, 128>}, {pipeline_mode = #tpu.pipeline_mode<synchronous>, transform_indices = @transform_21, window_bounds = array<i64: 32, 128>}]} {
    %c0 = arith.constant 0 : index
    %c0_0 = arith.constant 0 : index
    %0 = vector.load %arg1[%c0, %c0_0] : memref<32x64xf32, #tpu.memory_space<vmem>>, vector<32x64xf32>
    %c0_1 = arith.constant 0 : index
    %c0_2 = arith.constant 0 : index
    %1 = vector.load %arg3[%c0_1, %c0_2] : memref<1x64xf32, #tpu.memory_space<vmem>>, vector<1x64xf32>
    %c0_3 = arith.constant 0 : index
    %c0_4 = arith.constant 0 : index
    %2 = vector.load %arg4[%c0_3, %c0_4] : memref<1x64xf32, #tpu.memory_space<vmem>>, vector<1x64xf32>
    %cst = arith.constant dense<0.000000e+00> : vector<32xf32>
    %3 = vector.multi_reduction <add>, %0, %cst [1] : vector<32x64xf32> to vector<32xf32>
    %4 = vector.shape_cast %3 : vector<32xf32> to vector<32x1xf32>
    %cst_5 = arith.constant 6.400000e+01 : f32
    %5 = vector.broadcast %cst_5 : f32 to vector<32x1xf32>
    %6 = arith.divf %4, %5 : vector<32x1xf32>
    %7 = vector.broadcast %6 : vector<32x1xf32> to vector<32x64xf32>
    %8 = arith.subf %0, %7 : vector<32x64xf32>
    %9 = arith.mulf %8, %8 : vector<32x64xf32>
    %cst_6 = arith.constant dense<0.000000e+00> : vector<32xf32>
    %10 = vector.multi_reduction <add>, %9, %cst_6 [1] : vector<32x64xf32> to vector<32xf32>
    %11 = vector.shape_cast %10 : vector<32xf32> to vector<32x1xf32>
    %cst_7 = arith.constant 6.400000e+01 : f32
    %12 = vector.broadcast %cst_7 : f32 to vector<32x1xf32>
    %13 = arith.divf %11, %12 : vector<32x1xf32>
    %cst_8 = arith.constant 9.99999996E-13 : f32
    %14 = vector.broadcast %cst_8 : f32 to vector<32x1xf32>
    %15 = arith.addf %13, %14 : vector<32x1xf32>
    %16 = math.rsqrt %15 : vector<32x1xf32>
    %17 = vector.broadcast %16 : vector<32x1xf32> to vector<32x64xf32>
    %18 = arith.mulf %8, %17 : vector<32x64xf32>
    %19 = vector.broadcast %1 : vector<1x64xf32> to vector<32x64xf32>
    %20 = arith.mulf %18, %19 : vector<32x64xf32>
    %21 = vector.broadcast %2 : vector<1x64xf32> to vector<32x64xf32>
    %22 = arith.addf %20, %21 : vector<32x64xf32>
    %c0_9 = arith.constant 0 : index
    %c0_10 = arith.constant 0 : index
    %23 = vector.load %arg5[%c0_9, %c0_10] : memref<1x64xf32, #tpu.memory_space<vmem>>, vector<1x64xf32>
    %24 = vector.broadcast %23 : vector<1x64xf32> to vector<32x64xf32>
    %25 = arith.addf %22, %24 : vector<32x64xf32>
    %c0_11 = arith.constant 0 : index
    %c0_12 = arith.constant 0 : index
    %26 = vector.load %arg6[%c0_11, %c0_12] : memref<1x64xf32, #tpu.memory_space<vmem>>, vector<1x64xf32>
    %c0_13 = arith.constant 0 : index
    %c0_14 = arith.constant 0 : index
    %27 = vector.load %arg7[%c0_13, %c0_14] : memref<1x64xf32, #tpu.memory_space<vmem>>, vector<1x64xf32>
    %cst_15 = arith.constant dense<0.000000e+00> : vector<32xf32>
    %28 = vector.multi_reduction <add>, %25, %cst_15 [1] : vector<32x64xf32> to vector<32xf32>
    %29 = vector.shape_cast %28 : vector<32xf32> to vector<32x1xf32>
    %cst_16 = arith.constant 6.400000e+01 : f32
    %30 = vector.broadcast %cst_16 : f32 to vector<32x1xf32>
    %31 = arith.divf %29, %30 : vector<32x1xf32>
    %32 = vector.broadcast %31 : vector<32x1xf32> to vector<32x64xf32>
    %33 = arith.subf %25, %32 : vector<32x64xf32>
    %34 = arith.mulf %33, %33 : vector<32x64xf32>
    %cst_17 = arith.constant dense<0.000000e+00> : vector<32xf32>
    %35 = vector.multi_reduction <add>, %34, %cst_17 [1] : vector<32x64xf32> to vector<32xf32>
    %36 = vector.shape_cast %35 : vector<32xf32> to vector<32x1xf32>
    %cst_18 = arith.constant 6.400000e+01 : f32
    %37 = vector.broadcast %cst_18 : f32 to vector<32x1xf32>
    %38 = arith.divf %36, %37 : vector<32x1xf32>
    %cst_19 = arith.constant 9.99999996E-13 : f32
    %39 = vector.broadcast %cst_19 : f32 to vector<32x1xf32>
    %40 = arith.addf %38, %39 : vector<32x1xf32>
    %41 = math.rsqrt %40 : vector<32x1xf32>
    %42 = vector.broadcast %41 : vector<32x1xf32> to vector<32x64xf32>
    %43 = arith.mulf %33, %42 : vector<32x64xf32>
    %44 = vector.broadcast %26 : vector<1x64xf32> to vector<32x64xf32>
    %45 = arith.mulf %43, %44 : vector<32x64xf32>
    %46 = vector.broadcast %27 : vector<1x64xf32> to vector<32x64xf32>
    %47 = arith.addf %45, %46 : vector<32x64xf32>
    %c0_20 = arith.constant 0 : index
    %c0_21 = arith.constant 0 : index
    %c0_22 = arith.constant 0 : index
    %48 = vector.load %arg8[%c0_20, %c0_21, %c0_22] : memref<2x64x192xbf16, #tpu.memory_space<vmem>>, vector<1x64x192xbf16>
    %49 = vector.shape_cast %48 : vector<1x64x192xbf16> to vector<64x192xbf16>
    %50 = arith.truncf %47 : vector<32x64xf32> to vector<32x64xbf16>
    %cst_23 = arith.constant dense<0.000000e+00> : vector<32x192xf32>
    %51 = tpu.matmul %50, %49, %cst_23 {dimension_numbers = #tpu.dot_dimension_numbers<[1], [0], [0], [1], [0, 0, 1, 1], [], []>} : vector<32x64xbf16>, vector<64x192xbf16>, vector<32x192xf32> -> vector<32x192xf32>
    %c0_24 = arith.constant 0 : index
    %c0_25 = arith.constant 0 : index
    %52 = vector.load %arg9[%c0_24, %c0_25] : memref<2x192xf32, #tpu.memory_space<vmem>>, vector<1x192xf32>
    %53 = vector.broadcast %52 : vector<1x192xf32> to vector<32x192xf32>
    %54 = arith.addf %51, %53 : vector<32x192xf32>
    %55 = arith.truncf %54 : vector<32x192xf32> to vector<32x192xbf16>
    %c0_26 = arith.constant 0 : index
    %c0_27 = arith.constant 0 : index
    %c0_28 = arith.constant 0 : index
    %c0_29 = arith.constant 0 : index
    %56 = vector.load %arg10[%c0_26, %c0_27, %c0_28, %c0_29] : memref<2x16x16x32xbf16, #tpu.memory_space<vmem>>, vector<1x16x16x32xbf16>
    %57 = vector.shape_cast %56 : vector<1x16x16x32xbf16> to vector<16x16x32xbf16>
    %58 = vector.extract_strided_slice %55 {offsets = [0, 0], sizes = [16, 192], strides = [1, 1]} : vector<32x192xbf16> to vector<16x192xbf16>
    %c0_30 = arith.constant 0 : index
    %c0_31 = arith.constant 0 : index
    %59 = vector.load %arg2[%c0_30, %c0_31] : memref<2x16xf32, #tpu.memory_space<vmem>>, vector<1x16xf32>
    %60 = vector.extract_strided_slice %58 {offsets = [0, 0], sizes = [16, 32], strides = [1, 1]} : vector<16x192xbf16> to vector<16x32xbf16>
    %61 = vector.extract_strided_slice %58 {offsets = [0, 64], sizes = [16, 32], strides = [1, 1]} : vector<16x192xbf16> to vector<16x32xbf16>
    %62 = vector.extract_strided_slice %58 {offsets = [0, 128], sizes = [16, 32], strides = [1, 1]} : vector<16x192xbf16> to vector<16x32xbf16>
    %cst_32 = arith.constant dense<0.000000e+00> : vector<16x16xf32>
    %63 = tpu.matmul %60, %61, %cst_32 {dimension_numbers = #tpu.dot_dimension_numbers<[1], [1], [0], [0], [0, 0, 1, 0], [], []>} : vector<16x32xbf16>, vector<16x32xbf16>, vector<16x16xf32> -> vector<16x16xf32>
    %64 = vector.shape_cast %60 : vector<16x32xbf16> to vector<16x1x32xbf16>
    %65 = vector.shape_cast %61 : vector<16x32xbf16> to vector<1x16x32xbf16>
    %66 = vector.broadcast %64 : vector<16x1x32xbf16> to vector<16x16x32xbf16>
    %67 = vector.broadcast %65 : vector<1x16x32xbf16> to vector<16x16x32xbf16>
    %68 = arith.addf %66, %67 : vector<16x16x32xbf16>
    %69 = arith.mulf %68, %57 : vector<16x16x32xbf16>
    %70 = arith.extf %69 : vector<16x16x32xbf16> to vector<16x16x32xf32>
    %cst_33 = arith.constant dense<0.000000e+00> : vector<16x16xf32>
    %71 = vector.multi_reduction <add>, %70, %cst_33 [2] : vector<16x16x32xf32> to vector<16x16xf32>
    %72 = arith.addf %63, %71 : vector<16x16xf32>
    %cst_34 = arith.constant 0.176776692 : f32
    %73 = vector.broadcast %cst_34 : f32 to vector<16x16xf32>
    %74 = arith.mulf %72, %73 : vector<16x16xf32>
    %75 = vector.broadcast %59 : vector<1x16xf32> to vector<16x16xf32>
    %76 = arith.addf %74, %75 : vector<16x16xf32>
    %cst_35 = arith.constant dense<0xFF800000> : vector<16xf32>
    %77 = vector.multi_reduction <maximumf>, %76, %cst_35 [1] : vector<16x16xf32> to vector<16xf32>
    %78 = vector.shape_cast %77 : vector<16xf32> to vector<16x1xf32>
    %79 = vector.broadcast %78 : vector<16x1xf32> to vector<16x16xf32>
    %80 = arith.subf %76, %79 : vector<16x16xf32>
    %81 = math.exp %80 : vector<16x16xf32>
    %cst_36 = arith.constant dense<0.000000e+00> : vector<16xf32>
    %82 = vector.multi_reduction <add>, %81, %cst_36 [1] : vector<16x16xf32> to vector<16xf32>
    %83 = vector.shape_cast %82 : vector<16xf32> to vector<16x1xf32>
    %84 = tpu.reciprocal %83 {approx = true} : vector<16x1xf32> -> vector<16x1xf32>
    %85 = vector.broadcast %84 : vector<16x1xf32> to vector<16x16xf32>
    %86 = arith.mulf %81, %85 : vector<16x16xf32>
    %87 = arith.truncf %86 : vector<16x16xf32> to vector<16x16xbf16>
    %cst_37 = arith.constant dense<0.000000e+00> : vector<16x32xf32>
    %88 = tpu.matmul %87, %62, %cst_37 {dimension_numbers = #tpu.dot_dimension_numbers<[1], [0], [0], [1], [0, 0, 1, 1], [], []>} : vector<16x16xbf16>, vector<16x32xbf16>, vector<16x32xf32> -> vector<16x32xf32>
    %89 = vector.extract_strided_slice %58 {offsets = [0, 32], sizes = [16, 32], strides = [1, 1]} : vector<16x192xbf16> to vector<16x32xbf16>
    %90 = vector.extract_strided_slice %58 {offsets = [0, 96], sizes = [16, 32], strides = [1, 1]} : vector<16x192xbf16> to vector<16x32xbf16>
    %91 = vector.extract_strided_slice %58 {offsets = [0, 160], sizes = [16, 32], strides = [1, 1]} : vector<16x192xbf16> to vector<16x32xbf16>
    %cst_38 = arith.constant dense<0.000000e+00> : vector<16x16xf32>
    %92 = tpu.matmul %89, %90, %cst_38 {dimension_numbers = #tpu.dot_dimension_numbers<[1], [1], [0], [0], [0, 0, 1, 0], [], []>} : vector<16x32xbf16>, vector<16x32xbf16>, vector<16x16xf32> -> vector<16x16xf32>
    %93 = vector.shape_cast %89 : vector<16x32xbf16> to vector<16x1x32xbf16>
    %94 = vector.shape_cast %90 : vector<16x32xbf16> to vector<1x16x32xbf16>
    %95 = vector.broadcast %93 : vector<16x1x32xbf16> to vector<16x16x32xbf16>
    %96 = vector.broadcast %94 : vector<1x16x32xbf16> to vector<16x16x32xbf16>
    %97 = arith.addf %95, %96 : vector<16x16x32xbf16>
    %98 = arith.mulf %97, %57 : vector<16x16x32xbf16>
    %99 = arith.extf %98 : vector<16x16x32xbf16> to vector<16x16x32xf32>
    %cst_39 = arith.constant dense<0.000000e+00> : vector<16x16xf32>
    %100 = vector.multi_reduction <add>, %99, %cst_39 [2] : vector<16x16x32xf32> to vector<16x16xf32>
    %101 = arith.addf %92, %100 : vector<16x16xf32>
    %cst_40 = arith.constant 0.176776692 : f32
    %102 = vector.broadcast %cst_40 : f32 to vector<16x16xf32>
    %103 = arith.mulf %101, %102 : vector<16x16xf32>
    %104 = vector.broadcast %59 : vector<1x16xf32> to vector<16x16xf32>
    %105 = arith.addf %103, %104 : vector<16x16xf32>
    %cst_41 = arith.constant dense<0xFF800000> : vector<16xf32>
    %106 = vector.multi_reduction <maximumf>, %105, %cst_41 [1] : vector<16x16xf32> to vector<16xf32>
    %107 = vector.shape_cast %106 : vector<16xf32> to vector<16x1xf32>
    %108 = vector.broadcast %107 : vector<16x1xf32> to vector<16x16xf32>
    %109 = arith.subf %105, %108 : vector<16x16xf32>
    %110 = math.exp %109 : vector<16x16xf32>
    %cst_42 = arith.constant dense<0.000000e+00> : vector<16xf32>
    %111 = vector.multi_reduction <add>, %110, %cst_42 [1] : vector<16x16xf32> to vector<16xf32>
    %112 = vector.shape_cast %111 : vector<16xf32> to vector<16x1xf32>
    %113 = tpu.reciprocal %112 {approx = true} : vector<16x1xf32> -> vector<16x1xf32>
    %114 = vector.broadcast %113 : vector<16x1xf32> to vector<16x16xf32>
    %115 = arith.mulf %110, %114 : vector<16x16xf32>
    %116 = arith.truncf %115 : vector<16x16xf32> to vector<16x16xbf16>
    %cst_43 = arith.constant dense<0.000000e+00> : vector<16x32xf32>
    %117 = tpu.matmul %116, %91, %cst_43 {dimension_numbers = #tpu.dot_dimension_numbers<[1], [0], [0], [1], [0, 0, 1, 1], [], []>} : vector<16x16xbf16>, vector<16x32xbf16>, vector<16x32xf32> -> vector<16x32xf32>
    %118 = tpu.concatenate %88, %117 in 1 : vector<16x32xf32>, vector<16x32xf32> -> vector<16x64xf32>
    %119 = vector.extract_strided_slice %55 {offsets = [16, 0], sizes = [16, 192], strides = [1, 1]} : vector<32x192xbf16> to vector<16x192xbf16>
    %c1 = arith.constant 1 : index
    %c0_44 = arith.constant 0 : index
    %120 = vector.load %arg2[%c1, %c0_44] : memref<2x16xf32, #tpu.memory_space<vmem>>, vector<1x16xf32>
    %121 = vector.extract_strided_slice %119 {offsets = [0, 0], sizes = [16, 32], strides = [1, 1]} : vector<16x192xbf16> to vector<16x32xbf16>
    %122 = vector.extract_strided_slice %119 {offsets = [0, 64], sizes = [16, 32], strides = [1, 1]} : vector<16x192xbf16> to vector<16x32xbf16>
    %123 = vector.extract_strided_slice %119 {offsets = [0, 128], sizes = [16, 32], strides = [1, 1]} : vector<16x192xbf16> to vector<16x32xbf16>
    %cst_45 = arith.constant dense<0.000000e+00> : vector<16x16xf32>
    %124 = tpu.matmul %121, %122, %cst_45 {dimension_numbers = #tpu.dot_dimension_numbers<[1], [1], [0], [0], [0, 0, 1, 0], [], []>} : vector<16x32xbf16>, vector<16x32xbf16>, vector<16x16xf32> -> vector<16x16xf32>
    %125 = vector.shape_cast %121 : vector<16x32xbf16> to vector<16x1x32xbf16>
    %126 = vector.shape_cast %122 : vector<16x32xbf16> to vector<1x16x32xbf16>
    %127 = vector.broadcast %125 : vector<16x1x32xbf16> to vector<16x16x32xbf16>
    %128 = vector.broadcast %126 : vector<1x16x32xbf16> to vector<16x16x32xbf16>
    %129 = arith.addf %127, %128 : vector<16x16x32xbf16>
    %130 = arith.mulf %129, %57 : vector<16x16x32xbf16>
    %131 = arith.extf %130 : vector<16x16x32xbf16> to vector<16x16x32xf32>
    %cst_46 = arith.constant dense<0.000000e+00> : vector<16x16xf32>
    %132 = vector.multi_reduction <add>, %131, %cst_46 [2] : vector<16x16x32xf32> to vector<16x16xf32>
    %133 = arith.addf %124, %132 : vector<16x16xf32>
    %cst_47 = arith.constant 0.176776692 : f32
    %134 = vector.broadcast %cst_47 : f32 to vector<16x16xf32>
    %135 = arith.mulf %133, %134 : vector<16x16xf32>
    %136 = vector.broadcast %120 : vector<1x16xf32> to vector<16x16xf32>
    %137 = arith.addf %135, %136 : vector<16x16xf32>
    %cst_48 = arith.constant dense<0xFF800000> : vector<16xf32>
    %138 = vector.multi_reduction <maximumf>, %137, %cst_48 [1] : vector<16x16xf32> to vector<16xf32>
    %139 = vector.shape_cast %138 : vector<16xf32> to vector<16x1xf32>
    %140 = vector.broadcast %139 : vector<16x1xf32> to vector<16x16xf32>
    %141 = arith.subf %137, %140 : vector<16x16xf32>
    %142 = math.exp %141 : vector<16x16xf32>
    %cst_49 = arith.constant dense<0.000000e+00> : vector<16xf32>
    %143 = vector.multi_reduction <add>, %142, %cst_49 [1] : vector<16x16xf32> to vector<16xf32>
    %144 = vector.shape_cast %143 : vector<16xf32> to vector<16x1xf32>
    %145 = tpu.reciprocal %144 {approx = true} : vector<16x1xf32> -> vector<16x1xf32>
    %146 = vector.broadcast %145 : vector<16x1xf32> to vector<16x16xf32>
    %147 = arith.mulf %142, %146 : vector<16x16xf32>
    %148 = arith.truncf %147 : vector<16x16xf32> to vector<16x16xbf16>
    %cst_50 = arith.constant dense<0.000000e+00> : vector<16x32xf32>
    %149 = tpu.matmul %148, %123, %cst_50 {dimension_numbers = #tpu.dot_dimension_numbers<[1], [0], [0], [1], [0, 0, 1, 1], [], []>} : vector<16x16xbf16>, vector<16x32xbf16>, vector<16x32xf32> -> vector<16x32xf32>
    %150 = vector.extract_strided_slice %119 {offsets = [0, 32], sizes = [16, 32], strides = [1, 1]} : vector<16x192xbf16> to vector<16x32xbf16>
    %151 = vector.extract_strided_slice %119 {offsets = [0, 96], sizes = [16, 32], strides = [1, 1]} : vector<16x192xbf16> to vector<16x32xbf16>
    %152 = vector.extract_strided_slice %119 {offsets = [0, 160], sizes = [16, 32], strides = [1, 1]} : vector<16x192xbf16> to vector<16x32xbf16>
    %cst_51 = arith.constant dense<0.000000e+00> : vector<16x16xf32>
    %153 = tpu.matmul %150, %151, %cst_51 {dimension_numbers = #tpu.dot_dimension_numbers<[1], [1], [0], [0], [0, 0, 1, 0], [], []>} : vector<16x32xbf16>, vector<16x32xbf16>, vector<16x16xf32> -> vector<16x16xf32>
    %154 = vector.shape_cast %150 : vector<16x32xbf16> to vector<16x1x32xbf16>
    %155 = vector.shape_cast %151 : vector<16x32xbf16> to vector<1x16x32xbf16>
    %156 = vector.broadcast %154 : vector<16x1x32xbf16> to vector<16x16x32xbf16>
    %157 = vector.broadcast %155 : vector<1x16x32xbf16> to vector<16x16x32xbf16>
    %158 = arith.addf %156, %157 : vector<16x16x32xbf16>
    %159 = arith.mulf %158, %57 : vector<16x16x32xbf16>
    %160 = arith.extf %159 : vector<16x16x32xbf16> to vector<16x16x32xf32>
    %cst_52 = arith.constant dense<0.000000e+00> : vector<16x16xf32>
    %161 = vector.multi_reduction <add>, %160, %cst_52 [2] : vector<16x16x32xf32> to vector<16x16xf32>
    %162 = arith.addf %153, %161 : vector<16x16xf32>
    %cst_53 = arith.constant 0.176776692 : f32
    %163 = vector.broadcast %cst_53 : f32 to vector<16x16xf32>
    %164 = arith.mulf %162, %163 : vector<16x16xf32>
    %165 = vector.broadcast %120 : vector<1x16xf32> to vector<16x16xf32>
    %166 = arith.addf %164, %165 : vector<16x16xf32>
    %cst_54 = arith.constant dense<0xFF800000> : vector<16xf32>
    %167 = vector.multi_reduction <maximumf>, %166, %cst_54 [1] : vector<16x16xf32> to vector<16xf32>
    %168 = vector.shape_cast %167 : vector<16xf32> to vector<16x1xf32>
    %169 = vector.broadcast %168 : vector<16x1xf32> to vector<16x16xf32>
    %170 = arith.subf %166, %169 : vector<16x16xf32>
    %171 = math.exp %170 : vector<16x16xf32>
    %cst_55 = arith.constant dense<0.000000e+00> : vector<16xf32>
    %172 = vector.multi_reduction <add>, %171, %cst_55 [1] : vector<16x16xf32> to vector<16xf32>
    %173 = vector.shape_cast %172 : vector<16xf32> to vector<16x1xf32>
    %174 = tpu.reciprocal %173 {approx = true} : vector<16x1xf32> -> vector<16x1xf32>
    %175 = vector.broadcast %174 : vector<16x1xf32> to vector<16x16xf32>
    %176 = arith.mulf %171, %175 : vector<16x16xf32>
    %177 = arith.truncf %176 : vector<16x16xf32> to vector<16x16xbf16>
    %cst_56 = arith.constant dense<0.000000e+00> : vector<16x32xf32>
    %178 = tpu.matmul %177, %152, %cst_56 {dimension_numbers = #tpu.dot_dimension_numbers<[1], [0], [0], [1], [0, 0, 1, 1], [], []>} : vector<16x16xbf16>, vector<16x32xbf16>, vector<16x32xf32> -> vector<16x32xf32>
    %179 = tpu.concatenate %149, %178 in 1 : vector<16x32xf32>, vector<16x32xf32> -> vector<16x64xf32>
    %180 = tpu.concatenate %118, %179 in 0 : vector<16x64xf32>, vector<16x64xf32> -> vector<32x64xf32>
    %c0_57 = arith.constant 0 : index
    %c0_58 = arith.constant 0 : index
    %c0_59 = arith.constant 0 : index
    %181 = vector.load %arg11[%c0_57, %c0_58, %c0_59] : memref<2x64x64xbf16, #tpu.memory_space<vmem>>, vector<1x64x64xbf16>
    %182 = vector.shape_cast %181 : vector<1x64x64xbf16> to vector<64x64xbf16>
    %183 = arith.truncf %180 : vector<32x64xf32> to vector<32x64xbf16>
    %cst_60 = arith.constant dense<0.000000e+00> : vector<32x64xf32>
    %184 = tpu.matmul %183, %182, %cst_60 {dimension_numbers = #tpu.dot_dimension_numbers<[1], [0], [0], [1], [0, 0, 1, 1], [], []>} : vector<32x64xbf16>, vector<64x64xbf16>, vector<32x64xf32> -> vector<32x64xf32>
    %c0_61 = arith.constant 0 : index
    %c0_62 = arith.constant 0 : index
    %185 = vector.load %arg12[%c0_61, %c0_62] : memref<2x64xf32, #tpu.memory_space<vmem>>, vector<1x64xf32>
    %186 = vector.broadcast %185 : vector<1x64xf32> to vector<32x64xf32>
    %187 = arith.addf %184, %186 : vector<32x64xf32>
    %188 = arith.addf %187, %47 : vector<32x64xf32>
    %c0_63 = arith.constant 0 : index
    %c0_64 = arith.constant 0 : index
    %189 = vector.load %arg13[%c0_63, %c0_64] : memref<2x64xf32, #tpu.memory_space<vmem>>, vector<1x64xf32>
    %c0_65 = arith.constant 0 : index
    %c0_66 = arith.constant 0 : index
    %190 = vector.load %arg14[%c0_65, %c0_66] : memref<2x64xf32, #tpu.memory_space<vmem>>, vector<1x64xf32>
    %cst_67 = arith.constant dense<0.000000e+00> : vector<32xf32>
    %191 = vector.multi_reduction <add>, %188, %cst_67 [1] : vector<32x64xf32> to vector<32xf32>
    %192 = vector.shape_cast %191 : vector<32xf32> to vector<32x1xf32>
    %cst_68 = arith.constant 6.400000e+01 : f32
    %193 = vector.broadcast %cst_68 : f32 to vector<32x1xf32>
    %194 = arith.divf %192, %193 : vector<32x1xf32>
    %195 = vector.broadcast %194 : vector<32x1xf32> to vector<32x64xf32>
    %196 = arith.subf %188, %195 : vector<32x64xf32>
    %197 = arith.mulf %196, %196 : vector<32x64xf32>
    %cst_69 = arith.constant dense<0.000000e+00> : vector<32xf32>
    %198 = vector.multi_reduction <add>, %197, %cst_69 [1] : vector<32x64xf32> to vector<32xf32>
    %199 = vector.shape_cast %198 : vector<32xf32> to vector<32x1xf32>
    %cst_70 = arith.constant 6.400000e+01 : f32
    %200 = vector.broadcast %cst_70 : f32 to vector<32x1xf32>
    %201 = arith.divf %199, %200 : vector<32x1xf32>
    %cst_71 = arith.constant 9.99999996E-13 : f32
    %202 = vector.broadcast %cst_71 : f32 to vector<32x1xf32>
    %203 = arith.addf %201, %202 : vector<32x1xf32>
    %204 = math.rsqrt %203 : vector<32x1xf32>
    %205 = vector.broadcast %204 : vector<32x1xf32> to vector<32x64xf32>
    %206 = arith.mulf %196, %205 : vector<32x64xf32>
    %207 = vector.broadcast %189 : vector<1x64xf32> to vector<32x64xf32>
    %208 = arith.mulf %206, %207 : vector<32x64xf32>
    %209 = vector.broadcast %190 : vector<1x64xf32> to vector<32x64xf32>
    %210 = arith.addf %208, %209 : vector<32x64xf32>
    %c0_72 = arith.constant 0 : index
    %c0_73 = arith.constant 0 : index
    %c0_74 = arith.constant 0 : index
    %211 = vector.load %arg15[%c0_72, %c0_73, %c0_74] : memref<2x64x128xbf16, #tpu.memory_space<vmem>>, vector<1x64x128xbf16>
    %212 = vector.shape_cast %211 : vector<1x64x128xbf16> to vector<64x128xbf16>
    %213 = arith.truncf %210 : vector<32x64xf32> to vector<32x64xbf16>
    %cst_75 = arith.constant dense<0.000000e+00> : vector<32x128xf32>
    %214 = tpu.matmul %213, %212, %cst_75 {dimension_numbers = #tpu.dot_dimension_numbers<[1], [0], [0], [1], [0, 0, 1, 1], [], []>} : vector<32x64xbf16>, vector<64x128xbf16>, vector<32x128xf32> -> vector<32x128xf32>
    %c0_76 = arith.constant 0 : index
    %c0_77 = arith.constant 0 : index
    %215 = vector.load %arg16[%c0_76, %c0_77] : memref<2x128xf32, #tpu.memory_space<vmem>>, vector<1x128xf32>
    %216 = vector.broadcast %215 : vector<1x128xf32> to vector<32x128xf32>
    %217 = arith.addf %214, %216 : vector<32x128xf32>
    %cst_78 = arith.constant 5.000000e-01 : f32
    %218 = vector.broadcast %cst_78 : f32 to vector<32x128xf32>
    %219 = arith.mulf %218, %217 : vector<32x128xf32>
    %cst_79 = arith.constant 0.707106769 : f32
    %220 = vector.broadcast %cst_79 : f32 to vector<32x128xf32>
    %221 = arith.mulf %217, %220 : vector<32x128xf32>
    %222 = math.erf %221 : vector<32x128xf32>
    %cst_80 = arith.constant 1.000000e+00 : f32
    %223 = vector.broadcast %cst_80 : f32 to vector<32x128xf32>
    %224 = arith.addf %223, %222 : vector<32x128xf32>
    %225 = arith.mulf %219, %224 : vector<32x128xf32>
    %c0_81 = arith.constant 0 : index
    %c0_82 = arith.constant 0 : index
    %c0_83 = arith.constant 0 : index
    %226 = vector.load %arg17[%c0_81, %c0_82, %c0_83] : memref<2x128x64xbf16, #tpu.memory_space<vmem>>, vector<1x128x64xbf16>
    %227 = vector.shape_cast %226 : vector<1x128x64xbf16> to vector<128x64xbf16>
    %228 = arith.truncf %225 : vector<32x128xf32> to vector<32x128xbf16>
    %cst_84 = arith.constant dense<0.000000e+00> : vector<32x64xf32>
    %229 = tpu.matmul %228, %227, %cst_84 {dimension_numbers = #tpu.dot_dimension_numbers<[1], [0], [0], [1], [0, 0, 1, 1], [], []>} : vector<32x128xbf16>, vector<128x64xbf16>, vector<32x64xf32> -> vector<32x64xf32>
    %c0_85 = arith.constant 0 : index
    %c0_86 = arith.constant 0 : index
    %230 = vector.load %arg18[%c0_85, %c0_86] : memref<2x64xf32, #tpu.memory_space<vmem>>, vector<1x64xf32>
    %231 = vector.broadcast %230 : vector<1x64xf32> to vector<32x64xf32>
    %232 = arith.addf %229, %231 : vector<32x64xf32>
    %233 = arith.addf %232, %210 : vector<32x64xf32>
    %c0_87 = arith.constant 0 : index
    %c0_88 = arith.constant 0 : index
    %234 = vector.load %arg19[%c0_87, %c0_88] : memref<2x64xf32, #tpu.memory_space<vmem>>, vector<1x64xf32>
    %c0_89 = arith.constant 0 : index
    %c0_90 = arith.constant 0 : index
    %235 = vector.load %arg20[%c0_89, %c0_90] : memref<2x64xf32, #tpu.memory_space<vmem>>, vector<1x64xf32>
    %cst_91 = arith.constant dense<0.000000e+00> : vector<32xf32>
    %236 = vector.multi_reduction <add>, %233, %cst_91 [1] : vector<32x64xf32> to vector<32xf32>
    %237 = vector.shape_cast %236 : vector<32xf32> to vector<32x1xf32>
    %cst_92 = arith.constant 6.400000e+01 : f32
    %238 = vector.broadcast %cst_92 : f32 to vector<32x1xf32>
    %239 = arith.divf %237, %238 : vector<32x1xf32>
    %240 = vector.broadcast %239 : vector<32x1xf32> to vector<32x64xf32>
    %241 = arith.subf %233, %240 : vector<32x64xf32>
    %242 = arith.mulf %241, %241 : vector<32x64xf32>
    %cst_93 = arith.constant dense<0.000000e+00> : vector<32xf32>
    %243 = vector.multi_reduction <add>, %242, %cst_93 [1] : vector<32x64xf32> to vector<32xf32>
    %244 = vector.shape_cast %243 : vector<32xf32> to vector<32x1xf32>
    %cst_94 = arith.constant 6.400000e+01 : f32
    %245 = vector.broadcast %cst_94 : f32 to vector<32x1xf32>
    %246 = arith.divf %244, %245 : vector<32x1xf32>
    %cst_95 = arith.constant 9.99999996E-13 : f32
    %247 = vector.broadcast %cst_95 : f32 to vector<32x1xf32>
    %248 = arith.addf %246, %247 : vector<32x1xf32>
    %249 = math.rsqrt %248 : vector<32x1xf32>
    %250 = vector.broadcast %249 : vector<32x1xf32> to vector<32x64xf32>
    %251 = arith.mulf %241, %250 : vector<32x64xf32>
    %252 = vector.broadcast %234 : vector<1x64xf32> to vector<32x64xf32>
    %253 = arith.mulf %251, %252 : vector<32x64xf32>
    %254 = vector.broadcast %235 : vector<1x64xf32> to vector<32x64xf32>
    %255 = arith.addf %253, %254 : vector<32x64xf32>
    %c1_96 = arith.constant 1 : index
    %c0_97 = arith.constant 0 : index
    %c0_98 = arith.constant 0 : index
    %256 = vector.load %arg8[%c1_96, %c0_97, %c0_98] : memref<2x64x192xbf16, #tpu.memory_space<vmem>>, vector<1x64x192xbf16>
    %257 = vector.shape_cast %256 : vector<1x64x192xbf16> to vector<64x192xbf16>
    %258 = arith.truncf %255 : vector<32x64xf32> to vector<32x64xbf16>
    %cst_99 = arith.constant dense<0.000000e+00> : vector<32x192xf32>
    %259 = tpu.matmul %258, %257, %cst_99 {dimension_numbers = #tpu.dot_dimension_numbers<[1], [0], [0], [1], [0, 0, 1, 1], [], []>} : vector<32x64xbf16>, vector<64x192xbf16>, vector<32x192xf32> -> vector<32x192xf32>
    %c1_100 = arith.constant 1 : index
    %c0_101 = arith.constant 0 : index
    %260 = vector.load %arg9[%c1_100, %c0_101] : memref<2x192xf32, #tpu.memory_space<vmem>>, vector<1x192xf32>
    %261 = vector.broadcast %260 : vector<1x192xf32> to vector<32x192xf32>
    %262 = arith.addf %259, %261 : vector<32x192xf32>
    %263 = arith.truncf %262 : vector<32x192xf32> to vector<32x192xbf16>
    %c1_102 = arith.constant 1 : index
    %c0_103 = arith.constant 0 : index
    %c0_104 = arith.constant 0 : index
    %c0_105 = arith.constant 0 : index
    %264 = vector.load %arg10[%c1_102, %c0_103, %c0_104, %c0_105] : memref<2x16x16x32xbf16, #tpu.memory_space<vmem>>, vector<1x16x16x32xbf16>
    %265 = vector.shape_cast %264 : vector<1x16x16x32xbf16> to vector<16x16x32xbf16>
    %266 = vector.extract_strided_slice %263 {offsets = [0, 0], sizes = [16, 192], strides = [1, 1]} : vector<32x192xbf16> to vector<16x192xbf16>
    %c0_106 = arith.constant 0 : index
    %c0_107 = arith.constant 0 : index
    %267 = vector.load %arg2[%c0_106, %c0_107] : memref<2x16xf32, #tpu.memory_space<vmem>>, vector<1x16xf32>
    %268 = vector.extract_strided_slice %266 {offsets = [0, 0], sizes = [16, 32], strides = [1, 1]} : vector<16x192xbf16> to vector<16x32xbf16>
    %269 = vector.extract_strided_slice %266 {offsets = [0, 64], sizes = [16, 32], strides = [1, 1]} : vector<16x192xbf16> to vector<16x32xbf16>
    %270 = vector.extract_strided_slice %266 {offsets = [0, 128], sizes = [16, 32], strides = [1, 1]} : vector<16x192xbf16> to vector<16x32xbf16>
    %cst_108 = arith.constant dense<0.000000e+00> : vector<16x16xf32>
    %271 = tpu.matmul %268, %269, %cst_108 {dimension_numbers = #tpu.dot_dimension_numbers<[1], [1], [0], [0], [0, 0, 1, 0], [], []>} : vector<16x32xbf16>, vector<16x32xbf16>, vector<16x16xf32> -> vector<16x16xf32>
    %272 = vector.shape_cast %268 : vector<16x32xbf16> to vector<16x1x32xbf16>
    %273 = vector.shape_cast %269 : vector<16x32xbf16> to vector<1x16x32xbf16>
    %274 = vector.broadcast %272 : vector<16x1x32xbf16> to vector<16x16x32xbf16>
    %275 = vector.broadcast %273 : vector<1x16x32xbf16> to vector<16x16x32xbf16>
    %276 = arith.addf %274, %275 : vector<16x16x32xbf16>
    %277 = arith.mulf %276, %265 : vector<16x16x32xbf16>
    %278 = arith.extf %277 : vector<16x16x32xbf16> to vector<16x16x32xf32>
    %cst_109 = arith.constant dense<0.000000e+00> : vector<16x16xf32>
    %279 = vector.multi_reduction <add>, %278, %cst_109 [2] : vector<16x16x32xf32> to vector<16x16xf32>
    %280 = arith.addf %271, %279 : vector<16x16xf32>
    %cst_110 = arith.constant 0.176776692 : f32
    %281 = vector.broadcast %cst_110 : f32 to vector<16x16xf32>
    %282 = arith.mulf %280, %281 : vector<16x16xf32>
    %283 = vector.broadcast %267 : vector<1x16xf32> to vector<16x16xf32>
    %284 = arith.addf %282, %283 : vector<16x16xf32>
    %cst_111 = arith.constant dense<0xFF800000> : vector<16xf32>
    %285 = vector.multi_reduction <maximumf>, %284, %cst_111 [1] : vector<16x16xf32> to vector<16xf32>
    %286 = vector.shape_cast %285 : vector<16xf32> to vector<16x1xf32>
    %287 = vector.broadcast %286 : vector<16x1xf32> to vector<16x16xf32>
    %288 = arith.subf %284, %287 : vector<16x16xf32>
    %289 = math.exp %288 : vector<16x16xf32>
    %cst_112 = arith.constant dense<0.000000e+00> : vector<16xf32>
    %290 = vector.multi_reduction <add>, %289, %cst_112 [1] : vector<16x16xf32> to vector<16xf32>
    %291 = vector.shape_cast %290 : vector<16xf32> to vector<16x1xf32>
    %292 = tpu.reciprocal %291 {approx = true} : vector<16x1xf32> -> vector<16x1xf32>
    %293 = vector.broadcast %292 : vector<16x1xf32> to vector<16x16xf32>
    %294 = arith.mulf %289, %293 : vector<16x16xf32>
    %295 = arith.truncf %294 : vector<16x16xf32> to vector<16x16xbf16>
    %cst_113 = arith.constant dense<0.000000e+00> : vector<16x32xf32>
    %296 = tpu.matmul %295, %270, %cst_113 {dimension_numbers = #tpu.dot_dimension_numbers<[1], [0], [0], [1], [0, 0, 1, 1], [], []>} : vector<16x16xbf16>, vector<16x32xbf16>, vector<16x32xf32> -> vector<16x32xf32>
    %297 = vector.extract_strided_slice %266 {offsets = [0, 32], sizes = [16, 32], strides = [1, 1]} : vector<16x192xbf16> to vector<16x32xbf16>
    %298 = vector.extract_strided_slice %266 {offsets = [0, 96], sizes = [16, 32], strides = [1, 1]} : vector<16x192xbf16> to vector<16x32xbf16>
    %299 = vector.extract_strided_slice %266 {offsets = [0, 160], sizes = [16, 32], strides = [1, 1]} : vector<16x192xbf16> to vector<16x32xbf16>
    %cst_114 = arith.constant dense<0.000000e+00> : vector<16x16xf32>
    %300 = tpu.matmul %297, %298, %cst_114 {dimension_numbers = #tpu.dot_dimension_numbers<[1], [1], [0], [0], [0, 0, 1, 0], [], []>} : vector<16x32xbf16>, vector<16x32xbf16>, vector<16x16xf32> -> vector<16x16xf32>
    %301 = vector.shape_cast %297 : vector<16x32xbf16> to vector<16x1x32xbf16>
    %302 = vector.shape_cast %298 : vector<16x32xbf16> to vector<1x16x32xbf16>
    %303 = vector.broadcast %301 : vector<16x1x32xbf16> to vector<16x16x32xbf16>
    %304 = vector.broadcast %302 : vector<1x16x32xbf16> to vector<16x16x32xbf16>
    %305 = arith.addf %303, %304 : vector<16x16x32xbf16>
    %306 = arith.mulf %305, %265 : vector<16x16x32xbf16>
    %307 = arith.extf %306 : vector<16x16x32xbf16> to vector<16x16x32xf32>
    %cst_115 = arith.constant dense<0.000000e+00> : vector<16x16xf32>
    %308 = vector.multi_reduction <add>, %307, %cst_115 [2] : vector<16x16x32xf32> to vector<16x16xf32>
    %309 = arith.addf %300, %308 : vector<16x16xf32>
    %cst_116 = arith.constant 0.176776692 : f32
    %310 = vector.broadcast %cst_116 : f32 to vector<16x16xf32>
    %311 = arith.mulf %309, %310 : vector<16x16xf32>
    %312 = vector.broadcast %267 : vector<1x16xf32> to vector<16x16xf32>
    %313 = arith.addf %311, %312 : vector<16x16xf32>
    %cst_117 = arith.constant dense<0xFF800000> : vector<16xf32>
    %314 = vector.multi_reduction <maximumf>, %313, %cst_117 [1] : vector<16x16xf32> to vector<16xf32>
    %315 = vector.shape_cast %314 : vector<16xf32> to vector<16x1xf32>
    %316 = vector.broadcast %315 : vector<16x1xf32> to vector<16x16xf32>
    %317 = arith.subf %313, %316 : vector<16x16xf32>
    %318 = math.exp %317 : vector<16x16xf32>
    %cst_118 = arith.constant dense<0.000000e+00> : vector<16xf32>
    %319 = vector.multi_reduction <add>, %318, %cst_118 [1] : vector<16x16xf32> to vector<16xf32>
    %320 = vector.shape_cast %319 : vector<16xf32> to vector<16x1xf32>
    %321 = tpu.reciprocal %320 {approx = true} : vector<16x1xf32> -> vector<16x1xf32>
    %322 = vector.broadcast %321 : vector<16x1xf32> to vector<16x16xf32>
    %323 = arith.mulf %318, %322 : vector<16x16xf32>
    %324 = arith.truncf %323 : vector<16x16xf32> to vector<16x16xbf16>
    %cst_119 = arith.constant dense<0.000000e+00> : vector<16x32xf32>
    %325 = tpu.matmul %324, %299, %cst_119 {dimension_numbers = #tpu.dot_dimension_numbers<[1], [0], [0], [1], [0, 0, 1, 1], [], []>} : vector<16x16xbf16>, vector<16x32xbf16>, vector<16x32xf32> -> vector<16x32xf32>
    %326 = tpu.concatenate %296, %325 in 1 : vector<16x32xf32>, vector<16x32xf32> -> vector<16x64xf32>
    %327 = vector.extract_strided_slice %263 {offsets = [16, 0], sizes = [16, 192], strides = [1, 1]} : vector<32x192xbf16> to vector<16x192xbf16>
    %c1_120 = arith.constant 1 : index
    %c0_121 = arith.constant 0 : index
    %328 = vector.load %arg2[%c1_120, %c0_121] : memref<2x16xf32, #tpu.memory_space<vmem>>, vector<1x16xf32>
    %329 = vector.extract_strided_slice %327 {offsets = [0, 0], sizes = [16, 32], strides = [1, 1]} : vector<16x192xbf16> to vector<16x32xbf16>
    %330 = vector.extract_strided_slice %327 {offsets = [0, 64], sizes = [16, 32], strides = [1, 1]} : vector<16x192xbf16> to vector<16x32xbf16>
    %331 = vector.extract_strided_slice %327 {offsets = [0, 128], sizes = [16, 32], strides = [1, 1]} : vector<16x192xbf16> to vector<16x32xbf16>
    %cst_122 = arith.constant dense<0.000000e+00> : vector<16x16xf32>
    %332 = tpu.matmul %329, %330, %cst_122 {dimension_numbers = #tpu.dot_dimension_numbers<[1], [1], [0], [0], [0, 0, 1, 0], [], []>} : vector<16x32xbf16>, vector<16x32xbf16>, vector<16x16xf32> -> vector<16x16xf32>
    %333 = vector.shape_cast %329 : vector<16x32xbf16> to vector<16x1x32xbf16>
    %334 = vector.shape_cast %330 : vector<16x32xbf16> to vector<1x16x32xbf16>
    %335 = vector.broadcast %333 : vector<16x1x32xbf16> to vector<16x16x32xbf16>
    %336 = vector.broadcast %334 : vector<1x16x32xbf16> to vector<16x16x32xbf16>
    %337 = arith.addf %335, %336 : vector<16x16x32xbf16>
    %338 = arith.mulf %337, %265 : vector<16x16x32xbf16>
    %339 = arith.extf %338 : vector<16x16x32xbf16> to vector<16x16x32xf32>
    %cst_123 = arith.constant dense<0.000000e+00> : vector<16x16xf32>
    %340 = vector.multi_reduction <add>, %339, %cst_123 [2] : vector<16x16x32xf32> to vector<16x16xf32>
    %341 = arith.addf %332, %340 : vector<16x16xf32>
    %cst_124 = arith.constant 0.176776692 : f32
    %342 = vector.broadcast %cst_124 : f32 to vector<16x16xf32>
    %343 = arith.mulf %341, %342 : vector<16x16xf32>
    %344 = vector.broadcast %328 : vector<1x16xf32> to vector<16x16xf32>
    %345 = arith.addf %343, %344 : vector<16x16xf32>
    %cst_125 = arith.constant dense<0xFF800000> : vector<16xf32>
    %346 = vector.multi_reduction <maximumf>, %345, %cst_125 [1] : vector<16x16xf32> to vector<16xf32>
    %347 = vector.shape_cast %346 : vector<16xf32> to vector<16x1xf32>
    %348 = vector.broadcast %347 : vector<16x1xf32> to vector<16x16xf32>
    %349 = arith.subf %345, %348 : vector<16x16xf32>
    %350 = math.exp %349 : vector<16x16xf32>
    %cst_126 = arith.constant dense<0.000000e+00> : vector<16xf32>
    %351 = vector.multi_reduction <add>, %350, %cst_126 [1] : vector<16x16xf32> to vector<16xf32>
    %352 = vector.shape_cast %351 : vector<16xf32> to vector<16x1xf32>
    %353 = tpu.reciprocal %352 {approx = true} : vector<16x1xf32> -> vector<16x1xf32>
    %354 = vector.broadcast %353 : vector<16x1xf32> to vector<16x16xf32>
    %355 = arith.mulf %350, %354 : vector<16x16xf32>
    %356 = arith.truncf %355 : vector<16x16xf32> to vector<16x16xbf16>
    %cst_127 = arith.constant dense<0.000000e+00> : vector<16x32xf32>
    %357 = tpu.matmul %356, %331, %cst_127 {dimension_numbers = #tpu.dot_dimension_numbers<[1], [0], [0], [1], [0, 0, 1, 1], [], []>} : vector<16x16xbf16>, vector<16x32xbf16>, vector<16x32xf32> -> vector<16x32xf32>
    %358 = vector.extract_strided_slice %327 {offsets = [0, 32], sizes = [16, 32], strides = [1, 1]} : vector<16x192xbf16> to vector<16x32xbf16>
    %359 = vector.extract_strided_slice %327 {offsets = [0, 96], sizes = [16, 32], strides = [1, 1]} : vector<16x192xbf16> to vector<16x32xbf16>
    %360 = vector.extract_strided_slice %327 {offsets = [0, 160], sizes = [16, 32], strides = [1, 1]} : vector<16x192xbf16> to vector<16x32xbf16>
    %cst_128 = arith.constant dense<0.000000e+00> : vector<16x16xf32>
    %361 = tpu.matmul %358, %359, %cst_128 {dimension_numbers = #tpu.dot_dimension_numbers<[1], [1], [0], [0], [0, 0, 1, 0], [], []>} : vector<16x32xbf16>, vector<16x32xbf16>, vector<16x16xf32> -> vector<16x16xf32>
    %362 = vector.shape_cast %358 : vector<16x32xbf16> to vector<16x1x32xbf16>
    %363 = vector.shape_cast %359 : vector<16x32xbf16> to vector<1x16x32xbf16>
    %364 = vector.broadcast %362 : vector<16x1x32xbf16> to vector<16x16x32xbf16>
    %365 = vector.broadcast %363 : vector<1x16x32xbf16> to vector<16x16x32xbf16>
    %366 = arith.addf %364, %365 : vector<16x16x32xbf16>
    %367 = arith.mulf %366, %265 : vector<16x16x32xbf16>
    %368 = arith.extf %367 : vector<16x16x32xbf16> to vector<16x16x32xf32>
    %cst_129 = arith.constant dense<0.000000e+00> : vector<16x16xf32>
    %369 = vector.multi_reduction <add>, %368, %cst_129 [2] : vector<16x16x32xf32> to vector<16x16xf32>
    %370 = arith.addf %361, %369 : vector<16x16xf32>
    %cst_130 = arith.constant 0.176776692 : f32
    %371 = vector.broadcast %cst_130 : f32 to vector<16x16xf32>
    %372 = arith.mulf %370, %371 : vector<16x16xf32>
    %373 = vector.broadcast %328 : vector<1x16xf32> to vector<16x16xf32>
    %374 = arith.addf %372, %373 : vector<16x16xf32>
    %cst_131 = arith.constant dense<0xFF800000> : vector<16xf32>
    %375 = vector.multi_reduction <maximumf>, %374, %cst_131 [1] : vector<16x16xf32> to vector<16xf32>
    %376 = vector.shape_cast %375 : vector<16xf32> to vector<16x1xf32>
    %377 = vector.broadcast %376 : vector<16x1xf32> to vector<16x16xf32>
    %378 = arith.subf %374, %377 : vector<16x16xf32>
    %379 = math.exp %378 : vector<16x16xf32>
    %cst_132 = arith.constant dense<0.000000e+00> : vector<16xf32>
    %380 = vector.multi_reduction <add>, %379, %cst_132 [1] : vector<16x16xf32> to vector<16xf32>
    %381 = vector.shape_cast %380 : vector<16xf32> to vector<16x1xf32>
    %382 = tpu.reciprocal %381 {approx = true} : vector<16x1xf32> -> vector<16x1xf32>
    %383 = vector.broadcast %382 : vector<16x1xf32> to vector<16x16xf32>
    %384 = arith.mulf %379, %383 : vector<16x16xf32>
    %385 = arith.truncf %384 : vector<16x16xf32> to vector<16x16xbf16>
    %cst_133 = arith.constant dense<0.000000e+00> : vector<16x32xf32>
    %386 = tpu.matmul %385, %360, %cst_133 {dimension_numbers = #tpu.dot_dimension_numbers<[1], [0], [0], [1], [0, 0, 1, 1], [], []>} : vector<16x16xbf16>, vector<16x32xbf16>, vector<16x32xf32> -> vector<16x32xf32>
    %387 = tpu.concatenate %357, %386 in 1 : vector<16x32xf32>, vector<16x32xf32> -> vector<16x64xf32>
    %388 = tpu.concatenate %326, %387 in 0 : vector<16x64xf32>, vector<16x64xf32> -> vector<32x64xf32>
    %c1_134 = arith.constant 1 : index
    %c0_135 = arith.constant 0 : index
    %c0_136 = arith.constant 0 : index
    %389 = vector.load %arg11[%c1_134, %c0_135, %c0_136] : memref<2x64x64xbf16, #tpu.memory_space<vmem>>, vector<1x64x64xbf16>
    %390 = vector.shape_cast %389 : vector<1x64x64xbf16> to vector<64x64xbf16>
    %391 = arith.truncf %388 : vector<32x64xf32> to vector<32x64xbf16>
    %cst_137 = arith.constant dense<0.000000e+00> : vector<32x64xf32>
    %392 = tpu.matmul %391, %390, %cst_137 {dimension_numbers = #tpu.dot_dimension_numbers<[1], [0], [0], [1], [0, 0, 1, 1], [], []>} : vector<32x64xbf16>, vector<64x64xbf16>, vector<32x64xf32> -> vector<32x64xf32>
    %c1_138 = arith.constant 1 : index
    %c0_139 = arith.constant 0 : index
    %393 = vector.load %arg12[%c1_138, %c0_139] : memref<2x64xf32, #tpu.memory_space<vmem>>, vector<1x64xf32>
    %394 = vector.broadcast %393 : vector<1x64xf32> to vector<32x64xf32>
    %395 = arith.addf %392, %394 : vector<32x64xf32>
    %396 = arith.addf %395, %255 : vector<32x64xf32>
    %c1_140 = arith.constant 1 : index
    %c0_141 = arith.constant 0 : index
    %397 = vector.load %arg13[%c1_140, %c0_141] : memref<2x64xf32, #tpu.memory_space<vmem>>, vector<1x64xf32>
    %c1_142 = arith.constant 1 : index
    %c0_143 = arith.constant 0 : index
    %398 = vector.load %arg14[%c1_142, %c0_143] : memref<2x64xf32, #tpu.memory_space<vmem>>, vector<1x64xf32>
    %cst_144 = arith.constant dense<0.000000e+00> : vector<32xf32>
    %399 = vector.multi_reduction <add>, %396, %cst_144 [1] : vector<32x64xf32> to vector<32xf32>
    %400 = vector.shape_cast %399 : vector<32xf32> to vector<32x1xf32>
    %cst_145 = arith.constant 6.400000e+01 : f32
    %401 = vector.broadcast %cst_145 : f32 to vector<32x1xf32>
    %402 = arith.divf %400, %401 : vector<32x1xf32>
    %403 = vector.broadcast %402 : vector<32x1xf32> to vector<32x64xf32>
    %404 = arith.subf %396, %403 : vector<32x64xf32>
    %405 = arith.mulf %404, %404 : vector<32x64xf32>
    %cst_146 = arith.constant dense<0.000000e+00> : vector<32xf32>
    %406 = vector.multi_reduction <add>, %405, %cst_146 [1] : vector<32x64xf32> to vector<32xf32>
    %407 = vector.shape_cast %406 : vector<32xf32> to vector<32x1xf32>
    %cst_147 = arith.constant 6.400000e+01 : f32
    %408 = vector.broadcast %cst_147 : f32 to vector<32x1xf32>
    %409 = arith.divf %407, %408 : vector<32x1xf32>
    %cst_148 = arith.constant 9.99999996E-13 : f32
    %410 = vector.broadcast %cst_148 : f32 to vector<32x1xf32>
    %411 = arith.addf %409, %410 : vector<32x1xf32>
    %412 = math.rsqrt %411 : vector<32x1xf32>
    %413 = vector.broadcast %412 : vector<32x1xf32> to vector<32x64xf32>
    %414 = arith.mulf %404, %413 : vector<32x64xf32>
    %415 = vector.broadcast %397 : vector<1x64xf32> to vector<32x64xf32>
    %416 = arith.mulf %414, %415 : vector<32x64xf32>
    %417 = vector.broadcast %398 : vector<1x64xf32> to vector<32x64xf32>
    %418 = arith.addf %416, %417 : vector<32x64xf32>
    %c1_149 = arith.constant 1 : index
    %c0_150 = arith.constant 0 : index
    %c0_151 = arith.constant 0 : index
    %419 = vector.load %arg15[%c1_149, %c0_150, %c0_151] : memref<2x64x128xbf16, #tpu.memory_space<vmem>>, vector<1x64x128xbf16>
    %420 = vector.shape_cast %419 : vector<1x64x128xbf16> to vector<64x128xbf16>
    %421 = arith.truncf %418 : vector<32x64xf32> to vector<32x64xbf16>
    %cst_152 = arith.constant dense<0.000000e+00> : vector<32x128xf32>
    %422 = tpu.matmul %421, %420, %cst_152 {dimension_numbers = #tpu.dot_dimension_numbers<[1], [0], [0], [1], [0, 0, 1, 1], [], []>} : vector<32x64xbf16>, vector<64x128xbf16>, vector<32x128xf32> -> vector<32x128xf32>
    %c1_153 = arith.constant 1 : index
    %c0_154 = arith.constant 0 : index
    %423 = vector.load %arg16[%c1_153, %c0_154] : memref<2x128xf32, #tpu.memory_space<vmem>>, vector<1x128xf32>
    %424 = vector.broadcast %423 : vector<1x128xf32> to vector<32x128xf32>
    %425 = arith.addf %422, %424 : vector<32x128xf32>
    %cst_155 = arith.constant 5.000000e-01 : f32
    %426 = vector.broadcast %cst_155 : f32 to vector<32x128xf32>
    %427 = arith.mulf %426, %425 : vector<32x128xf32>
    %cst_156 = arith.constant 0.707106769 : f32
    %428 = vector.broadcast %cst_156 : f32 to vector<32x128xf32>
    %429 = arith.mulf %425, %428 : vector<32x128xf32>
    %430 = math.erf %429 : vector<32x128xf32>
    %cst_157 = arith.constant 1.000000e+00 : f32
    %431 = vector.broadcast %cst_157 : f32 to vector<32x128xf32>
    %432 = arith.addf %431, %430 : vector<32x128xf32>
    %433 = arith.mulf %427, %432 : vector<32x128xf32>
    %c1_158 = arith.constant 1 : index
    %c0_159 = arith.constant 0 : index
    %c0_160 = arith.constant 0 : index
    %434 = vector.load %arg17[%c1_158, %c0_159, %c0_160] : memref<2x128x64xbf16, #tpu.memory_space<vmem>>, vector<1x128x64xbf16>
    %435 = vector.shape_cast %434 : vector<1x128x64xbf16> to vector<128x64xbf16>
    %436 = arith.truncf %433 : vector<32x128xf32> to vector<32x128xbf16>
    %cst_161 = arith.constant dense<0.000000e+00> : vector<32x64xf32>
    %437 = tpu.matmul %436, %435, %cst_161 {dimension_numbers = #tpu.dot_dimension_numbers<[1], [0], [0], [1], [0, 0, 1, 1], [], []>} : vector<32x128xbf16>, vector<128x64xbf16>, vector<32x64xf32> -> vector<32x64xf32>
    %c1_162 = arith.constant 1 : index
    %c0_163 = arith.constant 0 : index
    %438 = vector.load %arg18[%c1_162, %c0_163] : memref<2x64xf32, #tpu.memory_space<vmem>>, vector<1x64xf32>
    %439 = vector.broadcast %438 : vector<1x64xf32> to vector<32x64xf32>
    %440 = arith.addf %437, %439 : vector<32x64xf32>
    %441 = arith.addf %440, %418 : vector<32x64xf32>
    %c1_164 = arith.constant 1 : index
    %c0_165 = arith.constant 0 : index
    %442 = vector.load %arg19[%c1_164, %c0_165] : memref<2x64xf32, #tpu.memory_space<vmem>>, vector<1x64xf32>
    %c1_166 = arith.constant 1 : index
    %c0_167 = arith.constant 0 : index
    %443 = vector.load %arg20[%c1_166, %c0_167] : memref<2x64xf32, #tpu.memory_space<vmem>>, vector<1x64xf32>
    %cst_168 = arith.constant dense<0.000000e+00> : vector<32xf32>
    %444 = vector.multi_reduction <add>, %441, %cst_168 [1] : vector<32x64xf32> to vector<32xf32>
    %445 = vector.shape_cast %444 : vector<32xf32> to vector<32x1xf32>
    %cst_169 = arith.constant 6.400000e+01 : f32
    %446 = vector.broadcast %cst_169 : f32 to vector<32x1xf32>
    %447 = arith.divf %445, %446 : vector<32x1xf32>
    %448 = vector.broadcast %447 : vector<32x1xf32> to vector<32x64xf32>
    %449 = arith.subf %441, %448 : vector<32x64xf32>
    %450 = arith.mulf %449, %449 : vector<32x64xf32>
    %cst_170 = arith.constant dense<0.000000e+00> : vector<32xf32>
    %451 = vector.multi_reduction <add>, %450, %cst_170 [1] : vector<32x64xf32> to vector<32xf32>
    %452 = vector.shape_cast %451 : vector<32xf32> to vector<32x1xf32>
    %cst_171 = arith.constant 6.400000e+01 : f32
    %453 = vector.broadcast %cst_171 : f32 to vector<32x1xf32>
    %454 = arith.divf %452, %453 : vector<32x1xf32>
    %cst_172 = arith.constant 9.99999996E-13 : f32
    %455 = vector.broadcast %cst_172 : f32 to vector<32x1xf32>
    %456 = arith.addf %454, %455 : vector<32x1xf32>
    %457 = math.rsqrt %456 : vector<32x1xf32>
    %458 = vector.broadcast %457 : vector<32x1xf32> to vector<32x64xf32>
    %459 = arith.mulf %449, %458 : vector<32x64xf32>
    %460 = vector.broadcast %442 : vector<1x64xf32> to vector<32x64xf32>
    %461 = arith.mulf %459, %460 : vector<32x64xf32>
    %462 = vector.broadcast %443 : vector<1x64xf32> to vector<32x64xf32>
    %463 = arith.addf %461, %462 : vector<32x64xf32>
    %464 = arith.truncf %463 : vector<32x64xf32> to vector<32x64xbf16>
    %c0_173 = arith.constant 0 : index
    %c0_174 = arith.constant 0 : index
    %465 = vector.load %arg21[%c0_173, %c0_174] : memref<64x128xbf16, #tpu.memory_space<vmem>>, vector<64x128xbf16>
    %cst_175 = arith.constant dense<0.000000e+00> : vector<32x128xf32>
    %466 = tpu.matmul %464, %465, %cst_175 {dimension_numbers = #tpu.dot_dimension_numbers<[1], [0], [0], [1], [0, 0, 1, 1], [], []>} : vector<32x64xbf16>, vector<64x128xbf16>, vector<32x128xf32> -> vector<32x128xf32>
    %c0_176 = arith.constant 0 : index
    %c0_177 = arith.constant 0 : index
    %467 = vector.load %arg22[%c0_176, %c0_177] : memref<32x128xf32, #tpu.memory_space<vmem>>, vector<32x128xf32>
    tpu.vector_store %arg22[%c0_176, %c0_177], %466 {strides = array<i32>} : memref<32x128xf32, #tpu.memory_space<vmem>>, vector<32x128xf32>,
    return
  }
  func.func @transform_0(%arg0: i32) -> (i32, i32) {
    %c0_i32 = arith.constant 0 : i32
    %c0_i32_0 = arith.constant 0 : i32
    %c0_i32_1 = arith.constant 0 : i32
    return %c0_i32, %c0_i32_0 : i32, i32
  }
  func.func @transform_1(%arg0: i32) -> (i32, i32) {
    %c0_i32 = arith.constant 0 : i32
    %c0_i32_0 = arith.constant 0 : i32
    %c0_i32_1 = arith.constant 0 : i32
    return %c0_i32, %c0_i32_0 : i32, i32
  }
  func.func @transform_2(%arg0: i32) -> (i32, i32) {
    %c0_i32 = arith.constant 0 : i32
    %c0_i32_0 = arith.constant 0 : i32
    %c0_i32_1 = arith.constant 0 : i32
    return %c0_i32, %c0_i32_0 : i32, i32
  }
  func.func @transform_3(%arg0: i32) -> (i32, i32) {
    %c0_i32 = arith.constant 0 : i32
    %c0_i32_0 = arith.constant 0 : i32
    %c0_i32_1 = arith.constant 0 : i32
    return %c0_i32, %c0_i32_0 : i32, i32
  }
  func.func @transform_4(%arg0: i32) -> (i32, i32) {
    %c0_i32 = arith.constant 0 : i32
    %c0_i32_0 = arith.constant 0 : i32
    %c0_i32_1 = arith.constant 0 : i32
    return %c0_i32, %c0_i32_0 : i32, i32
  }
  func.func @transform_5(%arg0: i32) -> (i32, i32) {
    %c0_i32 = arith.constant 0 : i32
    %c0_i32_0 = arith.constant 0 : i32
    %c0_i32_1 = arith.constant 0 : i32
    return %c0_i32, %c0_i32_0 : i32, i32
  }
  func.func @transform_6(%arg0: i32) -> (i32, i32) {
    %c0_i32 = arith.constant 0 : i32
    %c0_i32_0 = arith.constant 0 : i32
    %c0_i32_1 = arith.constant 0 : i32
    return %c0_i32, %c0_i32_0 : i32, i32
  }
  func.func @transform_7(%arg0: i32) -> (i32, i32, i32) {
    %c0_i32 = arith.constant 0 : i32
    %c0_i32_0 = arith.constant 0 : i32
    %c0_i32_1 = arith.constant 0 : i32
    %c0_i32_2 = arith.constant 0 : i32
    return %c0_i32, %c0_i32_0, %c0_i32_1 : i32, i32, i32
  }
  func.func @transform_8(%arg0: i32) -> (i32, i32) {
    %c0_i32 = arith.constant 0 : i32
    %c0_i32_0 = arith.constant 0 : i32
    %c0_i32_1 = arith.constant 0 : i32
    return %c0_i32, %c0_i32_0 : i32, i32
  }
  func.func @transform_9(%arg0: i32) -> (i32, i32, i32, i32) {
    %c0_i32 = arith.constant 0 : i32
    %c0_i32_0 = arith.constant 0 : i32
    %c0_i32_1 = arith.constant 0 : i32
    %c0_i32_2 = arith.constant 0 : i32
    %c0_i32_3 = arith.constant 0 : i32
    return %c0_i32, %c0_i32_0, %c0_i32_1, %c0_i32_2 : i32, i32, i32, i32
  }
  func.func @transform_10(%arg0: i32) -> (i32, i32, i32) {
    %c0_i32 = arith.constant 0 : i32
    %c0_i32_0 = arith.constant 0 : i32
    %c0_i32_1 = arith.constant 0 : i32
    %c0_i32_2 = arith.constant 0 : i32
    return %c0_i32, %c0_i32_0, %c0_i32_1 : i32, i32, i32
  }
  func.func @transform_11(%arg0: i32) -> (i32, i32) {
    %c0_i32 = arith.constant 0 : i32
    %c0_i32_0 = arith.constant 0 : i32
    %c0_i32_1 = arith.constant 0 : i32
    return %c0_i32, %c0_i32_0 : i32, i32
  }
  func.func @transform_12(%arg0: i32) -> (i32, i32) {
    %c0_i32 = arith.constant 0 : i32
    %c0_i32_0 = arith.constant 0 : i32
    %c0_i32_1 = arith.constant 0 : i32
    return %c0_i32, %c0_i32_0 : i32, i32
  }
  func.func @transform_13(%arg0: i32) -> (i32, i32) {
    %c0_i32 = arith.constant 0 : i32
    %c0_i32_0 = arith.constant 0 : i32
    %c0_i32_1 = arith.constant 0 : i32
    return %c0_i32, %c0_i32_0 : i32, i32
  }
  func.func @transform_14(%arg0: i32) -> (i32, i32, i32) {
    %c0_i32 = arith.constant 0 : i32
    %c0_i32_0 = arith.constant 0 : i32
    %c0_i32_1 = arith.constant 0 : i32
    %c0_i32_2 = arith.constant 0 : i32
    return %c0_i32, %c0_i32_0, %c0_i32_1 : i32, i32, i32
  }
  func.func @transform_15(%arg0: i32) -> (i32, i32) {
    %c0_i32 = arith.constant 0 : i32
    %c0_i32_0 = arith.constant 0 : i32
    %c0_i32_1 = arith.constant 0 : i32
    return %c0_i32, %c0_i32_0 : i32, i32
  }
  func.func @transform_16(%arg0: i32) -> (i32, i32, i32) {
    %c0_i32 = arith.constant 0 : i32
    %c0_i32_0 = arith.constant 0 : i32
    %c0_i32_1 = arith.constant 0 : i32
    %c0_i32_2 = arith.constant 0 : i32
    return %c0_i32, %c0_i32_0, %c0_i32_1 : i32, i32, i32
  }
  func.func @transform_17(%arg0: i32) -> (i32, i32) {
    %c0_i32 = arith.constant 0 : i32
    %c0_i32_0 = arith.constant 0 : i32
    %c0_i32_1 = arith.constant 0 : i32
    return %c0_i32, %c0_i32_0 : i32, i32
  }
  func.func @transform_18(%arg0: i32) -> (i32, i32) {
    %c0_i32 = arith.constant 0 : i32
    %c0_i32_0 = arith.constant 0 : i32
    %c0_i32_1 = arith.constant 0 : i32
    return %c0_i32, %c0_i32_0 : i32, i32
  }
  func.func @transform_19(%arg0: i32) -> (i32, i32) {
    %c0_i32 = arith.constant 0 : i32
    %c0_i32_0 = arith.constant 0 : i32
    %c0_i32_1 = arith.constant 0 : i32
    return %c0_i32, %c0_i32_0 : i32, i32
  }
  func.func @transform_20(%arg0: i32) -> (i32, i32) {
    %c0_i32 = arith.constant 0 : i32
    %c0_i32_0 = arith.constant 0 : i32
    %c0_i32_1 = arith.constant 0 : i32
    return %c0_i32, %c0_i32_0 : i32, i32
  }
  func.func @transform_21(%arg0: i32) -> (i32, i32) {
    %c0_i32 = arith.constant 0 : i32
    %c0_i32_0 = arith.constant 0 : i32
    %c0_i32_1 = arith.constant 0 : i32
    return %c0_i32, %c0_i32_0 : i32, i32
  }
}

</mosaic_0001>

<bundles_post_ra>
// kernel: bert_forward.1
= control target key start
LH: loop header
LB: loop body
LE: loop exit
PB: predicated region body
PF: predicated region fallthrough
CT: control target
= control target key end

     0   :  { %s11614_s0 = inlined_call_operand.vmem [shape: f32[32,64], index: 0, kind: input, shape index: {}]   ;;  %s11615_s1 = inlined_call_operand.vmem [shape: f32[2,16], index: 1, kind: input, shape index: {}]   ;;  %s11616_s2 = inlined_call_operand.vmem [shape: f32[1,64], index: 2, kind: input, shape index: {}]   ;;  %s11617_s3 = inlined_call_operand.vmem [shape: f32[1,64], index: 3, kind: input, shape index: {}]   ;;  %s11618_s4 = inlined_call_operand.vmem [shape: f32[1,64], index: 4, kind: input, shape index: {}]   ;;  %s11619_s5 = inlined_call_operand.vmem [shape: f32[1,64], index: 5, kind: input, shape index: {}]   ;;  %s11620_s6 = inlined_call_operand.vmem [shape: f32[1,64], index: 6, kind: input, shape index: {}]   ;;  %s11621_s7 = inlined_call_operand.vmem [shape: bf16[2,64,192], index: 7, kind: input, shape index: {}]   ;;  %s11622_s8 = inlined_call_operand.vmem [shape: f32[2,192], index: 8, kind: input, shape index: {}]   ;;  %s11623_s9 = inlined_call_operand.vmem [shape: bf16[2,16,16,32], index: 9, kind: input, shape index: {}]   ;;  %s11624_s10 = inlined_call_operand.vmem [shape: bf16[2,64,64], index: 10, kind: input, shape index: {}]   ;;  %s11625_s11 = inlined_call_operand.vmem [shape: f32[2,64], index: 11, kind: input, shape index: {}]   ;;  %s11626_s12 = inlined_call_operand.vmem [shape: f32[2,64], index: 12, kind: input, shape index: {}]   ;;  %s11627_s13 = inlined_call_operand.vmem [shape: f32[2,64], index: 13, kind: input, shape index: {}]   ;;  %s11628_s14 = inlined_call_operand.vmem [shape: bf16[2,64,128], index: 14, kind: input, shape index: {}]   ;;  %s11629_s15 = inlined_call_operand.vmem [shape: f32[2,128], index: 15, kind: input, shape index: {}]   ;;  %s11630_s16 = inlined_call_operand.vmem [shape: bf16[2,128,64], index: 16, kind: input, shape index: {}]   ;;  %s11631_s17 = inlined_call_operand.vmem [shape: f32[2,64], index: 17, kind: input, shape index: {}]   ;;  %s11632_s18 = inlined_call_operand.vmem [shape: f32[2,64], index: 18, kind: input, shape index: {}]   ;;  %s11633_s19 = inlined_call_operand.vmem [shape: f32[2,64], index: 19, kind: input, shape index: {}]   ;;  %s11634_s20 = inlined_call_operand.vmem [shape: bf16[64,128], index: 20, kind: input, shape index: {}]   ;;  %s11635_s21 = inlined_call_operand.hbm [shape: f32[32,128], index: 21, kind: output, shape index: {}]  }
   0x1   :  { %11692 = sst [smem:[#allocation28_spill]] %s11614_s0 }
   0x2   :  { %11693 = sst [smem:[#allocation29_spill]] %s11615_s1 }
   0x3   :  { %11694 = sst [smem:[#allocation30_spill]] %s11616_s2 }
   0x4   :  { %11695 = sst [smem:[#allocation31_spill]] %s11617_s3 }
   0x5   :  { %11696 = sst [smem:[#allocation32_spill]] %s11618_s4 }
   0x6   :  { %11697 = sst [smem:[#allocation33_spill]] %s11619_s5 }
   0x7   :  { %s11698_s26 = sld [smem:[#allocation28_spill]]  ;;  %vm76_vm0 = vcmask 523264  }
   0xd   :  { %v70_v0 = vld [vmem:[%s11698_s26] sm:$0xff]  ;;  %v71_v1 = vld [vmem:[%s11698_s26 + $0x8] sm:$0xff] }
   0xe   :  { %v77_v2 = vsel %vm76_vm0, %v70_v0, 0.0  ;;  %v80_v3 = vsel %vm76_vm0, %v71_v1, 0.0 }
   0xf   :  { %78 = vadd.xlane.f32.xlu0 %v77_v2 }
  0x13   :  { %81 = vadd.xlane.f32.xlu0 %v80_v3 }
  0x14   :  { %26 = vsyncpa [#allocation3], 0  ;;  %s11699_s0 = sld [smem:[#allocation30_spill]]  ;;  %s11700_s5 = sld [smem:[#allocation31_spill]]  ;;  %v8123_v45 = vld [vmem:[%s11621_s7 + $0x4] ss:$8 sps:$4 sm:$0xff]  }
  0x15   :  { %s11701_s1 = sld [smem:[#allocation32_spill]]  ;;  %v8125_v46 = vld [vmem:[%s11621_s7] ss:$8 sps:$4 sm:$0xff]   ;;  %v8126_v47 = vld [vmem:[%s11621_s7 + $0x14] ss:$8 sps:$4 sm:$0xff]   ;;  %303 = vmatprep.subr.bf16.mxu0 %v8123_v45  ;;  %v11640_v49 = vmov 0  }
  0x16   :  { %304 = vmatpush1.bf16.msra.mxu0 %v8125_v46  ;;  %v8128_v48 = vld [vmem:[%s11621_s7 + $0x10] ss:$8 sps:$4 sm:$0xff]   ;;  %335 = vmatprep.mubr.bf16.mxu0 %v11640_v49  ;;  %v8129_v50 = vld [vmem:[%s11621_s7 + $0x24] ss:$8 sps:$4 sm:$0xff]   ;;  %v8131_v51 = vld [vmem:[%s11621_s7 + $0x20] ss:$8 sps:$4 sm:$0xff]  }
  0x17   :  { %305 = vmatprep.subr.bf16.mxu0 %v8126_v47  ;;  %v8132_v52 = vld [vmem:[%s11621_s7 + $0x34] ss:$8 sps:$4 sm:$0xff]   ;;  %v8134_v53 = vld [vmem:[%s11621_s7 + $0x30] ss:$8 sps:$4 sm:$0xff]   ;;  %s11702_s3 = sld [smem:[#allocation33_spill]]  ;;  %vm8405_vm1 = vmmov 0  }
  0x18   :  { %v7255_v2 = vld [vmem:[%s11620_s6] ss:$0 sm:$0xff]  ;;  %s8406_s30 = smov 64   ;;  %vm814_vm2 = vcmask 261120   ;;  %vm954_vm3 = vcmask 130112   ;;  %vm1091_vm4 = vcmask 1041409  }
  0x19   :  { %vm1093_vm5 = vcmask 1042434   ;;  %vm1095_vm6 = vcmask 1043459   ;;  %vm1097_vm7 = vcmask 1044484   ;;  %vm1099_vm8 = vcmask 1045509   ;;  %s11727_s22 = sld [smem:[#allocation29_spill]]  ;;  %s8408_s23 = smov 32  }
  0x1a   :  { %v8536_v21 = vld [vmem:[%s11699_s0] ss:$0 sm:$0xff]  ;;  %306 = vmatpush1.bf16.msra.mxu0 %v8128_v48  ;;  %vm1101_vm9 = vcmask 1046534   ;;  %vm1103_vm10 = vcmask 1047559   ;;  %vm1169_vm11 = vcmask 130048  }
  0x1b   :  { %v8541_v23 = vld [vmem:[%s11700_s5] ss:$0 sm:$0xff]  ;;  %307 = vmatprep.subr.bf16.mxu0 %v8129_v50 }
  0x1c   :  { %v8547_v26 = vld [vmem:[%s11701_s1] ss:$0 sm:$0xff]  ;;  %s8409_s1 = smov 96  }
  0x1d   :  { %v7254_v62 = vld [vmem:[%s11702_s3] ss:$0 sm:$0xff] }
  0x1e   :  { %308 = vmatpush1.bf16.msra.mxu0 %v8131_v51 }
  0x1f   :  { %309 = vmatprep.subr.bf16.mxu0 %v8132_v52 }
  0x22   :  { %310 = vmatpush1.bf16.msra.mxu0 %v8134_v53 }
  0x9c   :  { %v79_v4 = vpop.xlane.xlu0 %78 }
  0x9d   :  { %v90_v5 = vmul.f32 0.015625, %v79_v4 }
  0x9f   :  { %v94_v6 = vsub.f32 %v70_v0, %v90_v5 }
  0xa0   :  { %v82_v7 = vpop.xlane.xlu0 %81 }
  0xa1   :  { %v91_v8 = vmul.f32 0.015625, %v82_v7  ;;  %v98_v9 = vmul.f32 %v94_v6, %v94_v6  ;;  %v11644_v7 = vlaneseq }
  0xa3   :  { %v95_v10 = vsub.f32 %v71_v1, %v91_v8  ;;  %v102_v11 = vsel %vm76_vm0, %v98_v9, 0.0  ;;  %v8598_v8 = vshrl.u32 %v11644_v7, 7  ;;  %v11642_v9 = vmov 0.0  }
  0xa4   :  { %103 = vadd.xlane.f32.xlu1 %v102_v11  ;;  %7577 = vmatprep.subr.bf16.mxu1 %v11642_v9  ;;  %v245_v11 = vld [vmem:[%s11622_s8] ss:$2 sm:$0x3] }
  0xa5   :  { %v99_v12 = vmul.f32 %v95_v10, %v95_v10  ;;  %11705 = vst [vmem:[#allocation7_spill] sm:$0xff] %v8598_v8  ;;  %7607 = vmatprep.subr.bf16.mxu0 %v11642_v9  ;;  %7579 = vmatprep.mubr.msk.bf16.mxu1 %vm8405_vm1, %v11642_v9 }
  0xa7   :  { %v105_v13 = vsel %vm76_vm0, %v99_v12, 0.0  ;;  %v11639_v12 = vsub.s32 1, %v8598_v8 }
  0xa8   :  { %106 = vadd.xlane.f32.xlu1 %v105_v13 }
 0x131   :  { %v104_v14 = vpop.xlane.xlu1 %103 }
 0x132   :  { %v114_v15 = vmul.f32 0.015625, %v104_v14 }
 0x134   :  { %v118_v16 = vadd.f32 1e-12, %v114_v15  ;;  %v8616_v15 = vrot.slane %v245_v11, %v11639_v12 }
 0x135   :  { %v107_v17 = vpop.xlane.xlu1 %106 }
 0x136   :  { %8215 = vrsqrt.f32 %v118_v16  ;;  %v115_v18 = vmul.f32 0.015625, %v107_v17  ;;  %11708 = vst [vmem:[#allocation10_spill] sm:$0xff] %v8616_v15 }
 0x138   :  { %v119_v19 = vadd.f32 1e-12, %v115_v18 }
 0x13a   :  { %8217 = vrsqrt.f32 %v119_v19 }
 0x140   :  { %v8216_v20 = vpop.eup %8215 }
 0x141   :  { %v126_v22 = vmul.f32 %v8216_v20, %v94_v6 }
 0x143   :  { %v136_v24 = vmul.f32 %v8536_v21, %v126_v22 }
 0x144   :  { %v8218_v25 = vpop.eup %8217 }
 0x145   :  { %v146_v27 = vadd.f32 %v8541_v23, %v136_v24  ;;  %v127_v28 = vmul.f32 %v8218_v25, %v95_v10  ;;  %v8603_v10 = vsub.s32 0, %v8598_v8 }
 0x147   :  { %v157_v29 = vadd.f32 %v8547_v26, %v146_v27  ;;  %v137_v30 = vmul.f32 %v8536_v21, %v127_v28  ;;  %11706 = vst [vmem:[#allocation8_spill] sm:$0xff] %v8603_v10  ;;  %v8612_v13 = vrot.slane %v245_v11, %v8603_v10  ;;  %v8407_v28 = vmov 1966171168  }
 0x149   :  { %v163_v31 = vsel %vm76_vm0, %v157_v29, 0.0  ;;  %v147_v32 = vadd.f32 %v8541_v23, %v137_v30  ;;  %11707 = vst [vmem:[#allocation9_spill] sm:$0xff] %v8612_v13 }
 0x14a   :  { %164 = vadd.xlane.f32.xlu0 %v163_v31 }
 0x14b   :  { %v158_v33 = vadd.f32 %v8547_v26, %v147_v32 }
 0x14d   :  { %v166_v34 = vsel %vm76_vm0, %v158_v33, 0.0 }
 0x14e   :  { %167 = vadd.xlane.f32.xlu1 %v166_v34 }
 0x1d7   :  { %v165_v35 = vpop.xlane.xlu0 %164 }
 0x1d8   :  { %v175_v36 = vmul.f32 0.015625, %v165_v35 }
 0x1da   :  { %v179_v37 = vsub.f32 %v157_v29, %v175_v36  ;;  %v396_v29 = vunpack.c.l.s4 %v8407_v28 }
 0x1db   :  { %v168_v38 = vpop.xlane.xlu1 %167 }
 0x1dc   :  { %v176_v39 = vmul.f32 0.015625, %v168_v38  ;;  %v183_v40 = vmul.f32 %v179_v37, %v179_v37  ;;  %v397_v30 = vunpack.c.0.s8 %v396_v29 }
 0x1de   :  { %v180_v41 = vsub.f32 %v158_v33, %v176_v39  ;;  %v187_v42 = vsel %vm76_vm0, %v183_v40, 0.0  ;;  %v8629_v31 = vsub.s32 %v397_v30, %v8598_v8 }
 0x1df   :  { %188 = vadd.xlane.f32.xlu0 %v187_v42 }
 0x1e0   :  { %v184_v43 = vmul.f32 %v180_v41, %v180_v41  ;;  %11710 = vst [vmem:[#allocation12_spill] sm:$0xff] %v8629_v31 }
 0x1e2   :  { %v190_v44 = vsel %vm76_vm0, %v184_v43, 0.0 }
 0x1e3   :  { %191 = vadd.xlane.f32.xlu1 %v190_v44 }
 0x26c   :  { %v189_v54 = vpop.xlane.xlu0 %188 }
 0x26d   :  { %v199_v55 = vmul.f32 0.015625, %v189_v54 }
 0x26f   :  { %v203_v56 = vadd.f32 1e-12, %v199_v55 }
 0x270   :  { %v192_v57 = vpop.xlane.xlu1 %191 }
 0x271   :  { %8219 = vrsqrt.f32 %v203_v56  ;;  %v200_v58 = vmul.f32 0.015625, %v192_v57 }
 0x273   :  { %v204_v59 = vadd.f32 1e-12, %v200_v58 }
 0x275   :  { %8221 = vrsqrt.f32 %v204_v59 }
 0x27b   :  { %v8220_v60 = vpop.eup %8219 }
 0x27c   :  { %v211_v61 = vmul.f32 %v8220_v60, %v179_v37 }
 0x27e   :  { %v221_v1 = vmul.f32 %v7254_v62, %v211_v61 }
 0x27f   :  { %v8222_v63 = vpop.eup %8221 }
 0x280   :  { %v212_v0 = vmul.f32 %v8222_v63, %v180_v41  ;;  %v8589_v4 = vadd.f32 %v7255_v2, %v221_v1 }
 0x282   :  { %v222_v3 = vmul.f32 %v7254_v62, %v212_v0  ;;  %11703 = vst [vmem:[#allocation5_spill] sm:$0xff] %v8589_v4 }
 0x284   :  { %v8591_v5 = vadd.f32 %v7255_v2, %v222_v3 }
 0x286   :  { %11704 = vst [vmem:[#allocation6_spill] sm:$0xff] %v8591_v5  ;;  %v243_v6 = vpack.c.bf16 %v8591_v5, %v8589_v4 }
 0x288   :  { %7264 = vmatmul.mubr.msk.bf16.vlgmr.msra.gmra.mrb[0].mxu0 %vm76_vm0, %v243_v6 }
 0x289   :  { %345 = vmatprep.mubr.bf16.mxu0 %v11640_v49 }
 0x35b   :  { %v337_v14 = vpop.f32.mrb[0].mxu0 }
 0x35c   :  { %v339_v16 = vpop.f32.mrb[1].mxu0  ;;  %v338_v18 = vadd.f32 %v337_v14, %v8612_v13 }
 0x35d   :  { %v341_v17 = vpop.f32.mrb[2].mxu0  ;;  %v340_v22 = vadd.f32 %v339_v16, %v8616_v15  ;;  %v8655_v16 = vld [vmem:[%s11623_s9 + $0x48] sm:$0xff]  }
 0x35e   :  { %v342_v19 = vadd.f32 %v341_v17, %v8612_v13  ;;  %v343_v20 = vpop.f32.mrb[3].mxu0  ;;  %v8660_v17 = vld [vmem:[%s11623_s9] sm:$0xff]  }
 0x35f   :  { %v344_v24 = vadd.f32 %v343_v20, %v8616_v15 }
 0x360   :  { %v8622_v25 = vpack.c.bf16 %v342_v19, %v338_v18  ;;  %v7266_v32 = vpack.c.bf16 %v342_v19, %v342_v19  ;;  %v8666_v19 = vld [vmem:[%s11623_s9 + $0x58] sm:$0xff]  }
 0x361   :  { %v8624_v27 = vpack.c.bf16 %v344_v24, %v340_v22 }
 0x362   :  { %651 = vrot.lane.b32.xlu0 %v8622_v25, %s8406_s30  ;;  %v408_v33 = vrot.slane %v7266_v32, %v8629_v31  ;;  %v401_v35 = vrot.slane %v8622_v25, %v8629_v31 }
 0x363   :  { %11709 = vst [vmem:[#allocation11_spill] sm:$0xff] %v8624_v27 }
 0x364   :  { %v410_v34 = vcombine.high %v408_v33, %v408_v33  ;;  %v424_v36 = vrot.slane %v408_v33, %v8629_v31  ;;  %v417_v38 = vrot.slane %v401_v35, %v8629_v31  ;;  %v409_v55 = vcombine.high %v401_v35, %v401_v35 }
 0x366   :  { %v8636_v37 = vrot.slane %v410_v34, %v8629_v31  ;;  %v452_v39 = vunpack.i.h.s16 %v424_v36  ;;  %v444_v41 = vunpack.i.h.s16 %v417_v38  ;;  %v439_v42 = vcombine.high %v417_v38, %v417_v38 }
 0x367   :  { %v7267_v43 = vpack.i.b16 %v417_v38, %v417_v38  ;;  %v440_v44 = vcombine.high %v424_v36, %v424_v36  ;;  %v7271_v58 = vpack.i.b16 %v424_v36, %v424_v36  ;;  %v8647_v0 = vrot.slane %v409_v55, %v8629_v31 }
 0x368   :  { %v454_v40 = vunpack.i.h.s16 %v8636_v37  ;;  %v468_v45 = vpack.i.b16 %v452_v39, %v452_v39  ;;  %v460_v47 = vpack.i.b16 %v444_v41, %v444_v41  ;;  %v7269_v48 = vpack.i.b16 %v439_v42, %v439_v42  ;;  %v8692_v39 = vld [vmem:[%s11623_s9 + $0x8] sm:$0xff]   ;;  %v8700_v41 = vld [vmem:[%s11623_s9 + $0x20] sm:$0xff]  }
 0x369   :  { %v478_v50 = vrot.slane %v7267_v43, %v8603_v10  ;;  %v7273_v53 = vpack.i.b16 %v440_v44, %v440_v44  ;;  %v448_v54 = vunpack.i.h.s16 %v439_v42  ;;  %v456_v1 = vunpack.i.h.s16 %v440_v44 }
 0x36a   :  { %v470_v46 = vpack.i.b16 %v454_v40, %v454_v40  ;;  %v514_v51 = vrot.slane %v468_v45, %v8603_v10  ;;  %v482_v56 = vrot.slane %v460_v47, %v8603_v10  ;;  %v494_v57 = vrot.slane %v7269_v48, %v8603_v10 }
 0x36b   :  { %v540_v59 = vpack.i.b16 %v478_v50, %v478_v50  ;;  %v526_v62 = vrot.slane %v7273_v53, %v8603_v10  ;;  %v464_v63 = vpack.i.b16 %v448_v54, %v448_v54  ;;  %v510_v11 = vrot.slane %v7271_v58, %v8603_v10 }
 0x36c   :  { %v522_v52 = vrot.slane %v470_v46, %v8603_v10  ;;  %v603_v60 = vpack.i.b16 %v514_v51, %v514_v51  ;;  %v547_v2 = vpack.i.b16 %v482_v56, %v482_v56  ;;  %v568_v3 = vpack.i.b16 %v494_v57, %v494_v57  ;;  %v8730_v57 = vld [vmem:[%s11623_s9 + $0x60] sm:$0xff]  }
 0x36d   :  { %v545_v6 = vrot.slane %v540_v59, %v8603_v10  ;;  %v624_v20 = vpack.i.b16 %v526_v62, %v526_v62  ;;  %v498_v22 = vrot.slane %v464_v63, %v8603_v10  ;;  %v472_v30 = vpack.i.b16 %v456_v1, %v456_v1 }
 0x36e   :  { %v617_v61 = vpack.i.b16 %v522_v52, %v522_v52  ;;  %v608_v14 = vrot.slane %v603_v60, %v8603_v10  ;;  %v552_v28 = vrot.slane %v547_v2, %v8603_v10  ;;  %v573_v29 = vrot.slane %v568_v3, %v8603_v10 }
 0x36f   :  { %v441_v32 = vcombine.high %v8647_v0, %v8647_v0  ;;  %v596_v42 = vpack.i.b16 %v510_v11, %v510_v11  ;;  %v442_v46 = vcombine.high %v8636_v37, %v8636_v37  ;;  %v629_v47 = vrot.slane %v624_v20, %v8603_v10  ;;  %v8753_v20 = vld [vmem:[%s11623_s9 + $0x40] sm:$0xff]  }
 0x370   :  { %v622_v18 = vrot.slane %v617_v61, %v8603_v10  ;;  %v575_v48 = vpack.i.b16 %v498_v22, %v498_v22  ;;  %v530_v52 = vrot.slane %v472_v30, %v8603_v10  ;;  %v7268_v1 = vpack.i.b16 %v8647_v0, %v8647_v0 }
 0x371   :  { %v7270_v53 = vpack.i.b16 %v441_v32, %v441_v32  ;;  %v601_v58 = vrot.slane %v596_v42, %v8603_v10  ;;  %v7274_v2 = vpack.i.b16 %v442_v46, %v442_v46  ;;  %v450_v11 = vunpack.i.h.s16 %v441_v32 }
 0x372   :  { %v580_v63 = vrot.slane %v575_v48, %v8603_v10  ;;  %v631_v3 = vpack.i.b16 %v530_v52, %v530_v52  ;;  %v486_v42 = vrot.slane %v7268_v1, %v8603_v10  ;;  %v7272_v1 = vpack.i.b16 %v8636_v37, %v8636_v37  ;;  %v8806_v37 = vld [vmem:[%s11623_s9 + $0x30] sm:$0xff]  }
 0x373   :  { %v11724_v31 = vlaneseq }
 0x3d4   :  { %v8669_v24 = vpop.permute.xlu0 %651 }
 0x3d5   :  { %v1118_v33 = vsel %vm814_vm2, %v8669_v24, 0  ;;  %v8678_v34 = vadd.bf16 %v8669_v24, %v608_v14  ;;  %v8681_v35 = vadd.bf16 %v8669_v24, %v545_v6  ;;  %v8684_v36 = vadd.bf16 %v8669_v24, %v622_v18 }
 0x3d6   :  { %7578 = vmatpush3.bf16.xpose.msra.mxu1 %v1118_v33  ;;  %v8687_v38 = vadd.bf16 %v8669_v24, %v552_v28  ;;  %v8695_v40 = vadd.bf16 %v8669_v24, %v573_v29  ;;  %v8725_v56 = vadd.bf16 %v8669_v24, %v629_v47  ;;  %v502_v6 = vrot.slane %v7270_v53, %v8603_v10  ;;  %v8766_v33 = vld [vmem:[%s11623_s9 + $0x28] sm:$0xff]  }
 0x3d7   :  { %11711 = vst [vmem:[#allocation13_spill] sm:$0xff] %v8678_v34  ;;  %11712 = vst [vmem:[#allocation14_spill] sm:$0xff] %v8684_v36  ;;  %v8704_v43 = vmul.bf16 %v8655_v16, %v8678_v34  ;;  %v766_v44 = vmul.bf16 %v8660_v17, %v8681_v35  ;;  %7583 = vmatprep.subr.bf16.mxu1 %v11642_v9  ;;  %v8711_v45 = vmul.bf16 %v8666_v19, %v8684_v36 }
 0x3d8   :  { %11713 = vst [vmem:[#allocation15_spill] sm:$0xff] %v8695_v40  ;;  %v767_v54 = vmul.bf16 %v8692_v39, %v8687_v38  ;;  %v8722_v55 = vmul.bf16 %v8700_v41, %v8695_v40  ;;  %11714 = vst [vmem:[#allocation16_spill] sm:$0xff] %v8725_v56  ;;  %v8745_v14 = vmul.bf16 %v8730_v57, %v8725_v56 }
 0x3d9   :  { %v800_v50 = vunpack.c.l.bf16 %v8704_v43  ;;  %v782_v51 = vunpack.c.l.bf16 %v766_v44  ;;  %v805_v61 = vunpack.c.h.bf16 %v8711_v45  ;;  %v783_v62 = vunpack.c.h.bf16 %v766_v44 }
 0x3da   :  { %v8748_v18 = vadd.bf16 %v8669_v24, %v601_v58  ;;  %v8756_v22 = vadd.bf16 %v8669_v24, %v580_v63  ;;  %v784_v30 = vunpack.c.l.bf16 %v767_v54  ;;  %v791_v32 = vunpack.c.h.bf16 %v8722_v55 }
 0x3db   :  { %v869_v59 = vsel %vm814_vm2, %v800_v50, 0.0  ;;  %v815_v60 = vsel %vm814_vm2, %v782_v51, 0.0  ;;  %v884_v28 = vsel %vm814_vm2, %v805_v61, 0.0  ;;  %v818_v29 = vsel %vm814_vm2, %v783_v62, 0.0 }
 0x3dc   :  { %870 = vadd.xlane.f32.xlu0 %v869_v59  ;;  %816 = vadd.xlane.f32.xlu1 %v815_v60  ;;  %11715 = vst [vmem:[#allocation17_spill] sm:$0xff] %v8756_v22  ;;  %v534_v44 = vrot.slane %v7274_v2, %v8603_v10  ;;  %v636_v47 = vrot.slane %v631_v3, %v8603_v10  ;;  %v458_v51 = vunpack.i.h.s16 %v442_v46  ;;  %v785_v52 = vunpack.c.h.bf16 %v767_v54  ;;  %v8787_v46 = vld [vmem:[%s11623_s9 + $0x68] sm:$0xff]  }
 0x3dd   :  { %7580 = vmatmul.mubr.msk.bf16.vlgmr.msra.gmra.mrb[0].mxu1 %vm814_vm2, %v8622_v25  ;;  %v582_v48 = vpack.i.b16 %v502_v6, %v502_v6  ;;  %v466_v50 = vpack.i.b16 %v450_v11, %v450_v11  ;;  %v807_v53 = vunpack.c.h.bf16 %v8745_v14  ;;  %v774_v58 = vmul.bf16 %v8753_v20, %v8748_v18 }
 0x3de   :  { %7584 = vmatpush3.bf16.msra.mxu1 %v8624_v27  ;;  %7585 = vmatprep.mubr.msk.bf16.mxu1 %vm8405_vm1, %v11642_v9  ;;  %v821_v59 = vsel %vm814_vm2, %v784_v30, 0.0  ;;  %v842_v60 = vsel %vm814_vm2, %v791_v32, 0.0  ;;  %v8779_v61 = vmul.bf16 %v8766_v33, %v8756_v22  ;;  %v8782_v62 = vadd.bf16 %v8669_v24, %v636_v47 }
 0x3df   :  { %7589 = vmatprep.subr.bf16.mxu1 %v11642_v9  ;;  %v554_v54 = vpack.i.b16 %v486_v42, %v486_v42  ;;  %v638_v63 = vpack.i.b16 %v534_v44, %v534_v44  ;;  %v587_v2 = vrot.slane %v582_v48, %v8603_v10  ;;  %v506_v3 = vrot.slane %v466_v50, %v8603_v10 }
 0x3e0   :  { %885 = vadd.xlane.f32.xlu0 %v884_v28  ;;  %819 = vadd.xlane.f32.xlu1 %v818_v29  ;;  %11716 = vst [vmem:[#allocation18_spill] sm:$0xff] %v8782_v62  ;;  %v474_v6 = vpack.i.b16 %v458_v51, %v458_v51  ;;  %v824_v11 = vsel %vm814_vm2, %v785_v52, 0.0  ;;  %v890_v28 = vsel %vm814_vm2, %v807_v53, 0.0  ;;  %v798_v29 = vunpack.c.l.bf16 %v774_v58 }
 0x3e1   :  { %v793_v30 = vunpack.c.h.bf16 %v8779_v61  ;;  %v8798_v32 = vmul.bf16 %v8787_v46, %v8782_v62  ;;  %v8801_v42 = vadd.bf16 %v8669_v24, %v587_v2  ;;  %v559_v44 = vrot.slane %v554_v54, %v8603_v10 }
 0x3e2   :  { %v643_v47 = vrot.slane %v638_v63, %v8603_v10  ;;  %v518_v48 = vrot.slane %v7272_v1, %v8603_v10  ;;  %v589_v50 = vpack.i.b16 %v506_v3, %v506_v3  ;;  %v538_v51 = vrot.slane %v474_v6, %v8603_v10 }
 0x3e3   :  { %11717 = vst [vmem:[#allocation19_spill] sm:$0xff] %v8801_v42  ;;  %v446_v52 = vunpack.i.h.s16 %v8647_v0  ;;  %v799_v53 = vunpack.c.h.bf16 %v774_v58  ;;  %v863_v63 = vsel %vm814_vm2, %v798_v29, 0.0  ;;  %v848_v1 = vsel %vm814_vm2, %v793_v30, 0.0  ;;  %v8834_v58 = vld [vmem:[%s11623_s9 + $0x70] sm:$0xff]  }
 0x3e4   :  { %822 = vadd.xlane.f32.xlu1 %v821_v59  ;;  %843 = vadd.xlane.f32.xlu0 %v842_v60  ;;  %v8814_v59 = vadd.bf16 %v8669_v24, %v559_v44  ;;  %v8819_v60 = vld [vmem:[%s11623_s9 + $0x10] sm:$0xff]   ;;  %v8822_v54 = vadd.bf16 %v8669_v24, %v643_v47  ;;  %v809_v2 = vunpack.c.h.bf16 %v8798_v32  ;;  %v8829_v0 = vmul.bf16 %v8806_v37, %v8801_v42 }
 0x3e5   :  { %v610_v3 = vpack.i.b16 %v518_v48, %v518_v48  ;;  %v594_v6 = vrot.slane %v589_v50, %v8603_v10  ;;  %v866_v29 = vsel %vm814_vm2, %v799_v53, 0.0  ;;  %v801_v30 = vunpack.c.h.bf16 %v8704_v43  ;;  %v8853_v50 = vld [vmem:[%s11623_s9 + $0x38] sm:$0xff]  }
 0x3e6   :  { %11718 = vst [vmem:[#allocation20_spill] sm:$0xff] %v8814_v59  ;;  %11719 = vst [vmem:[#allocation21_spill] sm:$0xff] %v8822_v54  ;;  %v768_v44 = vmul.bf16 %v8819_v60, %v8814_v59  ;;  %v896_v47 = vsel %vm814_vm2, %v809_v2, 0.0  ;;  %v795_v12 = vunpack.c.h.bf16 %v8829_v0  ;;  %v944_v27 = vand.u32 127, %v11724_v31 }
 0x3e7   :  { %v8848_v48 = vadd.bf16 %v8669_v24, %v594_v6  ;;  %v615_v43 = vrot.slane %v610_v3, %v8603_v10  ;;  %v872_v53 = vsel %vm814_vm2, %v801_v30, 0.0  ;;  %v8865_v6 = vld [vmem:[%s11623_s9 + $0x50] sm:$0xff]  }
 0x3e8   :  { %825 = vadd.xlane.f32.xlu1 %v824_v11  ;;  %891 = vadd.xlane.f32.xlu0 %v890_v28  ;;  %v645_v11 = vpack.i.b16 %v538_v51, %v538_v51  ;;  %v462_v28 = vpack.i.b16 %v446_v52, %v446_v52  ;;  %v8972_v62 = vsub.s32 %v944_v27, %v8598_v8 }
 0x3e9   :  { %11720 = vst [vmem:[#allocation22_spill] sm:$0xff] %v8848_v48  ;;  %v8860_v2 = vadd.bf16 %v8669_v24, %v615_v43  ;;  %v8871_v3 = vmul.bf16 %v8853_v50, %v8848_v48  ;;  %v787_v43 = vunpack.c.h.bf16 %v768_v44 }
 0x3ea   :  { %v650_v51 = vrot.slane %v645_v11, %v8603_v10  ;;  %v490_v52 = vrot.slane %v462_v28, %v8603_v10  ;;  %v8879_v28 = vld [vmem:[%s11623_s9 + $0x78] sm:$0xff]   ;;  %11726 = vst [vmem:[#allocation27_spill] sm:$0xff] %v8972_v62 }
 0x3eb   :  { %11721 = vst [vmem:[#allocation23_spill] sm:$0xff] %v8860_v2  ;;  %v797_v7 = vunpack.c.h.bf16 %v8871_v3 }
 0x3ec   :  { %864 = vadd.xlane.f32.xlu1 %v863_v63  ;;  %849 = vadd.xlane.f32.xlu0 %v848_v1  ;;  %v8845_v63 = vmul.bf16 %v8834_v58, %v8822_v54  ;;  %v786_v1 = vunpack.c.l.bf16 %v768_v44  ;;  %v8874_v11 = vadd.bf16 %v8669_v24, %v650_v51  ;;  %v561_v30 = vpack.i.b16 %v490_v52, %v490_v52 }
 0x3ed   :  { %v860_v44 = vsel %vm814_vm2, %v797_v7, 0.0 }
 0x3ee   :  { %11722 = vst [vmem:[#allocation24_spill] sm:$0xff] %v8874_v11  ;;  %v827_v49 = vsel %vm814_vm2, %v786_v1, 0.0  ;;  %v781_v51 = vmul.bf16 %v8879_v28, %v8874_v11  ;;  %v566_v5 = vrot.slane %v561_v30, %v8603_v10  ;;  %v8897_v1 = vld [vmem:[%s11623_s9 + $0x18] sm:$0xff]   ;;  %v949_v11 = vadd.s32 4294967288, %v944_v27 }
 0x3f0   :  { %867 = vadd.xlane.f32.xlu1 %v866_v29  ;;  %897 = vadd.xlane.f32.xlu0 %v896_v47  ;;  %v854_v29 = vsel %vm814_vm2, %v795_v12, 0.0  ;;  %v811_v47 = vunpack.c.h.bf16 %v8845_v63  ;;  %v776_v12 = vmul.bf16 %v8865_v6, %v8860_v2  ;;  %v8892_v4 = vadd.bf16 %v8669_v24, %v566_v5 }
 0x3f1   :  { %v8967_v54 = vsub.s32 %v949_v11, %v8598_v8 }
 0x3f2   :  { %v902_v9 = vsel %vm814_vm2, %v811_v47, 0.0  ;;  %v802_v52 = vunpack.c.l.bf16 %v776_v12  ;;  %11723 = vst [vmem:[#allocation25_spill] sm:$0xff] %v8892_v4  ;;  %v803_v47 = vunpack.c.h.bf16 %v776_v12  ;;  %v769_v5 = vmul.bf16 %v8897_v1, %v8892_v4 }
 0x3f3   :  { %v804_v12 = vunpack.c.l.bf16 %v8711_v45  ;;  %v808_v45 = vunpack.c.l.bf16 %v8798_v32  ;;  %v8932_v32 = vld [vmem:[%s11698_s26 + $0x10] sm:$0xff]  ;;  %11725 = vst [vmem:[#allocation26_spill] sm:$0xff] %v8967_v54 }
 0x3f4   :  { %873 = vadd.xlane.f32.xlu1 %v872_v53  ;;  %855 = vadd.xlane.f32.xlu0 %v854_v29  ;;  %v830_v53 = vsel %vm814_vm2, %v787_v43, 0.0  ;;  %v813_v29 = vunpack.c.h.bf16 %v781_v51  ;;  %v878_v30 = vsel %vm814_vm2, %v803_v47, 0.0  ;;  %v788_v43 = vunpack.c.l.bf16 %v769_v5 }
 0x3f5   :  { %v806_v47 = vunpack.c.l.bf16 %v8745_v14  ;;  %v810_v14 = vunpack.c.l.bf16 %v8845_v63  ;;  %v83_v63 = vsel %vm76_vm0, %v8932_v32, 0.0 }
 0x3f6   :  { %v908_v7 = vsel %vm814_vm2, %v813_v29, 0.0  ;;  %v881_v29 = vsel %vm814_vm2, %v804_v12, 0.0  ;;  %v812_v12 = vunpack.c.l.bf16 %v781_v51 }
 0x3f8   :  { %828 = vadd.xlane.f32.xlu1 %v827_v49  ;;  %903 = vadd.xlane.f32.xlu0 %v902_v9  ;;  %v8902_v49 = vld [vmem:[%s11698_s26 + $0x18] sm:$0xff]  ;;  %v875_v9 = vsel %vm814_vm2, %v802_v52, 0.0 }
 0x3f9   :  { %v86_v24 = vsel %vm76_vm0, %v8902_v49, 0.0 }
 0x3fc   :  { %831 = vadd.xlane.f32.xlu1 %v830_v53  ;;  %861 = vadd.xlane.f32.xlu0 %v860_v44  ;;  %v833_v53 = vsel %vm814_vm2, %v788_v43, 0.0  ;;  %v789_v44 = vunpack.c.h.bf16 %v769_v5  ;;  %v792_v5 = vunpack.c.l.bf16 %v8779_v61  ;;  %v893_v43 = vsel %vm814_vm2, %v808_v45, 0.0 }
 0x3fd   :  { %v796_v61 = vunpack.c.l.bf16 %v8871_v3 }
 0x3fe   :  { %v836_v52 = vsel %vm814_vm2, %v789_v44, 0.0  ;;  %v899_v44 = vsel %vm814_vm2, %v810_v14, 0.0 }
 0x400   :  { %876 = vadd.xlane.f32.xlu1 %v875_v9  ;;  %909 = vadd.xlane.f32.xlu0 %v908_v7  ;;  %v790_v9 = vunpack.c.l.bf16 %v8722_v55  ;;  %v794_v55 = vunpack.c.l.bf16 %v8829_v0  ;;  %v905_v0 = vsel %vm814_vm2, %v812_v12, 0.0 }
 0x402   :  { %v839_v7 = vsel %vm814_vm2, %v790_v9, 0.0 }
 0x404   :  { %879 = vadd.xlane.f32.xlu1 %v878_v30  ;;  %87 = vadd.xlane.f32.xlu0 %v86_v24  ;;  %v887_v24 = vsel %vm814_vm2, %v806_v47, 0.0  ;;  %v845_v30 = vsel %vm814_vm2, %v792_v5, 0.0 }
 0x408   :  { %834 = vadd.xlane.f32.xlu1 %v833_v53  ;;  %v851_v53 = vsel %vm814_vm2, %v794_v55, 0.0 }
 0x40c   :  { %837 = vadd.xlane.f32.xlu1 %v836_v52  ;;  %v857_v52 = vsel %vm814_vm2, %v796_v61, 0.0 }
 0x410   :  { %882 = vadd.xlane.f32.xlu1 %v881_v29 }
 0x414   :  { %840 = vadd.xlane.f32.xlu1 %v839_v7 }
 0x418   :  { %888 = vadd.xlane.f32.xlu1 %v887_v24 }
 0x41c   :  { %846 = vadd.xlane.f32.xlu1 %v845_v30 }
 0x420   :  { %894 = vadd.xlane.f32.xlu1 %v893_v43 }
 0x424   :  { %852 = vadd.xlane.f32.xlu1 %v851_v53 }
 0x428   :  { %900 = vadd.xlane.f32.xlu1 %v899_v44 }
 0x42c   :  { %858 = vadd.xlane.f32.xlu1 %v857_v52 }
 0x430   :  { %906 = vadd.xlane.f32.xlu1 %v905_v0 }
 0x434   :  { %84 = vadd.xlane.f32.xlu1 %v83_v63 }
 0x469   :  { %v817_v29 = vpop.xlane.xlu1 %816  ;;  %v8941_v24 = vpop.xlane.xlu0 %870 }
 0x46a   :  { %v948_v11 = vrot.slane %v817_v29, %v8972_v62 }
 0x46d   :  { %v820_v9 = vpop.xlane.xlu1 %819  ;;  %v8945_v45 = vpop.xlane.xlu0 %885 }
 0x46e   :  { %v953_v31 = vrot.slane %v820_v9, %v8967_v54  ;;  %v1053_v9 = vrot.slane %v8945_v45, %v8967_v54 }
 0x470   :  { %v955_v29 = vsel %vm954_vm3, %v953_v31, %v948_v11 }
 0x471   :  { %v823_v3 = vpop.xlane.xlu1 %822  ;;  %v8947_v55 = vpop.xlane.xlu0 %843 }
 0x472   :  { %v959_v40 = vrot.slane %v823_v3, %v8972_v62 }
 0x475   :  { %v826_v7 = vpop.xlane.xlu1 %825  ;;  %v8953_v44 = vpop.xlane.xlu0 %891 }
 0x476   :  { %v963_v22 = vrot.slane %v826_v7, %v8967_v54  ;;  %v1031_v7 = vrot.slane %v8941_v24, %v8972_v62 }
 0x478   :  { %v964_v36 = vsel %vm954_vm3, %v963_v22, %v959_v40  ;;  %v990_v40 = vrot.slane %v8947_v55, %v8967_v54 }
 0x479   :  { %v8937_v47 = vpop.xlane.xlu1 %864  ;;  %v8955_v52 = vpop.xlane.xlu0 %849  ;;  %v1092_v24 = vsel %vm1091_vm4, %v964_v36, %v955_v29 }
 0x47a   :  { %v1022_v55 = vrot.slane %v8937_v47, %v8972_v62  ;;  %v999_v36 = vrot.slane %v8955_v52, %v8967_v54 }
 0x47d   :  { %v8939_v51 = vpop.xlane.xlu1 %867  ;;  %v8959_v63 = vpop.xlane.xlu0 %897 }
 0x47e   :  { %v1026_v22 = vrot.slane %v8939_v51, %v8967_v54 }
 0x480   :  { %v1027_v47 = vsel %vm954_vm3, %v1026_v22, %v1022_v55 }
 0x481   :  { %v8943_v5 = vpop.xlane.xlu1 %873  ;;  %v8962_v15 = vpop.xlane.xlu0 %855 }
 0x482   :  { %v1035_v51 = vrot.slane %v8943_v5, %v8967_v54  ;;  %v1071_v5 = vrot.slane %v8959_v63, %v8967_v54  ;;  %v1008_v52 = vrot.slane %v8962_v15, %v8967_v54 }
 0x485   :  { %v829_v30 = vpop.xlane.xlu1 %828  ;;  %v8969_v42 = vpop.xlane.xlu0 %903 }
 0x486   :  { %v968_v45 = vrot.slane %v829_v30, %v8972_v62 }
 0x489   :  { %v832_v43 = vpop.xlane.xlu1 %831  ;;  %v862_v4 = vpop.xlane.xlu0 %861 }
 0x48a   :  { %v972_v3 = vrot.slane %v832_v43, %v8967_v54 }
 0x48d   :  { %v8949_v53 = vpop.xlane.xlu1 %876 }
 0x491   :  { %v8951_v14 = vpop.xlane.xlu1 %879 }
 0x492   :  { %v1044_v30 = vrot.slane %v8951_v14, %v8967_v54  ;;  %v910_v14 = vpop.xlane.xlu0 %909 }
 0x495   :  { %v835_v61 = vpop.xlane.xlu1 %834 }
 0x499   :  { %v838_v12 = vpop.xlane.xlu1 %837 }
 0x49a   :  { %v981_v59 = vrot.slane %v838_v12, %v8967_v54  ;;  %v977_v12 = vrot.slane %v835_v61, %v8972_v62 }
 0x49c   :  { %v982_v61 = vsel %vm954_vm3, %v981_v59, %v977_v12 }
 0x49d   :  { %v8957_v0 = vpop.xlane.xlu1 %882 }
 0x4a1   :  { %v841_v10 = vpop.xlane.xlu1 %840 }
 0x4a2   :  { %v986_v43 = vrot.slane %v841_v10, %v8972_v62 }
 0x4a5   :  { %v8964_v13 = vpop.xlane.xlu1 %888 }
 0x4a6   :  { %v1058_v22 = vrot.slane %v8964_v13, %v8972_v62  ;;  %v1017_v13 = vrot.slane %v862_v4, %v8967_v54 }
 0x4a9   :  { %v847_v48 = vpop.xlane.xlu1 %846 }
 0x4aa   :  { %v995_v11 = vrot.slane %v847_v48, %v8972_v62  ;;  %v1049_v48 = vrot.slane %v8957_v0, %v8972_v62 }
 0x4ac   :  { %v1000_v59 = vsel %vm954_vm3, %v999_v36, %v995_v11  ;;  %v88_v36 = vpop.xlane.xlu0 %87 }
 0x4ad   :  { %v8975_v56 = vpop.xlane.xlu1 %894 }
 0x4ae   :  { %v1067_v0 = vrot.slane %v8975_v56, %v8972_v62  ;;  %v1080_v56 = vrot.slane %v8969_v42, %v8967_v54 }
 0x4b0   :  { %v8981_v27 = vpop.f32.mrb[0].mxu1  ;;  %v1072_v4 = vsel %vm954_vm3, %v1071_v5, %v1067_v0 }
 0x4b1   :  { %v7581_v8 = vpop.f32.mrb[1].mxu1  ;;  %v853_v2 = vpop.xlane.xlu1 %852 }
 0x4b2   :  { %v8994_v34 = vpop.f32.mrb[2].mxu1  ;;  %v1062_v8 = vrot.slane %v8953_v44, %v8967_v54  ;;  %v973_v44 = vsel %vm954_vm3, %v972_v3, %v968_v45  ;;  %v1004_v10 = vrot.slane %v853_v2, %v8972_v62  ;;  %v1040_v3 = vrot.slane %v8949_v53, %v8972_v62 }
 0x4b3   :  { %v7582_v31 = vpop.f32.mrb[3].mxu1  ;;  %v991_v2 = vsel %vm954_vm3, %v990_v40, %v986_v43  ;;  %v1036_v45 = vsel %vm954_vm3, %v1035_v51, %v1031_v7  ;;  %v1094_v63 = vsel %vm1093_vm5, %v973_v44, %v1092_v24  ;;  %v1054_v7 = vsel %vm954_vm3, %v1053_v9, %v1049_v48 }
 0x4b4   :  { %v1045_v15 = vsel %vm954_vm3, %v1044_v30, %v1040_v3  ;;  %v1096_v31 = vsel %vm1095_vm6, %v982_v61, %v1094_v63  ;;  %v1009_v53 = vsel %vm954_vm3, %v1008_v52, %v1004_v10  ;;  %v1105_v51 = vsel %vm1091_vm4, %v1036_v45, %v1027_v47 }
 0x4b5   :  { %v901_v29 = vpop.xlane.xlu1 %900  ;;  %v1098_v24 = vsel %vm1097_vm7, %v991_v2, %v1096_v31  ;;  %v1063_v12 = vsel %vm954_vm3, %v1062_v8, %v1058_v22  ;;  %v1106_v44 = vsel %vm1093_vm5, %v1045_v15, %v1105_v51  ;;  %v1089_v10 = vrot.slane %v910_v14, %v8967_v54  ;;  %v9059_v14 = vld [vmem:[%s11727_s22] ss:$0 sm:$0xff] }
 0x4b6   :  { %v1076_v40 = vrot.slane %v901_v29, %v8972_v62  ;;  %v1100_v11 = vsel %vm1099_vm8, %v1000_v59, %v1098_v24  ;;  %v1107_v29 = vsel %vm1095_vm6, %v1054_v7, %v1106_v44  ;;  %v93_v52 = vmul.f32 0.015625, %v88_v36 }
 0x4b7   :  { %v1102_v30 = vsel %vm1101_vm9, %v1009_v53, %v1100_v11  ;;  %v1108_v61 = vsel %vm1097_vm7, %v1063_v12, %v1107_v29 }
 0x4b8   :  { %v1081_v47 = vsel %vm954_vm3, %v1080_v56, %v1076_v40  ;;  %v1109_v3 = vsel %vm1099_vm8, %v1072_v4, %v1108_v61  ;;  %v97_v15 = vsub.f32 %v8902_v49, %v93_v52 }
 0x4b9   :  { %v859_v43 = vpop.xlane.xlu1 %858  ;;  %v1110_v45 = vsel %vm1101_vm9, %v1081_v47, %v1109_v3 }
 0x4ba   :  { %v1013_v55 = vrot.slane %v859_v43, %v8972_v62  ;;  %v101_v24 = vmul.f32 %v97_v15, %v97_v15 }
 0x4bc   :  { %v1018_v9 = vsel %vm954_vm3, %v1017_v13, %v1013_v55  ;;  %v111_v49 = vsel %vm76_vm0, %v101_v24, 0.0 }
 0x4bd   :  { %v907_v42 = vpop.xlane.xlu1 %906  ;;  %v1104_v8 = vsel %vm1103_vm10, %v1018_v9, %v1102_v30 }
 0x4be   :  { %v1085_v48 = vrot.slane %v907_v42, %v8972_v62  ;;  %v1155_v5 = vadd.f32 %v8981_v27, %v1104_v8 }
 0x4c0   :  { %v1090_v2 = vsel %vm954_vm3, %v1089_v10, %v1085_v48  ;;  %v1161_v22 = vmul.f32 0.17677669, %v1155_v5 }
 0x4c1   :  { %v85_v63 = vpop.xlane.xlu1 %84  ;;  %v1111_v59 = vsel %vm1103_vm10, %v1090_v2, %v1110_v45 }
 0x4c2   :  { %v92_v0 = vmul.f32 0.015625, %v85_v63  ;;  %v1167_v27 = vadd.f32 %v9059_v14, %v1161_v22  ;;  %v1158_v31 = vadd.f32 %v8994_v34, %v1111_v59 }
 0x4c4   :  { %v96_v53 = vsub.f32 %v8932_v32, %v92_v0  ;;  %v1170_v40 = vsel %vm1169_vm11, %v1167_v27, -inf  ;;  %v1162_v43 = vmul.f32 0.17677669, %v1158_v31 }
 0x4c5   :  { %1171 = vmax.xlane.f32.xlu1 %v1170_v40 }
 0x4c6   :  { %v1168_v13 = vadd.f32 %v9059_v14, %v1162_v43  ;;  %v100_v7 = vmul.f32 %v96_v53, %v96_v53 }
 0x4c8   :  { %v1173_v55 = vsel %vm1169_vm11, %v1168_v13, -inf  ;;  %v108_v51 = vsel %vm76_vm0, %v100_v7, 0.0 }
 0x4c9   :  { %1174 = vmax.xlane.f32.xlu0 %v1173_v55  ;;  %109 = vadd.xlane.f32.xlu1 %v108_v51 }
 0x4cd   :  { %112 = vadd.xlane.f32.xlu0 %v111_v49 }
 0x552   :  { %v1172_v34 = vpop.xlane.xlu1 %1171 }
 0x553   :  { %v1176_v56 = vsub.f32 %v1167_v27, %v1172_v34 }
 0x555   :  { %v1178_v32 = vmul.f32 1.442695, %v1176_v56 }
 0x556   :  { %v1175_v12 = vpop.xlane.xlu0 %1174  ;;  %v110_v10 = vpop.xlane.xlu1 %109 }
 0x557   :  { %8223 = vpow2.f32 %v1178_v32  ;;  %v1177_v11 = vsub.f32 %v1168_v13, %v1175_v12  ;;  %v116_v29 = vmul.f32 0.015625, %v110_v10  ;;  %v11730_v10 = vld [vmem:[#allocation20_spill] sm:$0xff] }
 0x559   :  { %v1180_v36 = vmul.f32 1.442695, %v1177_v11  ;;  %v120_v42 = vadd.f32 1e-12, %v116_v29 }
 0x55a   :  { %v113_v47 = vpop.xlane.xlu0 %112 }
 0x55b   :  { %8225 = vpow2.f32 %v1180_v36  ;;  %v117_v8 = vmul.f32 0.015625, %v113_v47 }
 0x55c   :  { %8227 = vrsqrt.f32 %v120_v42 }
 0x55d   :  { %v121_v61 = vadd.f32 1e-12, %v117_v8 }
 0x55f   :  { %8229 = vrsqrt.f32 %v121_v61  ;;  %v11731_v61 = vld [vmem:[#allocation23_spill] sm:$0xff] }
 0x561   :  { %v8224_v44 = vpop.eup %8223 }
 0x562   :  { %v1182_v4 = vsel %vm1169_vm11, %v8224_v44, 0.0 }
 0x563   :  { %1183 = vadd.xlane.f32.xlu1 %v1182_v4 }
 0x565   :  { %v8226_v9 = vpop.eup %8225 }
 0x566   :  { %v1185_v30 = vsel %vm1169_vm11, %v8226_v9, 0.0  ;;  %v8228_v48 = vpop.eup %8227 }
 0x567   :  { %1186 = vadd.xlane.f32.xlu0 %v1185_v30  ;;  %v128_v52 = vmul.f32 %v8228_v48, %v96_v53 }
 0x569   :  { %v8230_v5 = vpop.eup %8229  ;;  %v138_v3 = vmul.f32 %v8536_v21, %v128_v52 }
 0x56a   :  { %v129_v2 = vmul.f32 %v8230_v5, %v97_v15 }
 0x56b   :  { %v148_v22 = vadd.f32 %v8541_v23, %v138_v3  ;;  %v11732_v3 = vld [vmem:[#allocation25_spill] sm:$0xff] }
 0x56c   :  { %v139_v45 = vmul.f32 %v8536_v21, %v129_v2 }
 0x56d   :  { %v159_v63 = vadd.f32 %v8547_v26, %v148_v22 }
 0x56e   :  { %v149_v59 = vadd.f32 %v8541_v23, %v139_v45 }
 0x56f   :  { %v169_v0 = vsel %vm76_vm0, %v159_v63, 0.0 }
 0x570   :  { %v160_v27 = vadd.f32 %v8547_v26, %v149_v59  ;;  %v11733_v59 = vld [vmem:[#allocation14_spill] sm:$0xff] }
 0x574   :  { %1559 = vrot.lane.b32.xlu1 %v8622_v25, %s8408_s23 }
 0x57d   :  { %1557 = vrot.lane.b32.xlu0 %v8622_v25, %s8409_s1  ;;  %v172_v25 = vsel %vm76_vm0, %v160_v27, 0.0 }
 0x598   :  { %170 = vadd.xlane.f32.xlu1 %v169_v0 }
 0x59c   :  { %173 = vadd.xlane.f32.xlu0 %v172_v25 }
 0x5a9   :  { %1237 = vrot.lane.b32.xlu1 %v8660_v17, %s8408_s23 }
 0x5ad   :  { %1253 = vrot.lane.b32.xlu1 %v8753_v20, %s8408_s23  ;;  %v11728_v20 = vmov 0.0  }
 0x5b1   :  { %1255 = vrot.lane.b32.xlu1 %v8655_v16, %s8408_s23 }
 0x5b2   :  { %1239 = vrot.lane.b32.xlu0 %v8692_v39, %s8408_s23 }
 0x5b5   :  { %1257 = vrot.lane.b32.xlu1 %v8865_v6, %s8408_s23 }
 0x5b6   :  { %1241 = vrot.lane.b32.xlu0 %v8819_v60, %s8408_s23 }
 0x5b9   :  { %1259 = vrot.lane.b32.xlu1 %v8666_v19, %s8408_s23 }
 0x5ba   :  { %1243 = vrot.lane.b32.xlu0 %v8897_v1, %s8408_s23 }
 0x5bd   :  { %1261 = vrot.lane.b32.xlu1 %v8730_v57, %s8408_s23 }
 0x5be   :  { %1245 = vrot.lane.b32.xlu0 %v8700_v41, %s8408_s23 }
 0x5c1   :  { %1263 = vrot.lane.b32.xlu1 %v8787_v46, %s8408_s23 }
 0x5c2   :  { %1247 = vrot.lane.b32.xlu0 %v8766_v33, %s8408_s23 }
 0x5c5   :  { %1265 = vrot.lane.b32.xlu1 %v8834_v58, %s8408_s23 }
 0x5c6   :  { %1249 = vrot.lane.b32.xlu0 %v8806_v37, %s8408_s23 }
 0x5c9   :  { %1267 = vrot.lane.b32.xlu1 %v8879_v28, %s8408_s23 }
 0x5ca   :  { %1251 = vrot.lane.b32.xlu0 %v8853_v50, %s8408_s23 }
 0x5f0   :  { %v1184_v21 = vpop.xlane.xlu1 %1183 }
 0x5f1   :  { %8231 = vrcp.f32 %v1184_v21 }
 0x5f4   :  { %v1187_v23 = vpop.xlane.xlu0 %1186  ;;  %v1560_v39 = vpop.permute.xlu1 %1559 }
 0x5f5   :  { %8233 = vrcp.f32 %v1187_v23  ;;  %v1757_v57 = vsel %vm814_vm2, %v1560_v39, 0 }
 0x5f8   :  { %v1558_v33 = vpop.permute.xlu0 %1557 }
 0x5fb   :  { %v8232_v26 = vpop.eup %8231 }
 0x5fc   :  { %v1190_v17 = vmul.f32 %v8232_v26, %v8224_v44  ;;  %v11729_v44 = vld [vmem:[#allocation13_spill] sm:$0xff] }
 0x5ff   :  { %v8234_v16 = vpop.eup %8233 }
 0x600   :  { %v1191_v19 = vmul.f32 %v8234_v16, %v8226_v9  ;;  %v11734_v16 = vld [vmem:[#allocation15_spill] sm:$0xff] }
 0x602   :  { %v1192_v41 = vpack.c.bf16 %v1191_v19, %v1190_v17 }
 0x604   :  { %7586 = vmatmul.mubr.msk.bf16.vlgmr.msra.gmra.mrb[4].mxu1 %vm1169_vm11, %v1192_v41 }
 0x605   :  { %7590 = vmatpush3.bf16.xpose.msra.mxu1 %v1757_v57  ;;  %7591 = vmatprep.mubr.msk.bf16.mxu1 %vm8405_vm1, %v11728_v20  ;;  %v11735_v57 = vld [vmem:[#allocation16_spill] sm:$0xff] }
 0x606   :  { %7595 = vmatprep.subr.bf16.mxu1 %v11728_v20 }
 0x60c   :  { %7592 = vmatmul.mubr.msk.bf16.vlgmr.msra.gmra.mrb[8].mxu1 %vm814_vm2, %v1558_v33 }
 0x60d   :  { %7597 = vmatprep.mubr.msk.bf16.mxu1 %vm8405_vm1, %v11728_v20 }
 0x625   :  { %v171_v46 = vpop.xlane.xlu1 %170 }
 0x626   :  { %v177_v37 = vmul.f32 0.015625, %v171_v46 }
 0x628   :  { %v9127_v60 = vsub.f32 %v159_v63, %v177_v37 }
 0x629   :  { %v174_v58 = vpop.xlane.xlu0 %173  ;;  %v9129_v50 = vpop.permute.xlu1 %1237 }
 0x62a   :  { %v178_v6 = vmul.f32 0.015625, %v174_v58  ;;  %v185_v28 = vmul.f32 %v9127_v60, %v9127_v60  ;;  %v1285_v55 = vmul.bf16 %v9129_v50, %v8681_v35 }
 0x62c   :  { %v9133_v1 = vsub.f32 %v160_v27, %v178_v6  ;;  %v193_v15 = vsel %vm76_vm0, %v185_v28, 0.0  ;;  %v1301_v56 = vunpack.c.l.bf16 %v1285_v55  ;;  %v1302_v32 = vunpack.c.h.bf16 %v1285_v55  ;;  %v11736_v28 = vld [vmem:[#allocation17_spill] sm:$0xff] }
 0x62d   :  { %v9136_v31 = vpop.permute.xlu0 %1239  ;;  %194 = vadd.xlane.f32.xlu0 %v193_v15  ;;  %v9138_v53 = vpop.permute.xlu1 %1253 }
 0x62e   :  { %v186_v40 = vmul.f32 %v9133_v1, %v9133_v1  ;;  %v1286_v51 = vmul.bf16 %v9136_v31, %v8687_v38  ;;  %v1293_v12 = vmul.bf16 %v9138_v53, %v8748_v18  ;;  %v7783_v47 = vpack.i.bf16 %v1302_v32, %v1301_v56  ;;  %v11737_v56 = vld [vmem:[#allocation18_spill] sm:$0xff] }
 0x630   :  { %v196_v43 = vsel %vm76_vm0, %v186_v40, 0.0  ;;  %v1303_v11 = vunpack.c.l.bf16 %v1286_v51  ;;  %v1304_v36 = vunpack.c.h.bf16 %v1286_v51  ;;  %v1317_v35 = vunpack.c.l.bf16 %v1293_v12 }
 0x631   :  { %v9143_v13 = vpop.permute.xlu1 %1255  ;;  %197 = vadd.xlane.f32.xlu1 %v196_v43  ;;  %v9145_v7 = vpop.permute.xlu0 %1241  ;;  %v1318_v30 = vunpack.c.h.bf16 %v1293_v12 }
 0x632   :  { %v1294_v4 = vmul.bf16 %v9143_v13, %v11729_v44  ;;  %v1287_v38 = vmul.bf16 %v9145_v7, %v11730_v10  ;;  %v7788_v48 = vpack.i.bf16 %v1304_v36, %v1303_v11  ;;  %v11738_v44 = vld [vmem:[#allocation19_spill] sm:$0xff] }
 0x633   :  { %v7793_v22 = vpack.i.bf16 %v1318_v30, %v1317_v35 }
 0x634   :  { %v1319_v42 = vunpack.c.l.bf16 %v1294_v4  ;;  %v1320_v8 = vunpack.c.h.bf16 %v1294_v4  ;;  %v1305_v52 = vunpack.c.l.bf16 %v1287_v38  ;;  %v1306_v5 = vunpack.c.h.bf16 %v1287_v38 }
 0x635   :  { %v9147_v24 = vpop.permute.xlu1 %1257  ;;  %v9153_v49 = vpop.permute.xlu0 %1243 }
 0x636   :  { %v1295_v18 = vmul.bf16 %v9147_v24, %v11731_v61  ;;  %v1288_v2 = vmul.bf16 %v9153_v49, %v11732_v3  ;;  %v7798_v25 = vpack.i.bf16 %v1320_v8, %v1319_v42  ;;  %v7803_v19 = vpack.i.bf16 %v1306_v5, %v1305_v52  ;;  %v11740_v52 = vld [vmem:[#allocation22_spill] sm:$0xff] }
 0x638   :  { %v1321_v45 = vunpack.c.l.bf16 %v1295_v18  ;;  %v1322_v63 = vunpack.c.h.bf16 %v1295_v18  ;;  %v1307_v23 = vunpack.c.l.bf16 %v1288_v2  ;;  %v1308_v26 = vunpack.c.h.bf16 %v1288_v2 }
 0x639   :  { %v9155_v34 = vpop.permute.xlu1 %1259  ;;  %v9161_v9 = vpop.permute.xlu0 %1245 }
 0x63a   :  { %v1296_v0 = vmul.bf16 %v9155_v34, %v11733_v59  ;;  %v1289_v17 = vmul.bf16 %v9161_v9, %v11734_v16  ;;  %v7808_v46 = vpack.i.bf16 %v1322_v63, %v1321_v45  ;;  %v7813_v43 = vpack.i.bf16 %v1308_v26, %v1307_v23  ;;  %v11741_v45 = vld [vmem:[#allocation24_spill] sm:$0xff] }
 0x63c   :  { %v1323_v39 = vunpack.c.l.bf16 %v1296_v0  ;;  %v1324_v41 = vunpack.c.h.bf16 %v1296_v0  ;;  %v1309_v58 = vunpack.c.l.bf16 %v1289_v17  ;;  %v1310_v6 = vunpack.c.h.bf16 %v1289_v17 }
 0x63d   :  { %v9165_v29 = vpop.permute.xlu1 %1261  ;;  %v9175_v27 = vpop.permute.xlu0 %1247 }
 0x63e   :  { %v1297_v33 = vmul.bf16 %v9165_v29, %v11735_v57  ;;  %v1290_v15 = vmul.bf16 %v9175_v27, %v11736_v28  ;;  %v7818_v12 = vpack.i.bf16 %v1324_v41, %v1323_v39  ;;  %v7823_v35 = vpack.i.bf16 %v1310_v6, %v1309_v58 }
 0x640   :  { %v1325_v55 = vunpack.c.l.bf16 %v1297_v33  ;;  %v1326_v51 = vunpack.c.h.bf16 %v1297_v33  ;;  %v1311_v11 = vunpack.c.l.bf16 %v1290_v15  ;;  %v1312_v36 = vunpack.c.h.bf16 %v1290_v15 }
 0x641   :  { %v9177_v21 = vpop.permute.xlu1 %1263  ;;  %v9185_v37 = vpop.permute.xlu0 %1249 }
 0x642   :  { %7789 = vrot.lane.b32.xlu1 %v7788_v48, %s8409_s1  ;;  %v1298_v32 = vmul.bf16 %v9177_v21, %v11737_v56  ;;  %v1291_v4 = vmul.bf16 %v9185_v37, %v11738_v44  ;;  %v7828_v8 = vpack.i.bf16 %v1326_v51, %v1325_v55  ;;  %v7833_v3 = vpack.i.bf16 %v1312_v36, %v1311_v11 }
 0x643   :  { %7784 = vrot.lane.b32.xlu0 %v7783_v47, %s8409_s1  ;;  %v11739_v47 = vld [vmem:[#allocation21_spill] sm:$0xff] }
 0x644   :  { %v1327_v30 = vunpack.c.l.bf16 %v1298_v32  ;;  %v1328_v10 = vunpack.c.h.bf16 %v1298_v32  ;;  %v1313_v18 = vunpack.c.l.bf16 %v1291_v4  ;;  %v1314_v48 = vunpack.c.h.bf16 %v1291_v4 }
 0x645   :  { %v9191_v40 = vpop.permute.xlu1 %1265  ;;  %v9199_v38 = vpop.permute.xlu0 %1251 }
 0x646   :  { %7799 = vrot.lane.b32.xlu1 %v7798_v25, %s8409_s1  ;;  %v1299_v42 = vmul.bf16 %v9191_v40, %v11739_v47  ;;  %v1292_v5 = vmul.bf16 %v9199_v38, %v11740_v52  ;;  %v7838_v59 = vpack.i.bf16 %v1328_v10, %v1327_v30  ;;  %v7843_v25 = vpack.i.bf16 %v1314_v48, %v1313_v18 }
 0x647   :  { %7794 = vrot.lane.b32.xlu0 %v7793_v22, %s8409_s1 }
 0x648   :  { %v1329_v2 = vunpack.c.l.bf16 %v1299_v42  ;;  %v1330_v22 = vunpack.c.h.bf16 %v1299_v42  ;;  %v1315_v0 = vunpack.c.l.bf16 %v1292_v5  ;;  %v1316_v23 = vunpack.c.h.bf16 %v1292_v5 }
 0x649   :  { %v9203_v61 = vpop.permute.xlu1 %1267 }
 0x64a   :  { %7809 = vrot.lane.b32.xlu1 %v7808_v46, %s8409_s1  ;;  %v1300_v63 = vmul.bf16 %v9203_v61, %v11741_v45  ;;  %v7848_v17 = vpack.i.bf16 %v1330_v22, %v1329_v2  ;;  %v7853_v39 = vpack.i.bf16 %v1316_v23, %v1315_v0 }
 0x64b   :  { %7804 = vrot.lane.b32.xlu0 %v7803_v19, %s8409_s1 }
 0x64c   :  { %v1331_v26 = vunpack.c.l.bf16 %v1300_v63  ;;  %v1332_v16 = vunpack.c.h.bf16 %v1300_v63 }
 0x64e   :  { %7819 = vrot.lane.b32.xlu1 %v7818_v12, %s8409_s1  ;;  %v7858_v19 = vpack.i.bf16 %v1332_v16, %v1331_v26 }
 0x64f   :  { %7814 = vrot.lane.b32.xlu0 %v7813_v43, %s8409_s1 }
 0x652   :  { %7829 = vrot.lane.b32.xlu1 %v7828_v8, %s8409_s1 }
 0x653   :  { %7824 = vrot.lane.b32.xlu0 %v7823_v35, %s8409_s1 }
 0x656   :  { %7839 = vrot.lane.b32.xlu1 %v7838_v59, %s8409_s1 }
 0x657   :  { %7834 = vrot.lane.b32.xlu0 %v7833_v3, %s8409_s1 }
 0x65a   :  { %7849 = vrot.lane.b32.xlu1 %v7848_v17, %s8409_s1 }
 0x65b   :  { %7844 = vrot.lane.b32.xlu0 %v7843_v25, %s8409_s1  ;;  %v8343_v25 = vld [vmem:[%s11702_s3] ss:$0 sm:$0xff] }
 0x65e   :  { %7859 = vrot.lane.b32.xlu1 %v7858_v19, %s8409_s1 }
 0x65f   :  { %7854 = vrot.lane.b32.xlu0 %v7853_v39, %s8409_s1  ;;  %v8344_v39 = vld [vmem:[%s11620_s6] ss:$0 sm:$0xff] }
 0x6ba   :  { %v195_v41 = vpop.xlane.xlu0 %194 }
 0x6bb   :  { %v201_v57 = vmul.f32 0.015625, %v195_v41 }
 0x6bd   :  { %v205_v33 = vadd.f32 1e-12, %v201_v57 }
 0x6be   :  { %v7785_v46 = vpop.permute.xlu0 %7784  ;;  %v198_v6 = vpop.xlane.xlu1 %197 }
 0x6bf   :  { %8235 = vrsqrt.f32 %v205_v33  ;;  %v7787_v58 = vunpack.i.h.bf16 %v7785_v46  ;;  %v7786_v28 = vunpack.i.l.bf16 %v7785_v46  ;;  %v202_v15 = vmul.f32 0.015625, %v198_v6 }
 0x6c1   :  { %v1461_v43 = vsel %vm814_vm2, %v7786_v28, 0.0  ;;  %v1464_v55 = vsel %vm814_vm2, %v7787_v58, 0.0  ;;  %v206_v51 = vadd.f32 1e-12, %v202_v15 }
 0x6c2   :  { %1462 = vadd.xlane.f32.xlu0 %v1461_v43  ;;  %v7795_v56 = vpop.permute.xlu0 %7794  ;;  %1465 = vadd.xlane.f32.xlu1 %v1464_v55  ;;  %v7790_v12 = vpop.permute.xlu1 %7789 }
 0x6c3   :  { %v7796_v32 = vunpack.i.l.bf16 %v7795_v56  ;;  %8237 = vrsqrt.f32 %v206_v51  ;;  %v7791_v11 = vunpack.i.l.bf16 %v7790_v12  ;;  %v7792_v4 = vunpack.i.h.bf16 %v7790_v12 }
 0x6c4   :  { %v7797_v48 = vunpack.i.h.bf16 %v7795_v56 }
 0x6c5   :  { %v1509_v36 = vsel %vm814_vm2, %v7796_v32, 0.0  ;;  %v1467_v44 = vsel %vm814_vm2, %v7791_v11, 0.0  ;;  %v1470_v18 = vsel %vm814_vm2, %v7792_v4, 0.0 }
 0x6c6   :  { %1510 = vadd.xlane.f32.xlu1 %v1509_v36  ;;  %v7805_v35 = vpop.permute.xlu0 %7804  ;;  %v7800_v30 = vpop.permute.xlu1 %7799  ;;  %1468 = vadd.xlane.f32.xlu0 %v1467_v44  ;;  %v1512_v45 = vsel %vm814_vm2, %v7797_v48, 0.0 }
 0x6c7   :  { %v7801_v10 = vunpack.i.l.bf16 %v7800_v30  ;;  %v7806_v42 = vunpack.i.l.bf16 %v7805_v35  ;;  %v7802_v63 = vunpack.i.h.bf16 %v7800_v30  ;;  %v7807_v57 = vunpack.i.h.bf16 %v7805_v35 }
 0x6c9   :  { %v8236_v47 = vpop.eup %8235  ;;  %v1515_v8 = vsel %vm814_vm2, %v7801_v10, 0.0  ;;  %v1473_v22 = vsel %vm814_vm2, %v7806_v42, 0.0  ;;  %v1518_v17 = vsel %vm814_vm2, %v7802_v63, 0.0  ;;  %v1476_v28 = vsel %vm814_vm2, %v7807_v57, 0.0 }
 0x6ca   :  { %v7810_v52 = vpop.permute.xlu1 %7809  ;;  %1516 = vadd.xlane.f32.xlu1 %v1515_v8  ;;  %1471 = vadd.xlane.f32.xlu0 %v1470_v18  ;;  %v213_v5 = vmul.f32 %v8236_v47, %v9127_v60  ;;  %v7815_v59 = vpop.permute.xlu0 %7814 }
 0x6cb   :  { %v7811_v2 = vunpack.i.l.bf16 %v7810_v52  ;;  %v7816_v16 = vunpack.i.l.bf16 %v7815_v59  ;;  %v7812_v43 = vunpack.i.h.bf16 %v7810_v52  ;;  %v7817_v44 = vunpack.i.h.bf16 %v7815_v59 }
 0x6cc   :  { %v223_v23 = vmul.f32 %v8343_v25, %v213_v5 }
 0x6cd   :  { %v8238_v3 = vpop.eup %8237  ;;  %v1521_v60 = vsel %vm814_vm2, %v7811_v2, 0.0  ;;  %v1479_v58 = vsel %vm814_vm2, %v7816_v16, 0.0  ;;  %v1524_v36 = vsel %vm814_vm2, %v7812_v43, 0.0  ;;  %v1482_v10 = vsel %vm814_vm2, %v7817_v44, 0.0 }
 0x6ce   :  { %1474 = vadd.xlane.f32.xlu1 %v1473_v22  ;;  %1513 = vadd.xlane.f32.xlu0 %v1512_v45  ;;  %v214_v0 = vmul.f32 %v8238_v3, %v9133_v1  ;;  %v7820_v19 = vpop.permute.xlu1 %7819  ;;  %v9235_v41 = vadd.f32 %v8344_v39, %v223_v23  ;;  %v7825_v6 = vpop.permute.xlu0 %7824 }
 0x6cf   :  { %v7821_v46 = vunpack.i.l.bf16 %v7820_v19  ;;  %v7826_v56 = vunpack.i.l.bf16 %v7825_v6  ;;  %v7822_v42 = vunpack.i.h.bf16 %v7820_v19  ;;  %v7827_v22 = vunpack.i.h.bf16 %v7825_v6 }
 0x6d0   :  { %v224_v26 = vmul.f32 %v8343_v25, %v214_v0 }
 0x6d1   :  { %v1527_v12 = vsel %vm814_vm2, %v7821_v46, 0.0  ;;  %v1485_v35 = vsel %vm814_vm2, %v7826_v56, 0.0  ;;  %v1530_v2 = vsel %vm814_vm2, %v7822_v42, 0.0  ;;  %v1488_v0 = vsel %vm814_vm2, %v7827_v22, 0.0 }
 0x6d2   :  { %1522 = vadd.xlane.f32.xlu1 %v1521_v60  ;;  %1519 = vadd.xlane.f32.xlu0 %v1518_v17  ;;  %v9237_v1 = vadd.f32 %v8344_v39, %v224_v26  ;;  %v7830_v11 = vpop.permute.xlu1 %7829  ;;  %v7835_v30 = vpop.permute.xlu0 %7834 }
 0x6d3   :  { %v7831_v4 = vunpack.i.l.bf16 %v7830_v11  ;;  %v7836_v48 = vunpack.i.l.bf16 %v7835_v30  ;;  %v7832_v25 = vunpack.i.h.bf16 %v7830_v11  ;;  %v7837_v17 = vunpack.i.h.bf16 %v7835_v30 }
 0x6d4   :  { %v244_v33 = vpack.c.bf16 %v9237_v1, %v9235_v41 }
 0x6d5   :  { %v1533_v5 = vsel %vm814_vm2, %v7831_v4, 0.0  ;;  %v1491_v63 = vsel %vm814_vm2, %v7836_v48, 0.0  ;;  %v1536_v60 = vsel %vm814_vm2, %v7832_v25, 0.0  ;;  %v1494_v46 = vsel %vm814_vm2, %v7837_v17, 0.0 }
 0x6d6   :  { %7265 = vmatmul.mubr.msk.bf16.gmra.mrb[4].mxu0 %vm76_vm0, %v244_v33  ;;  %1480 = vadd.xlane.f32.xlu1 %v1479_v58  ;;  %v7840_v3 = vpop.permute.xlu1 %7839  ;;  %v7845_v59 = vpop.permute.xlu0 %7844 }
 0x6d7   :  { %v9244_v15 = vpop.f32.mrb[4].mxu1  ;;  %1477 = vadd.xlane.f32.xlu0 %v1476_v28  ;;  %7609 = vmatprep.mubr.msk.bf16.mxu0 %vm8405_vm1, %v11728_v20  ;;  %v7841_v45 = vunpack.i.l.bf16 %v7840_v3  ;;  %v7846_v23 = vunpack.i.l.bf16 %v7845_v59  ;;  %v7842_v57 = vunpack.i.h.bf16 %v7840_v3  ;;  %v7847_v28 = vunpack.i.h.bf16 %v7845_v59 }
 0x6d8   :  { %v7587_v55 = vpop.f32.mrb[5].mxu1 }
 0x6d9   :  { %v9248_v51 = vpop.f32.mrb[6].mxu1  ;;  %v1539_v26 = vsel %vm814_vm2, %v7841_v45, 0.0  ;;  %v1497_v39 = vsel %vm814_vm2, %v7846_v23, 0.0  ;;  %v1542_v55 = vsel %vm814_vm2, %v7842_v57, 0.0  ;;  %v1500_v11 = vsel %vm814_vm2, %v7847_v28, 0.0 }
 0x6da   :  { %v7588_v32 = vpop.f32.mrb[7].mxu1  ;;  %1528 = vadd.xlane.f32.xlu1 %v1527_v12  ;;  %v7850_v16 = vpop.permute.xlu1 %7849 }
 0x6db   :  { %1525 = vadd.xlane.f32.xlu0 %v1524_v36  ;;  %v7851_v19 = vunpack.i.l.bf16 %v7850_v16  ;;  %v7855_v33 = vpop.permute.xlu0 %7854  ;;  %v7852_v12 = vunpack.i.h.bf16 %v7850_v16 }
 0x6dc   :  { %v7856_v58 = vunpack.i.l.bf16 %v7855_v33  ;;  %v7857_v44 = vunpack.i.h.bf16 %v7855_v33 }
 0x6dd   :  { %v1545_v6 = vsel %vm814_vm2, %v7851_v19, 0.0  ;;  %v1548_v4 = vsel %vm814_vm2, %v7852_v12, 0.0 }
 0x6de   :  { %1486 = vadd.xlane.f32.xlu1 %v1485_v35  ;;  %v7860_v43 = vpop.permute.xlu1 %7859  ;;  %v1503_v32 = vsel %vm814_vm2, %v7856_v58, 0.0  ;;  %v1506_v30 = vsel %vm814_vm2, %v7857_v44, 0.0 }
 0x6df   :  { %v9254_v47 = vpop.f32.mrb[8].mxu1  ;;  %1483 = vadd.xlane.f32.xlu0 %v1482_v10  ;;  %v7861_v56 = vunpack.i.l.bf16 %v7860_v43  ;;  %v7862_v35 = vunpack.i.h.bf16 %v7860_v43 }
 0x6e0   :  { %v7593_v8 = vpop.f32.mrb[9].mxu1 }
 0x6e1   :  { %v9256_v18 = vpop.f32.mrb[10].mxu1  ;;  %v1551_v36 = vsel %vm814_vm2, %v7861_v56, 0.0  ;;  %v1554_v10 = vsel %vm814_vm2, %v7862_v35, 0.0 }
 0x6e2   :  { %v7594_v52 = vpop.f32.mrb[11].mxu1  ;;  %1534 = vadd.xlane.f32.xlu1 %v1533_v5 }
 0x6e3   :  { %1531 = vadd.xlane.f32.xlu0 %v1530_v2 }
 0x6e6   :  { %1492 = vadd.xlane.f32.xlu1 %v1491_v63 }
 0x6e7   :  { %1489 = vadd.xlane.f32.xlu0 %v1488_v0 }
 0x6ea   :  { %1540 = vadd.xlane.f32.xlu1 %v1539_v26 }
 0x6eb   :  { %1537 = vadd.xlane.f32.xlu0 %v1536_v60 }
 0x6ee   :  { %1498 = vadd.xlane.f32.xlu1 %v1497_v39 }
 0x6ef   :  { %1495 = vadd.xlane.f32.xlu0 %v1494_v46 }
 0x6f2   :  { %1546 = vadd.xlane.f32.xlu1 %v1545_v6 }
 0x6f3   :  { %1543 = vadd.xlane.f32.xlu0 %v1542_v55 }
 0x6f6   :  { %1504 = vadd.xlane.f32.xlu1 %v1503_v32 }
 0x6f7   :  { %1501 = vadd.xlane.f32.xlu0 %v1500_v11 }
 0x6fa   :  { %1552 = vadd.xlane.f32.xlu1 %v1551_v36 }
 0x6fb   :  { %1549 = vadd.xlane.f32.xlu0 %v1548_v4 }
 0x6ff   :  { %1507 = vadd.xlane.f32.xlu0 %v1506_v30 }
 0x703   :  { %1555 = vadd.xlane.f32.xlu0 %v1554_v10 }
 0x74f   :  { %v1463_v42 = vpop.xlane.xlu0 %1462  ;;  %v1466_v8 = vpop.xlane.xlu1 %1465 }
 0x750   :  { %v1596_v43 = vrot.slane %v1463_v42, %v8972_v62  ;;  %v1600_v55 = vrot.slane %v1466_v8, %v8967_v54 }
 0x752   :  { %v1601_v30 = vsel %vm954_vm3, %v1600_v55, %v1596_v43 }
 0x753   :  { %v1511_v48 = vpop.xlane.xlu1 %1510  ;;  %v1469_v52 = vpop.xlane.xlu0 %1468 }
 0x754   :  { %v1605_v56 = vrot.slane %v1469_v52, %v8972_v62  ;;  %v1668_v10 = vrot.slane %v1511_v48, %v8972_v62 }
 0x757   :  { %v1517_v5 = vpop.xlane.xlu1 %1516  ;;  %v1472_v3 = vpop.xlane.xlu0 %1471 }
 0x758   :  { %v1609_v6 = vrot.slane %v1472_v3, %v8967_v54  ;;  %v1677_v8 = vrot.slane %v1517_v5, %v8972_v62 }
 0x75a   :  { %v1610_v36 = vsel %vm954_vm3, %v1609_v6, %v1605_v56 }
 0x75b   :  { %v1475_v2 = vpop.xlane.xlu1 %1474  ;;  %v1514_v22 = vpop.xlane.xlu0 %1513 }
 0x75c   :  { %v1672_v11 = vrot.slane %v1514_v22, %v8967_v54  ;;  %v1614_v44 = vrot.slane %v1475_v2, %v8972_v62 }
 0x75e   :  { %v1673_v2 = vsel %vm954_vm3, %v1672_v11, %v1668_v10 }
 0x75f   :  { %v1523_v45 = vpop.xlane.xlu1 %1522  ;;  %v1520_v63 = vpop.xlane.xlu0 %1519 }
 0x760   :  { %v1681_v42 = vrot.slane %v1520_v63, %v8967_v54 }
 0x762   :  { %v1682_v56 = vsel %vm954_vm3, %v1681_v42, %v1677_v8 }
 0x763   :  { %v1481_v59 = vpop.xlane.xlu1 %1480 }
 0x764   :  { %v1478_v0 = vpop.xlane.xlu0 %1477  ;;  %v1623_v52 = vrot.slane %v1481_v59, %v8972_v62 }
 0x765   :  { %v1618_v32 = vrot.slane %v1478_v0, %v8967_v54  ;;  %v1737_v0 = vsel %vm1091_vm4, %v1610_v36, %v1601_v30 }
 0x767   :  { %v1529_v25 = vpop.xlane.xlu1 %1528  ;;  %v1619_v3 = vsel %vm954_vm3, %v1618_v32, %v1614_v44 }
 0x768   :  { %v1526_v23 = vpop.xlane.xlu0 %1525  ;;  %v1738_v32 = vsel %vm1093_vm5, %v1619_v3, %v1737_v0 }
 0x76b   :  { %v1487_v26 = vpop.xlane.xlu1 %1486 }
 0x76c   :  { %v1484_v16 = vpop.xlane.xlu0 %1483  ;;  %v1632_v48 = vrot.slane %v1487_v26, %v8972_v62 }
 0x76d   :  { %v1627_v4 = vrot.slane %v1484_v16, %v8967_v54  ;;  %v1690_v16 = vrot.slane %v1526_v23, %v8967_v54 }
 0x76f   :  { %v1535_v60 = vpop.xlane.xlu1 %1534  ;;  %v1628_v63 = vsel %vm954_vm3, %v1627_v4, %v1623_v52  ;;  %v1744_v52 = vsel %vm1091_vm4, %v1682_v56, %v1673_v2 }
 0x770   :  { %v1532_v17 = vpop.xlane.xlu0 %1531  ;;  %v1739_v44 = vsel %vm1095_vm6, %v1628_v63, %v1738_v32 }
 0x771   :  { %v1699_v5 = vrot.slane %v1532_v17, %v8967_v54 }
 0x773   :  { %v1493_v19 = vpop.xlane.xlu1 %1492 }
 0x774   :  { %v1490_v39 = vpop.xlane.xlu0 %1489  ;;  %v1641_v23 = vrot.slane %v1493_v19, %v8972_v62 }
 0x775   :  { %v1636_v22 = vrot.slane %v1490_v39, %v8967_v54  ;;  %v1686_v39 = vrot.slane %v1523_v45, %v8972_v62 }
 0x777   :  { %v1541_v57 = vpop.xlane.xlu1 %1540  ;;  %v1637_v26 = vsel %vm954_vm3, %v1636_v22, %v1632_v48  ;;  %v1691_v36 = vsel %vm954_vm3, %v1690_v16, %v1686_v39 }
 0x778   :  { %v1538_v33 = vpop.xlane.xlu0 %1537  ;;  %v1745_v0 = vsel %vm1093_vm5, %v1691_v36, %v1744_v52 }
 0x779   :  { %v1708_v11 = vrot.slane %v1538_v33, %v8967_v54  ;;  %v1740_v33 = vsel %vm1097_vm7, %v1637_v26, %v1739_v44 }
 0x77b   :  { %v1499_v46 = vpop.xlane.xlu1 %1498 }
 0x77c   :  { %v1496_v58 = vpop.xlane.xlu0 %1495  ;;  %v1650_v17 = vrot.slane %v1499_v46, %v8972_v62  ;;  %v1713_v46 = vrot.slane %v1541_v57, %v8972_v62 }
 0x77d   :  { %v1645_v6 = vrot.slane %v1496_v58, %v8967_v54  ;;  %v1695_v58 = vrot.slane %v1529_v25, %v8972_v62 }
 0x77f   :  { %v1547_v12 = vpop.xlane.xlu1 %1546  ;;  %v1646_v45 = vsel %vm954_vm3, %v1645_v6, %v1641_v23  ;;  %v1700_v19 = vsel %vm954_vm3, %v1699_v5, %v1695_v58 }
 0x780   :  { %v1544_v28 = vpop.xlane.xlu0 %1543  ;;  %v1722_v3 = vrot.slane %v1547_v12, %v8972_v62  ;;  %v1746_v48 = vsel %vm1095_vm6, %v1700_v19, %v1745_v0  ;;  %v11742_v19 = vld [vmem:[#allocation9_spill] sm:$0xff] }
 0x781   :  { %v1717_v4 = vrot.slane %v1544_v28, %v8967_v54 }
 0x783   :  { %v1505_v43 = vpop.xlane.xlu1 %1504  ;;  %v1718_v16 = vsel %vm954_vm3, %v1717_v4, %v1713_v46 }
 0x784   :  { %v1502_v35 = vpop.xlane.xlu0 %1501  ;;  %v1659_v42 = vrot.slane %v1505_v43, %v8972_v62 }
 0x785   :  { %v1654_v59 = vrot.slane %v1502_v35, %v8967_v54  ;;  %v1704_v35 = vrot.slane %v1535_v60, %v8972_v62  ;;  %v1741_v60 = vsel %vm1099_vm8, %v1646_v45, %v1740_v33  ;;  %v11743_v33 = vld [vmem:[#allocation10_spill] sm:$0xff] }
 0x787   :  { %v1655_v25 = vsel %vm954_vm3, %v1654_v59, %v1650_v17  ;;  %v1709_v28 = vsel %vm954_vm3, %v1708_v11, %v1704_v35  ;;  %v1553_v22 = vpop.xlane.xlu1 %1552 }
 0x788   :  { %v1550_v55 = vpop.xlane.xlu0 %1549  ;;  %v1742_v6 = vsel %vm1101_vm9, %v1655_v25, %v1741_v60  ;;  %v1747_v43 = vsel %vm1097_vm7, %v1709_v28, %v1746_v48  ;;  %v1731_v12 = vrot.slane %v1553_v22, %v8972_v62  ;;  %v11744_v48 = vld [vmem:[#allocation11_spill] sm:$0xff] }
 0x789   :  { %v1726_v30 = vrot.slane %v1550_v55, %v8967_v54  ;;  %v1748_v39 = vsel %vm1099_vm8, %v1718_v16, %v1747_v43 }
 0x78b   :  { %v1727_v63 = vsel %vm954_vm3, %v1726_v30, %v1722_v3 }
 0x78c   :  { %v1508_v10 = vpop.xlane.xlu0 %1507  ;;  %v1749_v56 = vsel %vm1101_vm9, %v1727_v63, %v1748_v39 }
 0x78d   :  { %v1663_v8 = vrot.slane %v1508_v10, %v8967_v54 }
 0x78f   :  { %v1664_v57 = vsel %vm954_vm3, %v1663_v8, %v1659_v42 }
 0x790   :  { %v1556_v2 = vpop.xlane.xlu0 %1555  ;;  %v1743_v5 = vsel %vm1103_vm10, %v1664_v57, %v1742_v6 }
 0x791   :  { %v1735_v59 = vrot.slane %v1556_v2, %v8967_v54  ;;  %v1794_v55 = vadd.f32 %v9254_v47, %v1743_v5  ;;  %v11745_v2 = vld [vmem:[#allocation12_spill] sm:$0xff] }
 0x793   :  { %v1736_v32 = vsel %vm954_vm3, %v1735_v59, %v1731_v12  ;;  %v1800_v23 = vmul.f32 0.17677669, %v1794_v55 }
 0x794   :  { %v1750_v58 = vsel %vm1103_vm10, %v1736_v32, %v1749_v56 }
 0x795   :  { %v1802_v26 = vadd.f32 %v9059_v14, %v1800_v23  ;;  %v1797_v11 = vadd.f32 %v9256_v18, %v1750_v58 }
 0x797   :  { %v1804_v17 = vsel %vm1169_vm11, %v1802_v26, -inf  ;;  %v1801_v36 = vmul.f32 0.17677669, %v1797_v11 }
 0x798   :  { %1805 = vmax.xlane.f32.xlu1 %v1804_v17 }
 0x799   :  { %v1803_v44 = vadd.f32 %v9059_v14, %v1801_v36 }
 0x79b   :  { %v1807_v47 = vsel %vm1169_vm11, %v1803_v44, -inf }
 0x79c   :  { %1808 = vmax.xlane.f32.xlu0 %v1807_v47 }
 0x7a9   :  { %v347_v45 = vpop.f32.mrb[4].mxu0 }
 0x7aa   :  { %v349_v4 = vpop.f32.mrb[5].mxu0  ;;  %v348_v25 = vadd.f32 %v347_v45, %v11742_v19 }
 0x7ab   :  { %v351_v35 = vpop.f32.mrb[6].mxu0  ;;  %v350_v46 = vadd.f32 %v349_v4, %v11743_v33 }
 0x7ac   :  { %v352_v30 = vadd.f32 %v351_v35, %v11742_v19  ;;  %v353_v10 = vpop.f32.mrb[7].mxu0 }
 0x7ad   :  { %v354_v18 = vadd.f32 %v353_v10, %v11743_v33 }
 0x7ae   :  { %v9346_v42 = vpack.c.bf16 %v352_v30, %v348_v25  ;;  %v7296_v63 = vpack.c.bf16 %v352_v30, %v352_v30 }
 0x7af   :  { %v9348_v8 = vpack.c.bf16 %v354_v18, %v350_v46  ;;  %v11746_v18 = vld [vmem:[#allocation8_spill] sm:$0xff] }
 0x7b0   :  { %v1901_v5 = vrot.slane %v7296_v63, %v11745_v2  ;;  %v1894_v12 = vrot.slane %v9346_v42, %v11745_v2 }
 0x7b1   :  { %7608 = vmatpush3.bf16.msra.mxu0 %v9348_v8 }
 0x7b2   :  { %7619 = vmatprep.subr.bf16.mxu0 %v11728_v20  ;;  %v1903_v43 = vcombine.high %v1901_v5, %v1901_v5  ;;  %v1917_v59 = vrot.slane %v1901_v5, %v11745_v2  ;;  %v1910_v39 = vrot.slane %v1894_v12, %v11745_v2  ;;  %v1902_v56 = vcombine.high %v1894_v12, %v1894_v12 }
 0x7b4   :  { %v1931_v55 = vrot.slane %v1903_v43, %v11745_v2  ;;  %v1933_v32 = vcombine.high %v1917_v59, %v1917_v59  ;;  %v1945_v23 = vunpack.i.h.s16 %v1917_v59  ;;  %v1924_v11 = vrot.slane %v1902_v56, %v11745_v2 }
 0x7b5   :  { %v1932_v35 = vcombine.high %v1910_v39, %v1910_v39  ;;  %v7297_v25 = vpack.i.b16 %v1910_v39, %v1910_v39 }
 0x7b6   :  { %v1947_v58 = vunpack.i.h.s16 %v1931_v55  ;;  %v1949_v17 = vunpack.i.h.s16 %v1933_v32  ;;  %v1935_v36 = vcombine.high %v1931_v55, %v1931_v55  ;;  %v1961_v47 = vpack.i.b16 %v1945_v23, %v1945_v23 }
 0x7b7   :  { %v7302_v45 = vpack.i.b16 %v1931_v55, %v1931_v55  ;;  %v7303_v30 = vpack.i.b16 %v1933_v32, %v1933_v32  ;;  %v1939_v33 = vunpack.i.h.s16 %v1924_v11 }
 0x7b8   :  { %v1963_v4 = vpack.i.b16 %v1947_v58, %v1947_v58  ;;  %v1965_v10 = vpack.i.b16 %v1949_v17, %v1949_v17  ;;  %v1951_v46 = vunpack.i.h.s16 %v1935_v36  ;;  %v1941_v58 = vunpack.i.h.s16 %v1932_v35 }
 0x7b9   :  { %v2019_v63 = vrot.slane %v7303_v30, %v11746_v18  ;;  %v1955_v12 = vpack.i.b16 %v1939_v33, %v1939_v33 }
 0x7ba   :  { %v2023_v5 = vrot.slane %v1965_v10, %v11746_v18  ;;  %v1934_v10 = vcombine.high %v1924_v11, %v1924_v11 }
 0x825   :  { %v1806_v14 = vpop.xlane.xlu1 %1805 }
 0x826   :  { %v1810_v52 = vsub.f32 %v1802_v26, %v1806_v14  ;;  %v1937_v26 = vunpack.i.h.s16 %v1910_v39 }
 0x828   :  { %v1812_v28 = vmul.f32 1.442695, %v1810_v52  ;;  %v1953_v19 = vpack.i.b16 %v1937_v26, %v1937_v26  ;;  %v7298_v52 = vpack.i.b16 %v1924_v11, %v1924_v11 }
 0x829   :  { %v1809_v60 = vpop.xlane.xlu0 %1808 }
 0x82a   :  { %8239 = vpow2.f32 %v1812_v28  ;;  %v1811_v3 = vsub.f32 %v1803_v44, %v1809_v60  ;;  %v7301_v44 = vpack.i.b16 %v1917_v59, %v1917_v59  ;;  %v2007_v28 = vrot.slane %v1961_v47, %v11746_v18 }
 0x82b   :  { %v2011_v60 = vrot.slane %v7302_v45, %v11746_v18  ;;  %v1967_v59 = vpack.i.b16 %v1951_v46, %v1951_v46  ;;  %v1979_v39 = vrot.slane %v7298_v52, %v11746_v18  ;;  %v2117_v47 = vpack.i.b16 %v2019_v63, %v2019_v63 }
 0x82c   :  { %v1814_v22 = vmul.f32 1.442695, %v1811_v3  ;;  %v2003_v14 = vrot.slane %v7301_v44, %v11746_v18  ;;  %v2015_v3 = vrot.slane %v1963_v4, %v11746_v18  ;;  %v2096_v56 = vpack.i.b16 %v2007_v28, %v2007_v28 }
 0x82d   :  { %v2103_v32 = vpack.i.b16 %v2011_v60, %v2011_v60  ;;  %v2124_v45 = vpack.i.b16 %v2023_v5, %v2023_v5  ;;  %v9390_v30 = vrot.slane %v1967_v59, %v11746_v18  ;;  %v1957_v52 = vpack.i.b16 %v1941_v58, %v1941_v58 }
 0x82e   :  { %8241 = vpow2.f32 %v1814_v22  ;;  %v1975_v22 = vrot.slane %v1953_v19, %v11746_v18  ;;  %v2089_v55 = vpack.i.b16 %v2003_v14, %v2003_v14  ;;  %v2110_v23 = vpack.i.b16 %v2015_v3, %v2015_v3 }
 0x82f   :  { %v2101_v33 = vrot.slane %v2096_v56, %v11746_v18  ;;  %v2108_v14 = vrot.slane %v2103_v32, %v11746_v18  ;;  %v2122_v11 = vrot.slane %v2117_v47, %v11746_v18  ;;  %v7300_v59 = vpack.i.b16 %v1934_v10, %v1934_v10 }
 0x830   :  { %v2040_v26 = vpack.i.b16 %v1975_v22, %v1975_v22  ;;  %v2094_v46 = vrot.slane %v2089_v55, %v11746_v18  ;;  %v2115_v3 = vrot.slane %v2110_v23, %v11746_v18  ;;  %v1991_v32 = vrot.slane %v1957_v52, %v11746_v18 }
 0x832   :  { %v2045_v28 = vrot.slane %v2040_v26, %v11746_v18 }
 0x834   :  { %v9352_v0 = vpop.eup %8239 }
 0x835   :  { %v1816_v16 = vsel %vm1169_vm11, %v9352_v0, 0.0 }
 0x836   :  { %1817 = vadd.xlane.f32.xlu1 %v1816_v16  ;;  %v1971_v16 = vrot.slane %v7297_v25, %v11746_v18  ;;  %v1983_v25 = vrot.slane %v1955_v12, %v11746_v18 }
 0x838   :  { %v9356_v6 = vpop.eup %8241  ;;  %v2033_v17 = vpack.i.b16 %v1971_v16, %v1971_v16 }
 0x839   :  { %v1819_v57 = vsel %vm1169_vm11, %v9356_v6, 0.0 }
 0x83a   :  { %1820 = vadd.xlane.f32.xlu0 %v1819_v57  ;;  %v7299_v57 = vpack.i.b16 %v1932_v35, %v1932_v35  ;;  %v2047_v35 = vpack.i.b16 %v1979_v39, %v1979_v39  ;;  %v2038_v60 = vrot.slane %v2033_v17, %v11746_v18  ;;  %v1943_v17 = vunpack.i.h.s16 %v1934_v10 }
 0x83c   :  { %v1987_v44 = vrot.slane %v7299_v57, %v11746_v18  ;;  %v2054_v57 = vpack.i.b16 %v1983_v25, %v1983_v25  ;;  %v2052_v12 = vrot.slane %v2047_v35, %v11746_v18 }
 0x83e   :  { %v2061_v22 = vpack.i.b16 %v1987_v44, %v1987_v44 }
 0x840   :  { %v2066_v26 = vrot.slane %v2061_v22, %v11746_v18 }
 0x847   :  { %1828 = vrot.lane.b32.xlu1 %v11744_v48, %s8409_s1  ;;  %v7304_v48 = vpack.i.b16 %v1935_v36, %v1935_v36 }
 0x849   :  { %v9386_v36 = vrot.slane %v7304_v48, %v11746_v18  ;;  %v9403_v48 = vrot.slane %v2124_v45, %v11746_v18 }
 0x84b   :  { %2895 = vrot.lane.b32.xlu1 %v9346_v42, %s8408_s23  ;;  %v2131_v63 = vpack.i.b16 %v9386_v36, %v9386_v36 }
 0x84f   :  { %2893 = vrot.lane.b32.xlu1 %v9346_v42, %s8409_s1 }
 0x850   :  { %2144 = vrot.lane.b32.xlu0 %v9346_v42, %s8406_s30 }
 0x8c3   :  { %v1818_v43 = vpop.xlane.xlu1 %1817 }
 0x8c4   :  { %8243 = vrcp.f32 %v1818_v43 }
 0x8c7   :  { %v1829_v4 = vpop.permute.xlu1 %1828  ;;  %v1821_v19 = vpop.xlane.xlu0 %1820 }
 0x8c8   :  { %8245 = vrcp.f32 %v1821_v19  ;;  %7596 = vmatpush3.bf16.msra.mxu1 %v1829_v4  ;;  %v2059_v4 = vrot.slane %v2054_v57, %v11746_v18 }
 0x8c9   :  { %7601 = vmatprep.subr.bf16.mxu1 %v11728_v20 }
 0x8cb   :  { %v9399_v16 = vpop.permute.xlu0 %2144 }
 0x8cc   :  { %v9408_v5 = vadd.bf16 %v9399_v16, %v2045_v28  ;;  %v9411_v43 = vadd.bf16 %v9399_v16, %v2038_v60  ;;  %v9415_v55 = vadd.bf16 %v9399_v16, %v2101_v33  ;;  %v9418_v39 = vadd.bf16 %v9399_v16, %v2094_v46 }
 0x8cd   :  { %v9421_v56 = vadd.bf16 %v9399_v16, %v2108_v14  ;;  %v9434_v45 = vadd.bf16 %v9399_v16, %v2052_v12 }
 0x8ce   :  { %v2622_v23 = vmul.bf16 %v9408_v5, %v9136_v31  ;;  %v2621_v58 = vmul.bf16 %v9411_v43, %v9129_v50  ;;  %v2630_v44 = vmul.bf16 %v9415_v55, %v9143_v13  ;;  %v2629_v47 = vmul.bf16 %v9418_v39, %v9138_v53  ;;  %v8244_v19 = vpop.eup %8243 }
 0x8cf   :  { %v2631_v10 = vmul.bf16 %v9421_v56, %v9147_v24  ;;  %v9440_v13 = vadd.bf16 %v9399_v16, %v2115_v3  ;;  %v1824_v22 = vmul.f32 %v8244_v19, %v9352_v0  ;;  %v2623_v12 = vmul.bf16 %v9434_v45, %v9145_v7 }
 0x8d0   :  { %v2639_v25 = vunpack.c.l.bf16 %v2622_v23  ;;  %v2640_v31 = vunpack.c.h.bf16 %v2622_v23  ;;  %v2637_v35 = vunpack.c.l.bf16 %v2621_v58  ;;  %v2638_v33 = vunpack.c.h.bf16 %v2621_v58 }
 0x8d1   :  { %v2655_v50 = vunpack.c.l.bf16 %v2630_v44  ;;  %v2656_v46 = vunpack.c.h.bf16 %v2630_v44  ;;  %v2653_v28 = vunpack.c.l.bf16 %v2629_v47  ;;  %v2654_v60 = vunpack.c.h.bf16 %v2629_v47 }
 0x8d2   :  { %v8246_v14 = vpop.eup %8245  ;;  %v7868_v53 = vpack.i.bf16 %v2640_v31, %v2639_v25  ;;  %v7863_v52 = vpack.i.bf16 %v2638_v33, %v2637_v35  ;;  %v9447_v23 = vadd.bf16 %v9399_v16, %v2059_v4  ;;  %v2068_v24 = vpack.i.b16 %v1991_v32, %v1991_v32 }
 0x8d3   :  { %v1825_v57 = vmul.f32 %v8246_v14, %v9356_v6  ;;  %v1995_v3 = vrot.slane %v7300_v59, %v11746_v18  ;;  %v1959_v58 = vpack.i.b16 %v1943_v17, %v1943_v17  ;;  %v2657_v47 = vunpack.c.l.bf16 %v2631_v10 }
 0x8d4   :  { %7869 = vrot.lane.b32.xlu1 %v7868_v53, %s8409_s1  ;;  %7864 = vrot.lane.b32.xlu0 %v7863_v52, %s8409_s1  ;;  %v2658_v25 = vunpack.c.h.bf16 %v2631_v10  ;;  %v9453_v0 = vadd.bf16 %v9399_v16, %v2122_v11  ;;  %v2503_v7 = vsel %vm814_vm2, %v9399_v16, 0  ;;  %v7878_v6 = vpack.i.bf16 %v2656_v46, %v2655_v50  ;;  %v2896_v50 = vpop.permute.xlu1 %2895 }
 0x8d5   :  { %v1826_v44 = vpack.c.bf16 %v1825_v57, %v1824_v22  ;;  %v7873_v4 = vpack.i.bf16 %v2654_v60, %v2653_v28  ;;  %v2632_v19 = vmul.bf16 %v9440_v13, %v9155_v34  ;;  %v2641_v32 = vunpack.c.l.bf16 %v2623_v12 }
 0x8d6   :  { %v2642_v31 = vunpack.c.h.bf16 %v2623_v12  ;;  %v2624_v59 = vmul.bf16 %v9447_v23, %v9153_v49  ;;  %v9463_v17 = vadd.bf16 %v9399_v16, %v2066_v26  ;;  %v2073_v11 = vrot.slane %v2068_v24, %v11746_v18 }
 0x8d7   :  { %7598 = vmatmul.mubr.msk.bf16.vlgmr.msra.gmra.mrb[12].mxu1 %vm1169_vm11, %v1826_v44  ;;  %v2075_v35 = vpack.i.b16 %v1995_v3, %v1995_v3  ;;  %v2138_v33 = vpack.i.b16 %v9390_v30, %v9390_v30  ;;  %v7888_v34 = vpack.i.bf16 %v2658_v25, %v2657_v47  ;;  %v2633_v49 = vmul.bf16 %v9453_v0, %v9165_v29 }
 0x8d8   :  { %7602 = vmatpush3.bf16.xpose.msra.mxu1 %v2503_v7  ;;  %7879 = vrot.lane.b32.xlu1 %v7878_v6, %s8409_s1  ;;  %v1999_v26 = vrot.slane %v1959_v58, %v11746_v18  ;;  %v2659_v46 = vunpack.c.l.bf16 %v2632_v19  ;;  %v2660_v10 = vunpack.c.h.bf16 %v2632_v19  ;;  %v9478_v14 = vadd.bf16 %v9399_v16, %v9403_v48 }
 0x8d9   :  { %7874 = vrot.lane.b32.xlu0 %v7873_v4, %s8409_s1  ;;  %7603 = vmatprep.mubr.msk.bf16.mxu1 %vm8405_vm1, %v11728_v20  ;;  %v9481_v30 = vadd.bf16 %v9399_v16, %v2073_v11  ;;  %v7883_v53 = vpack.i.bf16 %v2642_v31, %v2641_v32  ;;  %v2643_v52 = vunpack.c.l.bf16 %v2624_v59  ;;  %v2644_v28 = vunpack.c.h.bf16 %v2624_v59 }
 0x8da   :  { %7613 = vmatprep.subr.bf16.mxu1 %v11728_v20  ;;  %v2625_v29 = vmul.bf16 %v9463_v17, %v9161_v9  ;;  %v2136_v60 = vrot.slane %v2131_v63, %v11746_v18  ;;  %v2080_v22 = vrot.slane %v2075_v35, %v11746_v18  ;;  %v2143_v48 = vrot.slane %v2138_v33, %v11746_v18  ;;  %v2894_v33 = vpop.permute.xlu1 %2893 }
 0x8db   :  { %v3093_v57 = vsel %vm814_vm2, %v2896_v50, 0  ;;  %v2661_v12 = vunpack.c.l.bf16 %v2633_v49  ;;  %v2662_v24 = vunpack.c.h.bf16 %v2633_v49  ;;  %v2082_v3 = vpack.i.b16 %v1999_v26, %v1999_v26 }
 0x8dc   :  { %7889 = vrot.lane.b32.xlu1 %v7888_v34, %s8409_s1  ;;  %v7898_v58 = vpack.i.bf16 %v2660_v10, %v2659_v46  ;;  %v2634_v9 = vmul.bf16 %v9478_v14, %v9177_v21  ;;  %v2626_v44 = vmul.bf16 %v9481_v30, %v9175_v27  ;;  %v9499_v36 = vadd.bf16 %v9399_v16, %v2136_v60 }
 0x8dd   :  { %7884 = vrot.lane.b32.xlu0 %v7883_v53, %s8409_s1  ;;  %v7893_v63 = vpack.i.bf16 %v2644_v28, %v2643_v52  ;;  %v2645_v47 = vunpack.c.l.bf16 %v2625_v29  ;;  %v2646_v25 = vunpack.c.h.bf16 %v2625_v29  ;;  %v9504_v7 = vadd.bf16 %v9399_v16, %v2080_v22 }
 0x8de   :  { %v7908_v21 = vpack.i.bf16 %v2662_v24, %v2661_v12  ;;  %v9511_v27 = vadd.bf16 %v9399_v16, %v2143_v48  ;;  %v2663_v6 = vunpack.c.l.bf16 %v2634_v9  ;;  %v2664_v4 = vunpack.c.h.bf16 %v2634_v9  ;;  %v8346_v12 = vld [vmem:[%s11623_s9 + $0x8] sm:$0xff]  }
 0x8df   :  { %7604 = vmatmul.mubr.msk.bf16.vlgmr.msra.gmra.mrb[16].mxu1 %vm814_vm2, %v9346_v42  ;;  %v2087_v42 = vrot.slane %v2082_v3, %v11746_v18  ;;  %v2647_v19 = vunpack.c.l.bf16 %v2626_v44  ;;  %v2635_v32 = vmul.bf16 %v9499_v36, %v9191_v40  ;;  %v7903_v31 = vpack.i.bf16 %v2646_v25, %v2645_v47 }
 0x8e0   :  { %7614 = vmatpush3.bf16.xpose.msra.mxu1 %v3093_v57  ;;  %7899 = vrot.lane.b32.xlu1 %v7898_v58, %s8409_s1  ;;  %v2648_v59 = vunpack.c.h.bf16 %v2626_v44  ;;  %v2627_v11 = vmul.bf16 %v9504_v7, %v9185_v37  ;;  %v7918_v34 = vpack.i.bf16 %v2664_v4, %v2663_v6  ;;  %v2636_v50 = vmul.bf16 %v9511_v27, %v9203_v61  ;;  %v8347_v44 = vld [vmem:[%s11623_s9 + $0x40] sm:$0xff]   ;;  %v8349_v6 = vld [vmem:[%s11623_s9 + $0x10] sm:$0xff]  }
 0x8e1   :  { %7894 = vrot.lane.b32.xlu0 %v7893_v63, %s8409_s1  ;;  %7615 = vmatprep.mubr.msk.bf16.mxu1 %vm8405_vm1, %v11728_v20  ;;  %v9519_v35 = vadd.bf16 %v9399_v16, %v2087_v42  ;;  %v2665_v49 = vunpack.c.l.bf16 %v2635_v32  ;;  %v2666_v26 = vunpack.c.h.bf16 %v2635_v32  ;;  %v2164_v24 = vmul.bf16 %v8346_v12, %v9408_v5  ;;  %v8348_v5 = vld [vmem:[%s11623_s9 + $0x48] sm:$0xff]  }
 0x8e2   :  { %v7913_v40 = vpack.i.bf16 %v2648_v59, %v2647_v19  ;;  %v2649_v46 = vunpack.c.l.bf16 %v2627_v11  ;;  %v2650_v10 = vunpack.c.h.bf16 %v2627_v11  ;;  %v2667_v53 = vunpack.c.l.bf16 %v2636_v50 }
 0x8e3   :  { %v2628_v37 = vmul.bf16 %v9519_v35, %v9199_v38  ;;  %v7928_v16 = vpack.i.bf16 %v2666_v26, %v2665_v49  ;;  %v2668_v52 = vunpack.c.h.bf16 %v2636_v50  ;;  %v8345_v38 = vld [vmem:[%s11623_s9] sm:$0xff]   ;;  %v2181_v58 = vunpack.c.l.bf16 %v2164_v24 }
 0x8e4   :  { %7909 = vrot.lane.b32.xlu1 %v7908_v21, %s8409_s1  ;;  %v7923_v28 = vpack.i.bf16 %v2650_v10, %v2649_v46  ;;  %v2163_v48 = vmul.bf16 %v8345_v38, %v9411_v43  ;;  %v2171_v63 = vmul.bf16 %v8347_v44, %v9418_v39  ;;  %v2182_v47 = vunpack.c.h.bf16 %v2164_v24  ;;  %v8351_v46 = vld [vmem:[%s11623_s9 + $0x18] sm:$0xff]  }
 0x8e5   :  { %7904 = vrot.lane.b32.xlu0 %v7903_v31, %s8409_s1  ;;  %v2651_v29 = vunpack.c.l.bf16 %v2628_v37  ;;  %v2652_v60 = vunpack.c.h.bf16 %v2628_v37  ;;  %v7938_v61 = vpack.i.bf16 %v2668_v52, %v2667_v53  ;;  %v2217_v43 = vsel %vm814_vm2, %v2181_v58, 0.0  ;;  %v8352_v52 = vld [vmem:[%s11623_s9 + $0x58] sm:$0xff]  }
 0x8e6   :  { %v2179_v57 = vunpack.c.l.bf16 %v2163_v48  ;;  %v2180_v9 = vunpack.c.h.bf16 %v2163_v48  ;;  %v2195_v21 = vunpack.c.l.bf16 %v2171_v63  ;;  %v2172_v42 = vmul.bf16 %v8348_v5, %v9415_v55  ;;  %v8356_v5 = vld [vmem:[%s11623_s9 + $0x68] sm:$0xff]  }
 0x8e7   :  { %7616 = vmatmul.mubr.msk.bf16.vlgmr.msra.gmra.mrb[20].mxu1 %vm814_vm2, %v2894_v33  ;;  %v7933_v22 = vpack.i.bf16 %v2652_v60, %v2651_v29  ;;  %v2165_v39 = vmul.bf16 %v8349_v6, %v9434_v45  ;;  %v2220_v4 = vsel %vm814_vm2, %v2182_v47, 0.0  ;;  %v2196_v32 = vunpack.c.h.bf16 %v2171_v63 }
 0x8e8   :  { %7919 = vrot.lane.b32.xlu1 %v7918_v34, %s8409_s1  ;;  %v2211_v3 = vsel %vm814_vm2, %v2179_v57, 0.0  ;;  %v2214_v25 = vsel %vm814_vm2, %v2180_v9, 0.0  ;;  %v2259_v19 = vsel %vm814_vm2, %v2195_v21, 0.0  ;;  %v2197_v31 = vunpack.c.l.bf16 %v2172_v42  ;;  %v8350_v34 = vld [vmem:[%s11623_s9 + $0x50] sm:$0xff]  }
 0x8e9   :  { %7914 = vrot.lane.b32.xlu0 %v7913_v40, %s8409_s1  ;;  %v2198_v59 = vunpack.c.h.bf16 %v2172_v42  ;;  %v2262_v11 = vsel %vm814_vm2, %v2196_v32, 0.0  ;;  %v2183_v33 = vunpack.c.l.bf16 %v2165_v39  ;;  %v2173_v45 = vmul.bf16 %v8350_v34, %v9421_v56 }
 0x8ea   :  { %v2265_v55 = vsel %vm814_vm2, %v2197_v31, 0.0  ;;  %v2184_v49 = vunpack.c.h.bf16 %v2165_v39  ;;  %v2166_v10 = vmul.bf16 %v8351_v46, %v9447_v23 }
 0x8eb   :  { %v2268_v26 = vsel %vm814_vm2, %v2198_v59, 0.0  ;;  %v2223_v50 = vsel %vm814_vm2, %v2183_v33, 0.0  ;;  %v2199_v40 = vunpack.c.l.bf16 %v2173_v45 }
 0x8ec   :  { %7929 = vrot.lane.b32.xlu1 %v7928_v16, %s8409_s1  ;;  %v2226_v37 = vsel %vm814_vm2, %v2184_v49, 0.0  ;;  %v2200_v16 = vunpack.c.h.bf16 %v2173_v45  ;;  %v2185_v53 = vunpack.c.l.bf16 %v2166_v10  ;;  %v2186_v29 = vunpack.c.h.bf16 %v2166_v10 }
 0x8ed   :  { %7924 = vrot.lane.b32.xlu0 %v7923_v28, %s8409_s1  ;;  %v2271_v56 = vsel %vm814_vm2, %v2199_v40, 0.0  ;;  %v2174_v28 = vmul.bf16 %v8352_v52, %v9440_v13  ;;  %v8354_v13 = vld [vmem:[%s11623_s9 + $0x60] sm:$0xff]  }
 0x8ee   :  { %v2274_v60 = vsel %vm814_vm2, %v2200_v16, 0.0  ;;  %v2229_v23 = vsel %vm814_vm2, %v2185_v53, 0.0  ;;  %v2175_v48 = vmul.bf16 %v8354_v13, %v9453_v0  ;;  %v2232_v57 = vsel %vm814_vm2, %v2186_v29, 0.0 }
 0x8ef   :  { %v2202_v24 = vunpack.c.h.bf16 %v2174_v28 }
 0x8f0   :  { %7939 = vrot.lane.b32.xlu1 %v7938_v61, %s8409_s1  ;;  %v2201_v61 = vunpack.c.l.bf16 %v2174_v28  ;;  %v2203_v0 = vunpack.c.l.bf16 %v2175_v48  ;;  %v2204_v47 = vunpack.c.h.bf16 %v2175_v48 }
 0x8f1   :  { %7934 = vrot.lane.b32.xlu0 %v7933_v22, %s8409_s1  ;;  %v8353_v22 = vld [vmem:[%s11623_s9 + $0x20] sm:$0xff]   ;;  %v2280_v9 = vsel %vm814_vm2, %v2202_v24, 0.0 }
 0x8f2   :  { %v2167_v38 = vmul.bf16 %v8353_v22, %v9463_v17  ;;  %v2277_v12 = vsel %vm814_vm2, %v2201_v61, 0.0  ;;  %v8355_v17 = vld [vmem:[%s11623_s9 + $0x28] sm:$0xff]   ;;  %v2286_v6 = vsel %vm814_vm2, %v2204_v47, 0.0 }
 0x8f3   :  { %v2168_v58 = vmul.bf16 %v8355_v17, %v9481_v30  ;;  %v2176_v30 = vmul.bf16 %v8356_v5, %v9478_v14 }
 0x8f4   :  { %v2188_v63 = vunpack.c.h.bf16 %v2167_v38 }
 0x8f5   :  { %v2189_v21 = vunpack.c.l.bf16 %v2168_v58  ;;  %v2190_v42 = vunpack.c.h.bf16 %v2168_v58  ;;  %v2206_v59 = vunpack.c.h.bf16 %v2176_v30 }
 0x8f7   :  { %v2241_v39 = vsel %vm814_vm2, %v2189_v21, 0.0  ;;  %v2244_v31 = vsel %vm814_vm2, %v2190_v42, 0.0  ;;  %v2292_v45 = vsel %vm814_vm2, %v2206_v59, 0.0 }
 0x910   :  { %2212 = vadd.xlane.f32.xlu0 %v2211_v3  ;;  %v2187_v3 = vunpack.c.l.bf16 %v2167_v38 }
 0x912   :  { %v2235_v44 = vsel %vm814_vm2, %v2187_v3, 0.0 }
 0x914   :  { %2218 = vadd.xlane.f32.xlu0 %v2217_v43  ;;  %2215 = vadd.xlane.f32.xlu1 %v2214_v25  ;;  %v2238_v43 = vsel %vm814_vm2, %v2188_v63, 0.0  ;;  %v2283_v25 = vsel %vm814_vm2, %v2203_v0, 0.0 }
 0x918   :  { %2221 = vadd.xlane.f32.xlu0 %v2220_v4  ;;  %2260 = vadd.xlane.f32.xlu1 %v2259_v19  ;;  %v2205_v4 = vunpack.c.l.bf16 %v2176_v30  ;;  %v8357_v19 = vld [vmem:[%s11623_s9 + $0x30] sm:$0xff]  }
 0x919   :  { %v2169_v32 = vmul.bf16 %v8357_v19, %v9504_v7  ;;  %v8359_v7 = vld [vmem:[%s11623_s9 + $0x38] sm:$0xff]  }
 0x91a   :  { %v2289_v14 = vsel %vm814_vm2, %v2205_v4, 0.0  ;;  %v2170_v34 = vmul.bf16 %v8359_v7, %v9519_v35 }
 0x91c   :  { %2263 = vadd.xlane.f32.xlu0 %v2262_v11  ;;  %2266 = vadd.xlane.f32.xlu1 %v2265_v55  ;;  %v2191_v11 = vunpack.c.l.bf16 %v2169_v32  ;;  %v8358_v55 = vld [vmem:[%s11623_s9 + $0x70] sm:$0xff]   ;;  %v2193_v35 = vunpack.c.l.bf16 %v2170_v34  ;;  %v2194_v53 = vunpack.c.h.bf16 %v2170_v34 }
 0x91d   :  { %v2177_v33 = vmul.bf16 %v8358_v55, %v9499_v36  ;;  %v8360_v36 = vld [vmem:[%s11623_s9 + $0x78] sm:$0xff]  }
 0x91e   :  { %v2247_v49 = vsel %vm814_vm2, %v2191_v11, 0.0  ;;  %v2178_v40 = vmul.bf16 %v8360_v36, %v9511_v27  ;;  %v2253_v16 = vsel %vm814_vm2, %v2193_v35, 0.0  ;;  %v2256_v27 = vsel %vm814_vm2, %v2194_v53, 0.0 }
 0x920   :  { %2269 = vadd.xlane.f32.xlu0 %v2268_v26  ;;  %2224 = vadd.xlane.f32.xlu1 %v2223_v50  ;;  %v2192_v26 = vunpack.c.h.bf16 %v2169_v32  ;;  %v2207_v50 = vunpack.c.l.bf16 %v2177_v33  ;;  %v2209_v52 = vunpack.c.l.bf16 %v2178_v40 }
 0x922   :  { %v2250_v46 = vsel %vm814_vm2, %v2192_v26, 0.0  ;;  %v2295_v10 = vsel %vm814_vm2, %v2207_v50, 0.0 }
 0x924   :  { %2227 = vadd.xlane.f32.xlu0 %v2226_v37  ;;  %2272 = vadd.xlane.f32.xlu1 %v2271_v56  ;;  %v2208_v37 = vunpack.c.h.bf16 %v2177_v33 }
 0x926   :  { %v2298_v56 = vsel %vm814_vm2, %v2208_v37, 0.0 }
 0x928   :  { %2275 = vadd.xlane.f32.xlu0 %v2274_v60  ;;  %2230 = vadd.xlane.f32.xlu1 %v2229_v23  ;;  %v2301_v60 = vsel %vm814_vm2, %v2209_v52, 0.0  ;;  %v2210_v23 = vunpack.c.h.bf16 %v2178_v40 }
 0x92a   :  { %v2304_v13 = vsel %vm814_vm2, %v2210_v23, 0.0 }
 0x92c   :  { %2233 = vadd.xlane.f32.xlu0 %v2232_v57  ;;  %2278 = vadd.xlane.f32.xlu1 %v2277_v12 }
 0x930   :  { %2281 = vadd.xlane.f32.xlu0 %v2280_v9  ;;  %2236 = vadd.xlane.f32.xlu1 %v2235_v44 }
 0x934   :  { %2239 = vadd.xlane.f32.xlu0 %v2238_v43  ;;  %2284 = vadd.xlane.f32.xlu1 %v2283_v25 }
 0x938   :  { %2287 = vadd.xlane.f32.xlu0 %v2286_v6  ;;  %2242 = vadd.xlane.f32.xlu1 %v2241_v39 }
 0x93c   :  { %2245 = vadd.xlane.f32.xlu0 %v2244_v31  ;;  %2290 = vadd.xlane.f32.xlu1 %v2289_v14 }
 0x940   :  { %2293 = vadd.xlane.f32.xlu0 %v2292_v45  ;;  %2248 = vadd.xlane.f32.xlu1 %v2247_v49 }
 0x944   :  { %2251 = vadd.xlane.f32.xlu0 %v2250_v46  ;;  %2296 = vadd.xlane.f32.xlu1 %v2295_v10 }
 0x946   :  { %v7865_v28 = vpop.permute.xlu0 %7864  ;;  %v7870_v61 = vpop.permute.xlu1 %7869 }
 0x947   :  { %v7866_v29 = vunpack.i.l.bf16 %v7865_v28  ;;  %v7871_v22 = vunpack.i.l.bf16 %v7870_v61  ;;  %v7867_v38 = vunpack.i.h.bf16 %v7865_v28  ;;  %v7872_v12 = vunpack.i.h.bf16 %v7870_v61 }
 0x948   :  { %2299 = vadd.xlane.f32.xlu0 %v2298_v56  ;;  %2254 = vadd.xlane.f32.xlu1 %v2253_v16 }
 0x949   :  { %v2797_v48 = vsel %vm814_vm2, %v7866_v29, 0.0  ;;  %v2800_v3 = vsel %vm814_vm2, %v7867_v38, 0.0  ;;  %v2803_v17 = vsel %vm814_vm2, %v7871_v22, 0.0  ;;  %v2806_v63 = vsel %vm814_vm2, %v7872_v12, 0.0 }
 0x94a   :  { %v7880_v58 = vpop.permute.xlu1 %7879 }
 0x94b   :  { %v7875_v57 = vpop.permute.xlu0 %7874  ;;  %v7881_v9 = vunpack.i.l.bf16 %v7880_v58  ;;  %v7882_v43 = vunpack.i.h.bf16 %v7880_v58 }
 0x94c   :  { %2257 = vadd.xlane.f32.xlu0 %v2256_v27  ;;  %2302 = vadd.xlane.f32.xlu1 %v2301_v60  ;;  %v7876_v24 = vunpack.i.l.bf16 %v7875_v57  ;;  %v7877_v44 = vunpack.i.h.bf16 %v7875_v57 }
 0x94d   :  { %v2851_v5 = vsel %vm814_vm2, %v7881_v9, 0.0  ;;  %v2854_v39 = vsel %vm814_vm2, %v7882_v43, 0.0 }
 0x94e   :  { %v2845_v0 = vsel %vm814_vm2, %v7876_v24, 0.0  ;;  %v2848_v21 = vsel %vm814_vm2, %v7877_v44, 0.0  ;;  %v7890_v30 = vpop.permute.xlu1 %7889 }
 0x94f   :  { %v7885_v47 = vpop.permute.xlu0 %7884  ;;  %v7891_v42 = vunpack.i.l.bf16 %v7890_v30  ;;  %v7892_v32 = vunpack.i.h.bf16 %v7890_v30 }
 0x950   :  { %2305 = vadd.xlane.f32.xlu0 %v2304_v13  ;;  %2798 = vadd.xlane.f32.xlu1 %v2797_v48  ;;  %v7886_v25 = vunpack.i.l.bf16 %v7885_v47  ;;  %v7887_v6 = vunpack.i.h.bf16 %v7885_v47 }
 0x951   :  { %v2857_v59 = vsel %vm814_vm2, %v7891_v42, 0.0  ;;  %v2860_v7 = vsel %vm814_vm2, %v7892_v32, 0.0 }
 0x952   :  { %v2809_v4 = vsel %vm814_vm2, %v7886_v25, 0.0  ;;  %v2812_v14 = vsel %vm814_vm2, %v7887_v6, 0.0  ;;  %v7900_v11 = vpop.permute.xlu1 %7899 }
 0x953   :  { %v7895_v19 = vpop.permute.xlu0 %7894  ;;  %v7901_v55 = vunpack.i.l.bf16 %v7900_v11  ;;  %v7902_v49 = vunpack.i.h.bf16 %v7900_v11 }
 0x954   :  { %2801 = vadd.xlane.f32.xlu0 %v2800_v3  ;;  %2804 = vadd.xlane.f32.xlu1 %v2803_v17  ;;  %v7896_v31 = vunpack.i.l.bf16 %v7895_v19  ;;  %v7897_v33 = vunpack.i.h.bf16 %v7895_v19 }
 0x955   :  { %v2863_v36 = vsel %vm814_vm2, %v7901_v55, 0.0  ;;  %v2866_v37 = vsel %vm814_vm2, %v7902_v49, 0.0 }
 0x956   :  { %v2815_v34 = vsel %vm814_vm2, %v7896_v31, 0.0  ;;  %v2818_v50 = vsel %vm814_vm2, %v7897_v33, 0.0  ;;  %v7910_v40 = vpop.permute.xlu1 %7909 }
 0x957   :  { %v7905_v45 = vpop.permute.xlu0 %7904  ;;  %v7911_v46 = vunpack.i.l.bf16 %v7910_v40  ;;  %v7912_v16 = vunpack.i.h.bf16 %v7910_v40 }
 0x958   :  { %2807 = vadd.xlane.f32.xlu0 %v2806_v63  ;;  %2846 = vadd.xlane.f32.xlu1 %v2845_v0  ;;  %v7906_v26 = vunpack.i.l.bf16 %v7905_v45  ;;  %v7907_v10 = vunpack.i.h.bf16 %v7905_v45 }
 0x959   :  { %v2869_v28 = vsel %vm814_vm2, %v7911_v46, 0.0  ;;  %v2872_v23 = vsel %vm814_vm2, %v7912_v16, 0.0 }
 0x95a   :  { %v2821_v35 = vsel %vm814_vm2, %v7906_v26, 0.0  ;;  %v2824_v52 = vsel %vm814_vm2, %v7907_v10, 0.0  ;;  %v7920_v29 = vpop.permute.xlu1 %7919 }
 0x95b   :  { %v7915_v56 = vpop.permute.xlu0 %7914  ;;  %v7921_v27 = vunpack.i.l.bf16 %v7920_v29  ;;  %v7922_v38 = vunpack.i.h.bf16 %v7920_v29 }
 0x95c   :  { %2849 = vadd.xlane.f32.xlu0 %v2848_v21  ;;  %2852 = vadd.xlane.f32.xlu1 %v2851_v5  ;;  %v7916_v53 = vunpack.i.l.bf16 %v7915_v56  ;;  %v7917_v60 = vunpack.i.h.bf16 %v7915_v56 }
 0x95d   :  { %v2875_v57 = vsel %vm814_vm2, %v7921_v27, 0.0  ;;  %v2878_v17 = vsel %vm814_vm2, %v7922_v38, 0.0 }
 0x95e   :  { %v2827_v61 = vsel %vm814_vm2, %v7916_v53, 0.0  ;;  %v2830_v48 = vsel %vm814_vm2, %v7917_v60, 0.0  ;;  %v7930_v12 = vpop.permute.xlu1 %7929 }
 0x95f   :  { %v7925_v22 = vpop.permute.xlu0 %7924  ;;  %v7931_v24 = vunpack.i.l.bf16 %v7930_v12  ;;  %v7932_v44 = vunpack.i.h.bf16 %v7930_v12 }
 0x960   :  { %2855 = vadd.xlane.f32.xlu0 %v2854_v39  ;;  %2810 = vadd.xlane.f32.xlu1 %v2809_v4  ;;  %v7926_v13 = vunpack.i.l.bf16 %v7925_v22  ;;  %v7927_v3 = vunpack.i.h.bf16 %v7925_v22 }
 0x961   :  { %v2881_v47 = vsel %vm814_vm2, %v7931_v24, 0.0  ;;  %v2884_v5 = vsel %vm814_vm2, %v7932_v44, 0.0 }
 0x962   :  { %v2833_v58 = vsel %vm814_vm2, %v7926_v13, 0.0  ;;  %v2836_v0 = vsel %vm814_vm2, %v7927_v3, 0.0  ;;  %v7940_v43 = vpop.permute.xlu1 %7939 }
 0x963   :  { %v7935_v9 = vpop.permute.xlu0 %7934  ;;  %v7941_v25 = vunpack.i.l.bf16 %v7940_v43  ;;  %v7942_v42 = vunpack.i.h.bf16 %v7940_v43 }
 0x964   :  { %2813 = vadd.xlane.f32.xlu0 %v2812_v14  ;;  %2858 = vadd.xlane.f32.xlu1 %v2857_v59  ;;  %v7936_v63 = vunpack.i.l.bf16 %v7935_v9  ;;  %v7937_v21 = vunpack.i.h.bf16 %v7935_v9 }
 0x965   :  { %v2887_v39 = vsel %vm814_vm2, %v7941_v25, 0.0  ;;  %v2890_v4 = vsel %vm814_vm2, %v7942_v42, 0.0 }
 0x966   :  { %v2839_v30 = vsel %vm814_vm2, %v7936_v63, 0.0  ;;  %v2842_v6 = vsel %vm814_vm2, %v7937_v21, 0.0 }
 0x968   :  { %2861 = vadd.xlane.f32.xlu0 %v2860_v7  ;;  %2816 = vadd.xlane.f32.xlu1 %v2815_v34 }
 0x96c   :  { %2819 = vadd.xlane.f32.xlu0 %v2818_v50  ;;  %2864 = vadd.xlane.f32.xlu1 %v2863_v36 }
 0x970   :  { %2867 = vadd.xlane.f32.xlu0 %v2866_v37  ;;  %2822 = vadd.xlane.f32.xlu1 %v2821_v35 }
 0x974   :  { %2825 = vadd.xlane.f32.xlu0 %v2824_v52  ;;  %2870 = vadd.xlane.f32.xlu1 %v2869_v28 }
 0x978   :  { %2873 = vadd.xlane.f32.xlu0 %v2872_v23  ;;  %2828 = vadd.xlane.f32.xlu1 %v2827_v61 }
 0x97c   :  { %2831 = vadd.xlane.f32.xlu0 %v2830_v48  ;;  %2876 = vadd.xlane.f32.xlu1 %v2875_v57 }
 0x980   :  { %2879 = vadd.xlane.f32.xlu0 %v2878_v17  ;;  %2834 = vadd.xlane.f32.xlu1 %v2833_v58 }
 0x984   :  { %2837 = vadd.xlane.f32.xlu0 %v2836_v0  ;;  %2882 = vadd.xlane.f32.xlu1 %v2881_v47 }
 0x988   :  { %2885 = vadd.xlane.f32.xlu0 %v2884_v5  ;;  %2840 = vadd.xlane.f32.xlu1 %v2839_v30 }
 0x98c   :  { %2843 = vadd.xlane.f32.xlu0 %v2842_v6  ;;  %2888 = vadd.xlane.f32.xlu1 %v2887_v39 }
 0x990   :  { %2891 = vadd.xlane.f32.xlu0 %v2890_v4 }
 0x99d   :  { %v2213_v19 = vpop.xlane.xlu0 %2212 }
 0x99e   :  { %v2342_v63 = vrot.slane %v2213_v19, %v8972_v62 }
 0x9a1   :  { %v2219_v32 = vpop.xlane.xlu0 %2218  ;;  %v2216_v31 = vpop.xlane.xlu1 %2215 }
 0x9a2   :  { %v2351_v17 = vrot.slane %v2219_v32, %v8972_v62  ;;  %v2346_v58 = vrot.slane %v2216_v31, %v8967_v54 }
 0x9a4   :  { %v2347_v5 = vsel %vm954_vm3, %v2346_v58, %v2342_v63 }
 0x9a5   :  { %v2222_v14 = vpop.xlane.xlu0 %2221  ;;  %v2261_v59 = vpop.xlane.xlu1 %2260 }
 0x9a6   :  { %v2355_v24 = vrot.slane %v2222_v14, %v8967_v54  ;;  %v2414_v30 = vrot.slane %v2261_v59, %v8972_v62 }
 0x9a8   :  { %v2356_v0 = vsel %vm954_vm3, %v2355_v24, %v2351_v17 }
 0x9a9   :  { %v2264_v11 = vpop.xlane.xlu0 %2263  ;;  %v2267_v55 = vpop.xlane.xlu1 %2266  ;;  %v2483_v39 = vsel %vm1091_vm4, %v2356_v0, %v2347_v5 }
 0x9aa   :  { %v9662_v33 = vpop.f32.mrb[12].mxu1  ;;  %v2418_v47 = vrot.slane %v2264_v11, %v8967_v54  ;;  %v2423_v14 = vrot.slane %v2267_v55, %v8972_v62 }
 0x9ab   :  { %v7599_v7 = vpop.f32.mrb[13].mxu1 }
 0x9ac   :  { %v9664_v34 = vpop.f32.mrb[14].mxu1  ;;  %v2419_v31 = vsel %vm954_vm3, %v2418_v47, %v2414_v30 }
 0x9ad   :  { %v7943_v45 = vpack.i.bf16 %v9664_v34, %v9662_v33  ;;  %v2270_v49 = vpop.xlane.xlu0 %2269  ;;  %v7600_v26 = vpop.f32.mrb[15].mxu1 }
 0x9ae   :  { %v2225_v50 = vpop.xlane.xlu1 %2224  ;;  %v2427_v42 = vrot.slane %v2270_v49, %v8967_v54 }
 0x9af   :  { %v2360_v43 = vrot.slane %v2225_v50, %v8972_v62 }
 0x9b1   :  { %v2228_v36 = vpop.xlane.xlu0 %2227 }
 0x9b2   :  { %v2273_v40 = vpop.xlane.xlu1 %2272  ;;  %v9668_v46 = vpop.f32.mrb[16].mxu1  ;;  %v2364_v44 = vrot.slane %v2228_v36, %v8967_v54 }
 0x9b3   :  { %v7605_v10 = vpop.f32.mrb[17].mxu1 }
 0x9b4   :  { %v9670_v37 = vpop.f32.mrb[18].mxu1  ;;  %v2365_v4 = vsel %vm954_vm3, %v2364_v44, %v2360_v43  ;;  %v2428_v10 = vsel %vm954_vm3, %v2427_v42, %v2423_v14 }
 0x9b5   :  { %v2276_v35 = vpop.xlane.xlu0 %2275  ;;  %v7606_v56 = vpop.f32.mrb[19].mxu1 }
 0x9b6   :  { %v2231_v16 = vpop.xlane.xlu1 %2230  ;;  %v2436_v11 = vrot.slane %v2276_v35, %v8967_v54  ;;  %v2484_v56 = vsel %vm1093_vm5, %v2365_v4, %v2483_v39 }
 0x9b7   :  { %v2369_v19 = vrot.slane %v2231_v16, %v8972_v62  ;;  %v2432_v16 = vrot.slane %v2273_v40, %v8972_v62 }
 0x9b9   :  { %v2234_v53 = vpop.xlane.xlu0 %2233 }
 0x9ba   :  { %v2279_v52 = vpop.xlane.xlu1 %2278  ;;  %v9672_v28 = vpop.f32.mrb[20].mxu1  ;;  %v2373_v25 = vrot.slane %v2234_v53, %v8967_v54 }
 0x9bb   :  { %v7617_v29 = vpop.f32.mrb[21].mxu1  ;;  %v2441_v53 = vrot.slane %v2279_v52, %v8972_v62 }
 0x9bc   :  { %v9674_v27 = vpop.f32.mrb[22].mxu1  ;;  %v2374_v59 = vsel %vm954_vm3, %v2373_v25, %v2369_v19 }
 0x9bd   :  { %v2282_v60 = vpop.xlane.xlu0 %2281  ;;  %v7618_v23 = vpop.f32.mrb[23].mxu1 }
 0x9be   :  { %v2237_v61 = vpop.xlane.xlu1 %2236  ;;  %v2445_v49 = vrot.slane %v2282_v60, %v8967_v54 }
 0x9bf   :  { %v2378_v26 = vrot.slane %v2237_v61, %v8972_v62  ;;  %v2437_v61 = vsel %vm954_vm3, %v2436_v11, %v2432_v16 }
 0x9c0   :  { %v2446_v40 = vsel %vm954_vm3, %v2445_v49, %v2441_v53 }
 0x9c1   :  { %v2240_v22 = vpop.xlane.xlu0 %2239 }
 0x9c2   :  { %v2285_v38 = vpop.xlane.xlu1 %2284  ;;  %v2382_v32 = vrot.slane %v2240_v22, %v8967_v54  ;;  %v2485_v22 = vsel %vm1095_vm6, %v2374_v59, %v2484_v56 }
 0x9c4   :  { %v2383_v29 = vsel %vm954_vm3, %v2382_v32, %v2378_v26 }
 0x9c5   :  { %v2288_v13 = vpop.xlane.xlu0 %2287 }
 0x9c6   :  { %v2243_v48 = vpop.xlane.xlu1 %2242  ;;  %v2454_v60 = vrot.slane %v2288_v13, %v8967_v54  ;;  %v2486_v13 = vsel %vm1097_vm7, %v2383_v29, %v2485_v22 }
 0x9c7   :  { %v2387_v55 = vrot.slane %v2243_v48, %v8972_v62  ;;  %v2450_v48 = vrot.slane %v2285_v38, %v8972_v62 }
 0x9c9   :  { %v2246_v57 = vpop.xlane.xlu0 %2245  ;;  %v2455_v47 = vsel %vm954_vm3, %v2454_v60, %v2450_v48 }
 0x9ca   :  { %v2291_v12 = vpop.xlane.xlu1 %2290  ;;  %v2391_v7 = vrot.slane %v2246_v57, %v8967_v54 }
 0x9cc   :  { %v2392_v57 = vsel %vm954_vm3, %v2391_v7, %v2387_v55  ;;  %v9739_v7 = vld [vmem:[%s11727_s22 + $0x1] ss:$0 sm:$0xff] }
 0x9cd   :  { %v2294_v3 = vpop.xlane.xlu0 %2293  ;;  %v2487_v38 = vsel %vm1099_vm8, %v2392_v57, %v2486_v13 }
 0x9ce   :  { %v2249_v9 = vpop.xlane.xlu1 %2248  ;;  %v2463_v24 = vrot.slane %v2294_v3, %v8967_v54  ;;  %v2490_v3 = vsel %vm1091_vm4, %v2428_v10, %v2419_v31 }
 0x9cf   :  { %v2396_v23 = vrot.slane %v2249_v9, %v8972_v62  ;;  %v2459_v9 = vrot.slane %v2291_v12, %v8972_v62  ;;  %v2491_v25 = vsel %vm1093_vm5, %v2437_v61, %v2490_v3 }
 0x9d0   :  { %v2492_v30 = vsel %vm1095_vm6, %v2446_v40, %v2491_v25 }
 0x9d1   :  { %v2252_v21 = vpop.xlane.xlu0 %2251  ;;  %v2493_v19 = vsel %vm1097_vm7, %v2455_v47, %v2492_v30 }
 0x9d2   :  { %v2297_v6 = vpop.xlane.xlu1 %2296  ;;  %v2400_v50 = vrot.slane %v2252_v21, %v8967_v54  ;;  %v2464_v21 = vsel %vm954_vm3, %v2463_v24, %v2459_v9 }
 0x9d3   :  { %v2468_v43 = vrot.slane %v2297_v6, %v8972_v62  ;;  %v2494_v11 = vsel %vm1099_vm8, %v2464_v21, %v2493_v19 }
 0x9d4   :  { %v2401_v52 = vsel %vm954_vm3, %v2400_v50, %v2396_v23 }
 0x9d5   :  { %v2300_v36 = vpop.xlane.xlu0 %2299  ;;  %v2488_v5 = vsel %vm1101_vm9, %v2401_v52, %v2487_v38 }
 0x9d6   :  { %v2255_v35 = vpop.xlane.xlu1 %2254  ;;  %v2472_v17 = vrot.slane %v2300_v36, %v8967_v54 }
 0x9d7   :  { %v2405_v44 = vrot.slane %v2255_v35, %v8972_v62 }
 0x9d8   :  { %v2473_v42 = vsel %vm954_vm3, %v2472_v17, %v2468_v43 }
 0x9d9   :  { %v2258_v58 = vpop.xlane.xlu0 %2257  ;;  %v2495_v59 = vsel %vm1101_vm9, %v2473_v42, %v2494_v11 }
 0x9da   :  { %v2409_v63 = vrot.slane %v2258_v58, %v8967_v54  ;;  %v2303_v0 = vpop.xlane.xlu1 %2302 }
 0x9db   :  { %v2477_v32 = vrot.slane %v2303_v0, %v8972_v62 }
 0x9dc   :  { %v2410_v12 = vsel %vm954_vm3, %v2409_v63, %v2405_v44 }
 0x9dd   :  { %v2306_v39 = vpop.xlane.xlu0 %2305  ;;  %v2489_v4 = vsel %vm1103_vm10, %v2410_v12, %v2488_v5 }
 0x9de   :  { %v2481_v6 = vrot.slane %v2306_v39, %v8967_v54  ;;  %v2799_v31 = vpop.xlane.xlu1 %2798  ;;  %v2540_v14 = vadd.f32 %v9668_v46, %v2489_v4 }
 0x9df   :  { %v2932_v30 = vrot.slane %v2799_v31, %v8972_v62 }
 0x9e0   :  { %v2482_v49 = vsel %vm954_vm3, %v2481_v6, %v2477_v32  ;;  %v2546_v26 = vmul.f32 0.17677669, %v2540_v14 }
 0x9e1   :  { %v2802_v50 = vpop.xlane.xlu0 %2801  ;;  %v2496_v36 = vsel %vm1103_vm10, %v2482_v49, %v2495_v59 }
 0x9e2   :  { %v2805_v10 = vpop.xlane.xlu1 %2804  ;;  %v9745_v56 = vadd.f32 %v9739_v7, %v2546_v26  ;;  %v2543_v46 = vadd.f32 %v9670_v37, %v2496_v36  ;;  %v2936_v25 = vrot.slane %v2802_v50, %v8967_v54 }
 0x9e3   :  { %v2941_v21 = vrot.slane %v2805_v10, %v8972_v62 }
 0x9e4   :  { %v2554_v16 = vsel %vm1169_vm11, %v9745_v56, -inf  ;;  %v2547_v55 = vmul.f32 0.17677669, %v2543_v46  ;;  %v2937_v6 = vsel %vm954_vm3, %v2936_v25, %v2932_v30 }
 0x9e5   :  { %v2808_v35 = vpop.xlane.xlu0 %2807  ;;  %2555 = vmax.xlane.f32.xlu1 %v2554_v16 }
 0x9e6   :  { %v2847_v53 = vpop.xlane.xlu1 %2846  ;;  %v9751_v29 = vadd.f32 %v9739_v7, %v2547_v55  ;;  %v2945_v38 = vrot.slane %v2808_v35, %v8967_v54 }
 0x9e7   :  { %v3004_v14 = vrot.slane %v2847_v53, %v8972_v62 }
 0x9e8   :  { %v2557_v60 = vsel %vm1169_vm11, %v9751_v29, -inf  ;;  %v2946_v42 = vsel %vm954_vm3, %v2945_v38, %v2941_v21 }
 0x9e9   :  { %v2850_v23 = vpop.xlane.xlu0 %2849  ;;  %2558 = vmax.xlane.f32.xlu0 %v2557_v60  ;;  %v3073_v49 = vsel %vm1091_vm4, %v2946_v42, %v2937_v6 }
 0x9ea   :  { %v2853_v61 = vpop.xlane.xlu1 %2852  ;;  %v3008_v39 = vrot.slane %v2850_v23, %v8967_v54 }
 0x9eb   :  { %v3013_v10 = vrot.slane %v2853_v61, %v8972_v62 }
 0x9ec   :  { %v3009_v36 = vsel %vm954_vm3, %v3008_v39, %v3004_v14 }
 0x9ed   :  { %v2856_v22 = vpop.xlane.xlu0 %2855 }
 0x9ee   :  { %v2811_v57 = vpop.xlane.xlu1 %2810  ;;  %v3017_v11 = vrot.slane %v2856_v22, %v8967_v54 }
 0x9ef   :  { %v2950_v4 = vrot.slane %v2811_v57, %v8972_v62 }
 0x9f0   :  { %v3018_v22 = vsel %vm954_vm3, %v3017_v11, %v3013_v10 }
 0x9f1   :  { %v2814_v24 = vpop.xlane.xlu0 %2813  ;;  %v3080_v39 = vsel %vm1091_vm4, %v3018_v22, %v3009_v36 }
 0x9f2   :  { %v2859_v37 = vpop.xlane.xlu1 %2858  ;;  %v2954_v12 = vrot.slane %v2814_v24, %v8967_v54 }
 0x9f3   :  { %v3022_v24 = vrot.slane %v2859_v37, %v8972_v62 }
 0x9f4   :  { %v2955_v31 = vsel %vm954_vm3, %v2954_v12, %v2950_v4 }
 0x9f5   :  { %v2862_v40 = vpop.xlane.xlu0 %2861  ;;  %v3074_v57 = vsel %vm1093_vm5, %v2955_v31, %v3073_v49 }
 0x9f6   :  { %v2817_v48 = vpop.xlane.xlu1 %2816  ;;  %v3026_v46 = vrot.slane %v2862_v40, %v8967_v54 }
 0x9f7   :  { %v2959_v26 = vrot.slane %v2817_v48, %v8972_v62 }
 0x9f9   :  { %v2820_v52 = vpop.xlane.xlu0 %2819 }
 0x9fa   :  { %v2865_v17 = vpop.xlane.xlu1 %2864  ;;  %v2963_v19 = vrot.slane %v2820_v52, %v8967_v54 }
 0x9fb   :  { %v3031_v48 = vrot.slane %v2865_v17, %v8972_v62 }
 0x9fc   :  { %v2964_v55 = vsel %vm954_vm3, %v2963_v19, %v2959_v26 }
 0x9fd   :  { %v2868_v58 = vpop.xlane.xlu0 %2867 }
 0x9fe   :  { %v2823_v13 = vpop.xlane.xlu1 %2822  ;;  %v3035_v35 = vrot.slane %v2868_v58, %v8967_v54 }
 0x9ff   :  { %v2968_v53 = vrot.slane %v2823_v13, %v8972_v62 }
 0xa00   :  { %v3036_v37 = vsel %vm954_vm3, %v3035_v35, %v3031_v48 }
 0xa01   :  { %v2826_v9 = vpop.xlane.xlu0 %2825 }
 0xa02   :  { %v2871_v44 = vpop.xlane.xlu1 %2870  ;;  %v2972_v50 = vrot.slane %v2826_v9, %v8967_v54  ;;  %v3027_v9 = vsel %vm954_vm3, %v3026_v46, %v3022_v24 }
 0xa04   :  { %v2973_v52 = vsel %vm954_vm3, %v2972_v50, %v2968_v53 }
 0xa05   :  { %v2874_v63 = vpop.xlane.xlu0 %2873 }
 0xa06   :  { %v2829_v0 = vpop.xlane.xlu1 %2828  ;;  %v3044_v58 = vrot.slane %v2874_v63, %v8967_v54 }
 0xa07   :  { %v2977_v61 = vrot.slane %v2829_v0, %v8972_v62  ;;  %v3040_v0 = vrot.slane %v2871_v44, %v8972_v62 }
 0xa09   :  { %v2832_v3 = vpop.xlane.xlu0 %2831 }
 0xa0a   :  { %v2877_v47 = vpop.xlane.xlu1 %2876  ;;  %v2981_v16 = vrot.slane %v2832_v3, %v8967_v54  ;;  %v3075_v3 = vsel %vm1095_vm6, %v2964_v55, %v3074_v57 }
 0xa0b   :  { %v3076_v63 = vsel %vm1097_vm7, %v2973_v52, %v3075_v3 }
 0xa0c   :  { %v2982_v38 = vsel %vm954_vm3, %v2981_v16, %v2977_v61 }
 0xa0d   :  { %v2880_v43 = vpop.xlane.xlu0 %2879  ;;  %v3077_v4 = vsel %vm1099_vm8, %v2982_v38, %v3076_v63 }
 0xa0e   :  { %v2835_v5 = vpop.xlane.xlu1 %2834  ;;  %v3053_v25 = vrot.slane %v2880_v43, %v8967_v54  ;;  %v3045_v43 = vsel %vm954_vm3, %v3044_v58, %v3040_v0 }
 0xa0f   :  { %v2986_v13 = vrot.slane %v2835_v5, %v8972_v62  ;;  %v3049_v5 = vrot.slane %v2877_v47, %v8972_v62 }
 0xa11   :  { %v2838_v32 = vpop.xlane.xlu0 %2837  ;;  %v3054_v6 = vsel %vm954_vm3, %v3053_v25, %v3049_v5 }
 0xa12   :  { %v2883_v59 = vpop.xlane.xlu1 %2882  ;;  %v2990_v60 = vrot.slane %v2838_v32, %v8967_v54  ;;  %v3081_v32 = vsel %vm1093_vm5, %v3027_v9, %v3080_v39 }
 0xa13   :  { %v3058_v44 = vrot.slane %v2883_v59, %v8972_v62  ;;  %v3082_v11 = vsel %vm1095_vm6, %v3036_v37, %v3081_v32 }
 0xa14   :  { %v2991_v17 = vsel %vm954_vm3, %v2990_v60, %v2986_v13  ;;  %v3083_v50 = vsel %vm1097_vm7, %v3045_v43, %v3082_v11 }
 0xa15   :  { %v2886_v23 = vpop.xlane.xlu0 %2885  ;;  %v3078_v14 = vsel %vm1101_vm9, %v2991_v17, %v3077_v4  ;;  %v3084_v46 = vsel %vm1099_vm8, %v3054_v6, %v3083_v50 }
 0xa16   :  { %v2841_v40 = vpop.xlane.xlu1 %2840  ;;  %v3062_v21 = vrot.slane %v2886_v23, %v8967_v54 }
 0xa17   :  { %v2995_v30 = vrot.slane %v2841_v40, %v8972_v62 }
 0xa18   :  { %v3063_v49 = vsel %vm954_vm3, %v3062_v21, %v3058_v44 }
 0xa19   :  { %v2844_v12 = vpop.xlane.xlu0 %2843  ;;  %v3085_v16 = vsel %vm1101_vm9, %v3063_v49, %v3084_v46 }
 0xa1a   :  { %v2999_v42 = vrot.slane %v2844_v12, %v8967_v54  ;;  %v2889_v19 = vpop.xlane.xlu1 %2888 }
 0xa1b   :  { %v3067_v59 = vrot.slane %v2889_v19, %v8972_v62 }
 0xa1c   :  { %v3000_v47 = vsel %vm954_vm3, %v2999_v42, %v2995_v30 }
 0xa1d   :  { %v2892_v31 = vpop.xlane.xlu0 %2891  ;;  %v3079_v26 = vsel %vm1103_vm10, %v3000_v47, %v3078_v14 }
 0xa1e   :  { %v3071_v36 = vrot.slane %v2892_v31, %v8967_v54  ;;  %v3130_v10 = vadd.f32 %v9672_v28, %v3079_v26 }
 0xa20   :  { %v3072_v55 = vsel %vm954_vm3, %v3071_v36, %v3067_v59  ;;  %v3136_v35 = vmul.f32 0.17677669, %v3130_v10  ;;  %v8151_v59 = vld [vmem:[%s11624_s10] sm:$0xff]  }
 0xa21   :  { %v3086_v53 = vsel %vm1103_vm10, %v3072_v55, %v3085_v16  ;;  %7625 = vmatprep.subr.bf16.mxu1 %v8151_v59  ;;  %v8154_v55 = vld [vmem:[%s11624_s10 + $0x18] sm:$0xff]  }
 0xa22   :  { %v3138_v60 = vadd.f32 %v9739_v7, %v3136_v35  ;;  %v3133_v23 = vadd.f32 %v9674_v27, %v3086_v53  ;;  %7626 = vmatpush3.bf16.msra.mxu1 %v8151_v59  ;;  %v8156_v59 = vld [vmem:[%s11628_s14 + $0x8] sm:$0xff]  }
 0xa24   :  { %v3140_v22 = vsel %vm1169_vm11, %v3138_v60, -inf  ;;  %v3137_v57 = vmul.f32 0.17677669, %v3133_v23 }
 0xa25   :  { %3141 = vmax.xlane.f32.xlu1 %v3140_v22 }
 0xa26   :  { %v3139_v24 = vadd.f32 %v9739_v7, %v3137_v57 }
 0xa28   :  { %v3143_v28 = vsel %vm1169_vm11, %v3139_v24, -inf }
 0xa29   :  { %3144 = vmax.xlane.f32.xlu0 %v3143_v28 }
 0xa72   :  { %v2556_v61 = vpop.xlane.xlu1 %2555 }
 0xa73   :  { %v2560_v40 = vsub.f32 %v9745_v56, %v2556_v61 }
 0xa75   :  { %v2562_v48 = vmul.f32 1.442695, %v2560_v40 }
 0xa76   :  { %v2559_v52 = vpop.xlane.xlu0 %2558 }
 0xa77   :  { %8247 = vpow2.f32 %v2562_v48  ;;  %v2561_v58 = vsub.f32 %v9751_v29, %v2559_v52  ;;  %v7310_v52 = vld [vmem:[%s11625_s11] ss:$0 sm:$0xff] }
 0xa79   :  { %v2564_v13 = vmul.f32 1.442695, %v2561_v58 }
 0xa7b   :  { %8249 = vpow2.f32 %v2564_v13 }
 0xa81   :  { %v8248_v27 = vpop.eup %8247 }
 0xa82   :  { %v2566_v9 = vsel %vm1169_vm11, %v8248_v27, 0.0 }
 0xa83   :  { %2567 = vadd.xlane.f32.xlu1 %v2566_v9 }
 0xa85   :  { %v8250_v3 = vpop.eup %8249 }
 0xa86   :  { %v2569_v7 = vsel %vm1169_vm11, %v8250_v3, 0.0 }
 0xa87   :  { %2570 = vadd.xlane.f32.xlu0 %v2569_v7 }
 0xab2   :  { %v3142_v38 = vpop.xlane.xlu1 %3141 }
 0xab3   :  { %v3146_v25 = vsub.f32 %v3138_v60, %v3142_v38 }
 0xab5   :  { %v3148_v37 = vmul.f32 1.442695, %v3146_v25  ;;  %v11747_v25 = vld [vmem:[#allocation5_spill] sm:$0xff] }
 0xab6   :  { %v3145_v0 = vpop.xlane.xlu0 %3144 }
 0xab7   :  { %8251 = vpow2.f32 %v3148_v37  ;;  %v3147_v56 = vsub.f32 %v3139_v24, %v3145_v0 }
 0xab9   :  { %v3150_v17 = vmul.f32 1.442695, %v3147_v56 }
 0xabb   :  { %8253 = vpow2.f32 %v3150_v17  ;;  %v11748_v17 = vld [vmem:[#allocation6_spill] sm:$0xff] }
 0xac1   :  { %v8252_v21 = vpop.eup %8251 }
 0xac2   :  { %v3152_v29 = vsel %vm1169_vm11, %v8252_v21, 0.0 }
 0xac3   :  { %3153 = vadd.xlane.f32.xlu1 %v3152_v29 }
 0xac5   :  { %v8254_v12 = vpop.eup %8253 }
 0xac6   :  { %v3155_v63 = vsel %vm1169_vm11, %v8254_v12, 0.0 }
 0xac7   :  { %3156 = vadd.xlane.f32.xlu0 %v3155_v63 }
 0xad4   :  { %3164 = vrot.lane.b32.xlu1 %v9348_v8, %s8409_s1 }
 0xadd   :  { %7944 = vrot.lane.b32.xlu0 %v7943_v45, %s8408_s23 }
 0xb10   :  { %v2568_v5 = vpop.xlane.xlu1 %2567 }
 0xb11   :  { %8255 = vrcp.f32 %v2568_v5 }
 0xb14   :  { %v2571_v30 = vpop.xlane.xlu0 %2570 }
 0xb15   :  { %8257 = vrcp.f32 %v2571_v30 }
 0xb1b   :  { %v8256_v42 = vpop.eup %8255 }
 0xb1c   :  { %v2574_v43 = vmul.f32 %v8256_v42, %v8248_v27 }
 0xb1f   :  { %v8258_v39 = vpop.eup %8257 }
 0xb20   :  { %v2575_v4 = vmul.f32 %v8258_v39, %v8250_v3 }
 0xb22   :  { %v2576_v44 = vpack.c.bf16 %v2575_v4, %v2574_v43 }
 0xb24   :  { %7610 = vmatmul.mubr.msk.bf16.vlgmr.msra.gmra.mrb[8].mxu0 %vm1169_vm11, %v2576_v44 }
 0xb25   :  { %7621 = vmatprep.mubr.msk.bf16.mxu0 %vm8405_vm1, %v11728_v20 }
 0xb50   :  { %v3154_v8 = vpop.xlane.xlu1 %3153 }
 0xb51   :  { %8259 = vrcp.f32 %v3154_v8 }
 0xb54   :  { %v3165_v19 = vpop.permute.xlu1 %3164  ;;  %v3157_v32 = vpop.xlane.xlu0 %3156 }
 0xb55   :  { %8261 = vrcp.f32 %v3157_v32  ;;  %7620 = vmatpush3.bf16.msra.mxu0 %v3165_v19 }
 0xb58   :  { %v7945_v33 = vpop.permute.xlu0 %7944 }
 0xb59   :  { %v7947_v34 = vunpack.i.h.bf16 %v7945_v33  ;;  %v7946_v45 = vunpack.i.l.bf16 %v7945_v33 }
 0xb5b   :  { %v1884_v6 = vsel %vm814_vm2, %v9248_v51, %v7947_v34  ;;  %v1883_v14 = vsel %vm814_vm2, %v9244_v15, %v7946_v45  ;;  %v8260_v11 = vpop.eup %8259  ;;  %v8152_v51 = vld [vmem:[%s11624_s10 + $0x8] sm:$0xff]   ;;  %v8153_v15 = vld [vmem:[%s11624_s10 + $0x10] sm:$0xff]  }
 0xb5c   :  { %v3229_v47 = vpack.c.bf16 %v1884_v6, %v1883_v14  ;;  %v3160_v31 = vmul.f32 %v8260_v11, %v8252_v21  ;;  %7627 = vmatprep.subr.bf16.mxu1 %v8152_v51 }
 0xb5d   :  { %7628 = vmatpush3.bf16.msra.mxu1 %v8152_v51  ;;  %v8157_v51 = vld [vmem:[%s11628_s14 + $0x10] sm:$0xff]  }
 0xb5e   :  { %7633 = vmatprep.mubr.msk.bf16.mxu1 %vm76_vm0, %v3229_v47  ;;  %7629 = vmatprep.subr.bf16.mxu1 %v8153_v15 }
 0xb5f   :  { %v8262_v49 = vpop.eup %8261 }
 0xb60   :  { %v3161_v26 = vmul.f32 %v8262_v49, %v8254_v12 }
 0xb61   :  { %7630 = vmatpush3.bf16.msra.mxu1 %v8153_v15  ;;  %v8158_v15 = vld [vmem:[%s11628_s14 + $0x18] sm:$0xff]  }
 0xb62   :  { %v3162_v50 = vpack.c.bf16 %v3161_v26, %v3160_v31  ;;  %7631 = vmatprep.subr.bf16.mxu1 %v8154_v55 }
 0xb64   :  { %7622 = vmatmul.mubr.msk.bf16.vlgmr.msra.gmra.mrb[12].mxu0 %vm1169_vm11, %v3162_v50  ;;  %v8155_v50 = vld [vmem:[%s11628_s14] sm:$0xff]  }
 0xb65   :  { %7632 = vmatpush3.bf16.msra.mxu1 %v8154_v55  ;;  %7637 = vmatprep.subr.bf16.mxu0 %v8155_v50 }
 0xb66   :  { %7638 = vmatpush3.bf16.msra.mxu0 %v8155_v50 }
 0xb67   :  { %7639 = vmatprep.subr.bf16.mxu0 %v8156_v59 }
 0xb6a   :  { %7640 = vmatpush3.bf16.msra.mxu0 %v8156_v59 }
 0xb6b   :  { %7641 = vmatprep.subr.bf16.mxu0 %v8157_v51 }
 0xb6e   :  { %7642 = vmatpush3.bf16.msra.mxu0 %v8157_v51 }
 0xb6f   :  { %7643 = vmatprep.subr.bf16.mxu0 %v8158_v15 }
 0xb72   :  { %7644 = vmatpush3.bf16.msra.mxu0 %v8158_v15 }
 0xbf7   :  { %v2614_v36 = vpop.f32.mrb[8].mxu0 }
 0xbf8   :  { %v7611_v10 = vpop.f32.mrb[9].mxu0 }
 0xbf9   :  { %v2617_v46 = vpop.f32.mrb[10].mxu0  ;;  %v8160_v10 = vld [vmem:[%s11630_s16 + $0x8] sm:$0xff]  }
 0xbfa   :  { %v7612_v16 = vpop.f32.mrb[11].mxu0 }
 0xc37   :  { %v3204_v35 = vpop.f32.mrb[12].mxu0 }
 0xc38   :  { %v7623_v53 = vpop.f32.mrb[13].mxu0 }
 0xc39   :  { %v3207_v60 = vpop.f32.mrb[14].mxu0 }
 0xc3a   :  { %v7948_v23 = vpack.i.bf16 %v3207_v60, %v3204_v35  ;;  %v7624_v22 = vpop.f32.mrb[15].mxu0 }
 0xc3c   :  { %7949 = vrot.lane.b32.xlu1 %v7948_v23, %s8408_s23 }
 0xcae   :  { %v7950_v57 = vpop.permute.xlu1 %7949 }
 0xcaf   :  { %v7952_v24 = vunpack.i.h.bf16 %v7950_v57  ;;  %v7951_v28 = vunpack.i.l.bf16 %v7950_v57 }
 0xcb1   :  { %v3220_v61 = vsel %vm814_vm2, %v2617_v46, %v7952_v24  ;;  %v3219_v40 = vsel %vm814_vm2, %v2614_v36, %v7951_v28  ;;  %v8159_v36 = vld [vmem:[%s11630_s16] sm:$0xff]  }
 0xcb2   :  { %v3230_v48 = vpack.c.bf16 %v3220_v61, %v3219_v40  ;;  %7649 = vmatprep.subr.bf16.mxu1 %v8159_v36 }
 0xcb4   :  { %7634 = vmatmul.mubr.msk.bf16.vlgmr.msra.gmra.mrb[24].mxu1 %vm76_vm0, %v3230_v48  ;;  %v7317_v48 = vld [vmem:[%s11626_s12] ss:$0 sm:$0xff] }
 0xcb5   :  { %7650 = vmatpush3.bf16.msra.mxu1 %v8159_v36 }
 0xcb6   :  { %7651 = vmatprep.subr.bf16.mxu1 %v8160_v10 }
 0xcb9   :  { %7652 = vmatpush3.bf16.msra.mxu1 %v8160_v10 }
 0xd87   :  { %v7635_v58 = vpop.f32.mrb[24].mxu1 }
 0xd88   :  { %v3300_v13 = vpop.f32.mrb[25].mxu1  ;;  %v3309_v38 = vadd.f32 %v7635_v58, %v7310_v52 }
 0xd89   :  { %v3301_v27 = vadd.f32 %v7310_v52, %v3300_v13  ;;  %v7636_v9 = vpop.f32.mrb[26].mxu1 }
 0xd8a   :  { %v3312_v3 = vadd.f32 %v7636_v9, %v7310_v52  ;;  %v3303_v7 = vpop.f32.mrb[27].mxu1  ;;  %v3317_v12 = vadd.f32 %v3309_v38, %v9235_v41  ;;  %v7318_v9 = vld [vmem:[%s11627_s13] ss:$0 sm:$0xff] }
 0xd8b   :  { %v3315_v37 = vadd.f32 %v3301_v27, %v11747_v25  ;;  %v3304_v0 = vadd.f32 %v7310_v52, %v3303_v7 }
 0xd8c   :  { %v3318_v56 = vadd.f32 %v3312_v3, %v9237_v1  ;;  %v3327_v30 = vsel %vm76_vm0, %v3317_v12, 0.0 }
 0xd8d   :  { %v3316_v21 = vadd.f32 %v3304_v0, %v11748_v17  ;;  %v3321_v29 = vsel %vm76_vm0, %v3315_v37, 0.0 }
 0xd8e   :  { %3322 = vadd.xlane.f32.xlu1 %v3321_v29  ;;  %v3330_v5 = vsel %vm76_vm0, %v3318_v56, 0.0 }
 0xd8f   :  { %v3324_v63 = vsel %vm76_vm0, %v3316_v21, 0.0 }
 0xd90   :  { %3325 = vadd.xlane.f32.xlu0 %v3324_v63 }
 0xd92   :  { %3331 = vadd.xlane.f32.xlu1 %v3330_v5 }
 0xd94   :  { %3328 = vadd.xlane.f32.xlu0 %v3327_v30  ;;  %v11749_v30 = vmov 0  }
 0xe1b   :  { %v3323_v42 = vpop.xlane.xlu1 %3322 }
 0xe1c   :  { %v3333_v39 = vmul.f32 0.015625, %v3323_v42  ;;  %v8161_v42 = vld [vmem:[%s11630_s16 + $0x10] sm:$0xff]  }
 0xe1d   :  { %v3326_v43 = vpop.xlane.xlu0 %3325  ;;  %7653 = vmatprep.subr.bf16.mxu1 %v8161_v42 }
 0xe1e   :  { %v3337_v1 = vsub.f32 %v3315_v37, %v3333_v39  ;;  %v3334_v4 = vmul.f32 0.015625, %v3326_v43  ;;  %v8162_v39 = vld [vmem:[%s11630_s16 + $0x18] sm:$0xff]   ;;  %7654 = vmatpush3.bf16.msra.mxu1 %v8161_v42  ;;  %v8163_v43 = vld [vmem:[%s11630_s16 + $0x20] sm:$0xff]  }
 0xe1f   :  { %v3332_v44 = vpop.xlane.xlu1 %3331  ;;  %7655 = vmatprep.subr.bf16.mxu1 %v8162_v39 }
 0xe20   :  { %v3338_v8 = vsub.f32 %v3316_v21, %v3334_v4  ;;  %v3336_v19 = vmul.f32 0.015625, %v3332_v44  ;;  %v3341_v32 = vmul.f32 %v3337_v1, %v3337_v1  ;;  %v8165_v4 = vld [vmem:[%s11630_s16 + $0x30] sm:$0xff]   ;;  %v8166_v44 = vld [vmem:[%s11630_s16 + $0x38] sm:$0xff]  }
 0xe21   :  { %v3329_v33 = vpop.xlane.xlu0 %3328 }
 0xe22   :  { %v3340_v41 = vsub.f32 %v3318_v56, %v3336_v19  ;;  %v3335_v34 = vmul.f32 0.015625, %v3329_v33  ;;  %v3345_v45 = vsel %vm76_vm0, %v3341_v32, 0.0  ;;  %v3342_v6 = vmul.f32 %v3338_v8, %v3338_v8  ;;  %7656 = vmatpush3.bf16.msra.mxu1 %v8162_v39 }
 0xe23   :  { %3346 = vadd.xlane.f32.xlu0 %v3345_v45  ;;  %7657 = vmatprep.subr.bf16.mxu1 %v8163_v43 }
 0xe24   :  { %v3339_v14 = vsub.f32 %v3317_v12, %v3335_v34  ;;  %v3348_v47 = vsel %vm76_vm0, %v3342_v6, 0.0  ;;  %v3344_v11 = vmul.f32 %v3340_v41, %v3340_v41 }
 0xe25   :  { %3349 = vadd.xlane.f32.xlu1 %v3348_v47 }
 0xe26   :  { %v3343_v49 = vmul.f32 %v3339_v14, %v3339_v14  ;;  %v3354_v26 = vsel %vm76_vm0, %v3344_v11, 0.0  ;;  %7658 = vmatpush3.bf16.msra.mxu1 %v8163_v43 }
 0xe28   :  { %v3351_v31 = vsel %vm76_vm0, %v3343_v49, 0.0 }
 0xe29   :  { %3352 = vadd.xlane.f32.xlu0 %v3351_v31  ;;  %3355 = vadd.xlane.f32.xlu1 %v3354_v26 }
 0xeb0   :  { %v3347_v46 = vpop.xlane.xlu0 %3346 }
 0xeb1   :  { %v3357_v16 = vmul.f32 0.015625, %v3347_v46 }
 0xeb2   :  { %v3350_v55 = vpop.xlane.xlu1 %3349 }
 0xeb3   :  { %v3361_v35 = vadd.f32 1e-12, %v3357_v16  ;;  %v3358_v53 = vmul.f32 0.015625, %v3350_v55 }
 0xeb5   :  { %8263 = vrsqrt.f32 %v3361_v35  ;;  %v3362_v60 = vadd.f32 1e-12, %v3358_v53 }
 0xeb6   :  { %v3353_v23 = vpop.xlane.xlu0 %3352  ;;  %v3356_v22 = vpop.xlane.xlu1 %3355 }
 0xeb7   :  { %8265 = vrsqrt.f32 %v3362_v60  ;;  %v3359_v57 = vmul.f32 0.015625, %v3353_v23  ;;  %v3360_v24 = vmul.f32 0.015625, %v3356_v22 }
 0xeb9   :  { %v3363_v28 = vadd.f32 1e-12, %v3359_v57  ;;  %v3364_v61 = vadd.f32 1e-12, %v3360_v24 }
 0xebb   :  { %8267 = vrsqrt.f32 %v3363_v28 }
 0xebc   :  { %8269 = vrsqrt.f32 %v3364_v61  ;;  %v7326_v61 = vld [vmem:[%s11631_s17] ss:$0 sm:$0xff] }
 0xebf   :  { %v8264_v40 = vpop.eup %8263 }
 0xec0   :  { %v3369_v52 = vmul.f32 %v8264_v40, %v3337_v1  ;;  %v8164_v1 = vld [vmem:[%s11630_s16 + $0x28] sm:$0xff]  }
 0xec1   :  { %v8266_v58 = vpop.eup %8265  ;;  %7659 = vmatprep.subr.bf16.mxu1 %v8164_v1 }
 0xec2   :  { %v3370_v13 = vmul.f32 %v8266_v58, %v3338_v8  ;;  %v3377_v27 = vmul.f32 %v7317_v48, %v3369_v52  ;;  %7660 = vmatpush3.bf16.msra.mxu1 %v8164_v1  ;;  %v7319_v8 = vld [vmem:[%s11629_s15] ss:$0 sm:$0xff] }
 0xec3   :  { %7661 = vmatprep.subr.bf16.mxu1 %v8165_v4 }
 0xec4   :  { %v3378_v3 = vmul.f32 %v7317_v48, %v3370_v13  ;;  %v9899_v37 = vadd.f32 %v7318_v9, %v3377_v27 }
 0xec5   :  { %v8268_v7 = vpop.eup %8267 }
 0xec6   :  { %v8270_v38 = vpop.eup %8269  ;;  %v3371_v25 = vmul.f32 %v8268_v7, %v3339_v14  ;;  %v9901_v0 = vadd.f32 %v7318_v9, %v3378_v3  ;;  %7662 = vmatpush3.bf16.msra.mxu1 %v8165_v4 }
 0xec7   :  { %v3372_v56 = vmul.f32 %v8270_v38, %v3340_v41  ;;  %7663 = vmatprep.subr.bf16.mxu1 %v8166_v44 }
 0xec8   :  { %v3397_v17 = vpack.c.bf16 %v9901_v0, %v9899_v37  ;;  %v3379_v21 = vmul.f32 %v7317_v48, %v3371_v25 }
 0xec9   :  { %v3380_v29 = vmul.f32 %v7317_v48, %v3372_v56 }
 0xeca   :  { %7645 = vmatprep.mubr.msk.bf16.mxu0 %vm76_vm0, %v3397_v17  ;;  %v9906_v12 = vadd.f32 %v7318_v9, %v3379_v21  ;;  %7664 = vmatpush3.bf16.msra.mxu1 %v8166_v44 }
 0xecb   :  { %v9908_v63 = vadd.f32 %v7318_v9, %v3380_v29  ;;  %7675 = vmatprep.subr.bf16.mxu1 %v11728_v20 }
 0xecd   :  { %v3398_v5 = vpack.c.bf16 %v9908_v63, %v9906_v12 }
 0xecf   :  { %7646 = vmatmul.mubr.msk.bf16.vlgmr.msra.gmra.mrb[16].mxu0 %vm76_vm0, %v3398_v5 }
 0xed0   :  { %3799 = vmatprep.mubr.bf16.mxu0 %v11749_v30 }
 0xfa2   :  { %v7647_v19 = vpop.f32.mrb[16].mxu0 }
 0xfa3   :  { %v3477_v32 = vadd.f32 %v7647_v19, %v7319_v8  ;;  %v3468_v33 = vpop.f32.mrb[17].mxu0 }
 0xfa4   :  { %v3469_v41 = vadd.f32 %v7319_v8, %v3468_v33  ;;  %v7648_v34 = vpop.f32.mrb[18].mxu0 }
 0xfa5   :  { %v3489_v45 = vmul.f32 0.70710677, %v3477_v32  ;;  %v3480_v6 = vadd.f32 %v7648_v34, %v7319_v8  ;;  %v3471_v14 = vpop.f32.mrb[19].mxu0  ;;  %v3485_v10 = vmul.f32 0.5, %v3477_v32 }
 0xfa6   :  { %v3487_v47 = vmul.f32 0.70710677, %v3469_v41  ;;  %v3472_v11 = vadd.f32 %v7319_v8, %v3471_v14  ;;  %v3483_v55 = vmul.f32 0.5, %v3469_v41 }
 0xfa7   :  { %8271 = verf.f32 %v3489_v45  ;;  %v3490_v49 = vmul.f32 0.70710677, %v3480_v6  ;;  %v3486_v46 = vmul.f32 0.5, %v3480_v6 }
 0xfa8   :  { %8273 = verf.f32 %v3487_v47  ;;  %v3488_v31 = vmul.f32 0.70710677, %v3472_v11  ;;  %v3484_v35 = vmul.f32 0.5, %v3472_v11  ;;  %v8167_v11 = vld [vmem:[%s11621_s7 + $0x40] ss:$8 sps:$4 sm:$0xff]  }
 0xfa9   :  { %8275 = verf.f32 %v3490_v49  ;;  %v8169_v49 = vld [vmem:[%s11621_s7 + $0x44] ss:$8 sps:$4 sm:$0xff]  }
 0xfaa   :  { %8277 = verf.f32 %v3488_v31  ;;  %v8172_v31 = vld [vmem:[%s11621_s7 + $0x54] ss:$8 sps:$4 sm:$0xff]   ;;  %3767 = vmatprep.subr.bf16.mxu0 %v8169_v49 }
 0xfab   :  { %3768 = vmatpush1.bf16.msra.mxu0 %v8167_v11  ;;  %v11758_v11 = vld [vmem:[#allocation7_spill] sm:$0xff] }
 0xfac   :  { %3769 = vmatprep.subr.bf16.mxu0 %v8172_v31  ;;  %v11759_v49 = vsub.s32 1, %v11758_v11 }
 0xfb1   :  { %v8272_v26 = vpop.eup %8271 }
 0xfb2   :  { %v8274_v50 = vpop.eup %8273  ;;  %v3497_v59 = vadd.f32 1.0, %v8272_v26  ;;  %v8170_v26 = vld [vmem:[%s11621_s7 + $0x50] ss:$8 sps:$4 sm:$0xff]  }
 0xfb3   :  { %v8276_v51 = vpop.eup %8275  ;;  %v3495_v15 = vadd.f32 1.0, %v8274_v50  ;;  %v8175_v50 = vld [vmem:[%s11621_s7 + $0x64] ss:$8 sps:$4 sm:$0xff]   ;;  %3770 = vmatpush1.bf16.msra.mxu0 %v8170_v26 }
 0xfb4   :  { %v8278_v36 = vpop.eup %8277  ;;  %v3498_v16 = vadd.f32 1.0, %v8276_v51  ;;  %v3501_v60 = vmul.f32 %v3497_v59, %v3485_v10  ;;  %v8173_v59 = vld [vmem:[%s11621_s7 + $0x60] ss:$8 sps:$4 sm:$0xff]   ;;  %3771 = vmatprep.subr.bf16.mxu0 %v8175_v50  ;;  %v8178_v51 = vld [vmem:[%s11621_s7 + $0x74] ss:$8 sps:$4 sm:$0xff]  }
 0xfb5   :  { %v3496_v53 = vadd.f32 1.0, %v8278_v36  ;;  %v3499_v22 = vmul.f32 %v3495_v15, %v3483_v55  ;;  %v8176_v15 = vld [vmem:[%s11621_s7 + $0x70] ss:$8 sps:$4 sm:$0xff]   ;;  %v9996_v36 = vld [vmem:[%s11623_s9 + $0x80] sm:$0xff]   ;;  %v10001_v10 = vld [vmem:[%s11623_s9 + $0x88] sm:$0xff]  }
 0xfb6   :  { %v3502_v23 = vmul.f32 %v3498_v16, %v3486_v46  ;;  %v10010_v46 = vld [vmem:[%s11623_s9 + $0xc0] sm:$0xff]   ;;  %v10015_v16 = vld [vmem:[%s11623_s9 + $0xc8] sm:$0xff]   ;;  %v10025_v55 = vld [vmem:[%s11623_s9 + $0x90] sm:$0xff]  }
 0xfb7   :  { %v3500_v57 = vmul.f32 %v3496_v53, %v3484_v35  ;;  %3772 = vmatpush1.bf16.msra.mxu0 %v8173_v59  ;;  %v10030_v35 = vld [vmem:[%s11623_s9 + $0xd0] sm:$0xff]   ;;  %v10039_v53 = vld [vmem:[%s11623_s9 + $0x98] sm:$0xff]  }
 0xfb8   :  { %v3520_v24 = vpack.c.bf16 %v3502_v23, %v3501_v60  ;;  %3773 = vmatprep.subr.bf16.mxu0 %v8178_v51  ;;  %v10044_v60 = vld [vmem:[%s11623_s9 + $0xd8] sm:$0xff]   ;;  %v10053_v23 = vld [vmem:[%s11623_s9 + $0xa0] sm:$0xff]  }
 0xfb9   :  { %v3519_v28 = vpack.c.bf16 %v3500_v57, %v3499_v22  ;;  %v10058_v22 = vld [vmem:[%s11623_s9 + $0xe0] sm:$0xff]   ;;  %v10067_v57 = vld [vmem:[%s11623_s9 + $0xa8] sm:$0xff]  }
 0xfbb   :  { %7665 = vmatprep.mubr.bf16.mxu1 %v3519_v28  ;;  %3774 = vmatpush1.bf16.msra.mxu0 %v8176_v15  ;;  %v10081_v28 = vld [vmem:[%s11623_s9 + $0xb0] sm:$0xff]  }
 0xfbc   :  { %7666 = vmatmul.mubr.bf16.vlgmr.msra.gmra.mrb[28].mxu1 %v3520_v24  ;;  %7669 = vmatprep.subr.bf16.mxu0 %v11728_v20  ;;  %v10072_v24 = vld [vmem:[%s11623_s9 + $0xe8] sm:$0xff]   ;;  %11750 = vst [vmem:[#allocation13_spill] sm:$0xff] %v10081_v28 }
 0xfbd   :  { %7677 = vmatprep.mubr.msk.bf16.mxu1 %vm8405_vm1, %v11728_v20 }
0x108f   :  { %v7667_v40 = vpop.f32.mrb[28].mxu1 }
0x1090   :  { %v3608_v48 = vpop.f32.mrb[29].mxu1  ;;  %v3617_v52 = vadd.f32 %v7667_v40, %v7326_v61 }
0x1091   :  { %v3609_v58 = vadd.f32 %v7326_v61, %v3608_v48  ;;  %v7668_v13 = vpop.f32.mrb[30].mxu1 }
0x1092   :  { %v3611_v27 = vpop.f32.mrb[31].mxu1  ;;  %v3620_v3 = vadd.f32 %v7668_v13, %v7326_v61  ;;  %v3625_v38 = vadd.f32 %v3617_v52, %v9906_v12 }
0x1093   :  { %v3623_v9 = vadd.f32 %v3609_v58, %v9899_v37  ;;  %v3612_v7 = vadd.f32 %v7326_v61, %v3611_v27  ;;  %v10086_v61 = vld [vmem:[%s11623_s9 + $0xf0] sm:$0xff]  }
0x1094   :  { %v3626_v17 = vadd.f32 %v3620_v3, %v9908_v63  ;;  %v3635_v29 = vsel %vm76_vm0, %v3625_v38, 0.0  ;;  %11751 = vst [vmem:[#allocation20_spill] sm:$0xff] %v10086_v61 }
0x1095   :  { %v3624_v25 = vadd.f32 %v3612_v7, %v9901_v0  ;;  %v3629_v56 = vsel %vm76_vm0, %v3623_v9, 0.0 }
0x1096   :  { %3630 = vadd.xlane.f32.xlu0 %v3629_v56  ;;  %v3638_v5 = vsel %vm76_vm0, %v3626_v17, 0.0 }
0x1097   :  { %v3632_v21 = vsel %vm76_vm0, %v3624_v25, 0.0 }
0x1098   :  { %3633 = vadd.xlane.f32.xlu1 %v3632_v21  ;;  %v7335_v21 = vld [vmem:[%s11632_s18] ss:$0 sm:$0xff] }
0x109a   :  { %3636 = vadd.xlane.f32.xlu0 %v3635_v29 }
0x109c   :  { %3639 = vadd.xlane.f32.xlu1 %v3638_v5 }
0x1123   :  { %v3631_v37 = vpop.xlane.xlu0 %3630 }
0x1124   :  { %v3641_v42 = vmul.f32 0.015625, %v3631_v37 }
0x1125   :  { %v3634_v39 = vpop.xlane.xlu1 %3633 }
0x1126   :  { %v9949_v12 = vsub.f32 %v3623_v9, %v3641_v42  ;;  %v3642_v0 = vmul.f32 0.015625, %v3634_v39 }
0x1127   :  { %v3637_v43 = vpop.xlane.xlu0 %3636 }
0x1128   :  { %v9951_v1 = vsub.f32 %v3624_v25, %v3642_v0  ;;  %v3643_v4 = vmul.f32 0.015625, %v3637_v43  ;;  %v3649_v63 = vmul.f32 %v9949_v12, %v9949_v12  ;;  %v7336_v0 = vld [vmem:[%s11633_s19] ss:$0 sm:$0xff] }
0x1129   :  { %v3640_v44 = vpop.xlane.xlu1 %3639 }
0x112a   :  { %v9955_v8 = vsub.f32 %v3625_v38, %v3643_v4  ;;  %v3644_v19 = vmul.f32 0.015625, %v3640_v44  ;;  %v3653_v32 = vsel %vm76_vm0, %v3649_v63, 0.0  ;;  %v3650_v33 = vmul.f32 %v9951_v1, %v9951_v1 }
0x112b   :  { %3654 = vadd.xlane.f32.xlu0 %v3653_v32 }
0x112c   :  { %v9960_v41 = vsub.f32 %v3626_v17, %v3644_v19  ;;  %v3656_v34 = vsel %vm76_vm0, %v3650_v33, 0.0  ;;  %v3651_v45 = vmul.f32 %v9955_v8, %v9955_v8 }
0x112d   :  { %3657 = vadd.xlane.f32.xlu1 %v3656_v34 }
0x112e   :  { %v3659_v6 = vsel %vm76_vm0, %v3651_v45, 0.0  ;;  %v3652_v14 = vmul.f32 %v9960_v41, %v9960_v41 }
0x112f   :  { %3660 = vadd.xlane.f32.xlu0 %v3659_v6 }
0x1130   :  { %v3662_v47 = vsel %vm76_vm0, %v3652_v14, 0.0 }
0x1131   :  { %3663 = vadd.xlane.f32.xlu1 %v3662_v47 }
0x1142   :  { %4684 = vrot.lane.b32.xlu1 %v9996_v36, %s8408_s23 }
0x1145   :  { %4686 = vrot.lane.b32.xlu0 %v10001_v10, %s8408_s23 }
0x1146   :  { %4700 = vrot.lane.b32.xlu1 %v10010_v46, %s8408_s23 }
0x1149   :  { %4702 = vrot.lane.b32.xlu0 %v10015_v16, %s8408_s23 }
0x114a   :  { %4688 = vrot.lane.b32.xlu1 %v10025_v55, %s8408_s23 }
0x114d   :  { %4704 = vrot.lane.b32.xlu0 %v10030_v35, %s8408_s23 }
0x114e   :  { %4690 = vrot.lane.b32.xlu1 %v10039_v53, %s8408_s23 }
0x1151   :  { %4706 = vrot.lane.b32.xlu0 %v10044_v60, %s8408_s23 }
0x1152   :  { %4692 = vrot.lane.b32.xlu1 %v10053_v23, %s8408_s23 }
0x1155   :  { %4708 = vrot.lane.b32.xlu0 %v10058_v22, %s8408_s23 }
0x1156   :  { %4694 = vrot.lane.b32.xlu1 %v10067_v57, %s8408_s23 }
0x1159   :  { %4710 = vrot.lane.b32.xlu0 %v10072_v24, %s8408_s23 }
0x115a   :  { %4696 = vrot.lane.b32.xlu1 %v10081_v28, %s8408_s23 }
0x115d   :  { %4712 = vrot.lane.b32.xlu0 %v10086_v61, %s8408_s23 }
0x11b8   :  { %v3655_v40 = vpop.xlane.xlu0 %3654 }
0x11b9   :  { %v3665_v48 = vmul.f32 0.015625, %v3655_v40 }
0x11ba   :  { %v3658_v52 = vpop.xlane.xlu1 %3657 }
0x11bb   :  { %v3669_v58 = vadd.f32 1e-12, %v3665_v48  ;;  %v3666_v13 = vmul.f32 0.015625, %v3658_v52 }
0x11bc   :  { %v3661_v27 = vpop.xlane.xlu0 %3660 }
0x11bd   :  { %8279 = vrsqrt.f32 %v3669_v58  ;;  %v3670_v9 = vadd.f32 1e-12, %v3666_v13  ;;  %v3667_v3 = vmul.f32 0.015625, %v3661_v27 }
0x11be   :  { %v3664_v7 = vpop.xlane.xlu1 %3663 }
0x11bf   :  { %8281 = vrsqrt.f32 %v3670_v9  ;;  %v3671_v38 = vadd.f32 1e-12, %v3667_v3  ;;  %v3668_v25 = vmul.f32 0.015625, %v3664_v7 }
0x11c1   :  { %8283 = vrsqrt.f32 %v3671_v38  ;;  %v3672_v56 = vadd.f32 1e-12, %v3668_v25 }
0x11c3   :  { %8285 = vrsqrt.f32 %v3672_v56 }
0x11c7   :  { %v8280_v17 = vpop.eup %8279 }
0x11c8   :  { %v3677_v29 = vmul.f32 %v8280_v17, %v9949_v12 }
0x11c9   :  { %v8282_v5 = vpop.eup %8281 }
0x11ca   :  { %v3685_v37 = vmul.f32 %v7335_v21, %v3677_v29  ;;  %v3678_v42 = vmul.f32 %v8282_v5, %v9951_v1  ;;  %v10164_v29 = vpop.permute.xlu0 %4686  ;;  %v10166_v5 = vpop.permute.xlu1 %4684 }
0x11cb   :  { %v8284_v39 = vpop.eup %8283  ;;  %11763 = vst [vmem:[#allocation22_spill] sm:$0xff] %v10164_v29  ;;  %11764 = vst [vmem:[#allocation24_spill] sm:$0xff] %v10166_v5 }
0x11cc   :  { %v3686_v43 = vmul.f32 %v7335_v21, %v3678_v42  ;;  %v10100_v63 = vadd.f32 %v7336_v0, %v3685_v37  ;;  %v3679_v19 = vmul.f32 %v8284_v39, %v9955_v8  ;;  %v10122_v8 = vld [vmem:[%s11623_s9 + $0xb8] sm:$0xff]  }
0x11cd   :  { %v8286_v4 = vpop.eup %8285  ;;  %11756 = vst [vmem:[#allocation16_spill] sm:$0xff] %v10122_v8  ;;  %4698 = vrot.lane.b32.xlu1 %v10122_v8, %s8408_s23 }
0x11ce   :  { %11752 = vst [vmem:[#allocation23_spill] sm:$0xff] %v10100_v63  ;;  %v10102_v44 = vadd.f32 %v7336_v0, %v3686_v43  ;;  %v3680_v32 = vmul.f32 %v8286_v4, %v9960_v41  ;;  %v3687_v1 = vmul.f32 %v7335_v21, %v3679_v19  ;;  %v7345_v41 = vld [vmem:[%s11622_s8 + $0x1] ss:$2 sm:$0x3]  ;;  %v10168_v37 = vpop.permute.xlu0 %4702  ;;  %v10170_v42 = vpop.permute.xlu1 %4700 }
0x11cf   :  { %v3714_v14 = vrot.slane %v7345_v41, %v11746_v18  ;;  %v3718_v31 = vrot.slane %v7345_v41, %v11759_v49  ;;  %11765 = vst [vmem:[#allocation9_spill] sm:$0xff] %v10168_v37  ;;  %11766 = vst [vmem:[#allocation10_spill] sm:$0xff] %v10170_v42 }
0x11d0   :  { %11753 = vst [vmem:[#allocation25_spill] sm:$0xff] %v10102_v44  ;;  %v3706_v12 = vpack.c.bf16 %v10102_v44, %v10100_v63  ;;  %v3688_v33 = vmul.f32 %v7335_v21, %v3680_v32  ;;  %v10112_v45 = vadd.f32 %v7336_v0, %v3687_v1 }
0x11d2   :  { %7354 = vmatmul.mubr.msk.bf16.vlgmr.msra.gmra.mrb[20].mxu0 %vm76_vm0, %v3706_v12  ;;  %v10110_v34 = vadd.f32 %v7336_v0, %v3688_v33  ;;  %11755 = vst [vmem:[#allocation15_spill] sm:$0xff] %v10112_v45  ;;  %v10172_v39 = vpop.permute.xlu0 %4704  ;;  %v10175_v4 = vpop.permute.xlu1 %4688 }
0x11d3   :  { %3809 = vmatprep.mubr.bf16.mxu0 %v11749_v30  ;;  %v10127_v30 = vld [vmem:[%s11623_s9 + $0xf8] sm:$0xff]   ;;  %11767 = vst [vmem:[#allocation11_spill] sm:$0xff] %v10172_v39 }
0x11d4   :  { %11754 = vst [vmem:[#allocation14_spill] sm:$0xff] %v10110_v34  ;;  %v3707_v6 = vpack.c.bf16 %v10110_v34, %v10112_v45  ;;  %11757 = vst [vmem:[#allocation17_spill] sm:$0xff] %v10127_v30  ;;  %4714 = vrot.lane.b32.xlu0 %v10127_v30, %s8408_s23 }
0x11d6   :  { %v10177_v19 = vpop.permute.xlu0 %4706  ;;  %v10181_v33 = vpop.permute.xlu1 %4690 }
0x11da   :  { %7355 = vmatmul.mubr.msk.bf16.gmra.mrb[24].mxu0 %vm76_vm0, %v3707_v6  ;;  %v10183_v1 = vpop.permute.xlu0 %4708 }
0x11db   :  { %7671 = vmatprep.mubr.msk.bf16.mxu0 %vm8405_vm1, %v11728_v20 }
0x12a5   :  { %v3801_v47 = vpop.f32.mrb[20].mxu0 }
0x12a6   :  { %v3803_v26 = vpop.f32.mrb[21].mxu0  ;;  %v3802_v59 = vadd.f32 %v3801_v47, %v3714_v14 }
0x12a7   :  { %v3805_v50 = vpop.f32.mrb[22].mxu0  ;;  %v3804_v40 = vadd.f32 %v3803_v26, %v3718_v31  ;;  %v10188_v26 = vpop.permute.xlu1 %4692 }
0x12a8   :  { %v3806_v51 = vadd.f32 %v3805_v50, %v3714_v14  ;;  %v3807_v15 = vpop.f32.mrb[23].mxu0  ;;  %v10190_v50 = vpop.permute.xlu0 %4710 }
0x12a9   :  { %v3808_v48 = vadd.f32 %v3807_v15, %v3718_v31 }
0x12aa   :  { %v10139_v52 = vpack.c.bf16 %v3806_v51, %v3802_v59  ;;  %v7388_v0 = vpack.c.bf16 %v3806_v51, %v3806_v51 }
0x12ab   :  { %v10141_v58 = vpack.c.bf16 %v3808_v48, %v3804_v40 }
0x12ac   :  { %5006 = vrot.lane.b32.xlu1 %v10139_v52, %s8408_s23  ;;  %4115 = vrot.lane.b32.xlu0 %v10139_v52, %s8406_s30  ;;  %v3872_v43 = vrot.slane %v7388_v0, %v11745_v2  ;;  %v3865_v12 = vrot.slane %v10139_v52, %v11745_v2  ;;  %v10195_v0 = vpop.permute.xlu0 %4712 }
0x12ad   :  { %11760 = vst [vmem:[#allocation18_spill] sm:$0xff] %v10141_v58  ;;  %v3811_v13 = vpop.f32.mrb[24].mxu0  ;;  %7676 = vmatpush3.bf16.msra.mxu1 %v10141_v58 }
0x12ae   :  { %v3813_v27 = vpop.f32.mrb[25].mxu0  ;;  %7687 = vmatprep.subr.bf16.mxu1 %v11728_v20  ;;  %v3812_v38 = vadd.f32 %v3811_v13, %v3714_v14  ;;  %v3874_v32 = vcombine.high %v3872_v43, %v3872_v43  ;;  %v3888_v6 = vrot.slane %v3872_v43, %v11745_v2  ;;  %v3881_v47 = vrot.slane %v3865_v12, %v11745_v2 }
0x12af   :  { %v3814_v9 = vadd.f32 %v3813_v27, %v3718_v31  ;;  %v3815_v3 = vpop.f32.mrb[26].mxu0 }
0x12b0   :  { %5004 = vrot.lane.b32.xlu1 %v10139_v52, %s8409_s1  ;;  %v3817_v7 = vpop.f32.mrb[27].mxu0  ;;  %v10151_v25 = vadd.f32 %v3815_v3, %v3714_v14  ;;  %v3902_v41 = vrot.slane %v3874_v32, %v11745_v2  ;;  %v3873_v14 = vcombine.high %v3865_v12, %v3865_v12  ;;  %v3904_v11 = vcombine.high %v3888_v6, %v3888_v6 }
0x12b1   :  { %v3818_v56 = vadd.f32 %v3817_v7, %v3718_v31  ;;  %v3916_v49 = vunpack.i.h.s16 %v3888_v6  ;;  %v3908_v51 = vunpack.i.h.s16 %v3881_v47  ;;  %v7393_v40 = vpack.i.b16 %v3888_v6, %v3888_v6 }
0x12b2   :  { %11761 = vst [vmem:[#allocation19_spill] sm:$0xff] %v10151_v25  ;;  %v10154_v17 = vpack.c.bf16 %v10151_v25, %v3812_v38  ;;  %v3918_v31 = vunpack.i.h.s16 %v3902_v41  ;;  %v3895_v59 = vrot.slane %v3873_v14, %v11745_v2  ;;  %v3920_v15 = vunpack.i.h.s16 %v3904_v11 }
0x12b3   :  { %v10160_v21 = vpack.c.bf16 %v3818_v56, %v3814_v9  ;;  %v3932_v48 = vpack.i.b16 %v3916_v49, %v3916_v49  ;;  %v7394_v13 = vpack.i.b16 %v3902_v41, %v3902_v41  ;;  %v3924_v9 = vpack.i.b16 %v3908_v51, %v3908_v51  ;;  %v10193_v56 = vpop.permute.xlu1 %4694 }
0x12b4   :  { %6337 = vrot.lane.b32.xlu1 %v10154_v17, %s8408_s23  ;;  %5590 = vrot.lane.b32.xlu0 %v10154_v17, %s8406_s30  ;;  %v3934_v27 = vpack.i.b16 %v3918_v31, %v3918_v31  ;;  %v7389_v3 = vpack.i.b16 %v3881_v47, %v3881_v47  ;;  %v3910_v7 = vunpack.i.h.s16 %v3895_v59  ;;  %v7395_v38 = vpack.i.b16 %v3904_v11, %v3904_v11 }
0x12b5   :  { %11762 = vst [vmem:[#allocation21_spill] sm:$0xff] %v10160_v21  ;;  %v7390_v43 = vpack.i.b16 %v3895_v59, %v3895_v59  ;;  %v3903_v32 = vcombine.high %v3881_v47, %v3881_v47  ;;  %v3906_v12 = vcombine.high %v3902_v41, %v3902_v41  ;;  %v3936_v45 = vpack.i.b16 %v3920_v15, %v3920_v15 }
0x12b6   :  { %v3974_v14 = vrot.slane %v7393_v40, %v11746_v18  ;;  %v3978_v44 = vrot.slane %v3932_v48, %v11746_v18  ;;  %v3982_v6 = vrot.slane %v7394_v13, %v11746_v18  ;;  %v3986_v49 = vrot.slane %v3934_v27, %v11746_v18 }
0x12b7   :  { %v3946_v31 = vrot.slane %v3924_v9, %v11746_v18  ;;  %v3942_v11 = vrot.slane %v7389_v3, %v11746_v18  ;;  %v3926_v51 = vpack.i.b16 %v3910_v7, %v3910_v7  ;;  %v3990_v34 = vrot.slane %v7395_v38, %v11746_v18  ;;  %v10208_v27 = vpop.permute.xlu1 %4696  ;;  %v10210_v9 = vpop.permute.xlu0 %4714 }
0x12b8   :  { %6335 = vrot.lane.b32.xlu0 %v10154_v17, %s8409_s1  ;;  %v3950_v63 = vrot.slane %v7390_v43, %v11746_v18  ;;  %v3922_v47 = vunpack.i.h.s16 %v3906_v12  ;;  %v7396_v41 = vpack.i.b16 %v3906_v12, %v3906_v12  ;;  %v10206_v15 = vrot.slane %v3936_v45, %v11746_v18 }
0x12b9   :  { %v7391_v40 = vpack.i.b16 %v3903_v32, %v3903_v32  ;;  %v4060_v48 = vpack.i.b16 %v3974_v14, %v3974_v14  ;;  %v4067_v58 = vpack.i.b16 %v3978_v44, %v3978_v44  ;;  %v4074_v13 = vpack.i.b16 %v3982_v6, %v3982_v6 }
0x12ba   :  { %v4081_v21 = vpack.i.b16 %v3986_v49, %v3986_v49  ;;  %v4011_v3 = vpack.i.b16 %v3946_v31, %v3946_v31  ;;  %v4004_v7 = vpack.i.b16 %v3942_v11, %v3942_v11  ;;  %v3954_v38 = vrot.slane %v3926_v51, %v11746_v18 }
0x12bb   :  { %v3912_v62 = vunpack.i.h.s16 %v3903_v32  ;;  %v4088_v43 = vpack.i.b16 %v3990_v34, %v3990_v34  ;;  %v4018_v54 = vpack.i.b16 %v3950_v63, %v3950_v63  ;;  %v3905_v12 = vcombine.high %v3895_v59, %v3895_v59  ;;  %v10227_v51 = vpop.permute.xlu1 %4698 }
0x12bc   :  { %v10213_v30 = vpack.i.b16 %v3922_v47, %v3922_v47  ;;  %v10216_v45 = vrot.slane %v7396_v41, %v11746_v18  ;;  %v3958_v14 = vrot.slane %v7391_v40, %v11746_v18  ;;  %v4072_v6 = vrot.slane %v4067_v58, %v11746_v18 }
0x12bd   :  { %v4065_v49 = vrot.slane %v4060_v48, %v11746_v18  ;;  %v4079_v31 = vrot.slane %v4074_v13, %v11746_v18  ;;  %v4086_v34 = vrot.slane %v4081_v21, %v11746_v18  ;;  %v4016_v63 = vrot.slane %v4011_v3, %v11746_v18 }
0x12be   :  { %v4009_v59 = vrot.slane %v4004_v7, %v11746_v18  ;;  %v4025_v32 = vpack.i.b16 %v3954_v38, %v3954_v38  ;;  %v3928_v11 = vpack.i.b16 %v3912_v62, %v3912_v62  ;;  %v4023_v41 = vrot.slane %v4018_v54, %v11746_v18 }
0x12bf   :  { %v4093_v58 = vrot.slane %v4088_v43, %v11746_v18  ;;  %v7392_v40 = vpack.i.b16 %v3905_v12, %v3905_v12  ;;  %v3914_v48 = vunpack.i.h.s16 %v3905_v12  ;;  %v4032_v62 = vpack.i.b16 %v3958_v14, %v3958_v14 }
0x12c0   :  { %v4030_v14 = vrot.slane %v4025_v32, %v11746_v18 }
0x12c1   :  { %v3930_v28 = vpack.i.b16 %v3914_v48, %v3914_v48 }
0x131e   :  { %v10229_v47 = vpop.permute.xlu0 %4115  ;;  %v5007_v8 = vpop.permute.xlu1 %5006 }
0x131f   :  { %v4570_v13 = vsel %vm814_vm2, %v10229_v47, 0  ;;  %v10236_v21 = vadd.bf16 %v10229_v47, %v4016_v63  ;;  %v10239_v3 = vadd.bf16 %v10229_v47, %v4009_v59  ;;  %v10242_v7 = vadd.bf16 %v10229_v47, %v4072_v6 }
0x1320   :  { %7670 = vmatpush3.bf16.xpose.msra.mxu0 %v4570_v13  ;;  %v10245_v54 = vadd.bf16 %v10229_v47, %v4065_v49  ;;  %v10248_v38 = vadd.bf16 %v10229_v47, %v4079_v31  ;;  %v10251_v43 = vadd.bf16 %v10229_v47, %v4023_v41  ;;  %v3962_v6 = vrot.slane %v3928_v11, %v11746_v18 }
0x1321   :  { %v4733_v12 = vmul.bf16 %v10164_v29, %v10236_v21  ;;  %v4732_v63 = vmul.bf16 %v10166_v5, %v10239_v3  ;;  %7681 = vmatprep.subr.bf16.mxu0 %v11728_v20  ;;  %v4741_v49 = vmul.bf16 %v10168_v37, %v10242_v7  ;;  %v10267_v41 = vadd.bf16 %v10229_v47, %v4086_v34 }
0x1322   :  { %v4740_v31 = vmul.bf16 %v10170_v42, %v10245_v54  ;;  %v4742_v59 = vmul.bf16 %v10172_v39, %v10248_v38  ;;  %v4734_v11 = vmul.bf16 %v10175_v4, %v10251_v43  ;;  %v10272_v37 = vadd.bf16 %v10229_v47, %v4030_v14 }
0x1323   :  { %v4750_v13 = vunpack.c.l.bf16 %v4733_v12  ;;  %v4751_v44 = vunpack.c.h.bf16 %v4733_v12  ;;  %v4748_v5 = vunpack.c.l.bf16 %v4732_v63  ;;  %v4749_v29 = vunpack.c.h.bf16 %v4732_v63 }
0x1324   :  { %v4766_v32 = vunpack.c.l.bf16 %v4741_v49  ;;  %v4767_v61 = vunpack.c.h.bf16 %v4741_v49  ;;  %v4764_v25 = vunpack.c.l.bf16 %v4740_v31  ;;  %v4765_v39 = vunpack.c.h.bf16 %v4740_v31 }
0x1325   :  { %v7958_v42 = vpack.i.bf16 %v4751_v44, %v4750_v13  ;;  %v7953_v2 = vpack.i.bf16 %v4749_v29, %v4748_v5  ;;  %v4037_v34 = vrot.slane %v4032_v62, %v11746_v18  ;;  %v4102_v12 = vpack.i.b16 %v10216_v45, %v10216_v45 }
0x1326   :  { %v3966_v63 = vrot.slane %v7392_v40, %v11746_v18  ;;  %v5204_v49 = vsel %vm814_vm2, %v5007_v8, 0  ;;  %v4768_v14 = vunpack.c.l.bf16 %v4742_v59  ;;  %v4743_v29 = vmul.bf16 %v10177_v19, %v10267_v41 }
0x1327   :  { %7959 = vrot.lane.b32.xlu0 %v7958_v42, %s8409_s1  ;;  %7954 = vrot.lane.b32.xlu1 %v7953_v2, %s8409_s1  ;;  %v4039_v5 = vpack.i.b16 %v3962_v6, %v3962_v6  ;;  %v7968_v44 = vpack.i.bf16 %v4767_v61, %v4766_v32  ;;  %v4769_v62 = vunpack.c.h.bf16 %v4742_v59  ;;  %v4735_v45 = vmul.bf16 %v10181_v33, %v10272_v37 }
0x1328   :  { %7672 = vmatmul.mubr.msk.bf16.vlgmr.msra.gmra.mrb[28].mxu0 %vm814_vm2, %v10139_v52  ;;  %v10288_v40 = vadd.bf16 %v10229_v47, %v4093_v58  ;;  %v7963_v8 = vpack.i.bf16 %v4765_v39, %v4764_v25  ;;  %v4752_v2 = vunpack.c.l.bf16 %v4734_v11  ;;  %v4753_v42 = vunpack.c.h.bf16 %v4734_v11 }
0x1329   :  { %7682 = vmatpush3.bf16.xpose.msra.mxu0 %v5204_v49  ;;  %7683 = vmatprep.mubr.msk.bf16.mxu0 %vm8405_vm1, %v11728_v20  ;;  %v10293_v48 = vadd.bf16 %v10229_v47, %v4037_v34  ;;  %v4002_v61 = vrot.slane %v10213_v30, %v11746_v18  ;;  %v11768_v52 = vpack.i.b16 %v10206_v15, %v10206_v15  ;;  %v4770_v6 = vunpack.c.l.bf16 %v4743_v29  ;;  %v10312_v34 = vpop.permute.xlu0 %5590 }
0x132a   :  { %7693 = vmatprep.subr.bf16.mxu0 %v11728_v20  ;;  %v4107_v25 = vrot.slane %v4102_v12, %v11746_v18  ;;  %v3970_v39 = vrot.slane %v3930_v28, %v11746_v18  ;;  %v4744_v31 = vmul.bf16 %v10183_v1, %v10288_v40  ;;  %v4044_v30 = vrot.slane %v4039_v5, %v11746_v18 }
0x132b   :  { %v4100_v58 = vrot.slane %v11768_v52, %v11746_v18  ;;  %7969 = vrot.lane.b32.xlu0 %v7968_v44, %s8409_s1  ;;  %7964 = vrot.lane.b32.xlu1 %v7963_v8, %s8409_s1  ;;  %v4046_v59 = vpack.i.b16 %v3966_v63, %v3966_v63  ;;  %v4771_v13 = vunpack.c.h.bf16 %v4743_v29  ;;  %v4754_v32 = vunpack.c.l.bf16 %v4735_v45  ;;  %v5005_v8 = vpop.permute.xlu1 %5004 }
0x132c   :  { %v4755_v11 = vunpack.c.h.bf16 %v4735_v45  ;;  %v7978_v28 = vpack.i.bf16 %v4769_v62, %v4768_v14  ;;  %v7973_v12 = vpack.i.bf16 %v4753_v42, %v4752_v2  ;;  %v4736_v49 = vmul.bf16 %v10188_v26, %v10293_v48 }
0x132d   :  { %v10310_v15 = vadd.bf16 %v10229_v47, %v4100_v58  ;;  %v10317_v44 = vadd.bf16 %v10229_v47, %v4044_v30  ;;  %v4109_v52 = vpack.i.b16 %v4002_v61, %v4002_v61  ;;  %v4053_v5 = vpack.i.b16 %v3970_v39, %v3970_v39 }
0x132e   :  { %v4772_v63 = vunpack.c.l.bf16 %v4744_v31  ;;  %v4773_v29 = vunpack.c.h.bf16 %v4744_v31  ;;  %v10322_v45 = vadd.bf16 %v10229_v47, %v4107_v25  ;;  %v4051_v14 = vrot.slane %v4046_v59, %v11746_v18 }
0x132f   :  { %7979 = vrot.lane.b32.xlu0 %v7978_v28, %s8409_s1  ;;  %7974 = vrot.lane.b32.xlu1 %v7973_v12, %s8409_s1  ;;  %v5949_v62 = vsel %vm814_vm2, %v10312_v34, 0  ;;  %v7988_v2 = vpack.i.bf16 %v4771_v13, %v4770_v6  ;;  %v7983_v42 = vpack.i.bf16 %v4755_v11, %v4754_v32  ;;  %v4745_v61 = vmul.bf16 %v10190_v50, %v10310_v15  ;;  %v6338_v32 = vpop.permute.xlu1 %6337 }
0x1330   :  { %7684 = vmatmul.mubr.msk.bf16.vlgmr.msra.gmra.mrb[32].mxu0 %vm814_vm2, %v5005_v8  ;;  %v4756_v58 = vunpack.c.l.bf16 %v4736_v49  ;;  %v4757_v39 = vunpack.c.h.bf16 %v4736_v49  ;;  %v4737_v25 = vmul.bf16 %v10193_v56, %v10317_v44  ;;  %v10335_v31 = vadd.bf16 %v10229_v47, %v4051_v14 }
0x1331   :  { %7694 = vmatpush3.bf16.xpose.msra.mxu0 %v5949_v62  ;;  %7695 = vmatprep.mubr.msk.bf16.mxu0 %vm8405_vm1, %v11728_v20  ;;  %v4114_v6 = vrot.slane %v4109_v52, %v11746_v18  ;;  %v4058_v30 = vrot.slane %v4053_v5, %v11746_v18  ;;  %v7998_v59 = vpack.i.bf16 %v4773_v29, %v4772_v63  ;;  %v4774_v11 = vunpack.c.l.bf16 %v4745_v61 }
0x1332   :  { %7705 = vmatprep.subr.bf16.mxu0 %v11728_v20  ;;  %v4746_v13 = vmul.bf16 %v10195_v0, %v10322_v45  ;;  %v4775_v28 = vunpack.c.h.bf16 %v4745_v61  ;;  %v7993_v8 = vpack.i.bf16 %v4757_v39, %v4756_v58  ;;  %v4758_v52 = vunpack.c.l.bf16 %v4737_v25 }
0x1333   :  { %7989 = vrot.lane.b32.xlu0 %v7988_v2, %s8409_s1  ;;  %7984 = vrot.lane.b32.xlu1 %v7983_v42, %s8409_s1  ;;  %v10345_v12 = vadd.bf16 %v10229_v47, %v4114_v6  ;;  %v10348_v49 = vadd.bf16 %v10229_v47, %v4058_v30  ;;  %v4759_v5 = vunpack.c.h.bf16 %v4737_v25  ;;  %v4738_v14 = vmul.bf16 %v10208_v27, %v10335_v31 }
0x1334   :  { %v6535_v63 = vsel %vm814_vm2, %v6338_v32, 0  ;;  %v8008_v29 = vpack.i.bf16 %v4775_v28, %v4774_v11  ;;  %v4776_v62 = vunpack.c.l.bf16 %v4746_v13  ;;  %v4777_v2 = vunpack.c.h.bf16 %v4746_v13  ;;  %v6336_v11 = vpop.permute.xlu0 %6335 }
0x1335   :  { %v4747_v47 = vmul.bf16 %v10210_v9, %v10345_v12  ;;  %v8003_v42 = vpack.i.bf16 %v4759_v5, %v4758_v52  ;;  %v4760_v61 = vunpack.c.l.bf16 %v4738_v14  ;;  %v4761_v58 = vunpack.c.h.bf16 %v4738_v14 }
0x1336   :  { %v4739_v39 = vmul.bf16 %v10227_v51, %v10348_v49  ;;  %v8018_v25 = vpack.i.bf16 %v4777_v2, %v4776_v62  ;;  %v4230_v52 = vmul.bf16 %v9996_v36, %v10239_v3  ;;  %v4231_v14 = vmul.bf16 %v10001_v10, %v10236_v21 }
0x1337   :  { %7999 = vrot.lane.b32.xlu0 %v7998_v59, %s8409_s1  ;;  %7994 = vrot.lane.b32.xlu1 %v7993_v8, %s8409_s1  ;;  %v4778_v6 = vunpack.c.l.bf16 %v4747_v47  ;;  %v8013_v30 = vpack.i.bf16 %v4761_v58, %v4760_v61  ;;  %v4779_v59 = vunpack.c.h.bf16 %v4747_v47  ;;  %v4238_v62 = vmul.bf16 %v10010_v46, %v10245_v54 }
0x1338   :  { %7696 = vmatmul.mubr.msk.bf16.vlgmr.msra.gmra.mrb[36].mxu0 %vm814_vm2, %v10154_v17  ;;  %v4762_v13 = vunpack.c.l.bf16 %v4739_v39  ;;  %v4763_v32 = vunpack.c.h.bf16 %v4739_v39  ;;  %v4247_v5 = vunpack.c.h.bf16 %v4230_v52  ;;  %v4246_v2 = vunpack.c.l.bf16 %v4230_v52 }
0x1339   :  { %7706 = vmatpush3.bf16.xpose.msra.mxu0 %v6535_v63  ;;  %7707 = vmatprep.mubr.msk.bf16.mxu0 %vm8405_vm1, %v11728_v20  ;;  %v8028_v28 = vpack.i.bf16 %v4779_v59, %v4778_v6  ;;  %v4239_v61 = vmul.bf16 %v10015_v16, %v10242_v7  ;;  %v4249_v3 = vunpack.c.h.bf16 %v4231_v14  ;;  %v4232_v58 = vmul.bf16 %v10025_v55, %v10251_v43 }
0x133a   :  { %v8023_v8 = vpack.i.bf16 %v4763_v32, %v4762_v13  ;;  %v4281_v63 = vsel %vm814_vm2, %v4247_v5, 0.0  ;;  %v4278_v36 = vsel %vm814_vm2, %v4246_v2, 0.0  ;;  %v4263_v54 = vunpack.c.h.bf16 %v4238_v62 }
0x133b   :  { %8009 = vrot.lane.b32.xlu0 %v8008_v29, %s8409_s1  ;;  %8004 = vrot.lane.b32.xlu1 %v8003_v42, %s8409_s1  ;;  %v4248_v29 = vunpack.c.l.bf16 %v4231_v14  ;;  %v4262_v42 = vunpack.c.l.bf16 %v4238_v62  ;;  %v4264_v21 = vunpack.c.l.bf16 %v4239_v61  ;;  %v4287_v46 = vsel %vm814_vm2, %v4249_v3, 0.0 }
0x133c   :  { %v4240_v16 = vmul.bf16 %v10030_v35, %v10248_v38  ;;  %v4329_v7 = vsel %vm814_vm2, %v4263_v54, 0.0  ;;  %v4265_v6 = vunpack.c.h.bf16 %v4239_v61  ;;  %v4233_v55 = vmul.bf16 %v10039_v53, %v10272_v37 }
0x133d   :  { %v4284_v47 = vsel %vm814_vm2, %v4248_v29, 0.0  ;;  %v4326_v10 = vsel %vm814_vm2, %v4262_v42, 0.0  ;;  %v4332_v39 = vsel %vm814_vm2, %v4264_v21, 0.0  ;;  %v4251_v13 = vunpack.c.h.bf16 %v4232_v58  ;;  %v11770_v21 = vld [vmem:[#allocation19_spill] sm:$0xff] }
0x133e   :  { %v4266_v59 = vunpack.c.l.bf16 %v4240_v16  ;;  %v4335_v43 = vsel %vm814_vm2, %v4265_v6, 0.0  ;;  %v4241_v35 = vmul.bf16 %v10044_v60, %v10267_v41  ;;  %v4234_v53 = vmul.bf16 %v10053_v23, %v10293_v48 }
0x133f   :  { %8019 = vrot.lane.b32.xlu0 %v8018_v25, %s8409_s1  ;;  %8014 = vrot.lane.b32.xlu1 %v8013_v30, %s8409_s1  ;;  %v4250_v25 = vunpack.c.l.bf16 %v4232_v58  ;;  %v4293_v38 = vsel %vm814_vm2, %v4251_v13, 0.0  ;;  %v4253_v5 = vunpack.c.h.bf16 %v4233_v55  ;;  %v4242_v60 = vmul.bf16 %v10058_v22, %v10288_v40 }
0x1340   :  { %7708 = vmatmul.mubr.msk.bf16.vlgmr.msra.gmra.mrb[40].mxu0 %vm814_vm2, %v6336_v11  ;;  %v4338_v32 = vsel %vm814_vm2, %v4266_v59, 0.0  ;;  %v4252_v11 = vunpack.c.l.bf16 %v4233_v55  ;;  %v4268_v52 = vunpack.c.l.bf16 %v4241_v35  ;;  %v4269_v29 = vunpack.c.h.bf16 %v4241_v35 }
0x1341   :  { %v4290_v30 = vsel %vm814_vm2, %v4250_v25, 0.0  ;;  %v4299_v41 = vsel %vm814_vm2, %v4253_v5, 0.0  ;;  %v4270_v2 = vunpack.c.l.bf16 %v4242_v60  ;;  %v4235_v23 = vmul.bf16 %v10067_v57, %v10317_v44  ;;  %v11769_v57 = vld [vmem:[#allocation13_spill] sm:$0xff] }
0x1342   :  { %v4344_v14 = vsel %vm814_vm2, %v4268_v52, 0.0  ;;  %v4347_v48 = vsel %vm814_vm2, %v4269_v29, 0.0  ;;  %v4243_v22 = vmul.bf16 %v10072_v24, %v10310_v15  ;;  %v4236_v44 = vmul.bf16 %v11769_v57, %v10335_v31  ;;  %v11774_v52 = vld [vmem:[#allocation17_spill] sm:$0xff] }
0x1343   :  { %8029 = vrot.lane.b32.xlu0 %v8028_v28, %s8409_s1  ;;  %8024 = vrot.lane.b32.xlu1 %v8023_v8, %s8409_s1  ;;  %v4267_v28 = vunpack.c.h.bf16 %v4240_v16  ;;  %v4296_v8 = vsel %vm814_vm2, %v4252_v11, 0.0  ;;  %v4350_v42 = vsel %vm814_vm2, %v4270_v2, 0.0  ;;  %v4256_v61 = vunpack.c.l.bf16 %v4235_v23  ;;  %v11772_v16 = vld [vmem:[#allocation20_spill] sm:$0xff] }
0x1344   :  { %v7417_v58 = vpack.c.bf16 %v11770_v21, %v11770_v21  ;;  %v4257_v54 = vunpack.c.h.bf16 %v4235_v23  ;;  %v4258_v25 = vunpack.c.l.bf16 %v4236_v44  ;;  %v4259_v11 = vunpack.c.h.bf16 %v4236_v44 }
0x1345   :  { %v4341_v37 = vsel %vm814_vm2, %v4267_v28, 0.0  ;;  %v4308_v3 = vsel %vm814_vm2, %v4256_v61, 0.0 }
0x1346   :  { %v4311_v31 = vsel %vm814_vm2, %v4257_v54, 0.0  ;;  %v4314_v55 = vsel %vm814_vm2, %v4258_v25, 0.0  ;;  %v4317_v5 = vsel %vm814_vm2, %v4259_v11, 0.0 }
0x1362   :  { %4282 = vadd.xlane.f32.xlu0 %v4281_v63  ;;  %v4254_v63 = vunpack.c.l.bf16 %v4234_v53 }
0x1364   :  { %v4302_v62 = vsel %vm814_vm2, %v4254_v63, 0.0 }
0x1366   :  { %4285 = vadd.xlane.f32.xlu0 %v4284_v47  ;;  %v4255_v47 = vunpack.c.h.bf16 %v4234_v53  ;;  %v4245_v53 = vmul.bf16 %v11774_v52, %v10345_v12 }
0x1367   :  { %4279 = vadd.xlane.f32.xlu1 %v4278_v36  ;;  %v4271_v36 = vunpack.c.h.bf16 %v4242_v60 }
0x1368   :  { %v4305_v40 = vsel %vm814_vm2, %v4255_v47, 0.0  ;;  %v4277_v44 = vunpack.c.h.bf16 %v4245_v53 }
0x136a   :  { %4327 = vadd.xlane.f32.xlu0 %v4326_v10  ;;  %v4272_v10 = vunpack.c.l.bf16 %v4243_v22 }
0x136b   :  { %4288 = vadd.xlane.f32.xlu1 %v4287_v46  ;;  %v4353_v46 = vsel %vm814_vm2, %v4271_v36, 0.0 }
0x136c   :  { %v4356_v15 = vsel %vm814_vm2, %v4272_v10, 0.0 }
0x136e   :  { %4333 = vadd.xlane.f32.xlu0 %v4332_v39  ;;  %v11771_v39 = vld [vmem:[#allocation12_spill] sm:$0xff] }
0x136f   :  { %4330 = vadd.xlane.f32.xlu1 %v4329_v7  ;;  %v5340_v24 = vrot.slane %v10154_v17, %v11771_v39  ;;  %v4244_v7 = vmul.bf16 %v11772_v16, %v10322_v45  ;;  %v5347_v6 = vrot.slane %v7417_v58, %v11771_v39  ;;  %v11773_v17 = vld [vmem:[#allocation16_spill] sm:$0xff] }
0x1370   :  { %v4237_v13 = vmul.bf16 %v11773_v17, %v10348_v49 }
0x1371   :  { %v5356_v59 = vrot.slane %v5340_v24, %v11771_v39  ;;  %v4275_v49 = vunpack.c.h.bf16 %v4244_v7  ;;  %v5348_v60 = vcombine.high %v5340_v24, %v5340_v24 }
0x1372   :  { %4291 = vadd.xlane.f32.xlu0 %v4290_v30  ;;  %v4273_v30 = vunpack.c.h.bf16 %v4243_v22 }
0x1373   :  { %4336 = vadd.xlane.f32.xlu1 %v4335_v43  ;;  %v4274_v43 = vunpack.c.l.bf16 %v4244_v7  ;;  %v5383_v35 = vunpack.i.h.s16 %v5356_v59  ;;  %v7418_v63 = vpack.i.b16 %v5356_v59, %v5356_v59  ;;  %v4365_v23 = vsel %vm814_vm2, %v4275_v49, 0.0 }
0x1374   :  { %v4359_v45 = vsel %vm814_vm2, %v4273_v30, 0.0 }
0x1375   :  { %v4362_v28 = vsel %vm814_vm2, %v4274_v43, 0.0  ;;  %v5417_v47 = vrot.slane %v7418_v63, %v11746_v18 }
0x1376   :  { %4339 = vadd.xlane.f32.xlu0 %v4338_v32  ;;  %v5363_v32 = vrot.slane %v5347_v6, %v11771_v39 }
0x1377   :  { %4294 = vadd.xlane.f32.xlu1 %v4293_v38  ;;  %v5349_v38 = vcombine.high %v5347_v6, %v5347_v6  ;;  %v5479_v58 = vpack.i.b16 %v5417_v47, %v5417_v47  ;;  %v4371_v6 = vsel %vm814_vm2, %v4277_v44, 0.0 }
0x1378   :  { %v7422_v61 = vpack.i.b16 %v5363_v32, %v5363_v32  ;;  %v5379_v22 = vcombine.high %v5363_v32, %v5363_v32 }
0x1379   :  { %v5484_v43 = vrot.slane %v5479_v58, %v11746_v18 }
0x137a   :  { %4297 = vadd.xlane.f32.xlu0 %v4296_v8  ;;  %v4260_v8 = vunpack.c.l.bf16 %v4237_v13  ;;  %v7424_v30 = vpack.i.b16 %v5379_v22, %v5379_v22 }
0x137b   :  { %4342 = vadd.xlane.f32.xlu1 %v4341_v37  ;;  %v5391_v37 = vunpack.i.h.s16 %v5363_v32 }
0x137c   :  { %v4320_v29 = vsel %vm814_vm2, %v4260_v8, 0.0 }
0x137d   :  { %v5407_v2 = vpack.i.b16 %v5391_v37, %v5391_v37 }
0x137e   :  { %4345 = vadd.xlane.f32.xlu0 %v4344_v14  ;;  %v5399_v14 = vpack.i.b16 %v5383_v35, %v5383_v35 }
0x137f   :  { %4300 = vadd.xlane.f32.xlu1 %v4299_v41  ;;  %v5377_v41 = vrot.slane %v5349_v38, %v11771_v39  ;;  %v5453_v10 = vrot.slane %v5407_v2, %v11746_v18  ;;  %v10455_v38 = vadd.bf16 %v10312_v34, %v5484_v43 }
0x1380   :  { %v5421_v12 = vrot.slane %v5399_v14, %v11746_v18 }
0x1381   :  { %v5542_v7 = vpack.i.b16 %v5453_v10, %v5453_v10 }
0x1382   :  { %4303 = vadd.xlane.f32.xlu0 %v4302_v62  ;;  %v4276_v62 = vunpack.c.l.bf16 %v4245_v53  ;;  %v5486_v21 = vpack.i.b16 %v5421_v12, %v5421_v12  ;;  %v5465_v53 = vrot.slane %v7424_v30, %v11746_v18 }
0x1383   :  { %4348 = vadd.xlane.f32.xlu1 %v4347_v48  ;;  %v4261_v48 = vunpack.c.h.bf16 %v4237_v13  ;;  %v5547_v52 = vrot.slane %v5542_v7, %v11746_v18 }
0x1384   :  { %v4368_v36 = vsel %vm814_vm2, %v4276_v62, 0.0  ;;  %v11775_v62 = vld [vmem:[#allocation22_spill] sm:$0xff] }
0x1385   :  { %v4323_v57 = vsel %vm814_vm2, %v4261_v48, 0.0  ;;  %v10461_v49 = vadd.bf16 %v10312_v34, %v5547_v52 }
0x1386   :  { %4351 = vadd.xlane.f32.xlu0 %v4350_v42  ;;  %v5370_v42 = vrot.slane %v5348_v60, %v11771_v39  ;;  %v5381_v39 = vcombine.high %v5377_v41, %v5377_v41 }
0x1387   :  { %4306 = vadd.xlane.f32.xlu1 %v4305_v40  ;;  %v5393_v40 = vunpack.i.h.s16 %v5377_v41 }
0x1388   :  { %v7419_v54 = vpack.i.b16 %v5370_v42, %v5370_v42  ;;  %v5385_v24 = vunpack.i.h.s16 %v5370_v42  ;;  %v5380_v10 = vcombine.high %v5370_v42, %v5370_v42 }
0x1389   :  { %v5409_v25 = vpack.i.b16 %v5393_v40, %v5393_v40  ;;  %v5563_v40 = vpack.i.b16 %v5465_v53, %v5465_v53 }
0x138a   :  { %4309 = vadd.xlane.f32.xlu0 %v4308_v3  ;;  %v7423_v3 = vpack.i.b16 %v5377_v41, %v5377_v41  ;;  %v5425_v13 = vrot.slane %v7419_v54, %v11746_v18  ;;  %v5401_v32 = vpack.i.b16 %v5385_v24, %v5385_v24  ;;  %v5389_v43 = vunpack.i.h.s16 %v5380_v10 }
0x138b   :  { %4354 = vadd.xlane.f32.xlu1 %v4353_v46  ;;  %v5449_v46 = vrot.slane %v7422_v61, %v11746_v18 }
0x138c   :  { %v5457_v16 = vrot.slane %v7423_v3, %v11746_v18  ;;  %v5493_v63 = vpack.i.b16 %v5425_v13, %v5425_v13  ;;  %v5429_v60 = vrot.slane %v5401_v32, %v11746_v18  ;;  %v11779_v13 = vld [vmem:[#allocation11_spill] sm:$0xff] }
0x138d   :  { %v5535_v17 = vpack.i.b16 %v5449_v46, %v5449_v46 }
0x138e   :  { %4357 = vadd.xlane.f32.xlu0 %v4356_v15  ;;  %v5395_v15 = vunpack.i.h.s16 %v5379_v22  ;;  %v5549_v8 = vpack.i.b16 %v5457_v16, %v5457_v16  ;;  %v5498_v58 = vrot.slane %v5493_v63, %v11746_v18  ;;  %v5500_v46 = vpack.i.b16 %v5429_v60, %v5429_v60  ;;  %v11778_v16 = vld [vmem:[#allocation10_spill] sm:$0xff] }
0x138f   :  { %4312 = vadd.xlane.f32.xlu1 %v4311_v31  ;;  %v5378_v31 = vcombine.high %v5356_v59, %v5356_v59  ;;  %v5461_v59 = vrot.slane %v5409_v25, %v11746_v18  ;;  %v5540_v14 = vrot.slane %v5535_v17, %v11746_v18 }
0x1390   :  { %v5411_v11 = vpack.i.b16 %v5395_v15, %v5395_v15  ;;  %v5554_v22 = vrot.slane %v5549_v8, %v11746_v18 }
0x1391   :  { %v7420_v37 = vpack.i.b16 %v5378_v31, %v5378_v31  ;;  %v5556_v47 = vpack.i.b16 %v5461_v59, %v5461_v59  ;;  %v10472_v61 = vadd.bf16 %v10312_v34, %v5540_v14 }
0x1392   :  { %4315 = vadd.xlane.f32.xlu0 %v4314_v55  ;;  %v5491_v55 = vrot.slane %v5486_v21, %v11746_v18  ;;  %v10479_v21 = vadd.bf16 %v10312_v34, %v5554_v22 }
0x1393   :  { %4360 = vadd.xlane.f32.xlu1 %v4359_v45  ;;  %v5397_v45 = vunpack.i.h.s16 %v5381_v39  ;;  %v6071_v7 = vmul.bf16 %v10472_v61, %v11778_v16  ;;  %v5561_v42 = vrot.slane %v5556_v47, %v11746_v18 }
0x1394   :  { %v10452_v35 = vadd.bf16 %v10312_v34, %v5491_v55  ;;  %v7421_v55 = vpack.i.b16 %v5380_v10, %v5380_v10  ;;  %v6073_v32 = vmul.bf16 %v10479_v21, %v11779_v13 }
0x1395   :  { %v5413_v41 = vpack.i.b16 %v5397_v45, %v5397_v45  ;;  %v5505_v45 = vrot.slane %v5500_v46, %v11746_v18  ;;  %v10494_v52 = vadd.bf16 %v10312_v34, %v5561_v42  ;;  %v6095_v53 = vunpack.c.l.bf16 %v6071_v7 }
0x1396   :  { %4363 = vadd.xlane.f32.xlu0 %v4362_v28  ;;  %v7425_v28 = vpack.i.b16 %v5381_v39, %v5381_v39  ;;  %v6064_v2 = vmul.bf16 %v10452_v35, %v11775_v62  ;;  %v5405_v62 = vpack.i.b16 %v5389_v43, %v5389_v43 }
0x1397   :  { %4318 = vadd.xlane.f32.xlu1 %v4317_v5  ;;  %v5387_v5 = vunpack.i.h.s16 %v5378_v31  ;;  %v5568_v31 = vrot.slane %v5563_v40, %v11746_v18  ;;  %v10499_v14 = vadd.bf16 %v10312_v34, %v5505_v45 }
0x1398   :  { %v5473_v12 = vrot.slane %v7425_v28, %v11746_v18  ;;  %v6081_v54 = vunpack.c.l.bf16 %v6064_v2  ;;  %v6082_v24 = vunpack.c.h.bf16 %v6064_v2  ;;  %v6099_v2 = vunpack.c.l.bf16 %v6073_v32 }
0x1399   :  { %v5403_v3 = vpack.i.b16 %v5387_v5, %v5387_v5  ;;  %v10509_v40 = vadd.bf16 %v10312_v34, %v5568_v31 }
0x139a   :  { %4321 = vadd.xlane.f32.xlu0 %v4320_v29  ;;  %v5469_v29 = vrot.slane %v5411_v11, %v11746_v18  ;;  %v8038_v28 = vpack.i.bf16 %v6082_v24, %v6081_v54  ;;  %v5577_v60 = vpack.i.b16 %v5473_v12, %v5473_v12  ;;  %v5445_v54 = vrot.slane %v5405_v62, %v11746_v18 }
0x139b   :  { %4366 = vadd.xlane.f32.xlu1 %v4365_v23  ;;  %v11776_v23 = vld [vmem:[#allocation24_spill] sm:$0xff]  ;;  %v5437_v11 = vrot.slane %v5403_v3, %v11746_v18 }
0x139c   :  { %v6063_v48 = vmul.bf16 %v10455_v38, %v11776_v23  ;;  %v5570_v25 = vpack.i.b16 %v5469_v29, %v5469_v29  ;;  %v5441_v29 = vrot.slane %v7421_v55, %v11746_v18  ;;  %v6100_v23 = vunpack.c.h.bf16 %v6073_v32 }
0x139d   :  { %v5514_v47 = vpack.i.b16 %v5437_v11, %v5437_v11 }
0x139e   :  { %4369 = vadd.xlane.f32.xlu0 %v4368_v36  ;;  %v5433_v36 = vrot.slane %v7420_v37, %v11746_v18  ;;  %v6079_v39 = vunpack.c.l.bf16 %v6063_v48  ;;  %v6080_v15 = vunpack.c.h.bf16 %v6063_v48  ;;  %v6096_v37 = vunpack.c.h.bf16 %v6071_v7 }
0x139f   :  { %4324 = vadd.xlane.f32.xlu1 %v4323_v57  ;;  %v11777_v57 = vld [vmem:[#allocation9_spill] sm:$0xff]  ;;  %v5575_v48 = vrot.slane %v5570_v25, %v11746_v18  ;;  %v5521_v46 = vpack.i.b16 %v5441_v29, %v5441_v29 }
0x13a0   :  { %v6072_v44 = vmul.bf16 %v10461_v49, %v11777_v57  ;;  %v5507_v30 = vpack.i.b16 %v5433_v36, %v5433_v36  ;;  %v8033_v59 = vpack.i.bf16 %v6080_v15, %v6079_v39  ;;  %v8043_v36 = vpack.i.bf16 %v6096_v37, %v6095_v53 }
0x13a1   :  { %v6066_v57 = vmul.bf16 %v10499_v14, %v10181_v33  ;;  %v10522_v24 = vadd.bf16 %v10312_v34, %v5575_v48  ;;  %v5519_v39 = vrot.slane %v5514_v47, %v11746_v18  ;;  %v6075_v33 = vmul.bf16 %v10509_v40, %v10183_v1 }
0x13a2   :  { %v6097_v17 = vunpack.c.l.bf16 %v6072_v44  ;;  %v6098_v8 = vunpack.c.h.bf16 %v6072_v44  ;;  %v5512_v63 = vrot.slane %v5507_v30, %v11746_v18  ;;  %v5477_v44 = vrot.slane %v5413_v41, %v11746_v18 }
0x13a3   :  { %4372 = vadd.xlane.f32.xlu1 %v4371_v6  ;;  %v10485_v6 = vadd.bf16 %v10312_v34, %v5498_v58  ;;  %v5582_v58 = vrot.slane %v5577_v60, %v11746_v18  ;;  %v6085_v7 = vunpack.c.l.bf16 %v6066_v57  ;;  %v6086_v42 = vunpack.c.h.bf16 %v6066_v57 }
0x13a4   :  { %v8048_v22 = vpack.i.bf16 %v6098_v8, %v6097_v17  ;;  %v10512_v12 = vadd.bf16 %v10312_v34, %v5512_v63  ;;  %v10530_v31 = vadd.bf16 %v10312_v34, %v5519_v39  ;;  %v5526_v30 = vrot.slane %v5521_v46, %v11746_v18  ;;  %v10549_v63 = vpop.permute.xlu0 %7959 }
0x13a5   :  { %v6065_v5 = vmul.bf16 %v10485_v6, %v10175_v4  ;;  %v6074_v4 = vmul.bf16 %v10494_v52, %v10177_v19  ;;  %v8058_v19 = vpack.i.bf16 %v6100_v23, %v6099_v2  ;;  %v5584_v55 = vpack.i.b16 %v5477_v44, %v5477_v44 }
0x13a6   :  { %v6067_v41 = vmul.bf16 %v10512_v12, %v10188_v26  ;;  %v6076_v43 = vmul.bf16 %v10522_v24, %v10190_v50  ;;  %v10538_v1 = vadd.bf16 %v10312_v34, %v5582_v58  ;;  %v5528_v26 = vpack.i.b16 %v5445_v54, %v5445_v54 }
0x13a7   :  { %v6083_v3 = vunpack.c.l.bf16 %v6065_v5  ;;  %v6084_v10 = vunpack.c.h.bf16 %v6065_v5  ;;  %v6101_v15 = vunpack.c.l.bf16 %v6074_v4  ;;  %v6102_v25 = vunpack.c.h.bf16 %v6074_v4 }
0x13a8   :  { %v6103_v17 = vunpack.c.l.bf16 %v6075_v33  ;;  %v6104_v13 = vunpack.c.h.bf16 %v6075_v33  ;;  %v6087_v32 = vunpack.c.l.bf16 %v6067_v41  ;;  %v6088_v45 = vunpack.c.h.bf16 %v6067_v41 }
0x13a9   :  { %v8053_v16 = vpack.i.bf16 %v6084_v10, %v6083_v3  ;;  %v8068_v11 = vpack.i.bf16 %v6102_v25, %v6101_v15  ;;  %v10543_v8 = vadd.bf16 %v10312_v34, %v5526_v30  ;;  %v5589_v53 = vrot.slane %v5584_v55, %v11746_v18 }
0x13aa   :  { %v6105_v50 = vunpack.c.l.bf16 %v6076_v43  ;;  %v6106_v37 = vunpack.c.h.bf16 %v6076_v43  ;;  %v5533_v5 = vrot.slane %v5528_v26, %v11746_v18  ;;  %v8078_v60 = vpack.i.bf16 %v6104_v13, %v6103_v17  ;;  %v8361_v26 = vld [vmem:[%s11623_s9 + $0x80] sm:$0xff]  }
0x13ab   :  { %v8073_v29 = vpack.i.bf16 %v6088_v45, %v6087_v32  ;;  %v10554_v62 = vadd.bf16 %v10312_v34, %v5589_v53  ;;  %v6069_v48 = vmul.bf16 %v10543_v8, %v10208_v27  ;;  %v5609_v17 = vmul.bf16 %v8361_v26, %v10455_v38  ;;  %v8362_v45 = vld [vmem:[%s11623_s9 + $0x88] sm:$0xff]  }
0x13ac   :  { %v10559_v47 = vadd.bf16 %v10312_v34, %v5533_v5  ;;  %v8088_v18 = vpack.i.bf16 %v6106_v37, %v6105_v50  ;;  %v10569_v34 = vpop.permute.xlu0 %7969  ;;  %v8363_v50 = vld [vmem:[%s11623_s9 + $0xc0] sm:$0xff]  }
0x13ad   :  { %v6091_v10 = vunpack.c.l.bf16 %v6069_v48  ;;  %v6092_v57 = vunpack.c.h.bf16 %v6069_v48  ;;  %v5625_v32 = vunpack.c.l.bf16 %v5609_v17  ;;  %v5617_v38 = vmul.bf16 %v8363_v50, %v10472_v61 }
0x13ae   :  { %v6070_v27 = vmul.bf16 %v10559_v47, %v10227_v51  ;;  %v5626_v5 = vunpack.c.h.bf16 %v5609_v17 }
0x13af   :  { %v8093_v46 = vpack.i.bf16 %v6092_v57, %v6091_v10  ;;  %v5642_v10 = vunpack.c.h.bf16 %v5617_v38 }
0x13b0   :  { %v10577_v15 = vpop.permute.xlu0 %7979 }
0x13b4   :  { %8039 = vrot.lane.b32.xlu0 %v8038_v28, %s8409_s1  ;;  %8034 = vrot.lane.b32.xlu1 %v8033_v59, %s8409_s1  ;;  %v8063_v28 = vpack.i.bf16 %v6086_v42, %v6085_v7  ;;  %v6068_v59 = vmul.bf16 %v10530_v31, %v10193_v56  ;;  %v6077_v56 = vmul.bf16 %v10538_v1, %v10195_v0  ;;  %v10583_v41 = vpop.permute.xlu0 %7989 }
0x13b5   :  { %v6078_v0 = vmul.bf16 %v10554_v62, %v10210_v9  ;;  %v6094_v9 = vunpack.c.h.bf16 %v6070_v27 }
0x13b6   :  { %v6089_v2 = vunpack.c.l.bf16 %v6068_v59  ;;  %v6090_v23 = vunpack.c.h.bf16 %v6068_v59  ;;  %v6108_v4 = vunpack.c.h.bf16 %v6077_v56  ;;  %v5657_v59 = vsel %vm814_vm2, %v5625_v32, 0.0 }
0x13b7   :  { %v6109_v58 = vunpack.c.l.bf16 %v6078_v0  ;;  %v6110_v54 = vunpack.c.h.bf16 %v6078_v0  ;;  %v8365_v0 = vld [vmem:[%s11623_s9 + $0x90] sm:$0xff]  }
0x13b8   :  { %8049 = vrot.lane.b32.xlu0 %v8048_v22, %s8409_s1  ;;  %8044 = vrot.lane.b32.xlu1 %v8043_v36, %s8409_s1  ;;  %v6107_v22 = vunpack.c.l.bf16 %v6077_v56  ;;  %v10565_v36 = vpop.permute.xlu1 %7954  ;;  %v8083_v3 = vpack.i.bf16 %v6090_v23, %v6089_v2  ;;  %v10587_v7 = vpop.permute.xlu0 %7999  ;;  %v8364_v56 = vld [vmem:[%s11623_s9 + $0xc8] sm:$0xff]   ;;  %v5660_v23 = vsel %vm814_vm2, %v5626_v5, 0.0 }
0x13b9   :  { %v8108_v51 = vpack.i.bf16 %v6110_v54, %v6109_v58  ;;  %v5618_v2 = vmul.bf16 %v8364_v56, %v10461_v49 }
0x13ba   :  { %v8098_v44 = vpack.i.bf16 %v6108_v4, %v6107_v22 }
0x13bb   :  { %v5643_v4 = vunpack.c.l.bf16 %v5618_v2 }
0x13bc   :  { %8059 = vrot.lane.b32.xlu0 %v8058_v19, %s8409_s1  ;;  %8054 = vrot.lane.b32.xlu1 %v8053_v16, %s8409_s1  ;;  %v6093_v19 = vunpack.c.l.bf16 %v6070_v27  ;;  %v10573_v39 = vpop.permute.xlu1 %7964  ;;  %v10591_v30 = vpop.permute.xlu0 %8009 }
0x13be   :  { %v8103_v25 = vpack.i.bf16 %v6094_v9, %v6093_v19  ;;  %v5644_v9 = vunpack.c.h.bf16 %v5618_v2 }
0x13c0   :  { %8069 = vrot.lane.b32.xlu0 %v8068_v11, %s8409_s1  ;;  %8064 = vrot.lane.b32.xlu1 %v8063_v28, %s8409_s1  ;;  %v10581_v33 = vpop.permute.xlu1 %7974  ;;  %v10595_v43 = vpop.permute.xlu0 %8019  ;;  %v5610_v11 = vmul.bf16 %v8362_v45, %v10452_v35  ;;  %v5641_v35 = vunpack.c.l.bf16 %v5617_v38  ;;  %v8367_v45 = vld [vmem:[%s11623_s9 + $0x98] sm:$0xff]  }
0x13c2   :  { %v5627_v53 = vunpack.c.l.bf16 %v5610_v11  ;;  %v5628_v48 = vunpack.c.h.bf16 %v5610_v11  ;;  %v5705_v22 = vsel %vm814_vm2, %v5641_v35, 0.0 }
0x13c4   :  { %8079 = vrot.lane.b32.xlu0 %v8078_v60, %s8409_s1  ;;  %8074 = vrot.lane.b32.xlu1 %v8073_v29, %s8409_s1  ;;  %v10585_v16 = vpop.permute.xlu1 %7984  ;;  %v10607_v28 = vpop.permute.xlu0 %8029  ;;  %v5663_v29 = vsel %vm814_vm2, %v5627_v53, 0.0  ;;  %v5666_v49 = vsel %vm814_vm2, %v5628_v48, 0.0 }
0x13c8   :  { %8089 = vrot.lane.b32.xlu0 %v8088_v18, %s8409_s1  ;;  %8084 = vrot.lane.b32.xlu1 %v8083_v3, %s8409_s1  ;;  %v10589_v42 = vpop.permute.xlu1 %7994  ;;  %v5611_v3 = vmul.bf16 %v8365_v0, %v10485_v6  ;;  %v5708_v6 = vsel %vm814_vm2, %v5642_v10, 0.0 }
0x13ca   :  { %v5629_v58 = vunpack.c.l.bf16 %v5611_v3  ;;  %v5630_v53 = vunpack.c.h.bf16 %v5611_v3 }
0x13cc   :  { %8099 = vrot.lane.b32.xlu0 %v8098_v44, %s8409_s1  ;;  %8094 = vrot.lane.b32.xlu1 %v8093_v46, %s8409_s1  ;;  %v10593_v55 = vpop.permute.xlu1 %8004  ;;  %v5711_v44 = vsel %vm814_vm2, %v5643_v4, 0.0  ;;  %v8366_v46 = vld [vmem:[%s11623_s9 + $0xd0] sm:$0xff]   ;;  %v5669_v17 = vsel %vm814_vm2, %v5629_v58, 0.0 }
0x13cd   :  { %v5619_v54 = vmul.bf16 %v8366_v46, %v10479_v21  ;;  %v5612_v21 = vmul.bf16 %v8367_v45, %v10499_v14  ;;  %v5672_v14 = vsel %vm814_vm2, %v5630_v53, 0.0 }
0x13cf   :  { %v5645_v32 = vunpack.c.l.bf16 %v5619_v54  ;;  %v5631_v5 = vunpack.c.l.bf16 %v5612_v21  ;;  %v5646_v2 = vunpack.c.h.bf16 %v5619_v54  ;;  %v5632_v58 = vunpack.c.h.bf16 %v5612_v21 }
0x13d0   :  { %8109 = vrot.lane.b32.xlu0 %v8108_v51, %s8409_s1  ;;  %8104 = vrot.lane.b32.xlu1 %v8103_v25, %s8409_s1  ;;  %v10601_v13 = vpop.permute.xlu1 %8014 }
0x13d1   :  { %v5717_v38 = vsel %vm814_vm2, %v5645_v32, 0.0  ;;  %v5675_v3 = vsel %vm814_vm2, %v5631_v5, 0.0 }
0x13d4   :  { %v10616_v60 = vpop.permute.xlu1 %8024 }
0x13ef   :  { %5658 = vadd.xlane.f32.xlu0 %v5657_v59  ;;  %v10614_v37 = vpop.xlane.xlu0 %4282  ;;  %v5714_v59 = vsel %vm814_vm2, %v5644_v9, 0.0 }
0x13f3   :  { %5664 = vadd.xlane.f32.xlu0 %v5663_v29  ;;  %v10624_v61 = vpop.xlane.xlu0 %4285  ;;  %v8368_v29 = vld [vmem:[%s11623_s9 + $0xd8] sm:$0xff]  }
0x13f4   :  { %v10626_v18 = vpop.xlane.xlu1 %4279  ;;  %5661 = vadd.xlane.f32.xlu1 %v5660_v23  ;;  %v5620_v35 = vmul.bf16 %v8368_v29, %v10494_v52  ;;  %v8369_v52 = vld [vmem:[%s11623_s9 + $0xa0] sm:$0xff]  }
0x13f5   :  { %v5613_v10 = vmul.bf16 %v8369_v52, %v10512_v12  ;;  %v5678_v12 = vsel %vm814_vm2, %v5632_v58, 0.0 }
0x13f7   :  { %5706 = vadd.xlane.f32.xlu0 %v5705_v22  ;;  %v10636_v27 = vpop.xlane.xlu0 %4327  ;;  %v5633_v54 = vunpack.c.l.bf16 %v5613_v10 }
0x13f8   :  { %5667 = vadd.xlane.f32.xlu1 %v5666_v49  ;;  %v10634_v57 = vpop.xlane.xlu1 %4288  ;;  %v5647_v49 = vunpack.c.l.bf16 %v5620_v35 }
0x13f9   :  { %v5681_v53 = vsel %vm814_vm2, %v5633_v54, 0.0 }
0x13fa   :  { %v5723_v46 = vsel %vm814_vm2, %v5647_v49, 0.0 }
0x13fb   :  { %v10643_v19 = vpop.f32.mrb[28].mxu0  ;;  %5712 = vadd.xlane.f32.xlu0 %v5711_v44  ;;  %v10656_v50 = vpop.xlane.xlu0 %4333  ;;  %v5720_v44 = vsel %vm814_vm2, %v5646_v2, 0.0 }
0x13fc   :  { %v7673_v51 = vpop.f32.mrb[29].mxu0  ;;  %5709 = vadd.xlane.f32.xlu1 %v5708_v6  ;;  %v10653_v11 = vpop.xlane.xlu1 %4330  ;;  %v8370_v6 = vld [vmem:[%s11623_s9 + $0xe0] sm:$0xff]  }
0x13fd   :  { %v10646_v25 = vpop.f32.mrb[30].mxu0  ;;  %v5621_v9 = vmul.bf16 %v8370_v6, %v10509_v40  ;;  %v8371_v40 = vld [vmem:[%s11623_s9 + $0xa8] sm:$0xff]  }
0x13fe   :  { %v7674_v26 = vpop.f32.mrb[31].mxu0  ;;  %v5614_v5 = vmul.bf16 %v8371_v40, %v10530_v31  ;;  %v8374_v40 = vld [vmem:[%s11623_s9 + $0xf0] sm:$0xff]  }
0x13ff   :  { %5670 = vadd.xlane.f32.xlu0 %v5669_v17  ;;  %v10670_v4 = vpop.xlane.xlu0 %4291  ;;  %v5648_v17 = vunpack.c.h.bf16 %v5620_v35  ;;  %v5634_v35 = vunpack.c.h.bf16 %v5613_v10  ;;  %v5650_v10 = vunpack.c.h.bf16 %v5621_v9 }
0x1400   :  { %5715 = vadd.xlane.f32.xlu1 %v5714_v59  ;;  %v10666_v48 = vpop.xlane.xlu1 %4336 }
0x1401   :  { %v5726_v29 = vsel %vm814_vm2, %v5648_v17, 0.0  ;;  %v5684_v31 = vsel %vm814_vm2, %v5634_v35, 0.0 }
0x1403   :  { %v10663_v56 = vpop.f32.mrb[32].mxu0  ;;  %5718 = vadd.xlane.f32.xlu0 %v5717_v38  ;;  %v10688_v32 = vpop.xlane.xlu0 %4339  ;;  %v5649_v38 = vunpack.c.l.bf16 %v5621_v9  ;;  %v5636_v9 = vunpack.c.h.bf16 %v5614_v5 }
0x1404   :  { %11780 = vst [vmem:[#allocation8_spill] sm:$0xff] %v10663_v56  ;;  %v7685_v23 = vpop.f32.mrb[33].mxu0  ;;  %5673 = vadd.xlane.f32.xlu1 %v5672_v14  ;;  %v10683_v51 = vpop.xlane.xlu1 %4294 }
0x1405   :  { %v10668_v22 = vpop.f32.mrb[34].mxu0  ;;  %v5729_v23 = vsel %vm814_vm2, %v5649_v38, 0.0 }
0x1406   :  { %11781 = vst [vmem:[#allocation5_spill] sm:$0xff] %v10668_v22  ;;  %v7686_v0 = vpop.f32.mrb[35].mxu0 }
0x1407   :  { %5676 = vadd.xlane.f32.xlu0 %v5675_v3  ;;  %v10700_v2 = vpop.xlane.xlu0 %4297  ;;  %v5635_v0 = vunpack.c.l.bf16 %v5614_v5  ;;  %v8372_v3 = vld [vmem:[%s11623_s9 + $0xe8] sm:$0xff]  }
0x1408   :  { %5721 = vadd.xlane.f32.xlu1 %v5720_v44  ;;  %v10698_v14 = vpop.xlane.xlu1 %4342  ;;  %v5622_v49 = vmul.bf16 %v8372_v3, %v10522_v24 }
0x1409   :  { %v5687_v54 = vsel %vm814_vm2, %v5635_v0, 0.0 }
0x140a   :  { %v5651_v6 = vunpack.c.l.bf16 %v5622_v49  ;;  %v5652_v35 = vunpack.c.h.bf16 %v5622_v49 }
0x140b   :  { %v10685_v26 = vpop.f32.mrb[36].mxu0  ;;  %5724 = vadd.xlane.f32.xlu0 %v5723_v46 }
0x140c   :  { %11782 = vst [vmem:[#allocation6_spill] sm:$0xff] %v10685_v26  ;;  %v7697_v45 = vpop.f32.mrb[37].mxu0  ;;  %5679 = vadd.xlane.f32.xlu1 %v5678_v12  ;;  %v8373_v12 = vld [vmem:[%s11623_s9 + $0xb0] sm:$0xff]   ;;  %v10717_v17 = vpop.xlane.xlu1 %4300 }
0x140d   :  { %v10690_v21 = vpop.f32.mrb[38].mxu0  ;;  %v5615_v24 = vmul.bf16 %v8373_v12, %v10543_v8  ;;  %v5732_v45 = vsel %vm814_vm2, %v5650_v10, 0.0  ;;  %v5690_v8 = vsel %vm814_vm2, %v5636_v9, 0.0 }
0x140e   :  { %11783 = vst [vmem:[#allocation7_spill] sm:$0xff] %v10690_v21  ;;  %v7698_v59 = vpop.f32.mrb[39].mxu0 }
0x140f   :  { %5682 = vadd.xlane.f32.xlu0 %v5681_v53  ;;  %v10720_v59 = vpop.xlane.xlu0 %4345  ;;  %v5735_v53 = vsel %vm814_vm2, %v5651_v6, 0.0  ;;  %v5637_v38 = vunpack.c.l.bf16 %v5615_v24 }
0x1410   :  { %5727 = vadd.xlane.f32.xlu1 %v5726_v29  ;;  %v5623_v29 = vmul.bf16 %v8374_v40, %v10538_v1  ;;  %v5738_v1 = vsel %vm814_vm2, %v5652_v35, 0.0 }
0x1411   :  { %v5693_v0 = vsel %vm814_vm2, %v5637_v38, 0.0 }
0x1412   :  { %v5653_v3 = vunpack.c.l.bf16 %v5623_v29 }
0x1413   :  { %v10707_v52 = vpop.f32.mrb[40].mxu0  ;;  %5730 = vadd.xlane.f32.xlu0 %v5729_v23  ;;  %v10728_v23 = vpop.xlane.xlu1 %4348 }
0x1414   :  { %11784 = vst [vmem:[#allocation13_spill] sm:$0xff] %v10707_v52  ;;  %v7709_v44 = vpop.f32.mrb[41].mxu0  ;;  %5685 = vadd.xlane.f32.xlu1 %v5684_v31  ;;  %v10730_v5 = vpop.xlane.xlu0 %4303  ;;  %v8375_v31 = vld [vmem:[%s11623_s9 + $0xb8] sm:$0xff]   ;;  %v5741_v49 = vsel %vm814_vm2, %v5653_v3, 0.0 }
0x1415   :  { %v10710_v58 = vpop.f32.mrb[42].mxu0  ;;  %v5616_v10 = vmul.bf16 %v8375_v31, %v10559_v47  ;;  %v5638_v44 = vunpack.c.h.bf16 %v5615_v24  ;;  %v5654_v47 = vunpack.c.h.bf16 %v5623_v29  ;;  %v7961_v31 = vunpack.i.l.bf16 %v10549_v63 }
0x1416   :  { %11785 = vst [vmem:[#allocation19_spill] sm:$0xff] %v10710_v58  ;;  %v7710_v46 = vpop.f32.mrb[43].mxu0 }
0x1417   :  { %5688 = vadd.xlane.f32.xlu0 %v5687_v54  ;;  %v5639_v46 = vunpack.c.l.bf16 %v5616_v10  ;;  %v8376_v54 = vld [vmem:[%s11623_s9 + $0xf8] sm:$0xff]   ;;  %v10743_v12 = vpop.xlane.xlu1 %4306  ;;  %v5744_v38 = vsel %vm814_vm2, %v5654_v47, 0.0  ;;  %v5640_v40 = vunpack.c.h.bf16 %v5616_v10  ;;  %v7957_v10 = vunpack.i.h.bf16 %v10565_v36 }
0x1418   :  { %5733 = vadd.xlane.f32.xlu1 %v5732_v45  ;;  %v5624_v6 = vmul.bf16 %v8376_v54, %v10554_v62  ;;  %v5696_v45 = vsel %vm814_vm2, %v5638_v44, 0.0  ;;  %v10746_v9 = vpop.xlane.xlu0 %4351  ;;  %v7956_v62 = vunpack.i.l.bf16 %v10565_v36  ;;  %v7966_v54 = vunpack.i.l.bf16 %v10573_v39 }
0x1419   :  { %v5699_v24 = vsel %vm814_vm2, %v5639_v46, 0.0  ;;  %v5702_v29 = vsel %vm814_vm2, %v5640_v40, 0.0  ;;  %v4911_v47 = vsel %vm814_vm2, %v7957_v10, 0.0  ;;  %v7971_v36 = vunpack.i.l.bf16 %v10569_v34 }
0x141a   :  { %v5656_v3 = vunpack.c.h.bf16 %v5624_v6  ;;  %v7967_v40 = vunpack.i.h.bf16 %v10573_v39  ;;  %v7981_v39 = vunpack.i.l.bf16 %v10577_v15 }
0x141b   :  { %5736 = vadd.xlane.f32.xlu0 %v5735_v53  ;;  %v5655_v53 = vunpack.c.l.bf16 %v5624_v6  ;;  %v7962_v6 = vunpack.i.h.bf16 %v10549_v63  ;;  %v7976_v63 = vunpack.i.l.bf16 %v10581_v33 }
0x141c   :  { %5691 = vadd.xlane.f32.xlu1 %v5690_v8  ;;  %v10750_v8 = vpop.xlane.xlu1 %4354  ;;  %v10753_v35 = vpop.xlane.xlu0 %4309 }
0x141d   :  { %v4920_v10 = vsel %vm814_vm2, %v7976_v63, 0.0 }
0x141f   :  { %5694 = vadd.xlane.f32.xlu0 %v5693_v0  ;;  %v5747_v0 = vsel %vm814_vm2, %v5655_v53, 0.0 }
0x1420   :  { %5739 = vadd.xlane.f32.xlu1 %v5738_v1  ;;  %v4908_v1 = vsel %vm814_vm2, %v7956_v62, 0.0  ;;  %v10760_v44 = vpop.xlane.xlu1 %4312  ;;  %v10763_v46 = vpop.xlane.xlu0 %4357  ;;  %v4917_v62 = vsel %vm814_vm2, %v7962_v6, 0.0 }
0x1423   :  { %5742 = vadd.xlane.f32.xlu0 %v5741_v49  ;;  %v5750_v49 = vsel %vm814_vm2, %v5656_v3, 0.0 }
0x1424   :  { %5697 = vadd.xlane.f32.xlu1 %v5696_v45  ;;  %v4914_v45 = vsel %vm814_vm2, %v7961_v31, 0.0  ;;  %v10772_v53 = vpop.xlane.xlu0 %4315  ;;  %v4959_v31 = vsel %vm814_vm2, %v7967_v40, 0.0 }
0x1427   :  { %5700 = vadd.xlane.f32.xlu0 %v5699_v24  ;;  %v10769_v24 = vpop.xlane.xlu1 %4360 }
0x1428   :  { %5745 = vadd.xlane.f32.xlu1 %v5744_v38  ;;  %v4956_v38 = vsel %vm814_vm2, %v7966_v54, 0.0 }
0x142b   :  { %5748 = vadd.xlane.f32.xlu0 %v5747_v0  ;;  %v4962_v0 = vsel %vm814_vm2, %v7971_v36, 0.0  ;;  %v10780_v3 = vpop.xlane.xlu1 %4318  ;;  %v7982_v36 = vunpack.i.h.bf16 %v10577_v15  ;;  %v7996_v15 = vunpack.i.l.bf16 %v10589_v42 }
0x142c   :  { %5703 = vadd.xlane.f32.xlu1 %v5702_v29  ;;  %v7972_v29 = vunpack.i.h.bf16 %v10569_v34  ;;  %v7986_v34 = vunpack.i.l.bf16 %v10585_v16 }
0x142e   :  { %v4965_v54 = vsel %vm814_vm2, %v7972_v29, 0.0  ;;  %v4926_v40 = vsel %vm814_vm2, %v7986_v34, 0.0  ;;  %v4932_v34 = vsel %vm814_vm2, %v7996_v15, 0.0  ;;  %v8011_v15 = vunpack.i.l.bf16 %v10591_v30 }
0x142f   :  { %4909 = vadd.xlane.f32.xlu0 %v4908_v1  ;;  %v10783_v1 = vpop.xlane.xlu0 %4363 }
0x1430   :  { %5751 = vadd.xlane.f32.xlu1 %v5750_v49  ;;  %v7977_v49 = vunpack.i.h.bf16 %v10581_v33  ;;  %v7991_v33 = vunpack.i.l.bf16 %v10583_v41 }
0x1433   :  { %4915 = vadd.xlane.f32.xlu0 %v4914_v45  ;;  %v10789_v45 = vpop.xlane.xlu1 %4366  ;;  %v10792_v6 = vpop.xlane.xlu0 %4321 }
0x1434   :  { %4912 = vadd.xlane.f32.xlu1 %v4911_v47  ;;  %v4968_v47 = vsel %vm814_vm2, %v7981_v39, 0.0  ;;  %v7992_v39 = vunpack.i.h.bf16 %v10583_v41  ;;  %v8006_v41 = vunpack.i.l.bf16 %v10593_v55 }
0x1437   :  { %4957 = vadd.xlane.f32.xlu0 %v4956_v38  ;;  %v4923_v38 = vsel %vm814_vm2, %v7977_v49, 0.0  ;;  %v10800_v63 = vpop.xlane.xlu1 %4324  ;;  %v10803_v29 = vpop.xlane.xlu0 %4369 }
0x1438   :  { %4918 = vadd.xlane.f32.xlu1 %v4917_v62  ;;  %v7987_v62 = vunpack.i.h.bf16 %v10585_v16  ;;  %v8001_v16 = vunpack.i.l.bf16 %v10587_v7 }
0x143b   :  { %4963 = vadd.xlane.f32.xlu0 %v4962_v0  ;;  %v4971_v0 = vsel %vm814_vm2, %v7982_v36, 0.0  ;;  %v10809_v49 = vpop.xlane.xlu1 %4372  ;;  %v4977_v36 = vsel %vm814_vm2, %v7992_v39, 0.0 }
0x143c   :  { %4960 = vadd.xlane.f32.xlu1 %v4959_v31  ;;  %v4974_v31 = vsel %vm814_vm2, %v7991_v33, 0.0  ;;  %v8002_v33 = vunpack.i.h.bf16 %v10587_v7  ;;  %v8016_v7 = vunpack.i.l.bf16 %v10601_v13 }
0x143e   :  { %v4983_v39 = vsel %vm814_vm2, %v8002_v33, 0.0 }
0x143f   :  { %4921 = vadd.xlane.f32.xlu0 %v4920_v10  ;;  %v4929_v10 = vsel %vm814_vm2, %v7987_v62, 0.0 }
0x1440   :  { %4966 = vadd.xlane.f32.xlu1 %v4965_v54  ;;  %v10812_v54 = vpop.permute.xlu0 %8039 }
0x1443   :  { %4969 = vadd.xlane.f32.xlu0 %v4968_v47  ;;  %v7997_v47 = vunpack.i.h.bf16 %v10589_v42  ;;  %v4938_v42 = vsel %vm814_vm2, %v8006_v41, 0.0  ;;  %v4944_v41 = vsel %vm814_vm2, %v8016_v7, 0.0 }
0x1444   :  { %4924 = vadd.xlane.f32.xlu1 %v4923_v38  ;;  %v4980_v38 = vsel %vm814_vm2, %v8001_v16, 0.0 }
0x1445   :  { %v4935_v62 = vsel %vm814_vm2, %v7997_v47, 0.0  ;;  %v8012_v47 = vunpack.i.h.bf16 %v10591_v30  ;;  %v8026_v30 = vunpack.i.l.bf16 %v10616_v60 }
0x1447   :  { %4927 = vadd.xlane.f32.xlu0 %v4926_v40  ;;  %v8035_v40 = vpop.permute.xlu1 %8034 }
0x1448   :  { %4972 = vadd.xlane.f32.xlu1 %v4971_v0  ;;  %v10821_v0 = vpop.permute.xlu0 %8049 }
0x144b   :  { %4975 = vadd.xlane.f32.xlu0 %v4974_v31  ;;  %v8007_v31 = vunpack.i.h.bf16 %v10593_v55  ;;  %v8021_v55 = vunpack.i.l.bf16 %v10595_v43 }
0x144c   :  { %4930 = vadd.xlane.f32.xlu1 %v4929_v10  ;;  %v10827_v10 = vpop.permute.xlu1 %8044  ;;  %v10830_v16 = vpop.permute.xlu0 %8059 }
0x144f   :  { %4933 = vadd.xlane.f32.xlu0 %v4932_v34  ;;  %v4986_v34 = vsel %vm814_vm2, %v8011_v15, 0.0  ;;  %v4992_v15 = vsel %vm814_vm2, %v8021_v55, 0.0  ;;  %v8036_v55 = vunpack.i.l.bf16 %v8035_v40 }
0x1450   :  { %4978 = vadd.xlane.f32.xlu1 %v4977_v36  ;;  %v4941_v36 = vsel %vm814_vm2, %v8007_v31, 0.0  ;;  %v10838_v33 = vpop.permute.xlu1 %8054  ;;  %v8022_v31 = vunpack.i.h.bf16 %v10595_v43 }
0x1453   :  { %4981 = vadd.xlane.f32.xlu0 %v4980_v38  ;;  %v8017_v38 = vunpack.i.h.bf16 %v10601_v13  ;;  %v8031_v13 = vunpack.i.l.bf16 %v10607_v28 }
0x1454   :  { %4936 = vadd.xlane.f32.xlu1 %v4935_v62  ;;  %v4989_v62 = vsel %vm814_vm2, %v8012_v47, 0.0  ;;  %v10847_v7 = vpop.permute.xlu1 %8064  ;;  %v4950_v47 = vsel %vm814_vm2, %v8026_v30, 0.0  ;;  %v8041_v30 = vunpack.i.l.bf16 %v10812_v54 }
0x1455   :  { %v4998_v43 = vsel %vm814_vm2, %v8031_v13, 0.0 }
0x1457   :  { %4939 = vadd.xlane.f32.xlu0 %v4938_v42  ;;  %v10841_v42 = vpop.permute.xlu0 %8069 }
0x1458   :  { %4984 = vadd.xlane.f32.xlu1 %v4983_v39  ;;  %v4947_v39 = vsel %vm814_vm2, %v8017_v38, 0.0  ;;  %v8032_v38 = vunpack.i.h.bf16 %v10607_v28  ;;  %v8046_v28 = vunpack.i.l.bf16 %v10827_v10 }
0x145b   :  { %4987 = vadd.xlane.f32.xlu0 %v4986_v34  ;;  %v10850_v34 = vpop.permute.xlu0 %8079 }
0x145c   :  { %4942 = vadd.xlane.f32.xlu1 %v4941_v36  ;;  %v8027_v36 = vunpack.i.h.bf16 %v10616_v60  ;;  %v6239_v60 = vsel %vm814_vm2, %v8036_v55, 0.0  ;;  %v6287_v55 = vsel %vm814_vm2, %v8046_v28, 0.0 }
0x145f   :  { %4945 = vadd.xlane.f32.xlu0 %v4944_v41  ;;  %v4995_v41 = vsel %vm814_vm2, %v8022_v31, 0.0  ;;  %v5001_v31 = vsel %vm814_vm2, %v8032_v38, 0.0  ;;  %v8047_v38 = vunpack.i.h.bf16 %v10827_v10 }
0x1460   :  { %4990 = vadd.xlane.f32.xlu1 %v4989_v62  ;;  %v10857_v62 = vpop.permute.xlu1 %8074 }
0x1463   :  { %4993 = vadd.xlane.f32.xlu0 %v4992_v15  ;;  %v4953_v15 = vsel %vm814_vm2, %v8027_v36, 0.0  ;;  %v6245_v36 = vsel %vm814_vm2, %v8041_v30, 0.0 }
0x1464   :  { %4948 = vadd.xlane.f32.xlu1 %v4947_v39  ;;  %v10860_v39 = vpop.permute.xlu0 %8089  ;;  %v10865_v13 = vpop.permute.xlu1 %8084 }
0x1467   :  { %4951 = vadd.xlane.f32.xlu0 %v4950_v47  ;;  %v8037_v47 = vunpack.i.h.bf16 %v8035_v40  ;;  %v8051_v40 = vunpack.i.l.bf16 %v10821_v0 }
0x1468   :  { %4996 = vadd.xlane.f32.xlu1 %v4995_v41  ;;  %v10868_v41 = vpop.permute.xlu0 %8099 }
0x1469   :  { %v6293_v30 = vsel %vm814_vm2, %v8051_v40, 0.0 }
0x146b   :  { %4999 = vadd.xlane.f32.xlu0 %v4998_v43  ;;  %v8042_v43 = vunpack.i.h.bf16 %v10812_v54  ;;  %v8056_v54 = vunpack.i.l.bf16 %v10838_v33 }
0x146c   :  { %4954 = vadd.xlane.f32.xlu1 %v4953_v15  ;;  %v6242_v15 = vsel %vm814_vm2, %v8037_v47, 0.0  ;;  %v10879_v20 = vpop.permute.xlu0 %8109  ;;  %v8052_v47 = vunpack.i.h.bf16 %v10821_v0 }
0x146f   :  { %6240 = vadd.xlane.f32.xlu0 %v6239_v60  ;;  %v10876_v60 = vpop.permute.xlu1 %8094 }
0x1470   :  { %5002 = vadd.xlane.f32.xlu1 %v5001_v31  ;;  %v6248_v31 = vsel %vm814_vm2, %v8042_v43, 0.0  ;;  %v6251_v43 = vsel %vm814_vm2, %v8056_v54, 0.0 }
0x1473   :  { %6246 = vadd.xlane.f32.xlu0 %v6245_v36  ;;  %v6290_v36 = vsel %vm814_vm2, %v8047_v38, 0.0  ;;  %v10887_v10 = vpop.permute.xlu1 %8104  ;;  %v8066_v38 = vunpack.i.l.bf16 %v10847_v7 }
0x1474   :  { %6243 = vadd.xlane.f32.xlu1 %v6242_v15  ;;  %v8061_v15 = vunpack.i.l.bf16 %v10830_v16 }
0x1477   :  { %6288 = vadd.xlane.f32.xlu0 %v6287_v55  ;;  %v8057_v55 = vunpack.i.h.bf16 %v10838_v33 }
0x1478   :  { %6249 = vadd.xlane.f32.xlu1 %v6248_v31  ;;  %v6296_v31 = vsel %vm814_vm2, %v8052_v47, 0.0  ;;  %v8071_v47 = vunpack.i.l.bf16 %v10841_v42 }
0x1479   :  { %v6254_v58 = vsel %vm814_vm2, %v8057_v55, 0.0  ;;  %v8076_v55 = vunpack.i.l.bf16 %v10857_v62 }
0x147b   :  { %6294 = vadd.xlane.f32.xlu0 %v6293_v30  ;;  %v6299_v30 = vsel %vm814_vm2, %v8061_v15, 0.0 }
0x147c   :  { %v10885_v28 = vpop.xlane.xlu0 %5658  ;;  %6291 = vadd.xlane.f32.xlu1 %v6290_v36  ;;  %v8062_v36 = vunpack.i.h.bf16 %v10830_v16 }
0x147e   :  { %v6302_v52 = vsel %vm814_vm2, %v8062_v36, 0.0 }
0x147f   :  { %6252 = vadd.xlane.f32.xlu0 %v6251_v43  ;;  %v6257_v43 = vsel %vm814_vm2, %v8066_v38, 0.0  ;;  %v11786_v38 = vld [vmem:[#allocation26_spill] sm:$0xff] }
0x1480   :  { %v10893_v40 = vpop.xlane.xlu0 %5664  ;;  %6297 = vadd.xlane.f32.xlu1 %v6296_v31  ;;  %v8067_v31 = vunpack.i.h.bf16 %v10847_v7  ;;  %v4413_v7 = vrot.slane %v10614_v37, %v11786_v38  ;;  %v4431_v37 = vrot.slane %v10683_v51, %v11786_v38 }
0x1481   :  { %v10895_v0 = vpop.xlane.xlu1 %5661 }
0x1482   :  { %v6260_v22 = vsel %vm814_vm2, %v8067_v31, 0.0  ;;  %v4494_v31 = vrot.slane %v10666_v48, %v11786_v38  ;;  %v8077_v48 = vunpack.i.h.bf16 %v10857_v62 }
0x1483   :  { %6300 = vadd.xlane.f32.xlu0 %v6299_v30  ;;  %v8072_v30 = vunpack.i.h.bf16 %v10841_v42 }
0x1484   :  { %v10901_v54 = vpop.xlane.xlu0 %5706  ;;  %6255 = vadd.xlane.f32.xlu1 %v6254_v58  ;;  %v6305_v58 = vsel %vm814_vm2, %v8071_v47, 0.0  ;;  %v4422_v47 = vrot.slane %v10634_v57, %v11786_v38  ;;  %v4485_v57 = vrot.slane %v10653_v11, %v11786_v38 }
0x1485   :  { %v10903_v33 = vpop.xlane.xlu1 %5667  ;;  %v6308_v56 = vsel %vm814_vm2, %v8072_v30, 0.0 }
0x1487   :  { %6258 = vadd.xlane.f32.xlu0 %v6257_v43  ;;  %v11787_v43 = vld [vmem:[#allocation27_spill] sm:$0xff] }
0x1488   :  { %v10909_v15 = vpop.xlane.xlu0 %5712  ;;  %6303 = vadd.xlane.f32.xlu1 %v6302_v52  ;;  %v4409_v36 = vrot.slane %v10626_v18, %v11787_v43  ;;  %v4418_v52 = vrot.slane %v10624_v61, %v11787_v43  ;;  %v4490_v42 = vrot.slane %v10656_v50, %v11787_v43  ;;  %v4503_v18 = vrot.slane %v10698_v14, %v11786_v38 }
0x1489   :  { %v10911_v16 = vpop.xlane.xlu1 %5709  ;;  %v6263_v61 = vsel %vm814_vm2, %v8076_v55, 0.0  ;;  %v4440_v50 = vrot.slane %v10717_v17, %v11786_v38  ;;  %v4427_v14 = vrot.slane %v10670_v4, %v11787_v43  ;;  %v4499_v26 = vrot.slane %v10688_v32, %v11787_v43 }
0x148a   :  { %v4414_v51 = vsel %vm954_vm3, %v4413_v7, %v4409_v36  ;;  %v4481_v11 = vrot.slane %v10636_v27, %v11787_v43  ;;  %v4423_v17 = vsel %vm954_vm3, %v4422_v47, %v4418_v52  ;;  %v4495_v62 = vsel %vm954_vm3, %v4494_v31, %v4490_v42 }
0x148b   :  { %6306 = vadd.xlane.f32.xlu0 %v6305_v58  ;;  %v4436_v30 = vrot.slane %v10700_v2, %v11787_v43  ;;  %v4432_v4 = vsel %vm954_vm3, %v4431_v37, %v4427_v14  ;;  %v4504_v36 = vsel %vm954_vm3, %v4503_v18, %v4499_v26  ;;  %v8086_v32 = vunpack.i.l.bf16 %v10865_v13 }
0x148c   :  { %v10921_v21 = vpop.xlane.xlu0 %5670  ;;  %6261 = vadd.xlane.f32.xlu1 %v6260_v22  ;;  %v8081_v22 = vunpack.i.l.bf16 %v10850_v34  ;;  %v8082_v52 = vunpack.i.h.bf16 %v10850_v34  ;;  %v6266_v47 = vsel %vm814_vm2, %v8077_v48, 0.0  ;;  %v4550_v2 = vsel %vm1091_vm4, %v4423_v17, %v4414_v51 }
0x148d   :  { %v10931_v58 = vpop.xlane.xlu1 %5715  ;;  %v4441_v27 = vsel %vm954_vm3, %v4440_v50, %v4436_v30  ;;  %v4551_v26 = vsel %vm1093_vm5, %v4432_v4, %v4550_v2  ;;  %v4508_v18 = vrot.slane %v10720_v59, %v11787_v43  ;;  %v4449_v34 = vrot.slane %v10743_v12, %v11786_v38 }
0x148e   :  { %v4458_v50 = vrot.slane %v10760_v44, %v11786_v38  ;;  %v8091_v48 = vunpack.i.l.bf16 %v10860_v39  ;;  %v6269_v51 = vsel %vm814_vm2, %v8086_v32, 0.0  ;;  %v4445_v14 = vrot.slane %v10730_v5, %v11787_v43 }
0x148f   :  { %6264 = vadd.xlane.f32.xlu0 %v6263_v61  ;;  %v4486_v61 = vsel %vm954_vm3, %v4485_v57, %v4481_v11  ;;  %v4552_v57 = vsel %vm1095_vm6, %v4441_v27, %v4551_v26  ;;  %v4467_v59 = vrot.slane %v10780_v3, %v11786_v38  ;;  %v8087_v11 = vunpack.i.h.bf16 %v10865_v13 }
0x1490   :  { %v10950_v55 = vpop.xlane.xlu0 %5718  ;;  %6309 = vadd.xlane.f32.xlu1 %v6308_v56  ;;  %v6311_v56 = vsel %vm814_vm2, %v8081_v22, 0.0  ;;  %v4557_v42 = vsel %vm1091_vm4, %v4495_v62, %v4486_v61  ;;  %v6314_v12 = vsel %vm814_vm2, %v8082_v52, 0.0  ;;  %v4512_v17 = vrot.slane %v10728_v23, %v11786_v38 }
0x1491   :  { %v10958_v7 = vpop.xlane.xlu1 %5673  ;;  %v4558_v37 = vsel %vm1093_vm5, %v4504_v36, %v4557_v42  ;;  %v4517_v44 = vrot.slane %v10746_v9, %v11787_v43  ;;  %v4454_v62 = vrot.slane %v10753_v35, %v11787_v43  ;;  %v4476_v5 = vrot.slane %v10800_v63, %v11786_v38 }
0x1492   :  { %v4450_v3 = vsel %vm954_vm3, %v4449_v34, %v4445_v14  ;;  %v4521_v13 = vrot.slane %v10750_v8, %v11786_v38  ;;  %v4463_v23 = vrot.slane %v10772_v53, %v11787_v43  ;;  %v4530_v9 = vrot.slane %v10769_v24, %v11786_v38 }
0x1493   :  { %6312 = vadd.xlane.f32.xlu0 %v6311_v56  ;;  %v4459_v35 = vsel %vm954_vm3, %v4458_v50, %v4454_v62  ;;  %v4472_v63 = vrot.slane %v10792_v6, %v11787_v43  ;;  %v8096_v36 = vunpack.i.l.bf16 %v10876_v60  ;;  %v6317_v32 = vsel %vm814_vm2, %v8091_v48, 0.0 }
0x1494   :  { %v10970_v31 = vpop.xlane.xlu0 %5676  ;;  %6267 = vadd.xlane.f32.xlu1 %v6266_v47  ;;  %v4526_v8 = vrot.slane %v10763_v46, %v11787_v43  ;;  %v4468_v56 = vsel %vm954_vm3, %v4467_v59, %v4463_v23  ;;  %v8092_v53 = vunpack.i.h.bf16 %v10860_v39  ;;  %v6272_v24 = vsel %vm814_vm2, %v8087_v11, 0.0 }
0x1495   :  { %v10978_v22 = vpop.xlane.xlu1 %5721  ;;  %v4513_v61 = vsel %vm954_vm3, %v4512_v17, %v4508_v18  ;;  %v4553_v27 = vsel %vm1097_vm7, %v4450_v3, %v4552_v57  ;;  %v4539_v6 = vrot.slane %v10789_v45, %v11786_v38  ;;  %v4477_v52 = vsel %vm954_vm3, %v4476_v5, %v4472_v63 }
0x1496   :  { %v4522_v46 = vsel %vm954_vm3, %v4521_v13, %v4517_v44  ;;  %v4554_v2 = vsel %vm1099_vm8, %v4459_v35, %v4553_v27  ;;  %v4531_v39 = vsel %vm954_vm3, %v4530_v9, %v4526_v8  ;;  %v4548_v42 = vrot.slane %v10809_v49, %v11786_v38 }
0x1497   :  { %6270 = vadd.xlane.f32.xlu0 %v6269_v51  ;;  %v4535_v18 = vrot.slane %v10783_v1, %v11787_v43  ;;  %v4555_v45 = vsel %vm1101_vm9, %v4468_v56, %v4554_v2  ;;  %v8101_v34 = vunpack.i.l.bf16 %v10868_v41  ;;  %v6275_v57 = vsel %vm814_vm2, %v8096_v36, 0.0 }
0x1498   :  { %v10999_v30 = vpop.xlane.xlu0 %5724  ;;  %6315 = vadd.xlane.f32.xlu1 %v6314_v12  ;;  %v4544_v50 = vrot.slane %v10803_v29, %v11787_v43  ;;  %v8097_v48 = vunpack.i.h.bf16 %v10876_v60  ;;  %v6320_v51 = vsel %vm814_vm2, %v8092_v53, 0.0  ;;  %v4556_v49 = vsel %vm1103_vm10, %v4477_v52, %v4555_v45 }
0x1499   :  { %v11008_v4 = vpop.xlane.xlu1 %5679  ;;  %v4559_v14 = vsel %vm1095_vm6, %v4513_v61, %v4558_v37  ;;  %v4540_v1 = vsel %vm954_vm3, %v4539_v6, %v4535_v18  ;;  %v8106_v60 = vunpack.i.l.bf16 %v10887_v10  ;;  %v6323_v44 = vsel %vm814_vm2, %v8101_v34, 0.0 }
0x149a   :  { %v4560_v11 = vsel %vm1097_vm7, %v4522_v46, %v4559_v14  ;;  %v4549_v12 = vsel %vm954_vm3, %v4548_v42, %v4544_v50  ;;  %v4607_v62 = vadd.f32 %v10643_v19, %v4556_v49  ;;  %v8102_v5 = vunpack.i.h.bf16 %v10868_v41 }
0x149b   :  { %6318 = vadd.xlane.f32.xlu0 %v6317_v32  ;;  %v4561_v29 = vsel %vm1099_vm8, %v4531_v39, %v4560_v11  ;;  %v6278_v3 = vsel %vm814_vm2, %v8097_v48, 0.0  ;;  %v8111_v35 = vunpack.i.l.bf16 %v10879_v20  ;;  %v6281_v63 = vsel %vm814_vm2, %v8106_v60, 0.0 }
0x149c   :  { %v11025_v47 = vpop.xlane.xlu0 %5682  ;;  %6273 = vadd.xlane.f32.xlu1 %v6272_v24  ;;  %v4562_v37 = vsel %vm1101_vm9, %v4540_v1, %v4561_v29  ;;  %v4613_v36 = vmul.f32 0.17677669, %v4607_v62  ;;  %v8107_v19 = vunpack.i.h.bf16 %v10887_v10  ;;  %v6326_v41 = vsel %vm814_vm2, %v8102_v5, 0.0  ;;  %v11077_v24 = vld [vmem:[%s11727_s22] ss:$0 sm:$0xff] }
0x149d   :  { %v11032_v26 = vpop.xlane.xlu1 %5727  ;;  %v4563_v23 = vsel %vm1103_vm10, %v4549_v12, %v4562_v37  ;;  %v6329_v53 = vsel %vm814_vm2, %v8111_v35, 0.0  ;;  %v8112_v10 = vunpack.i.h.bf16 %v10879_v20 }
0x149e   :  { %v4610_v32 = vadd.f32 %v10646_v25, %v4563_v23  ;;  %v11080_v61 = vadd.f32 %v11077_v24, %v4613_v36  ;;  %v6284_v25 = vsel %vm814_vm2, %v8107_v19, 0.0  ;;  %v5801_v36 = vrot.slane %v10903_v33, %v11786_v38 }
0x149f   :  { %6276 = vadd.xlane.f32.xlu0 %v6275_v57  ;;  %v6332_v2 = vsel %vm814_vm2, %v8112_v10, 0.0  ;;  %v5873_v19 = vrot.slane %v10931_v58, %v11786_v38  ;;  %v5792_v10 = vrot.slane %v10895_v0, %v11786_v38  ;;  %v5864_v33 = vrot.slane %v10911_v16, %v11786_v38 }
0x14a0   :  { %v11046_v59 = vpop.xlane.xlu0 %5730  ;;  %6321 = vadd.xlane.f32.xlu1 %v6320_v51  ;;  %v4614_v27 = vmul.f32 0.17677669, %v4610_v32  ;;  %v4617_v46 = vsel %vm1169_vm11, %v11080_v61, -inf  ;;  %v5810_v32 = vrot.slane %v10958_v7, %v11786_v38  ;;  %v5806_v58 = vrot.slane %v10921_v21, %v11787_v43 }
0x14a1   :  { %v11050_v17 = vpop.xlane.xlu1 %5685  ;;  %v5788_v7 = vrot.slane %v10885_v28, %v11787_v43  ;;  %v5882_v16 = vrot.slane %v10978_v22, %v11786_v38  ;;  %v5819_v28 = vrot.slane %v11008_v4, %v11786_v38  ;;  %v5891_v4 = vrot.slane %v11032_v26, %v11786_v38 }
0x14a2   :  { %v11092_v39 = vadd.f32 %v11077_v24, %v4614_v27 }
0x14a3   :  { %6324 = vadd.xlane.f32.xlu0 %v6323_v44  ;;  %v5793_v21 = vsel %vm954_vm3, %v5792_v10, %v5788_v7  ;;  %v5815_v10 = vrot.slane %v10970_v31, %v11787_v43  ;;  %v5887_v31 = vrot.slane %v10999_v30, %v11787_v43 }
0x14a4   :  { %v11059_v13 = vpop.xlane.xlu0 %5688  ;;  %6279 = vadd.xlane.f32.xlu1 %v6278_v3  ;;  %v4620_v18 = vsel %vm1169_vm11, %v11092_v39, -inf }
0x14a5   :  { %v11062_v9 = vpop.xlane.xlu1 %5733  ;;  %v5820_v26 = vsel %vm954_vm3, %v5819_v28, %v5815_v10 }
0x14a7   :  { %6282 = vadd.xlane.f32.xlu0 %v6281_v63 }
0x14a8   :  { %v11069_v8 = vpop.xlane.xlu0 %5736  ;;  %6327 = vadd.xlane.f32.xlu1 %v6326_v41 }
0x14a9   :  { %v11071_v56 = vpop.xlane.xlu1 %5691 }
0x14ab   :  { %6330 = vadd.xlane.f32.xlu0 %v6329_v53  ;;  %v5797_v53 = vrot.slane %v10893_v40, %v11787_v43  ;;  %v5860_v40 = vrot.slane %v10901_v54, %v11787_v43 }
0x14ac   :  { %v11084_v6 = vpop.xlane.xlu0 %5694  ;;  %6285 = vadd.xlane.f32.xlu1 %v6284_v25  ;;  %v5869_v25 = vrot.slane %v10909_v15, %v11787_v43  ;;  %v5811_v15 = vsel %vm954_vm3, %v5810_v32, %v5806_v58  ;;  %v5828_v32 = vrot.slane %v11050_v17, %v11786_v38  ;;  %v5824_v17 = vrot.slane %v11025_v47, %v11787_v43 }
0x14ad   :  { %v11086_v52 = vpop.xlane.xlu1 %5739  ;;  %v5900_v58 = vrot.slane %v11062_v9, %v11786_v38  ;;  %v5896_v47 = vrot.slane %v11046_v59, %v11787_v43  ;;  %v5842_v9 = vrot.slane %v11084_v6, %v11787_v43 }
0x14ae   :  { %v5874_v0 = vsel %vm954_vm3, %v5873_v19, %v5869_v25  ;;  %v5878_v19 = vrot.slane %v10950_v55, %v11787_v43  ;;  %v5837_v25 = vrot.slane %v11071_v56, %v11786_v38  ;;  %v5833_v56 = vrot.slane %v11059_v13, %v11787_v43 }
0x14af   :  { %4618 = vmax.xlane.f32.xlu0 %v4617_v46  ;;  %v5802_v46 = vsel %vm954_vm3, %v5801_v36, %v5797_v53  ;;  %v5901_v6 = vsel %vm954_vm3, %v5900_v58, %v5896_v47 }
0x14b0   :  { %v11094_v42 = vpop.xlane.xlu0 %5742  ;;  %6333 = vadd.xlane.f32.xlu1 %v6332_v2  ;;  %v5929_v54 = vsel %vm1091_vm4, %v5802_v46, %v5793_v21  ;;  %v5883_v55 = vsel %vm954_vm3, %v5882_v16, %v5878_v19  ;;  %v5829_v46 = vsel %vm954_vm3, %v5828_v32, %v5824_v17  ;;  %v5838_v13 = vsel %vm954_vm3, %v5837_v25, %v5833_v56 }
0x14b1   :  { %v11096_v20 = vpop.xlane.xlu1 %5697  ;;  %v5930_v22 = vsel %vm1093_vm5, %v5811_v15, %v5929_v54 }
0x14b2   :  { %v5846_v7 = vrot.slane %v11096_v20, %v11786_v38  ;;  %v5909_v20 = vrot.slane %v11086_v52, %v11786_v38  ;;  %v5931_v16 = vsel %vm1095_vm6, %v5820_v26, %v5930_v22  ;;  %v5905_v52 = vrot.slane %v11069_v8, %v11787_v43 }
0x14b3   :  { %v5932_v28 = vsel %vm1097_vm7, %v5829_v46, %v5931_v16  ;;  %v11788_v46 = vld [vmem:[#allocation6_spill] sm:$0xff] }
0x14b4   :  { %v11100_v45 = vpop.xlane.xlu0 %5700  ;;  %4621 = vmax.xlane.f32.xlu1 %v4620_v18  ;;  %v5865_v18 = vsel %vm954_vm3, %v5864_v33, %v5860_v40  ;;  %v5847_v21 = vsel %vm954_vm3, %v5846_v7, %v5842_v9  ;;  %v5933_v19 = vsel %vm1099_vm8, %v5838_v13, %v5932_v28  ;;  %v5910_v32 = vsel %vm954_vm3, %v5909_v20, %v5905_v52 }
0x14b5   :  { %v11102_v34 = vpop.xlane.xlu1 %5745  ;;  %v5936_v36 = vsel %vm1091_vm4, %v5874_v0, %v5865_v18  ;;  %v5892_v0 = vsel %vm954_vm3, %v5891_v4, %v5887_v31 }
0x14b6   :  { %v5918_v59 = vrot.slane %v11102_v34, %v11786_v38  ;;  %v5937_v18 = vsel %vm1093_vm5, %v5883_v55, %v5936_v36  ;;  %v5934_v36 = vsel %vm1101_vm9, %v5847_v21, %v5933_v19 }
0x14b7   :  { %v5938_v54 = vsel %vm1095_vm6, %v5892_v0, %v5937_v18 }
0x14b8   :  { %v11104_v57 = vpop.xlane.xlu0 %5748  ;;  %v5939_v10 = vsel %vm1097_vm7, %v5901_v6, %v5938_v54 }
0x14b9   :  { %v11106_v50 = vpop.xlane.xlu1 %5703  ;;  %v5940_v58 = vsel %vm1099_vm8, %v5910_v32, %v5939_v10  ;;  %v5923_v31 = vrot.slane %v11104_v57, %v11787_v43 }
0x14ba   :  { %v5855_v40 = vrot.slane %v11106_v50, %v11786_v38  ;;  %v5851_v50 = vrot.slane %v11100_v45, %v11787_v43  ;;  %v5914_v45 = vrot.slane %v11094_v42, %v11787_v43 }
0x14bc   :  { %v11108_v48 = vpop.xlane.xlu0 %4909  ;;  %v5856_v34 = vsel %vm954_vm3, %v5855_v40, %v5851_v50  ;;  %v5919_v4 = vsel %vm954_vm3, %v5918_v59, %v5914_v45 }
0x14bd   :  { %v11110_v51 = vpop.xlane.xlu1 %5751  ;;  %v5043_v26 = vrot.slane %v11108_v48, %v11787_v43 }
0x14be   :  { %v5927_v42 = vrot.slane %v11110_v51, %v11786_v38 }
0x14c0   :  { %v11112_v49 = vpop.xlane.xlu0 %4915  ;;  %v5928_v9 = vsel %vm954_vm3, %v5927_v42, %v5923_v31 }
0x14c1   :  { %v11114_v14 = vpop.xlane.xlu1 %4912  ;;  %v5052_v55 = vrot.slane %v11112_v49, %v11787_v43 }
0x14c2   :  { %v5047_v17 = vrot.slane %v11114_v14, %v11786_v38  ;;  %v5941_v14 = vsel %vm1101_vm9, %v5919_v4, %v5940_v58 }
0x14c4   :  { %v11116_v1 = vpop.xlane.xlu0 %4957  ;;  %v5048_v48 = vsel %vm954_vm3, %v5047_v17, %v5043_v26 }
0x14c5   :  { %v11118_v11 = vpop.xlane.xlu1 %4918  ;;  %v5115_v20 = vrot.slane %v11116_v1, %v11787_v43 }
0x14c6   :  { %v5056_v8 = vrot.slane %v11118_v11, %v11786_v38  ;;  %v5935_v11 = vsel %vm1103_vm10, %v5856_v34, %v5934_v36 }
0x14c7   :  { %v5986_v57 = vadd.f32 %v11788_v46, %v5935_v11 }
0x14c8   :  { %v11120_v12 = vpop.xlane.xlu0 %4963  ;;  %v5057_v51 = vsel %vm954_vm3, %v5056_v8, %v5052_v55 }
0x14c9   :  { %v11122_v29 = vpop.xlane.xlu1 %4960  ;;  %v5184_v0 = vsel %vm1091_vm4, %v5057_v51, %v5048_v48  ;;  %v5124_v50 = vrot.slane %v11120_v12, %v11787_v43  ;;  %v11789_v48 = vld [vmem:[#allocation8_spill] sm:$0xff] }
0x14ca   :  { %v5119_v49 = vrot.slane %v11122_v29, %v11786_v38 }
0x14cc   :  { %v11124_v60 = vpop.xlane.xlu0 %4921  ;;  %v5120_v59 = vsel %vm954_vm3, %v5119_v49, %v5115_v20 }
0x14cd   :  { %v11126_v44 = vpop.xlane.xlu1 %4966  ;;  %v5061_v40 = vrot.slane %v11124_v60, %v11787_v43 }
0x14ce   :  { %v5128_v29 = vrot.slane %v11126_v44, %v11786_v38 }
0x14d0   :  { %v11128_v62 = vpop.xlane.xlu0 %4969  ;;  %v5129_v21 = vsel %vm954_vm3, %v5128_v29, %v5124_v50 }
0x14d1   :  { %v11130_v37 = vpop.xlane.xlu1 %4924  ;;  %v5191_v42 = vsel %vm1091_vm4, %v5129_v21, %v5120_v59  ;;  %v11790_v59 = vld [vmem:[#allocation7_spill] sm:$0xff] }
0x14d2   :  { %v5065_v7 = vrot.slane %v11130_v37, %v11786_v38 }
0x14d4   :  { %v11132_v5 = vpop.xlane.xlu0 %4927  ;;  %v5066_v60 = vsel %vm954_vm3, %v5065_v7, %v5061_v40 }
0x14d5   :  { %v11134_v3 = vpop.xlane.xlu1 %4972  ;;  %v5185_v18 = vsel %vm1093_vm5, %v5066_v60, %v5184_v0  ;;  %v5992_v0 = vmul.f32 0.17677669, %v5986_v57 }
0x14d6   :  { %v5137_v1 = vrot.slane %v11134_v3, %v11786_v38  ;;  %v5133_v3 = vrot.slane %v11128_v62, %v11787_v43 }
0x14d8   :  { %v11136_v23 = vpop.xlane.xlu0 %4975  ;;  %v5138_v34 = vsel %vm954_vm3, %v5137_v1, %v5133_v3 }
0x14d9   :  { %v11138_v35 = vpop.xlane.xlu1 %4930  ;;  %v5142_v28 = vrot.slane %v11136_v23, %v11787_v43  ;;  %v5192_v11 = vsel %vm1093_vm5, %v5138_v34, %v5191_v42 }
0x14da   :  { %v5074_v37 = vrot.slane %v11138_v35, %v11786_v38  ;;  %v5070_v35 = vrot.slane %v11132_v5, %v11787_v43 }
0x14dc   :  { %v11140_v63 = vpop.xlane.xlu0 %4933  ;;  %v5075_v6 = vsel %vm954_vm3, %v5074_v37, %v5070_v35  ;;  %v5942_v37 = vsel %vm1103_vm10, %v5928_v9, %v5941_v14 }
0x14dd   :  { %v11146_v41 = vpop.xlane.xlu1 %4978  ;;  %v5079_v5 = vrot.slane %v11140_v63, %v11787_v43  ;;  %v5186_v54 = vsel %vm1095_vm6, %v5075_v6, %v5185_v18  ;;  %v5989_v1 = vadd.f32 %v11790_v59, %v5942_v37 }
0x14df   :  { %v5993_v21 = vmul.f32 0.17677669, %v5989_v1 }
0x14e0   :  { %v11160_v27 = vpop.xlane.xlu0 %4981 }
0x14e1   :  { %v11168_v2 = vpop.xlane.xlu1 %4936  ;;  %v5151_v23 = vrot.slane %v11160_v27, %v11787_v43 }
0x14e2   :  { %v5083_v13 = vrot.slane %v11168_v2, %v11786_v38  ;;  %v5146_v2 = vrot.slane %v11146_v41, %v11786_v38 }
0x14e4   :  { %v11183_v53 = vpop.xlane.xlu0 %4939  ;;  %v5084_v63 = vsel %vm954_vm3, %v5083_v13, %v5079_v5  ;;  %v5147_v32 = vsel %vm954_vm3, %v5146_v2, %v5142_v28  ;;  %v11352_v2 = vld [vmem:[%s11727_s22 + $0x1] ss:$0 sm:$0xff] }
0x14e5   :  { %v11192_v33 = vpop.xlane.xlu1 %4984  ;;  %v5187_v10 = vsel %vm1097_vm7, %v5084_v63, %v5186_v54  ;;  %v5193_v26 = vsel %vm1095_vm6, %v5147_v32, %v5192_v11 }
0x14e6   :  { %v5155_v41 = vrot.slane %v11192_v33, %v11786_v38 }
0x14e8   :  { %v11215_v30 = vpop.xlane.xlu0 %4987  ;;  %v5156_v55 = vsel %vm954_vm3, %v5155_v41, %v5151_v23  ;;  %v11365_v41 = vadd.f32 %v11352_v2, %v5993_v21 }
0x14e9   :  { %v11223_v15 = vpop.xlane.xlu1 %4942  ;;  %v5160_v36 = vrot.slane %v11215_v30, %v11787_v43 }
0x14ea   :  { %v5092_v44 = vrot.slane %v11223_v15, %v11786_v38  ;;  %v5088_v15 = vrot.slane %v11183_v53, %v11787_v43  ;;  %v5999_v54 = vsel %vm1169_vm11, %v11365_v41, -inf }
0x14ec   :  { %v4946_v22 = vpop.xlane.xlu0 %4945  ;;  %v5093_v62 = vsel %vm954_vm3, %v5092_v44, %v5088_v15 }
0x14ed   :  { %v11243_v25 = vpop.xlane.xlu1 %4990  ;;  %v5097_v45 = vrot.slane %v4946_v22, %v11787_v43  ;;  %v5188_v27 = vsel %vm1099_vm8, %v5093_v62, %v5187_v10 }
0x14ee   :  { %v5164_v19 = vrot.slane %v11243_v25, %v11786_v38 }
0x14f0   :  { %v4994_v56 = vpop.xlane.xlu0 %4993  ;;  %v5165_v58 = vsel %vm954_vm3, %v5164_v19, %v5160_v36 }
0x14f1   :  { %v4949_v47 = vpop.xlane.xlu1 %4948  ;;  %v5169_v17 = vrot.slane %v4994_v56, %v11787_v43  ;;  %v5194_v56 = vsel %vm1097_vm7, %v5156_v55, %v5193_v26 }
0x14f2   :  { %v5101_v52 = vrot.slane %v4949_v47, %v11786_v38  ;;  %v5195_v29 = vsel %vm1099_vm8, %v5165_v58, %v5194_v56 }
0x14f4   :  { %v4952_v16 = vpop.xlane.xlu0 %4951  ;;  %v5102_v8 = vsel %vm954_vm3, %v5101_v52, %v5097_v45  ;;  %v11355_v52 = vadd.f32 %v11352_v2, %v5992_v0 }
0x14f5   :  { %v4997_v12 = vpop.xlane.xlu1 %4996  ;;  %v5106_v4 = vrot.slane %v4952_v16, %v11787_v43  ;;  %v5189_v7 = vsel %vm1101_vm9, %v5102_v8, %v5188_v27  ;;  %v11791_v16 = vld [vmem:[#allocation5_spill] sm:$0xff] }
0x14f6   :  { %v5173_v33 = vrot.slane %v4997_v12, %v11786_v38  ;;  %v5996_v28 = vsel %vm1169_vm11, %v11355_v52, -inf }
0x14f8   :  { %v5000_v53 = vpop.xlane.xlu0 %4999  ;;  %v5174_v51 = vsel %vm954_vm3, %v5173_v33, %v5169_v17 }
0x14f9   :  { %v4955_v22 = vpop.xlane.xlu1 %4954  ;;  %v5178_v47 = vrot.slane %v5000_v53, %v11787_v43  ;;  %v5196_v60 = vsel %vm1101_vm9, %v5174_v51, %v5195_v29 }
0x14fa   :  { %v5110_v25 = vrot.slane %v4955_v22, %v11786_v38 }
0x14fc   :  { %v5111_v30 = vsel %vm954_vm3, %v5110_v25, %v5106_v4  ;;  %v11328_v31 = vpop.xlane.xlu0 %6240 }
0x14fd   :  { %v5003_v49 = vpop.xlane.xlu1 %5002  ;;  %v5190_v40 = vsel %vm1103_vm10, %v5111_v30, %v5189_v7  ;;  %v6374_v26 = vrot.slane %v11328_v31, %v11787_v43 }
0x14fe   :  { %v5182_v46 = vrot.slane %v5003_v49, %v11786_v38  ;;  %v5241_v20 = vadd.f32 %v11789_v48, %v5190_v40 }
0x1500   :  { %v5183_v35 = vsel %vm954_vm3, %v5182_v46, %v5178_v47  ;;  %v6247_v13 = vpop.xlane.xlu0 %6246  ;;  %v5247_v50 = vmul.f32 0.17677669, %v5241_v20 }
0x1501   :  { %v6244_v14 = vpop.xlane.xlu1 %6243  ;;  %v5197_v9 = vsel %vm1103_vm10, %v5183_v35, %v5196_v60  ;;  %v6383_v58 = vrot.slane %v6247_v13, %v11787_v43 }
0x1502   :  { %v11344_v44 = vadd.f32 %v11077_v24, %v5247_v50  ;;  %v5244_v6 = vadd.f32 %v11791_v16, %v5197_v9  ;;  %v6378_v7 = vrot.slane %v6244_v14, %v11786_v38 }
0x1504   :  { %v6289_v5 = vpop.xlane.xlu0 %6288  ;;  %v5251_v57 = vsel %vm1169_vm11, %v11344_v44, -inf  ;;  %v5248_v12 = vmul.f32 0.17677669, %v5244_v6  ;;  %v6379_v46 = vsel %vm954_vm3, %v6378_v7, %v6374_v26 }
0x1505   :  { %v6250_v3 = vpop.xlane.xlu1 %6249  ;;  %5252 = vmax.xlane.f32.xlu0 %v5251_v57  ;;  %v6446_v48 = vrot.slane %v6289_v5, %v11787_v43 }
0x1506   :  { %v11358_v18 = vadd.f32 %v11077_v24, %v5248_v12  ;;  %v6387_v27 = vrot.slane %v6250_v3, %v11786_v38 }
0x1508   :  { %v6295_v15 = vpop.xlane.xlu0 %6294  ;;  %v5254_v63 = vsel %vm1169_vm11, %v11358_v18, -inf  ;;  %v6388_v51 = vsel %vm954_vm3, %v6387_v27, %v6383_v58 }
0x1509   :  { %v6292_v45 = vpop.xlane.xlu1 %6291  ;;  %5997 = vmax.xlane.f32.xlu0 %v5996_v28  ;;  %5255 = vmax.xlane.f32.xlu1 %v5254_v63  ;;  %v6515_v29 = vsel %vm1091_vm4, %v6388_v51, %v6379_v46  ;;  %v6455_v35 = vrot.slane %v6295_v15, %v11787_v43 }
0x150a   :  { %v6450_v49 = vrot.slane %v6292_v45, %v11786_v38 }
0x150c   :  { %v6253_v34 = vpop.xlane.xlu0 %6252  ;;  %v6451_v13 = vsel %vm954_vm3, %v6450_v49, %v6446_v48  ;;  %v11792_v48 = vld [vmem:[#allocation13_spill] sm:$0xff] }
0x150d   :  { %v6298_v62 = vpop.xlane.xlu1 %6297  ;;  %6000 = vmax.xlane.f32.xlu1 %v5999_v54  ;;  %v6392_v37 = vrot.slane %v6253_v34, %v11787_v43 }
0x150e   :  { %v6459_v20 = vrot.slane %v6298_v62, %v11786_v38 }
0x1510   :  { %v6301_v24 = vpop.xlane.xlu0 %6300  ;;  %v6460_v57 = vsel %vm954_vm3, %v6459_v20, %v6455_v35 }
0x1511   :  { %v6256_v19 = vpop.xlane.xlu1 %6255  ;;  %v6464_v12 = vrot.slane %v6301_v24, %v11787_v43 }
0x1512   :  { %v6396_v30 = vrot.slane %v6256_v19, %v11786_v38 }
0x1514   :  { %v6259_v53 = vpop.xlane.xlu0 %6258  ;;  %v6397_v31 = vsel %vm954_vm3, %v6396_v30, %v6392_v37 }
0x1515   :  { %v6304_v32 = vpop.xlane.xlu1 %6303  ;;  %v6401_v0 = vrot.slane %v6259_v53, %v11787_v43  ;;  %v6516_v21 = vsel %vm1093_vm5, %v6397_v31, %v6515_v29 }
0x1516   :  { %v6468_v50 = vrot.slane %v6304_v32, %v11786_v38 }
0x1518   :  { %v6307_v23 = vpop.xlane.xlu0 %6306  ;;  %v6469_v34 = vsel %vm954_vm3, %v6468_v50, %v6464_v12 }
0x1519   :  { %v6262_v8 = vpop.xlane.xlu1 %6261  ;;  %v6473_v15 = vrot.slane %v6307_v23, %v11787_v43 }
0x151a   :  { %v6405_v56 = vrot.slane %v6262_v8, %v11786_v38 }
0x151c   :  { %v6265_v33 = vpop.xlane.xlu0 %6264  ;;  %v6406_v14 = vsel %vm954_vm3, %v6405_v56, %v6401_v0 }
0x151d   :  { %v6310_v22 = vpop.xlane.xlu1 %6309  ;;  %v6410_v9 = vrot.slane %v6265_v33, %v11787_v43  ;;  %v6517_v54 = vsel %vm1095_vm6, %v6406_v14, %v6516_v21 }
0x151e   :  { %v6477_v16 = vrot.slane %v6310_v22, %v11786_v38 }
0x1520   :  { %v6313_v10 = vpop.xlane.xlu0 %6312  ;;  %v6478_v53 = vsel %vm954_vm3, %v6477_v16, %v6473_v15 }
0x1521   :  { %v6268_v36 = vpop.xlane.xlu1 %6267  ;;  %v6482_v32 = vrot.slane %v6313_v10, %v11787_v43 }
0x1522   :  { %v6414_v60 = vrot.slane %v6268_v36, %v11786_v38 }
0x1524   :  { %v6271_v4 = vpop.xlane.xlu0 %6270  ;;  %v6415_v28 = vsel %vm954_vm3, %v6414_v60, %v6410_v9 }
0x1525   :  { %v6316_v25 = vpop.xlane.xlu1 %6315  ;;  %v6419_v3 = vrot.slane %v6271_v4, %v11787_v43  ;;  %v6518_v22 = vsel %vm1097_vm7, %v6415_v28, %v6517_v54 }
0x1526   :  { %v6486_v63 = vrot.slane %v6316_v25, %v11786_v38 }
0x1528   :  { %v6319_v42 = vpop.xlane.xlu0 %6318  ;;  %v6487_v27 = vsel %vm954_vm3, %v6486_v63, %v6482_v32 }
0x1529   :  { %v6274_v55 = vpop.xlane.xlu1 %6273  ;;  %v6491_v36 = vrot.slane %v6319_v42, %v11787_v43 }
0x152a   :  { %v6423_v59 = vrot.slane %v6274_v55, %v11786_v38  ;;  %v6522_v55 = vsel %vm1091_vm4, %v6460_v57, %v6451_v13 }
0x152c   :  { %v6277_v17 = vpop.xlane.xlu0 %6276  ;;  %v6424_v62 = vsel %vm954_vm3, %v6423_v59, %v6419_v3  ;;  %v11793_v59 = vld [vmem:[#allocation19_spill] sm:$0xff] }
0x152d   :  { %v6322_v11 = vpop.xlane.xlu1 %6321  ;;  %v6428_v45 = vrot.slane %v6277_v17, %v11787_v43  ;;  %v6519_v17 = vsel %vm1099_vm8, %v6424_v62, %v6518_v22 }
0x152e   :  { %v6495_v24 = vrot.slane %v6322_v11, %v11786_v38  ;;  %v6523_v11 = vsel %vm1093_vm5, %v6469_v34, %v6522_v55 }
0x152f   :  { %v6524_v26 = vsel %vm1095_vm6, %v6478_v53, %v6523_v11 }
0x1530   :  { %v6325_v40 = vpop.xlane.xlu0 %6324  ;;  %v6496_v58 = vsel %vm954_vm3, %v6495_v24, %v6491_v36 }
0x1531   :  { %v6280_v47 = vpop.xlane.xlu1 %6279  ;;  %v6500_v10 = vrot.slane %v6325_v40, %v11787_v43  ;;  %v6525_v40 = vsel %vm1097_vm7, %v6487_v27, %v6524_v26 }
0x1532   :  { %v6432_v6 = vrot.slane %v6280_v47, %v11786_v38  ;;  %v6526_v29 = vsel %vm1099_vm8, %v6496_v58, %v6525_v40  ;;  %v11796_v40 = vld [vmem:[#allocation18_spill] sm:$0xff] }
0x1534   :  { %v6283_v1 = vpop.xlane.xlu0 %6282  ;;  %v6433_v23 = vsel %vm954_vm3, %v6432_v6, %v6428_v45 }
0x1535   :  { %v6328_v5 = vpop.xlane.xlu1 %6327  ;;  %v6437_v4 = vrot.slane %v6283_v1, %v11787_v43  ;;  %v6520_v7 = vsel %vm1101_vm9, %v6433_v23, %v6519_v17 }
0x1536   :  { %v6504_v8 = vrot.slane %v6328_v5, %v11786_v38 }
0x1538   :  { %v6331_v19 = vpop.xlane.xlu0 %6330  ;;  %v6505_v51 = vsel %vm954_vm3, %v6504_v8, %v6500_v10 }
0x1539   :  { %v6286_v33 = vpop.xlane.xlu1 %6285  ;;  %v6509_v47 = vrot.slane %v6331_v19, %v11787_v43  ;;  %v6527_v0 = vsel %vm1101_vm9, %v6505_v51, %v6526_v29 }
0x153a   :  { %v6441_v25 = vrot.slane %v6286_v33, %v11786_v38 }
0x153c   :  { %v6442_v42 = vsel %vm954_vm3, %v6441_v25, %v6437_v4  ;;  %v4619_v30 = vpop.xlane.xlu0 %4618 }
0x153d   :  { %v4623_v49 = vsub.f32 %v11080_v61, %v4619_v30  ;;  %v6334_v37 = vpop.xlane.xlu1 %6333  ;;  %v6521_v56 = vsel %vm1103_vm10, %v6442_v42, %v6520_v7 }
0x153e   :  { %v6513_v46 = vrot.slane %v6334_v37, %v11786_v38  ;;  %v6572_v20 = vadd.f32 %v11792_v48, %v6521_v56  ;;  %v11794_v37 = vmov 0.0   ;;  %v11795_v56 = vld [vmem:[#allocation21_spill] sm:$0xff] }
0x153f   :  { %v4625_v31 = vmul.f32 1.442695, %v4623_v49 }
0x1540   :  { %v6514_v60 = vsel %vm954_vm3, %v6513_v46, %v6509_v47  ;;  %v6578_v35 = vmul.f32 0.17677669, %v6572_v20 }
0x1541   :  { %8287 = vpow2.f32 %v4625_v31  ;;  %v4622_v61 = vpop.xlane.xlu1 %4621  ;;  %v6528_v13 = vsel %vm1103_vm10, %v6514_v60, %v6527_v0 }
0x1542   :  { %v4624_v50 = vsub.f32 %v11092_v39, %v4622_v61  ;;  %v6580_v43 = vadd.f32 %v11352_v2, %v6578_v35  ;;  %v6575_v38 = vadd.f32 %v11793_v59, %v6528_v13 }
0x1544   :  { %v4627_v1 = vmul.f32 1.442695, %v4624_v50  ;;  %v6582_v14 = vsel %vm1169_vm11, %v6580_v43, -inf  ;;  %v6579_v9 = vmul.f32 0.17677669, %v6575_v38 }
0x1545   :  { %6583 = vmax.xlane.f32.xlu0 %v6582_v14 }
0x1546   :  { %8289 = vpow2.f32 %v4627_v1  ;;  %v6581_v16 = vadd.f32 %v11352_v2, %v6579_v9 }
0x1548   :  { %v6585_v6 = vsel %vm1169_vm11, %v6581_v16, -inf }
0x1549   :  { %6586 = vmax.xlane.f32.xlu1 %v6585_v6 }
0x154b   :  { %v8288_v5 = vpop.eup %8287 }
0x154c   :  { %v4629_v57 = vsel %vm1169_vm11, %v8288_v5, 0.0 }
0x154d   :  { %4630 = vadd.xlane.f32.xlu0 %v4629_v57 }
0x1550   :  { %v8290_v39 = vpop.eup %8289 }
0x1551   :  { %v4632_v12 = vsel %vm1169_vm11, %v8290_v39, 0.0 }
0x1552   :  { %4633 = vadd.xlane.f32.xlu1 %v4632_v12 }
0x1592   :  { %v5253_v21 = vpop.xlane.xlu0 %5252 }
0x1593   :  { %v5257_v3 = vsub.f32 %v11344_v44, %v5253_v21 }
0x1595   :  { %v5259_v54 = vmul.f32 1.442695, %v5257_v3 }
0x1596   :  { %v5256_v15 = vpop.xlane.xlu1 %5255  ;;  %v5998_v28 = vpop.xlane.xlu0 %5997 }
0x1597   :  { %v5258_v63 = vsub.f32 %v11358_v18, %v5256_v15  ;;  %v6002_v2 = vsub.f32 %v11355_v52, %v5998_v28  ;;  %v8195_v28 = vld [vmem:[%s11624_s10 + $0x20] sm:$0xff]  }
0x1598   :  { %7717 = vmatprep.subr.bf16.mxu0 %v8195_v28 }
0x1599   :  { %v5261_v45 = vmul.f32 1.442695, %v5258_v63  ;;  %v6004_v34 = vmul.f32 1.442695, %v6002_v2  ;;  %v8196_v63 = vld [vmem:[%s11624_s10 + $0x28] sm:$0xff]   ;;  %7718 = vmatpush3.bf16.msra.mxu0 %v8195_v28  ;;  %v8197_v2 = vld [vmem:[%s11624_s10 + $0x30] sm:$0xff]  }
0x159a   :  { %v6001_v62 = vpop.xlane.xlu1 %6000  ;;  %7719 = vmatprep.subr.bf16.mxu0 %v8196_v63 }
0x159b   :  { %8291 = vpow2.f32 %v5261_v45  ;;  %v6003_v24 = vsub.f32 %v11365_v41, %v6001_v62 }
0x159c   :  { %8293 = vpow2.f32 %v6004_v34 }
0x159d   :  { %v6006_v19 = vmul.f32 1.442695, %v6003_v24  ;;  %8295 = vpow2.f32 %v5259_v54  ;;  %7720 = vmatpush3.bf16.msra.mxu0 %v8196_v63 }
0x159e   :  { %7721 = vmatprep.subr.bf16.mxu0 %v8197_v2 }
0x159f   :  { %8297 = vpow2.f32 %v6006_v19 }
0x15a1   :  { %7722 = vmatpush3.bf16.msra.mxu0 %v8197_v2 }
0x15a5   :  { %v8292_v53 = vpop.eup %8291 }
0x15a6   :  { %v11446_v32 = vpop.eup %8293  ;;  %v5266_v44 = vsel %vm1169_vm11, %v8292_v53, 0.0 }
0x15a7   :  { %5267 = vadd.xlane.f32.xlu1 %v5266_v44  ;;  %v6008_v52 = vsel %vm1169_vm11, %v11446_v32, 0.0  ;;  %v8296_v18 = vpop.eup %8295 }
0x15a8   :  { %6009 = vadd.xlane.f32.xlu0 %v6008_v52  ;;  %v5263_v41 = vsel %vm1169_vm11, %v8296_v18, 0.0  ;;  %v8198_v52 = vld [vmem:[%s11624_s10 + $0x38] sm:$0xff]  }
0x15a9   :  { %v8298_v23 = vpop.eup %8297  ;;  %7723 = vmatprep.subr.bf16.mxu0 %v8198_v52 }
0x15aa   :  { %v6011_v8 = vsel %vm1169_vm11, %v8298_v23, 0.0  ;;  %7724 = vmatpush3.bf16.msra.mxu0 %v8198_v52  ;;  %v8202_v52 = vld [vmem:[%s11628_s14 + $0x38] sm:$0xff]  }
0x15ab   :  { %6012 = vadd.xlane.f32.xlu1 %v6011_v8 }
0x15ac   :  { %5264 = vadd.xlane.f32.xlu0 %v5263_v41 }
0x15d2   :  { %v6584_v33 = vpop.xlane.xlu0 %6583 }
0x15d3   :  { %v6588_v22 = vsub.f32 %v6580_v43, %v6584_v33 }
0x15d5   :  { %v6590_v36 = vmul.f32 1.442695, %v6588_v22 }
0x15d6   :  { %v6587_v4 = vpop.xlane.xlu1 %6586 }
0x15d7   :  { %8299 = vpow2.f32 %v6590_v36  ;;  %v6589_v25 = vsub.f32 %v6581_v16, %v6587_v4 }
0x15d9   :  { %v6592_v55 = vmul.f32 1.442695, %v6589_v25 }
0x15da   :  { %v4631_v27 = vpop.xlane.xlu0 %4630 }
0x15db   :  { %8301 = vpow2.f32 %v6592_v55 }
0x15dc   :  { %8303 = vrcp.f32 %v4631_v27 }
0x15df   :  { %v4634_v17 = vpop.xlane.xlu1 %4633 }
0x15e0   :  { %8305 = vrcp.f32 %v4634_v17 }
0x15e1   :  { %v8300_v10 = vpop.eup %8299 }
0x15e2   :  { %v6594_v11 = vsel %vm1169_vm11, %v8300_v10, 0.0 }
0x15e3   :  { %6595 = vadd.xlane.f32.xlu0 %v6594_v11 }
0x15e5   :  { %v8302_v58 = vpop.eup %8301 }
0x15e6   :  { %v6597_v7 = vsel %vm1169_vm11, %v8302_v58, 0.0  ;;  %v8304_v42 = vpop.eup %8303 }
0x15e7   :  { %6598 = vadd.xlane.f32.xlu1 %v6597_v7  ;;  %v4637_v26 = vmul.f32 %v8304_v42, %v8288_v5 }
0x15ea   :  { %v8306_v30 = vpop.eup %8305 }
0x15eb   :  { %v4638_v51 = vmul.f32 %v8306_v30, %v8290_v39  ;;  %v7438_v30 = vld [vmem:[%s11625_s11 + $0x1] ss:$0 sm:$0xff] }
0x15ed   :  { %v4639_v49 = vpack.c.bf16 %v4638_v51, %v4637_v26 }
0x15ef   :  { %7678 = vmatmul.mubr.msk.bf16.vlgmr.msra.gmra.mrb[32].mxu1 %vm1169_vm11, %v4639_v49 }
0x15f0   :  { %7689 = vmatprep.mubr.msk.bf16.mxu1 %vm8405_vm1, %v11794_v37 }
0x15f8   :  { %6606 = vrot.lane.b32.xlu1 %v11795_v56, %s8409_s1 }
0x15f9   :  { %5275 = vrot.lane.b32.xlu0 %v11796_v40, %s8409_s1 }
0x1634   :  { %v5268_v48 = vpop.xlane.xlu1 %5267 }
0x1635   :  { %v6010_v47 = vpop.xlane.xlu0 %6009 }
0x1638   :  { %v6013_v20 = vpop.xlane.xlu1 %6012 }
0x1639   :  { %v5265_v46 = vpop.xlane.xlu0 %5264 }
0x163a   :  { %8307 = vrcp.f32 %v5265_v46  ;;  %v11797_v46 = vld [vmem:[#allocation23_spill] sm:$0xff] }
0x163b   :  { %8309 = vrcp.f32 %v5268_v48 }
0x163c   :  { %8311 = vrcp.f32 %v6013_v20 }
0x163d   :  { %8313 = vrcp.f32 %v6010_v47 }
0x1644   :  { %v8308_v29 = vpop.eup %8307 }
0x1645   :  { %v8310_v0 = vpop.eup %8309  ;;  %v5271_v60 = vmul.f32 %v8308_v29, %v8296_v18  ;;  %v11798_v29 = vld [vmem:[#allocation14_spill] sm:$0xff] }
0x1646   :  { %v5272_v35 = vmul.f32 %v8310_v0, %v8292_v53  ;;  %v8312_v43 = vpop.eup %8311  ;;  %v11799_v0 = vld [vmem:[#allocation25_spill] sm:$0xff] }
0x1647   :  { %v8314_v59 = vpop.eup %8313  ;;  %v6017_v38 = vmul.f32 %v8312_v43, %v8298_v23 }
0x1648   :  { %v5273_v50 = vpack.c.bf16 %v5272_v35, %v5271_v60  ;;  %v6016_v1 = vmul.f32 %v8314_v59, %v11446_v32 }
0x164a   :  { %v6018_v14 = vpack.c.bf16 %v6017_v38, %v6016_v1 }
0x1670   :  { %v6596_v31 = vpop.xlane.xlu0 %6595 }
0x1674   :  { %v6599_v61 = vpop.xlane.xlu1 %6598  ;;  %v5276_v13 = vpop.permute.xlu0 %5275 }
0x1675   :  { %8315 = vrcp.f32 %v6599_v61  ;;  %7688 = vmatpush3.bf16.msra.mxu1 %v5276_v13  ;;  %v11800_v61 = vld [vmem:[#allocation15_spill] sm:$0xff] }
0x1676   :  { %7699 = vmatprep.subr.bf16.mxu1 %v11794_v37  ;;  %8317 = vrcp.f32 %v6596_v31 }
0x1678   :  { %7690 = vmatmul.mubr.msk.bf16.vlgmr.msra.gmra.mrb[36].mxu1 %vm1169_vm11, %v5273_v50  ;;  %v6607_v16 = vpop.permute.xlu1 %6606 }
0x1679   :  { %7700 = vmatpush3.bf16.msra.mxu1 %v11795_v56  ;;  %7701 = vmatprep.mubr.msk.bf16.mxu1 %vm8405_vm1, %v11794_v37 }
0x167a   :  { %7711 = vmatprep.subr.bf16.mxu1 %v11794_v37 }
0x167f   :  { %v8316_v9 = vpop.eup %8315 }
0x1680   :  { %7702 = vmatmul.mubr.msk.bf16.vlgmr.msra.gmra.mrb[40].mxu1 %vm1169_vm11, %v6018_v14  ;;  %v8318_v6 = vpop.eup %8317  ;;  %v6603_v5 = vmul.f32 %v8316_v9, %v8302_v58 }
0x1681   :  { %7712 = vmatpush3.bf16.msra.mxu1 %v6607_v16  ;;  %7713 = vmatprep.mubr.msk.bf16.mxu1 %vm8405_vm1, %v11794_v37  ;;  %v6602_v57 = vmul.f32 %v8318_v6, %v8300_v10 }
0x1683   :  { %v6604_v39 = vpack.c.bf16 %v6603_v5, %v6602_v57 }
0x1688   :  { %7714 = vmatmul.mubr.msk.bf16.vlgmr.msra.gmra.mrb[44].mxu1 %vm1169_vm11, %v6604_v39 }
0x16c2   :  { %v4677_v12 = vpop.f32.mrb[32].mxu1 }
0x16c3   :  { %v7679_v21 = vpop.f32.mrb[33].mxu1 }
0x16c4   :  { %v4680_v3 = vpop.f32.mrb[34].mxu1 }
0x16c5   :  { %v7680_v15 = vpop.f32.mrb[35].mxu1 }
0x174b   :  { %v5315_v45 = vpop.f32.mrb[36].mxu1 }
0x174c   :  { %v7691_v34 = vpop.f32.mrb[37].mxu1 }
0x174d   :  { %v5318_v54 = vpop.f32.mrb[38].mxu1 }
0x174e   :  { %v8113_v62 = vpack.i.bf16 %v5318_v54, %v5315_v45  ;;  %v7692_v24 = vpop.f32.mrb[39].mxu1 }
0x174f   :  { %v8199_v24 = vld [vmem:[%s11628_s14 + $0x20] sm:$0xff]  }
0x1750   :  { %8114 = vrot.lane.b32.xlu1 %v8113_v62, %s8408_s23  ;;  %7729 = vmatprep.subr.bf16.mxu1 %v8199_v24 }
0x1751   :  { %7730 = vmatpush3.bf16.msra.mxu1 %v8199_v24 }
0x1753   :  { %v6056_v19 = vpop.f32.mrb[40].mxu1 }
0x1754   :  { %v7703_v53 = vpop.f32.mrb[41].mxu1 }
0x1755   :  { %v6059_v32 = vpop.f32.mrb[42].mxu1  ;;  %v8201_v53 = vld [vmem:[%s11628_s14 + $0x30] sm:$0xff]  }
0x1756   :  { %v7704_v44 = vpop.f32.mrb[43].mxu1 }
0x1757   :  { %v8204_v44 = vld [vmem:[%s11630_s16 + $0x48] sm:$0xff]  }
0x175b   :  { %v6646_v18 = vpop.f32.mrb[44].mxu1 }
0x175c   :  { %v7715_v23 = vpop.f32.mrb[45].mxu1 }
0x175d   :  { %v6649_v8 = vpop.f32.mrb[46].mxu1 }
0x175e   :  { %v8118_v41 = vpack.i.bf16 %v6649_v8, %v6646_v18  ;;  %v7716_v33 = vpop.f32.mrb[47].mxu1 }
0x1760   :  { %8119 = vrot.lane.b32.xlu0 %v8118_v41, %s8408_s23 }
0x17c2   :  { %v8115_v22 = vpop.permute.xlu1 %8114 }
0x17c3   :  { %v8117_v36 = vunpack.i.h.bf16 %v8115_v22  ;;  %v8116_v4 = vunpack.i.l.bf16 %v8115_v22 }
0x17c5   :  { %v5331_v25 = vsel %vm814_vm2, %v4680_v3, %v8117_v36  ;;  %v5330_v55 = vsel %vm814_vm2, %v4677_v12, %v8116_v4 }
0x17c6   :  { %v6672_v27 = vpack.c.bf16 %v5331_v25, %v5330_v55 }
0x17c8   :  { %7725 = vmatprep.mubr.msk.bf16.mxu0 %vm76_vm0, %v6672_v27 }
0x17d2   :  { %v8120_v17 = vpop.permute.xlu0 %8119 }
0x17d3   :  { %v8122_v10 = vunpack.i.h.bf16 %v8120_v17  ;;  %v8121_v11 = vunpack.i.l.bf16 %v8120_v17 }
0x17d5   :  { %v6662_v58 = vsel %vm814_vm2, %v6059_v32, %v8122_v10  ;;  %v6661_v7 = vsel %vm814_vm2, %v6056_v19, %v8121_v11  ;;  %v8200_v19 = vld [vmem:[%s11628_s14 + $0x28] sm:$0xff]   ;;  %v8203_v32 = vld [vmem:[%s11630_s16 + $0x40] sm:$0xff]  }
0x17d6   :  { %v6673_v42 = vpack.c.bf16 %v6662_v58, %v6661_v7  ;;  %7731 = vmatprep.subr.bf16.mxu1 %v8200_v19  ;;  %7741 = vmatprep.subr.bf16.mxu0 %v8203_v32  ;;  %v7445_v11 = vld [vmem:[%s11626_s12 + $0x1] ss:$0 sm:$0xff] }
0x17d7   :  { %7732 = vmatpush3.bf16.msra.mxu1 %v8200_v19 }
0x17d8   :  { %7726 = vmatmul.mubr.msk.bf16.vlgmr.msra.gmra.mrb[44].mxu0 %vm76_vm0, %v6673_v42  ;;  %7733 = vmatprep.subr.bf16.mxu1 %v8201_v53 }
0x17d9   :  { %7742 = vmatpush3.bf16.msra.mxu0 %v8203_v32 }
0x17da   :  { %7743 = vmatprep.subr.bf16.mxu0 %v8204_v44 }
0x17db   :  { %7734 = vmatpush3.bf16.msra.mxu1 %v8201_v53 }
0x17dc   :  { %7735 = vmatprep.subr.bf16.mxu1 %v8202_v52 }
0x17dd   :  { %7744 = vmatpush3.bf16.msra.mxu0 %v8204_v44 }
0x17df   :  { %7736 = vmatpush3.bf16.msra.mxu1 %v8202_v52 }
0x18ab   :  { %v7727_v26 = vpop.f32.mrb[44].mxu0 }
0x18ac   :  { %v6743_v51 = vpop.f32.mrb[45].mxu0  ;;  %v6752_v47 = vadd.f32 %v7727_v26, %v7438_v30  ;;  %v7446_v26 = vld [vmem:[%s11627_s13 + $0x1] ss:$0 sm:$0xff] }
0x18ad   :  { %v6744_v49 = vadd.f32 %v7438_v30, %v6743_v51  ;;  %v7728_v37 = vpop.f32.mrb[46].mxu0 }
0x18ae   :  { %v6755_v56 = vadd.f32 %v7728_v37, %v7438_v30  ;;  %v6746_v40 = vpop.f32.mrb[47].mxu0  ;;  %v6760_v13 = vadd.f32 %v6752_v47, %v11800_v61  ;;  %v8206_v61 = vld [vmem:[%s11630_s16 + $0x58] sm:$0xff]  }
0x18af   :  { %v6758_v48 = vadd.f32 %v6744_v49, %v11797_v46  ;;  %v6747_v20 = vadd.f32 %v7438_v30, %v6746_v40 }
0x18b0   :  { %v6761_v31 = vadd.f32 %v6755_v56, %v11798_v29  ;;  %v6770_v59 = vsel %vm76_vm0, %v6760_v13, 0.0 }
0x18b1   :  { %v6759_v60 = vadd.f32 %v6747_v20, %v11799_v0  ;;  %v6764_v35 = vsel %vm76_vm0, %v6758_v48, 0.0 }
0x18b2   :  { %6765 = vadd.xlane.f32.xlu1 %v6764_v35  ;;  %v6773_v43 = vsel %vm76_vm0, %v6761_v31, 0.0  ;;  %v8205_v35 = vld [vmem:[%s11630_s16 + $0x50] sm:$0xff]  }
0x18b3   :  { %v6767_v50 = vsel %vm76_vm0, %v6759_v60, 0.0  ;;  %7745 = vmatprep.subr.bf16.mxu0 %v8205_v35 }
0x18b4   :  { %6768 = vadd.xlane.f32.xlu0 %v6767_v50  ;;  %7746 = vmatpush3.bf16.msra.mxu0 %v8205_v35  ;;  %v8208_v50 = vld [vmem:[%s11630_s16 + $0x68] sm:$0xff]  }
0x18b5   :  { %7747 = vmatprep.subr.bf16.mxu0 %v8206_v61 }
0x18b6   :  { %6774 = vadd.xlane.f32.xlu1 %v6773_v43  ;;  %v8209_v43 = vld [vmem:[%s11630_s16 + $0x70] sm:$0xff]  }
0x18b8   :  { %6771 = vadd.xlane.f32.xlu0 %v6770_v59  ;;  %7748 = vmatpush3.bf16.msra.mxu0 %v8206_v61  ;;  %v8210_v59 = vld [vmem:[%s11630_s16 + $0x78] sm:$0xff]  }
0x193f   :  { %v6766_v38 = vpop.xlane.xlu1 %6765 }
0x1940   :  { %v6776_v1 = vmul.f32 0.015625, %v6766_v38  ;;  %v7455_v38 = vld [vmem:[%s11629_s15 + $0x1] ss:$0 sm:$0xff] }
0x1941   :  { %v6769_v14 = vpop.xlane.xlu0 %6768 }
0x1942   :  { %v6780_v9 = vsub.f32 %v6758_v48, %v6776_v1  ;;  %v6777_v16 = vmul.f32 0.015625, %v6769_v14 }
0x1943   :  { %v6775_v6 = vpop.xlane.xlu1 %6774 }
0x1944   :  { %v6781_v5 = vsub.f32 %v6759_v60, %v6777_v16  ;;  %v6779_v57 = vmul.f32 0.015625, %v6775_v6  ;;  %v6784_v39 = vmul.f32 %v6780_v9, %v6780_v9 }
0x1945   :  { %v6772_v12 = vpop.xlane.xlu0 %6771 }
0x1946   :  { %v6783_v21 = vsub.f32 %v6761_v31, %v6779_v57  ;;  %v6778_v3 = vmul.f32 0.015625, %v6772_v12  ;;  %v6788_v15 = vsel %vm76_vm0, %v6784_v39, 0.0  ;;  %v6785_v28 = vmul.f32 %v6781_v5, %v6781_v5 }
0x1947   :  { %6789 = vadd.xlane.f32.xlu0 %v6788_v15 }
0x1948   :  { %v6782_v63 = vsub.f32 %v6760_v13, %v6778_v3  ;;  %v6791_v2 = vsel %vm76_vm0, %v6785_v28, 0.0  ;;  %v6787_v45 = vmul.f32 %v6783_v21, %v6783_v21  ;;  %v8207_v13 = vld [vmem:[%s11630_s16 + $0x60] sm:$0xff]  }
0x1949   :  { %6792 = vadd.xlane.f32.xlu1 %v6791_v2  ;;  %7749 = vmatprep.subr.bf16.mxu0 %v8207_v13 }
0x194a   :  { %v6786_v34 = vmul.f32 %v6782_v63, %v6782_v63  ;;  %v6797_v62 = vsel %vm76_vm0, %v6787_v45, 0.0  ;;  %7750 = vmatpush3.bf16.msra.mxu0 %v8207_v13 }
0x194b   :  { %7751 = vmatprep.subr.bf16.mxu0 %v8208_v50 }
0x194c   :  { %v6794_v54 = vsel %vm76_vm0, %v6786_v34, 0.0 }
0x194d   :  { %6795 = vadd.xlane.f32.xlu0 %v6794_v54  ;;  %6798 = vadd.xlane.f32.xlu1 %v6797_v62 }
0x194e   :  { %7752 = vmatpush3.bf16.msra.mxu0 %v8208_v50 }
0x194f   :  { %7753 = vmatprep.subr.bf16.mxu0 %v8209_v43 }
0x1952   :  { %7754 = vmatpush3.bf16.msra.mxu0 %v8209_v43 }
0x1953   :  { %7755 = vmatprep.subr.bf16.mxu0 %v8210_v59 }
0x1956   :  { %7756 = vmatpush3.bf16.msra.mxu0 %v8210_v59 }
0x19d4   :  { %v6790_v18 = vpop.xlane.xlu0 %6789 }
0x19d5   :  { %v6800_v23 = vmul.f32 0.015625, %v6790_v18 }
0x19d6   :  { %v6793_v8 = vpop.xlane.xlu1 %6792 }
0x19d7   :  { %v6804_v41 = vadd.f32 1e-12, %v6800_v23  ;;  %v6801_v33 = vmul.f32 0.015625, %v6793_v8 }
0x19d9   :  { %8319 = vrsqrt.f32 %v6804_v41  ;;  %v6805_v22 = vadd.f32 1e-12, %v6801_v33 }
0x19da   :  { %v6796_v36 = vpop.xlane.xlu0 %6795  ;;  %v6799_v4 = vpop.xlane.xlu1 %6798 }
0x19db   :  { %8321 = vrsqrt.f32 %v6805_v22  ;;  %v6802_v25 = vmul.f32 0.015625, %v6796_v36  ;;  %v6803_v55 = vmul.f32 0.015625, %v6799_v4  ;;  %v7478_v22 = vld [vmem:[%s11631_s17 + $0x1] ss:$0 sm:$0xff] }
0x19dd   :  { %v6806_v27 = vadd.f32 1e-12, %v6802_v25  ;;  %v6807_v17 = vadd.f32 1e-12, %v6803_v55 }
0x19df   :  { %8323 = vrsqrt.f32 %v6806_v27 }
0x19e0   :  { %8325 = vrsqrt.f32 %v6807_v17 }
0x19e3   :  { %v8320_v10 = vpop.eup %8319 }
0x19e4   :  { %v6812_v58 = vmul.f32 %v8320_v10, %v6780_v9 }
0x19e5   :  { %v8322_v7 = vpop.eup %8321 }
0x19e6   :  { %v6813_v42 = vmul.f32 %v8322_v7, %v6781_v5  ;;  %v6820_v30 = vmul.f32 %v7445_v11, %v6812_v58 }
0x19e8   :  { %v6821_v51 = vmul.f32 %v7445_v11, %v6813_v42  ;;  %v11532_v40 = vadd.f32 %v7446_v26, %v6820_v30 }
0x19e9   :  { %v8324_v49 = vpop.eup %8323 }
0x19ea   :  { %v8326_v37 = vpop.eup %8325  ;;  %v6814_v56 = vmul.f32 %v8324_v49, %v6782_v63  ;;  %v11534_v47 = vadd.f32 %v7446_v26, %v6821_v51 }
0x19eb   :  { %v6815_v46 = vmul.f32 %v8326_v37, %v6783_v21 }
0x19ec   :  { %v6822_v48 = vmul.f32 %v7445_v11, %v6814_v56  ;;  %v6841_v20 = vpack.c.bf16 %v11534_v47, %v11532_v40 }
0x19ed   :  { %v6823_v29 = vmul.f32 %v7445_v11, %v6815_v46 }
0x19ee   :  { %7737 = vmatprep.mubr.msk.bf16.mxu1 %vm76_vm0, %v6841_v20  ;;  %v11539_v31 = vadd.f32 %v7446_v26, %v6822_v48 }
0x19ef   :  { %v11541_v0 = vadd.f32 %v7446_v26, %v6823_v29 }
0x19f1   :  { %v6842_v60 = vpack.c.bf16 %v11541_v0, %v11539_v31 }
0x19f3   :  { %7738 = vmatmul.mubr.msk.bf16.vlgmr.msra.gmra.mrb[48].mxu1 %vm76_vm0, %v6842_v60 }
0x1ac6   :  { %v7739_v1 = vpop.f32.mrb[48].mxu1 }
0x1ac7   :  { %v6921_v14 = vadd.f32 %v7739_v1, %v7455_v38  ;;  %v6912_v9 = vpop.f32.mrb[49].mxu1 }
0x1ac8   :  { %v6913_v16 = vadd.f32 %v7455_v38, %v6912_v9  ;;  %v7740_v6 = vpop.f32.mrb[50].mxu1 }
0x1ac9   :  { %v6933_v5 = vmul.f32 0.70710677, %v6921_v14  ;;  %v6924_v57 = vadd.f32 %v7740_v6, %v7455_v38  ;;  %v6915_v39 = vpop.f32.mrb[51].mxu1  ;;  %v6929_v62 = vmul.f32 0.5, %v6921_v14  ;;  %v8212_v6 = vld [vmem:[%s11634_s20 + $0x8] sm:$0xff]  }
0x1aca   :  { %v6931_v12 = vmul.f32 0.70710677, %v6913_v16  ;;  %v6916_v21 = vadd.f32 %v7455_v38, %v6915_v39  ;;  %v6927_v53 = vmul.f32 0.5, %v6913_v16  ;;  %v8211_v16 = vld [vmem:[%s11634_s20] sm:$0xff]  }
0x1acb   :  { %8327 = verf.f32 %v6933_v5  ;;  %v6934_v3 = vmul.f32 0.70710677, %v6924_v57  ;;  %v6930_v24 = vmul.f32 0.5, %v6924_v57  ;;  %7761 = vmatprep.subr.bf16.mxu1 %v8211_v16  ;;  %v8213_v5 = vld [vmem:[%s11634_s20 + $0x10] sm:$0xff]   ;;  %v8214_v57 = vld [vmem:[%s11634_s20 + $0x18] sm:$0xff]  }
0x1acc   :  { %8329 = verf.f32 %v6931_v12  ;;  %v6932_v15 = vmul.f32 0.70710677, %v6916_v21  ;;  %v6928_v32 = vmul.f32 0.5, %v6916_v21  ;;  %7762 = vmatpush3.bf16.msra.mxu1 %v8211_v16 }
0x1acd   :  { %8331 = verf.f32 %v6934_v3  ;;  %7763 = vmatprep.subr.bf16.mxu1 %v8212_v6 }
0x1ace   :  { %8333 = verf.f32 %v6932_v15 }
0x1ad0   :  { %7764 = vmatpush3.bf16.msra.mxu1 %v8212_v6 }
0x1ad1   :  { %7765 = vmatprep.subr.bf16.mxu1 %v8213_v5 }
0x1ad4   :  { %7766 = vmatpush3.bf16.msra.mxu1 %v8213_v5 }
0x1ad5   :  { %v8328_v28 = vpop.eup %8327  ;;  %7767 = vmatprep.subr.bf16.mxu1 %v8214_v57 }
0x1ad6   :  { %v8330_v63 = vpop.eup %8329  ;;  %v6941_v2 = vadd.f32 1.0, %v8328_v28 }
0x1ad7   :  { %v8332_v45 = vpop.eup %8331  ;;  %v6939_v34 = vadd.f32 1.0, %v8330_v63 }
0x1ad8   :  { %v8334_v54 = vpop.eup %8333  ;;  %v6942_v19 = vadd.f32 1.0, %v8332_v45  ;;  %v6945_v52 = vmul.f32 %v6941_v2, %v6929_v62  ;;  %7768 = vmatpush3.bf16.msra.mxu1 %v8214_v57 }
0x1ad9   :  { %v6940_v44 = vadd.f32 1.0, %v8334_v54  ;;  %v6943_v23 = vmul.f32 %v6939_v34, %v6927_v53 }
0x1ada   :  { %v6946_v18 = vmul.f32 %v6942_v19, %v6930_v24  ;;  %v7487_v19 = vld [vmem:[%s11632_s18 + $0x1] ss:$0 sm:$0xff]  ;;  %s8410_s18 = smov [#allocation2]  }
0x1adb   :  { %v6944_v8 = vmul.f32 %v6940_v44, %v6928_v32  ;;  %s7240_s12 = sshll.u32 %s8410_s18, 4  ;;  %s7241_s12 = int_to_ptr.vmem [resolvable:$true] %s7240_s12 }
0x1adc   :  { %v6965_v41 = vpack.c.bf16 %v6946_v18, %v6945_v52  ;;  %p8384_p1 = scmp.lt.s32.totalorder %s7241_s12, %s7241_s12 }
0x1add   :  { %v6964_v33 = vpack.c.bf16 %v6944_v8, %v6943_v23  ;;  %v7488_v23 = vld [vmem:[%s11633_s19 + $0x1] ss:$0 sm:$0xff]  ;;  %s8379_s19 = scalar_lea.vmem %s7241_s12, 512 }
0x1ade   :  { %p8380_p0 = scmp.ne.s32.totalorder %s7241_s12, %s8379_s19  ;;  %p8385_p2 = scmp.lt.s32.totalorder %s8379_s19, %s8379_s19 }
0x1adf   :  { %7757 = vmatprep.mubr.bf16.mxu0 %v6964_v33 }
0x1ae0   :  { %7758 = vmatmul.mubr.bf16.vlgmr.msra.gmra.mrb[48].mxu0 %v6965_v41  ;;  %p8386_p3 = por %p8385_p2, %p8384_p1 }
0x1ae2   :  { %p8387_p4 = pnand %p8386_p3, %p8380_p0 }
0x1bb3   :  { %v7759_v36 = vpop.f32.mrb[48].mxu0 }
0x1bb4   :  { %v7053_v4 = vpop.f32.mrb[49].mxu0  ;;  %v7062_v25 = vadd.f32 %v7759_v36, %v7478_v22 }
0x1bb5   :  { %v7054_v55 = vadd.f32 %v7478_v22, %v7053_v4  ;;  %v7760_v27 = vpop.f32.mrb[50].mxu0 }
0x1bb6   :  { %v7056_v17 = vpop.f32.mrb[51].mxu0  ;;  %v7065_v11 = vadd.f32 %v7760_v27, %v7478_v22  ;;  %v7070_v7 = vadd.f32 %v7062_v25, %v11539_v31 }
0x1bb7   :  { %v7068_v10 = vadd.f32 %v7054_v55, %v11532_v40  ;;  %v7057_v58 = vadd.f32 %v7478_v22, %v7056_v17 }
0x1bb8   :  { %v7071_v26 = vadd.f32 %v7065_v11, %v11541_v0  ;;  %v7080_v49 = vsel %vm76_vm0, %v7070_v7, 0.0 }
0x1bb9   :  { %v7069_v42 = vadd.f32 %v7057_v58, %v11534_v47  ;;  %v7074_v30 = vsel %vm76_vm0, %v7068_v10, 0.0 }
0x1bba   :  { %7075 = vadd.xlane.f32.xlu0 %v7074_v30  ;;  %v7083_v37 = vsel %vm76_vm0, %v7071_v26, 0.0 }
0x1bbb   :  { %v7077_v51 = vsel %vm76_vm0, %v7069_v42, 0.0 }
0x1bbc   :  { %7078 = vadd.xlane.f32.xlu1 %v7077_v51 }
0x1bbe   :  { %7081 = vadd.xlane.f32.xlu0 %v7080_v49 }
0x1bc0   :  { %7084 = vadd.xlane.f32.xlu1 %v7083_v37 }
0x1c47   :  { %v7076_v56 = vpop.xlane.xlu0 %7075 }
0x1c48   :  { %v7086_v40 = vmul.f32 0.015625, %v7076_v56 }
0x1c49   :  { %v7079_v46 = vpop.xlane.xlu1 %7078 }
0x1c4a   :  { %v7090_v48 = vsub.f32 %v7068_v10, %v7086_v40  ;;  %v7087_v20 = vmul.f32 0.015625, %v7079_v46 }
0x1c4b   :  { %v7082_v47 = vpop.xlane.xlu0 %7081 }
0x1c4c   :  { %v7091_v29 = vsub.f32 %v7069_v42, %v7087_v20  ;;  %v7088_v31 = vmul.f32 0.015625, %v7082_v47  ;;  %v7094_v60 = vmul.f32 %v7090_v48, %v7090_v48 }
0x1c4d   :  { %v7085_v35 = vpop.xlane.xlu1 %7084 }
0x1c4e   :  { %v7092_v0 = vsub.f32 %v7070_v7, %v7088_v31  ;;  %v7089_v61 = vmul.f32 0.015625, %v7085_v35  ;;  %v7098_v13 = vsel %vm76_vm0, %v7094_v60, 0.0  ;;  %v7095_v50 = vmul.f32 %v7091_v29, %v7091_v29 }
0x1c4f   :  { %7099 = vadd.xlane.f32.xlu0 %v7098_v13 }
0x1c50   :  { %v7093_v43 = vsub.f32 %v7071_v26, %v7089_v61  ;;  %v7101_v59 = vsel %vm76_vm0, %v7095_v50, 0.0  ;;  %v7096_v38 = vmul.f32 %v7092_v0, %v7092_v0 }
0x1c51   :  { %7102 = vadd.xlane.f32.xlu1 %v7101_v59 }
0x1c52   :  { %v7104_v1 = vsel %vm76_vm0, %v7096_v38, 0.0  ;;  %v7097_v14 = vmul.f32 %v7093_v43, %v7093_v43 }
0x1c53   :  { %7105 = vadd.xlane.f32.xlu0 %v7104_v1 }
0x1c54   :  { %v7107_v9 = vsel %vm76_vm0, %v7097_v14, 0.0 }
0x1c55   :  { %7108 = vadd.xlane.f32.xlu1 %v7107_v9 }
0x1cdc   :  { %v7100_v39 = vpop.xlane.xlu0 %7099 }
0x1cdd   :  { %v7110_v12 = vmul.f32 0.015625, %v7100_v39 }
0x1cde   :  { %v7103_v21 = vpop.xlane.xlu1 %7102 }
0x1cdf   :  { %v7114_v3 = vadd.f32 1e-12, %v7110_v12  ;;  %v7111_v15 = vmul.f32 0.015625, %v7103_v21 }
0x1ce0   :  { %v7106_v28 = vpop.xlane.xlu0 %7105 }
0x1ce1   :  { %8335 = vrsqrt.f32 %v7114_v3  ;;  %v7115_v63 = vadd.f32 1e-12, %v7111_v15  ;;  %v7112_v2 = vmul.f32 0.015625, %v7106_v28 }
0x1ce2   :  { %v7109_v45 = vpop.xlane.xlu1 %7108 }
0x1ce3   :  { %8337 = vrsqrt.f32 %v7115_v63  ;;  %v7116_v34 = vadd.f32 1e-12, %v7112_v2  ;;  %v7113_v54 = vmul.f32 0.015625, %v7109_v45 }
0x1ce5   :  { %8339 = vrsqrt.f32 %v7116_v34  ;;  %v7117_v62 = vadd.f32 1e-12, %v7113_v54 }
0x1ce7   :  { %8341 = vrsqrt.f32 %v7117_v62 }
0x1ceb   :  { %v8336_v24 = vpop.eup %8335 }
0x1cec   :  { %v7122_v53 = vmul.f32 %v8336_v24, %v7090_v48 }
0x1ced   :  { %v8338_v32 = vpop.eup %8337 }
0x1cee   :  { %v7123_v44 = vmul.f32 %v8338_v32, %v7091_v29  ;;  %v7130_v52 = vmul.f32 %v7487_v19, %v7122_v53 }
0x1cef   :  { %v8340_v18 = vpop.eup %8339 }
0x1cf0   :  { %v7124_v8 = vmul.f32 %v8340_v18, %v7092_v0  ;;  %v7131_v41 = vmul.f32 %v7487_v19, %v7123_v44  ;;  %v7138_v4 = vadd.f32 %v7488_v23, %v7130_v52 }
0x1cf1   :  { %v8342_v33 = vpop.eup %8341 }
0x1cf2   :  { %v7132_v22 = vmul.f32 %v7487_v19, %v7124_v8  ;;  %v7125_v36 = vmul.f32 %v8342_v33, %v7093_v43  ;;  %v7139_v25 = vadd.f32 %v7488_v23, %v7131_v41 }
0x1cf4   :  { %v7133_v55 = vmul.f32 %v7487_v19, %v7125_v36  ;;  %v7142_v27 = vpack.c.bf16 %v7139_v25, %v7138_v4  ;;  %v7140_v17 = vadd.f32 %v7488_v23, %v7132_v22 }
0x1cf6   :  { %7769 = vmatprep.mubr.msk.bf16.mxu1 %vm76_vm0, %v7142_v27  ;;  %v7141_v10 = vadd.f32 %v7488_v23, %v7133_v55 }
0x1cf8   :  { %v7143_v11 = vpack.c.bf16 %v7141_v10, %v7140_v17 }
0x1cfa   :  { %7770 = vmatmul.mubr.msk.bf16.vlgmr.msra.gmra.mrb[52].mxu1 %vm76_vm0, %v7143_v11 }
0x1dcd   :  { %v7771_v58 = vpop.f32.mrb[52].mxu1 }
0x1dce   :  { %7233 = vst [vmem:[#allocation2 + $0x10] sm:$0xff] %v7771_v58  ;;  %v7216_v7 = vpop.f32.mrb[53].mxu1 }
0x1dcf   :  { %7231 = vst [vmem:[#allocation2] sm:$0xff] %v7216_v7  ;;  %v7772_v42 = vpop.f32.mrb[54].mxu1 }
0x1dd0   :  { %7234 = vst [vmem:[#allocation2 + $0x18] sm:$0xff] %v7772_v42  ;;  %v7219_v30 = vpop.f32.mrb[55].mxu1 }
0x1dd1   :  { %7232 = vst [vmem:[#allocation2 + $0x8] sm:$0xff] %v7219_v30 }
0x1dd2   :  { %8390 = shalt.err (!%p8387_p4)
}
0x1dd3   :  { %s8391_s7 = scalar_lea.hbm %s11635_s21, 512 }
0x1dd4   :  { %p8392_p5 = scmp.ne.s32.totalorder %s11635_s21, %s8391_s7  ;;  %p8395_p6 = scmp.lt.u32.totalorder %s8391_s7, %s11635_s21 }
0x1dd6   :  { %p8397_p7 = pnand %p8395_p6, %p8392_p5 }
0x1dd8   :  { %8400 = shalt.err (!%p8397_p7)
}
0x1dd9   :  { %s8411_s11 = smov 128   ;;  %s8412_s29 = smov 8  }
0x1dda   :  { %7246 = dma.vmem_to_hbm [thread:$0]  %s7241_s12, 512, %s11635_s21, [#allocation3], %s8411_s11, %s8411_s11, %s8412_s29  }
0x1ddb   :  { %8401 = dma.done.wait [#allocation3], 512  }
0x1ddc   :  { %8402 = vsyncadd [#allocation3], 4294966784 }
0x1ddd   :  { %7250 = vsyncpa [#allocation3], 1 }

</bundles_post_ra>
